<compile_context>
chip_gen: v7x
topology: tpu7x:2x2x1
jax: 0.10.0
libtpu: 0.0.40
codegen_flags: <defaults>
</compile_context>

<pallas_src>
import math
import functools

import jax
import jax.numpy as jnp
from jax import lax
from jax.experimental import pallas as pl
from jax.experimental.pallas import tpu as pltpu

# ------------------------- model hyperparameters -------------------------
B = 2            # batch
S_C = 8          # comment (decoder) sequence length
S_CODE = 16      # source-code encoder length
S_T = 8          # template encoder length
S_K = 8          # keywords encoder length
D = 32           # d_model
D_FF = 64        # d_ff
H = 4            # head_num
DH = D // H      # per-head dim
N_LAYERS = 2     # decoder_layer_num
VOCAB = 50       # comment vocab size
VOCAB_PAD = 128  # lane-dense padded vocab for the output slab
EMB_ROWS = 64    # padded embedding-table rows (>= VOCAB)
MAX_POS = 64     # positional-embedding table size
LN_EPS = 1e-5
NEG = -1000000.0  # mask value used by the d2l masked_softmax reference


# ----------------------------- kernel helpers -----------------------------
def _layer_norm(v, gamma, beta):
    mu = jnp.mean(v, axis=-1, keepdims=True)
    var = jnp.mean((v - mu) ** 2, axis=-1, keepdims=True)
    return (v - mu) * lax.rsqrt(var + LN_EPS) * gamma + beta


def _mha(q_proj, k_proj, v_proj, s_q, s_kv, masks):
    """q_proj: (B*s_q, D); k_proj/v_proj: (B*s_kv, D); masks: list of B (s_q,s_kv) bools."""
    out_rows = []
    for b in range(B):
        qb = q_proj[b * s_q:(b + 1) * s_q, :]
        kb = k_proj[b * s_kv:(b + 1) * s_kv, :]
        vb = v_proj[b * s_kv:(b + 1) * s_kv, :]
        mb = masks[b]
        heads = []
        for h in range(H):
            qh = qb[:, h * DH:(h + 1) * DH]
            kh = kb[:, h * DH:(h + 1) * DH]
            vh = vb[:, h * DH:(h + 1) * DH]
            sc = jnp.dot(qh, kh.T, preferred_element_type=jnp.float32)
            sc = sc * (1.0 / math.sqrt(DH))
            sc = jnp.where(mb, sc, NEG)
            sc = sc - jnp.max(sc, axis=-1, keepdims=True)
            p = jnp.exp(sc)
            inv = pl.reciprocal(jnp.sum(p, axis=-1, keepdims=True), approx=True)
            heads.append(jnp.dot(p * inv, vh, preferred_element_type=jnp.float32))
        out_rows.append(jnp.concatenate(heads, axis=-1))
    return jnp.concatenate(out_rows, axis=0)        # (B*s_q, D)


def _self_attn(x, w_qkv, w_o, causal_mask):
    qkv = jnp.dot(x, w_qkv, preferred_element_type=jnp.float32)   # (B*S_C, 3D)
    q = qkv[:, 0:D]
    k = qkv[:, D:2 * D]
    v = qkv[:, 2 * D:3 * D]
    ctx = _mha(q, k, v, S_C, S_C, [causal_mask] * B)
    return jnp.dot(ctx, w_o, preferred_element_type=jnp.float32)


def _cross_attn(q_in, kv_flat, s_kv, w_q, w_kv, w_o, len_ref):
    q = jnp.dot(q_in, w_q, preferred_element_type=jnp.float32)      # (B*S_C, D)
    kv = jnp.dot(kv_flat, w_kv, preferred_element_type=jnp.float32)  # (B*s_kv, 2D)
    k = kv[:, 0:D]
    v = kv[:, D:2 * D]
    col = lax.broadcasted_iota(jnp.int32, (S_C, s_kv), 1)
    masks = [col < len_ref[b] for b in range(B)]
    ctx = _mha(q, k, v, S_C, s_kv, masks)
    return jnp.dot(ctx, w_o, preferred_element_type=jnp.float32)


# ------------------------------- the kernel -------------------------------
def decoder_kernel(code_len_ref, tmpl_len_ref, kw_len_ref,        # scalar prefetch (SMEM)
                   ids_ref,                                       # (B*S_C, 1) int32
                   code_ref, tmpl_ref, kw_ref,                    # flattened encoder states
                   emb_ref, pos_ref,                              # embedding tables
                   dense_w_ref, dense_b_ref,                      # (D, VOCAB_PAD), (1, VOCAB_PAD)
                   wqkv_self_ref, wo_self_ref,
                   wq_code_ref, wkv_code_ref, wo_code_ref,
                   wq_kw_ref, wkv_kw_ref, wo_kw_ref,
                   wq_tmpl_ref, wkv_tmpl_ref, wo_tmpl_ref,
                   ln_g_ref, ln_b_ref,                            # (L, 4, D) each
                   ffn_w1_ref, ffn_b1_ref, ffn_w2_ref, ffn_b2_ref,
                   out_ref):                                      # (B*S_C, VOCAB_PAD)
    # ---- comment embedding + positional encoding (fused; one-hot matmul gather) ----
    ids = ids_ref[...]                                            # (B*S_C, 1) int32
    onehot = (lax.broadcasted_iota(jnp.int32, (B * S_C, EMB_ROWS), 1) == ids)
    x = jnp.dot(onehot.astype(jnp.float32), emb_ref[...],
                preferred_element_type=jnp.float32)               # (B*S_C, D)
    pos_block = pos_ref[0:S_C, :]                                 # (S_C, D) static slice
    x = x + jnp.concatenate([pos_block] * B, axis=0)
    # dropout is identity (eval-style)

    code = code_ref[...]                                          # (B*S_CODE, D)
    tmpl = tmpl_ref[...]
    kw = kw_ref[...]

    # causal mask for training-mode masked self-attention (dec_valid_lens = 1..S)
    row = lax.broadcasted_iota(jnp.int32, (S_C, S_C), 0)
    col = lax.broadcasted_iota(jnp.int32, (S_C, S_C), 1)
    causal = col <= row

    for l in range(N_LAYERS):
        gs = ln_g_ref[l]                                          # (4, D)
        bs = ln_b_ref[l]

        # masked self-attention + AddNorm1
        x2 = _self_attn(x, wqkv_self_ref[l], wo_self_ref[l], causal)
        y = _layer_norm(x + x2, gs[0:1, :], bs[0:1, :])

        # cross-attention over source code and keywords + AddNorm2
        y2_code = _cross_attn(y, code, S_CODE, wq_code_ref[l], wkv_code_ref[l],
                              wo_code_ref[l], code_len_ref)
        y2_kw = _cross_attn(y, kw, S_K, wq_kw_ref[l], wkv_kw_ref[l],
                            wo_kw_ref[l], kw_len_ref)
        z = _layer_norm(y + y2_code + y2_kw, gs[1:2, :], bs[1:2, :])

        # cross-attention over the template + AddNorm3
        z2 = _cross_attn(z, tmpl, S_T, wq_tmpl_ref[l], wkv_tmpl_ref[l],
                         wo_tmpl_ref[l], tmpl_len_ref)
        z_end = _layer_norm(z + z2, gs[2:3, :], bs[2:3, :])

        # position-wise FFN + AddNorm4
        h1 = jnp.maximum(
            jnp.dot(z_end, ffn_w1_ref[l], preferred_element_type=jnp.float32)
            + ffn_b1_ref[l], 0.0)
        ffn_out = (jnp.dot(h1, ffn_w2_ref[l], preferred_element_type=jnp.float32)
                   + ffn_b2_ref[l])
        x = _layer_norm(z_end + ffn_out, gs[3:4, :], bs[3:4, :])

    # final dense projection to the (lane-dense padded) vocab
    logits = (jnp.dot(x, dense_w_ref[...], preferred_element_type=jnp.float32)
              + dense_b_ref[...])
    out_ref[...] = logits.astype(out_ref.dtype)


# ------------------------------ host wrapper ------------------------------
def _full_spec(arr):
    if arr.ndim == 2:
        return pl.BlockSpec(arr.shape, lambda i, c, t, k: (0, 0))
    assert arr.ndim == 3
    return pl.BlockSpec(arr.shape, lambda i, c, t, k: (0, 0, 0))


@jax.jit
def keywords_guided_decoder_forward(comment, source_code_enc, template_enc, keywords_enc,
                                    source_code_len, template_len, keywords_len, params):
    b, s_c = comment.shape
    ids_flat = comment.reshape(b * s_c, 1).astype(jnp.int32)
    code_flat = source_code_enc.reshape(b * S_CODE, D).astype(jnp.float32)
    tmpl_flat = template_enc.reshape(b * S_T, D).astype(jnp.float32)
    kw_flat = keywords_enc.reshape(b * S_K, D).astype(jnp.float32)

    inputs = [
        ids_flat, code_flat, tmpl_flat, kw_flat,
        params['emb'], params['pos'], params['dense_w'], params['dense_b'],
        params['wqkv_self'], params['wo_self'],
        params['wq_code'], params['wkv_code'], params['wo_code'],
        params['wq_kw'], params['wkv_kw'], params['wo_kw'],
        params['wq_tmpl'], params['wkv_tmpl'], params['wo_tmpl'],
        params['ln_g'], params['ln_b'],
        params['ffn_w1'], params['ffn_b1'], params['ffn_w2'], params['ffn_b2'],
    ]

    out = pl.pallas_call(
        decoder_kernel,
        out_shape=jax.ShapeDtypeStruct((b * s_c, VOCAB_PAD), jnp.float32),
        grid_spec=pltpu.PrefetchScalarGridSpec(
            num_scalar_prefetch=3,
            grid=(1,),
            in_specs=[_full_spec(a) for a in inputs],
            out_specs=pl.BlockSpec((b * s_c, VOCAB_PAD), lambda i, c, t, k: (0, 0)),
        ),
        compiler_params=pltpu.CompilerParams(
            dimension_semantics=("arbitrary",)),
    )(source_code_len.astype(jnp.int32), template_len.astype(jnp.int32),
      keywords_len.astype(jnp.int32), *inputs)

    return out[:, :VOCAB].reshape(b, s_c, VOCAB)


# --------------------------- parameter set-up -----------------------------
def init_params(key):
    ks = iter(jax.random.split(key, 32))

    def rnd(shape, scale):
        return jax.random.normal(next(ks), shape, jnp.float32) * scale

    s = 1.0 / math.sqrt(D)
    emb = jnp.zeros((EMB_ROWS, D), jnp.float32).at[:VOCAB].set(rnd((VOCAB, D), 0.1))
    pos = rnd((MAX_POS, D), 0.1)
    dense_w = jnp.zeros((D, VOCAB_PAD), jnp.float32).at[:, :VOCAB].set(rnd((D, VOCAB), s))
    dense_b = jnp.zeros((1, VOCAB_PAD), jnp.float32).at[:, :VOCAB].set(rnd((1, VOCAB), 0.01))

    def stack(shape, scale):
        return rnd((N_LAYERS,) + shape, scale)

    return dict(
        emb=emb, pos=pos, dense_w=dense_w, dense_b=dense_b,
        wqkv_self=stack((D, 3 * D), s), wo_self=stack((D, D), s),
        wq_code=stack((D, D), s), wkv_code=stack((D, 2 * D), s), wo_code=stack((D, D), s),
        wq_kw=stack((D, D), s), wkv_kw=stack((D, 2 * D), s), wo_kw=stack((D, D), s),
        wq_tmpl=stack((D, D), s), wkv_tmpl=stack((D, 2 * D), s), wo_tmpl=stack((D, D), s),
        ln_g=jnp.ones((N_LAYERS, 4, D), jnp.float32),
        ln_b=jnp.zeros((N_LAYERS, 4, D), jnp.float32),
        ffn_w1=stack((D, D_FF), s), ffn_b1=stack((1, D_FF), 0.01),
        ffn_w2=stack((D_FF, D), 1.0 / math.sqrt(D_FF)), ffn_b2=stack((1, D), 0.01),
    )


# ----------------------- pure-JAX reference (check) ------------------------
_HI = jax.lax.Precision.HIGHEST


def _layer_norm_ref(v, gamma, beta):
    mu = jnp.mean(v, axis=-1, keepdims=True)
    var = jnp.mean((v - mu) ** 2, axis=-1, keepdims=True)
    return (v - mu) / jnp.sqrt(var + LN_EPS) * gamma + beta


def _mha_ref(q_in, kv_in, wq, wk, wv, wo, mask):
    q = jnp.einsum('bsd,de->bse', q_in, wq, precision=_HI)
    k = jnp.einsum('bsd,de->bse', kv_in, wk, precision=_HI)
    v = jnp.einsum('bsd,de->bse', kv_in, wv, precision=_HI)
    bq, sq, _ = q.shape
    sk = k.shape[1]
    qh = q.reshape(bq, sq, H, DH).transpose(0, 2, 1, 3)
    kh = k.reshape(bq, sk, H, DH).transpose(0, 2, 1, 3)
    vh = v.reshape(bq, sk, H, DH).transpose(0, 2, 1, 3)
    sc = jnp.einsum('bhqd,bhkd->bhqk', qh, kh, precision=_HI) / math.sqrt(DH)
    sc = jnp.where(mask[:, None, :, :], sc, NEG)
    w = jax.nn.softmax(sc, axis=-1)
    ctx = jnp.einsum('bhqk,bhkd->bhqd', w, vh, precision=_HI)
    ctx = ctx.transpose(0, 2, 1, 3).reshape(bq, sq, D)
    return jnp.einsum('bsd,de->bse', ctx, wo, precision=_HI)


def reference_forward(comment, code_enc, tmpl_enc, kw_enc, code_len, tmpl_len, kw_len, p):
    b, s_c = comment.shape
    x = p['emb'][comment] + p['pos'][jnp.arange(s_c)][None, :, :]
    causal = jnp.broadcast_to(jnp.arange(s_c)[:, None] >= jnp.arange(s_c)[None, :],
                              (b, s_c, s_c))

    def kmask(lens, s_kv):
        return jnp.broadcast_to(jnp.arange(s_kv)[None, None, :] < lens[:, None, None],
                                (b, s_c, s_kv))

    for l in range(N_LAYERS):
        wqkv = p['wqkv_self'][l]
        x2 = _mha_ref(x, x, wqkv[:, :D], wqkv[:, D:2 * D], wqkv[:, 2 * D:],
                      p['wo_self'][l], causal)
        y = _layer_norm_ref(x + x2, p['ln_g'][l, 0], p['ln_b'][l, 0])
        wkv = p['wkv_code'][l]
        y2c = _mha_ref(y, code_enc, p['wq_code'][l], wkv[:, :D], wkv[:, D:],
                       p['wo_code'][l], kmask(code_len, code_enc.shape[1]))
        wkv = p['wkv_kw'][l]
        y2k = _mha_ref(y, kw_enc, p['wq_kw'][l], wkv[:, :D], wkv[:, D:],
                       p['wo_kw'][l], kmask(kw_len, kw_enc.shape[1]))
        z = _layer_norm_ref(y + y2c + y2k, p['ln_g'][l, 1], p['ln_b'][l, 1])
        wkv = p['wkv_tmpl'][l]
        z2 = _mha_ref(z, tmpl_enc, p['wq_tmpl'][l], wkv[:, :D], wkv[:, D:],
                      p['wo_tmpl'][l], kmask(tmpl_len, tmpl_enc.shape[1]))
        z_end = _layer_norm_ref(z + z2, p['ln_g'][l, 2], p['ln_b'][l, 2])
        h1 = jax.nn.relu(jnp.einsum('bsd,df->bsf', z_end, p['ffn_w1'][l], precision=_HI)
                         + p['ffn_b1'][l])
        ffn_out = (jnp.einsum('bsf,fd->bsd', h1, p['ffn_w2'][l], precision=_HI)
                   + p['ffn_b2'][l])
        x = _layer_norm_ref(z_end + ffn_out, p['ln_g'][l, 3], p['ln_b'][l, 3])

    logits = jnp.einsum('bsd,dv->bsv', x, p['dense_w'], precision=_HI) + p['dense_b'][0]
    return logits[:, :, :VOCAB]


# --------------------------------- main ------------------------------------
if __name__ == "__main__":
    key = jax.random.PRNGKey(0)
    kp, kc, k1, k2, k3 = jax.random.split(key, 5)

    params = init_params(kp)
    comment = jax.random.randint(kc, (B, S_C), 0, VOCAB, dtype=jnp.int32)
    source_code_enc = jax.random.normal(k1, (B, S_CODE, D), jnp.float32)
    template_enc = jax.random.normal(k2, (B, S_T, D), jnp.float32)
    keywords_enc = jax.random.normal(k3, (B, S_K, D), jnp.float32)
    source_code_len = jnp.array([S_CODE, 10], dtype=jnp.int32)
    template_len = jnp.array([S_T, 5], dtype=jnp.int32)
    keywords_len = jnp.array([3, S_K], dtype=jnp.int32)

    logits = keywords_guided_decoder_forward(
        comment, source_code_enc, template_enc, keywords_enc,
        source_code_len, template_len, keywords_len, params)
    jax.block_until_ready(logits)

    assert logits.shape == (B, S_C, VOCAB)
    assert bool(jnp.all(jnp.isfinite(logits)))

    ref = reference_forward(comment, source_code_enc, template_enc, keywords_enc,
                            source_code_len, template_len, keywords_len, params)
    max_err = float(jnp.max(jnp.abs(logits - ref)))
    assert max_err < 1e-1, f"kernel/reference mismatch: max abs err = {max_err}"

    print("KERNEL_OK")
</pallas_src>

<mosaic_0001>
module attributes {stable_mosaic.version = 11 : i64} {
  func.func @decoder_kernel(%arg0: i32, %arg1: memref<2xi32, #tpu.memory_space<smem>>, %arg2: memref<2xi32, #tpu.memory_space<smem>>, %arg3: memref<2xi32, #tpu.memory_space<smem>>, %arg4: memref<16x1xi32, #tpu.memory_space<vmem>>, %arg5: memref<32x32xf32, #tpu.memory_space<vmem>>, %arg6: memref<16x32xf32, #tpu.memory_space<vmem>>, %arg7: memref<16x32xf32, #tpu.memory_space<vmem>>, %arg8: memref<64x32xf32, #tpu.memory_space<vmem>>, %arg9: memref<64x32xf32, #tpu.memory_space<vmem>>, %arg10: memref<32x128xf32, #tpu.memory_space<vmem>>, %arg11: memref<1x128xf32, #tpu.memory_space<vmem>>, %arg12: memref<2x32x96xf32, #tpu.memory_space<vmem>>, %arg13: memref<2x32x32xf32, #tpu.memory_space<vmem>>, %arg14: memref<2x32x32xf32, #tpu.memory_space<vmem>>, %arg15: memref<2x32x64xf32, #tpu.memory_space<vmem>>, %arg16: memref<2x32x32xf32, #tpu.memory_space<vmem>>, %arg17: memref<2x32x32xf32, #tpu.memory_space<vmem>>, %arg18: memref<2x32x64xf32, #tpu.memory_space<vmem>>, %arg19: memref<2x32x32xf32, #tpu.memory_space<vmem>>, %arg20: memref<2x32x32xf32, #tpu.memory_space<vmem>>, %arg21: memref<2x32x64xf32, #tpu.memory_space<vmem>>, %arg22: memref<2x32x32xf32, #tpu.memory_space<vmem>>, %arg23: memref<2x4x32xf32, #tpu.memory_space<vmem>>, %arg24: memref<2x4x32xf32, #tpu.memory_space<vmem>>, %arg25: memref<2x32x64xf32, #tpu.memory_space<vmem>>, %arg26: memref<2x1x64xf32, #tpu.memory_space<vmem>>, %arg27: memref<2x64x32xf32, #tpu.memory_space<vmem>>, %arg28: memref<2x1x32xf32, #tpu.memory_space<vmem>>, %arg29: memref<16x128xf32, #tpu.memory_space<vmem>>) attributes {dimension_semantics = [#tpu.dimension_semantics<arbitrary>], iteration_bounds = array<i64: 1>, scalar_prefetch = 3 : i64, scratch_operands = 0 : i64, tpu.core_type = #tpu.core_type<tc>, window_params = [{pipeline_mode = #tpu.pipeline_mode<synchronous>, transform_indices = @transform_0, window_bounds = array<i64: 16, 1>}, {pipeline_mode = #tpu.pipeline_mode<synchronous>, transform_indices = @transform_1, window_bounds = array<i64: 32, 32>}, {pipeline_mode = #tpu.pipeline_mode<synchronous>, transform_indices = @transform_2, window_bounds = array<i64: 16, 32>}, {pipeline_mode = #tpu.pipeline_mode<synchronous>, transform_indices = @transform_3, window_bounds = array<i64: 16, 32>}, {pipeline_mode = #tpu.pipeline_mode<synchronous>, transform_indices = @transform_4, window_bounds = array<i64: 64, 32>}, {pipeline_mode = #tpu.pipeline_mode<synchronous>, transform_indices = @transform_5, window_bounds = array<i64: 64, 32>}, {pipeline_mode = #tpu.pipeline_mode<synchronous>, transform_indices = @transform_6, window_bounds = array<i64: 32, 128>}, {pipeline_mode = #tpu.pipeline_mode<synchronous>, transform_indices = @transform_7, window_bounds = array<i64: 1, 128>}, {pipeline_mode = #tpu.pipeline_mode<synchronous>, transform_indices = @transform_8, window_bounds = array<i64: 2, 32, 96>}, {pipeline_mode = #tpu.pipeline_mode<synchronous>, transform_indices = @transform_9, window_bounds = array<i64: 2, 32, 32>}, {pipeline_mode = #tpu.pipeline_mode<synchronous>, transform_indices = @transform_10, window_bounds = array<i64: 2, 32, 32>}, {pipeline_mode = #tpu.pipeline_mode<synchronous>, transform_indices = @transform_11, window_bounds = array<i64: 2, 32, 64>}, {pipeline_mode = #tpu.pipeline_mode<synchronous>, transform_indices = @transform_12, window_bounds = array<i64: 2, 32, 32>}, {pipeline_mode = #tpu.pipeline_mode<synchronous>, transform_indices = @transform_13, window_bounds = array<i64: 2, 32, 32>}, {pipeline_mode = #tpu.pipeline_mode<synchronous>, transform_indices = @transform_14, window_bounds = array<i64: 2, 32, 64>}, {pipeline_mode = #tpu.pipeline_mode<synchronous>, transform_indices = @transform_15, window_bounds = array<i64: 2, 32, 32>}, {pipeline_mode = #tpu.pipeline_mode<synchronous>, transform_indices = @transform_16, window_bounds = array<i64: 2, 32, 32>}, {pipeline_mode = #tpu.pipeline_mode<synchronous>, transform_indices = @transform_17, window_bounds = array<i64: 2, 32, 64>}, {pipeline_mode = #tpu.pipeline_mode<synchronous>, transform_indices = @transform_18, window_bounds = array<i64: 2, 32, 32>}, {pipeline_mode = #tpu.pipeline_mode<synchronous>, transform_indices = @transform_19, window_bounds = array<i64: 2, 4, 32>}, {pipeline_mode = #tpu.pipeline_mode<synchronous>, transform_indices = @transform_20, window_bounds = array<i64: 2, 4, 32>}, {pipeline_mode = #tpu.pipeline_mode<synchronous>, transform_indices = @transform_21, window_bounds = array<i64: 2, 32, 64>}, {pipeline_mode = #tpu.pipeline_mode<synchronous>, transform_indices = @transform_22, window_bounds = array<i64: 2, 1, 64>}, {pipeline_mode = #tpu.pipeline_mode<synchronous>, transform_indices = @transform_23, window_bounds = array<i64: 2, 64, 32>}, {pipeline_mode = #tpu.pipeline_mode<synchronous>, transform_indices = @transform_24, window_bounds = array<i64: 2, 1, 32>}, {pipeline_mode = #tpu.pipeline_mode<synchronous>, transform_indices = @transform_25, window_bounds = array<i64: 16, 128>}]} {
    %c0 = arith.constant 0 : index
    %c0_0 = arith.constant 0 : index
    %0 = vector.load %arg4[%c0, %c0_0] : memref<16x1xi32, #tpu.memory_space<vmem>>, vector<16x1xi32>
    %1 = tpu.iota {dimensions = array<i32: 1>} : vector<16x64xi32>
    %2 = vector.broadcast %0 : vector<16x1xi32> to vector<16x64xi32>
    %3 = arith.cmpi eq, %1, %2 : vector<16x64xi32>
    %4 = arith.extui %3 : vector<16x64xi1> to vector<16x64xi32>
    %5 = arith.sitofp %4 : vector<16x64xi32> to vector<16x64xf32>
    %c0_1 = arith.constant 0 : index
    %c0_2 = arith.constant 0 : index
    %6 = vector.load %arg8[%c0_1, %c0_2] : memref<64x32xf32, #tpu.memory_space<vmem>>, vector<64x32xf32>
    %cst = arith.constant dense<0.000000e+00> : vector<16x32xf32>
    %7 = tpu.matmul %5, %6, %cst {dimension_numbers = #tpu.dot_dimension_numbers<[1], [0], [0], [1], [0, 0, 1, 1], [], []>} : vector<16x64xf32>, vector<64x32xf32>, vector<16x32xf32> -> vector<16x32xf32>
    %c0_3 = arith.constant 0 : index
    %c0_4 = arith.constant 0 : index
    %8 = vector.load %arg9[%c0_3, %c0_4] : memref<64x32xf32, #tpu.memory_space<vmem>>, vector<8x32xf32>
    %9 = tpu.concatenate %8, %8 in 0 : vector<8x32xf32>, vector<8x32xf32> -> vector<16x32xf32>
    %10 = arith.addf %7, %9 : vector<16x32xf32>
    %c0_5 = arith.constant 0 : index
    %c0_6 = arith.constant 0 : index
    %11 = vector.load %arg5[%c0_5, %c0_6] : memref<32x32xf32, #tpu.memory_space<vmem>>, vector<32x32xf32>
    %c0_7 = arith.constant 0 : index
    %c0_8 = arith.constant 0 : index
    %12 = vector.load %arg6[%c0_7, %c0_8] : memref<16x32xf32, #tpu.memory_space<vmem>>, vector<16x32xf32>
    %c0_9 = arith.constant 0 : index
    %c0_10 = arith.constant 0 : index
    %13 = vector.load %arg7[%c0_9, %c0_10] : memref<16x32xf32, #tpu.memory_space<vmem>>, vector<16x32xf32>
    %14 = tpu.iota {dimensions = array<i32: 0>} : vector<8x8xi32>
    %15 = tpu.iota {dimensions = array<i32: 1>} : vector<8x8xi32>
    %16 = arith.cmpi sle, %15, %14 : vector<8x8xi32>
    %c0_11 = arith.constant 0 : index
    %c0_12 = arith.constant 0 : index
    %c0_13 = arith.constant 0 : index
    %17 = vector.load %arg23[%c0_11, %c0_12, %c0_13] : memref<2x4x32xf32, #tpu.memory_space<vmem>>, vector<1x4x32xf32>
    %18 = vector.shape_cast %17 : vector<1x4x32xf32> to vector<4x32xf32>
    %c0_14 = arith.constant 0 : index
    %c0_15 = arith.constant 0 : index
    %c0_16 = arith.constant 0 : index
    %19 = vector.load %arg24[%c0_14, %c0_15, %c0_16] : memref<2x4x32xf32, #tpu.memory_space<vmem>>, vector<1x4x32xf32>
    %20 = vector.shape_cast %19 : vector<1x4x32xf32> to vector<4x32xf32>
    %c0_17 = arith.constant 0 : index
    %c0_18 = arith.constant 0 : index
    %c0_19 = arith.constant 0 : index
    %21 = vector.load %arg12[%c0_17, %c0_18, %c0_19] : memref<2x32x96xf32, #tpu.memory_space<vmem>>, vector<1x32x96xf32>
    %22 = vector.shape_cast %21 : vector<1x32x96xf32> to vector<32x96xf32>
    %c0_20 = arith.constant 0 : index
    %c0_21 = arith.constant 0 : index
    %c0_22 = arith.constant 0 : index
    %23 = vector.load %arg13[%c0_20, %c0_21, %c0_22] : memref<2x32x32xf32, #tpu.memory_space<vmem>>, vector<1x32x32xf32>
    %24 = vector.shape_cast %23 : vector<1x32x32xf32> to vector<32x32xf32>
    %cst_23 = arith.constant dense<0.000000e+00> : vector<16x96xf32>
    %25 = tpu.matmul %10, %22, %cst_23 {dimension_numbers = #tpu.dot_dimension_numbers<[1], [0], [0], [1], [0, 0, 1, 1], [], []>} : vector<16x32xf32>, vector<32x96xf32>, vector<16x96xf32> -> vector<16x96xf32>
    %26 = vector.extract_strided_slice %25 {offsets = [0, 0], sizes = [16, 32], strides = [1, 1]} : vector<16x96xf32> to vector<16x32xf32>
    %27 = vector.extract_strided_slice %25 {offsets = [0, 32], sizes = [16, 32], strides = [1, 1]} : vector<16x96xf32> to vector<16x32xf32>
    %28 = vector.extract_strided_slice %25 {offsets = [0, 64], sizes = [16, 32], strides = [1, 1]} : vector<16x96xf32> to vector<16x32xf32>
    %29 = vector.extract_strided_slice %26 {offsets = [0, 0], sizes = [8, 32], strides = [1, 1]} : vector<16x32xf32> to vector<8x32xf32>
    %30 = vector.extract_strided_slice %27 {offsets = [0, 0], sizes = [8, 32], strides = [1, 1]} : vector<16x32xf32> to vector<8x32xf32>
    %31 = vector.extract_strided_slice %28 {offsets = [0, 0], sizes = [8, 32], strides = [1, 1]} : vector<16x32xf32> to vector<8x32xf32>
    %32 = vector.extract_strided_slice %29 {offsets = [0, 0], sizes = [8, 8], strides = [1, 1]} : vector<8x32xf32> to vector<8x8xf32>
    %33 = vector.extract_strided_slice %30 {offsets = [0, 0], sizes = [8, 8], strides = [1, 1]} : vector<8x32xf32> to vector<8x8xf32>
    %34 = vector.extract_strided_slice %31 {offsets = [0, 0], sizes = [8, 8], strides = [1, 1]} : vector<8x32xf32> to vector<8x8xf32>
    %35 = tpu.transpose %33, [1, 0] : vector<8x8xf32> -> vector<8x8xf32>
    %cst_24 = arith.constant dense<0.000000e+00> : vector<8x8xf32>
    %36 = tpu.matmul %32, %35, %cst_24 {dimension_numbers = #tpu.dot_dimension_numbers<[1], [0], [0], [1], [0, 0, 1, 1], [], []>} : vector<8x8xf32>, vector<8x8xf32>, vector<8x8xf32> -> vector<8x8xf32>
    %cst_25 = arith.constant 0.353553385 : f32
    %37 = vector.broadcast %cst_25 : f32 to vector<8x8xf32>
    %38 = arith.mulf %36, %37 : vector<8x8xf32>
    %cst_26 = arith.constant -1.000000e+06 : f32
    %39 = vector.broadcast %cst_26 : f32 to vector<8x8xf32>
    %40 = arith.select %16, %38, %39 : vector<8x8xi1>, vector<8x8xf32>
    %cst_27 = arith.constant dense<0xFF800000> : vector<8xf32>
    %41 = vector.multi_reduction <maximumf>, %40, %cst_27 [1] : vector<8x8xf32> to vector<8xf32>
    %42 = vector.shape_cast %41 : vector<8xf32> to vector<8x1xf32>
    %43 = vector.broadcast %42 : vector<8x1xf32> to vector<8x8xf32>
    %44 = arith.subf %40, %43 : vector<8x8xf32>
    %45 = math.exp %44 : vector<8x8xf32>
    %cst_28 = arith.constant dense<0.000000e+00> : vector<8xf32>
    %46 = vector.multi_reduction <add>, %45, %cst_28 [1] : vector<8x8xf32> to vector<8xf32>
    %47 = vector.shape_cast %46 : vector<8xf32> to vector<8x1xf32>
    %48 = tpu.reciprocal %47 {approx = true} : vector<8x1xf32> -> vector<8x1xf32>
    %49 = vector.broadcast %48 : vector<8x1xf32> to vector<8x8xf32>
    %50 = arith.mulf %45, %49 : vector<8x8xf32>
    %cst_29 = arith.constant dense<0.000000e+00> : vector<8x8xf32>
    %51 = tpu.matmul %50, %34, %cst_29 {dimension_numbers = #tpu.dot_dimension_numbers<[1], [0], [0], [1], [0, 0, 1, 1], [], []>} : vector<8x8xf32>, vector<8x8xf32>, vector<8x8xf32> -> vector<8x8xf32>
    %52 = vector.extract_strided_slice %29 {offsets = [0, 8], sizes = [8, 8], strides = [1, 1]} : vector<8x32xf32> to vector<8x8xf32>
    %53 = vector.extract_strided_slice %30 {offsets = [0, 8], sizes = [8, 8], strides = [1, 1]} : vector<8x32xf32> to vector<8x8xf32>
    %54 = vector.extract_strided_slice %31 {offsets = [0, 8], sizes = [8, 8], strides = [1, 1]} : vector<8x32xf32> to vector<8x8xf32>
    %55 = tpu.transpose %53, [1, 0] : vector<8x8xf32> -> vector<8x8xf32>
    %cst_30 = arith.constant dense<0.000000e+00> : vector<8x8xf32>
    %56 = tpu.matmul %52, %55, %cst_30 {dimension_numbers = #tpu.dot_dimension_numbers<[1], [0], [0], [1], [0, 0, 1, 1], [], []>} : vector<8x8xf32>, vector<8x8xf32>, vector<8x8xf32> -> vector<8x8xf32>
    %cst_31 = arith.constant 0.353553385 : f32
    %57 = vector.broadcast %cst_31 : f32 to vector<8x8xf32>
    %58 = arith.mulf %56, %57 : vector<8x8xf32>
    %cst_32 = arith.constant -1.000000e+06 : f32
    %59 = vector.broadcast %cst_32 : f32 to vector<8x8xf32>
    %60 = arith.select %16, %58, %59 : vector<8x8xi1>, vector<8x8xf32>
    %cst_33 = arith.constant dense<0xFF800000> : vector<8xf32>
    %61 = vector.multi_reduction <maximumf>, %60, %cst_33 [1] : vector<8x8xf32> to vector<8xf32>
    %62 = vector.shape_cast %61 : vector<8xf32> to vector<8x1xf32>
    %63 = vector.broadcast %62 : vector<8x1xf32> to vector<8x8xf32>
    %64 = arith.subf %60, %63 : vector<8x8xf32>
    %65 = math.exp %64 : vector<8x8xf32>
    %cst_34 = arith.constant dense<0.000000e+00> : vector<8xf32>
    %66 = vector.multi_reduction <add>, %65, %cst_34 [1] : vector<8x8xf32> to vector<8xf32>
    %67 = vector.shape_cast %66 : vector<8xf32> to vector<8x1xf32>
    %68 = tpu.reciprocal %67 {approx = true} : vector<8x1xf32> -> vector<8x1xf32>
    %69 = vector.broadcast %68 : vector<8x1xf32> to vector<8x8xf32>
    %70 = arith.mulf %65, %69 : vector<8x8xf32>
    %cst_35 = arith.constant dense<0.000000e+00> : vector<8x8xf32>
    %71 = tpu.matmul %70, %54, %cst_35 {dimension_numbers = #tpu.dot_dimension_numbers<[1], [0], [0], [1], [0, 0, 1, 1], [], []>} : vector<8x8xf32>, vector<8x8xf32>, vector<8x8xf32> -> vector<8x8xf32>
    %72 = vector.extract_strided_slice %29 {offsets = [0, 16], sizes = [8, 8], strides = [1, 1]} : vector<8x32xf32> to vector<8x8xf32>
    %73 = vector.extract_strided_slice %30 {offsets = [0, 16], sizes = [8, 8], strides = [1, 1]} : vector<8x32xf32> to vector<8x8xf32>
    %74 = vector.extract_strided_slice %31 {offsets = [0, 16], sizes = [8, 8], strides = [1, 1]} : vector<8x32xf32> to vector<8x8xf32>
    %75 = tpu.transpose %73, [1, 0] : vector<8x8xf32> -> vector<8x8xf32>
    %cst_36 = arith.constant dense<0.000000e+00> : vector<8x8xf32>
    %76 = tpu.matmul %72, %75, %cst_36 {dimension_numbers = #tpu.dot_dimension_numbers<[1], [0], [0], [1], [0, 0, 1, 1], [], []>} : vector<8x8xf32>, vector<8x8xf32>, vector<8x8xf32> -> vector<8x8xf32>
    %cst_37 = arith.constant 0.353553385 : f32
    %77 = vector.broadcast %cst_37 : f32 to vector<8x8xf32>
    %78 = arith.mulf %76, %77 : vector<8x8xf32>
    %cst_38 = arith.constant -1.000000e+06 : f32
    %79 = vector.broadcast %cst_38 : f32 to vector<8x8xf32>
    %80 = arith.select %16, %78, %79 : vector<8x8xi1>, vector<8x8xf32>
    %cst_39 = arith.constant dense<0xFF800000> : vector<8xf32>
    %81 = vector.multi_reduction <maximumf>, %80, %cst_39 [1] : vector<8x8xf32> to vector<8xf32>
    %82 = vector.shape_cast %81 : vector<8xf32> to vector<8x1xf32>
    %83 = vector.broadcast %82 : vector<8x1xf32> to vector<8x8xf32>
    %84 = arith.subf %80, %83 : vector<8x8xf32>
    %85 = math.exp %84 : vector<8x8xf32>
    %cst_40 = arith.constant dense<0.000000e+00> : vector<8xf32>
    %86 = vector.multi_reduction <add>, %85, %cst_40 [1] : vector<8x8xf32> to vector<8xf32>
    %87 = vector.shape_cast %86 : vector<8xf32> to vector<8x1xf32>
    %88 = tpu.reciprocal %87 {approx = true} : vector<8x1xf32> -> vector<8x1xf32>
    %89 = vector.broadcast %88 : vector<8x1xf32> to vector<8x8xf32>
    %90 = arith.mulf %85, %89 : vector<8x8xf32>
    %cst_41 = arith.constant dense<0.000000e+00> : vector<8x8xf32>
    %91 = tpu.matmul %90, %74, %cst_41 {dimension_numbers = #tpu.dot_dimension_numbers<[1], [0], [0], [1], [0, 0, 1, 1], [], []>} : vector<8x8xf32>, vector<8x8xf32>, vector<8x8xf32> -> vector<8x8xf32>
    %92 = vector.extract_strided_slice %29 {offsets = [0, 24], sizes = [8, 8], strides = [1, 1]} : vector<8x32xf32> to vector<8x8xf32>
    %93 = vector.extract_strided_slice %30 {offsets = [0, 24], sizes = [8, 8], strides = [1, 1]} : vector<8x32xf32> to vector<8x8xf32>
    %94 = vector.extract_strided_slice %31 {offsets = [0, 24], sizes = [8, 8], strides = [1, 1]} : vector<8x32xf32> to vector<8x8xf32>
    %95 = tpu.transpose %93, [1, 0] : vector<8x8xf32> -> vector<8x8xf32>
    %cst_42 = arith.constant dense<0.000000e+00> : vector<8x8xf32>
    %96 = tpu.matmul %92, %95, %cst_42 {dimension_numbers = #tpu.dot_dimension_numbers<[1], [0], [0], [1], [0, 0, 1, 1], [], []>} : vector<8x8xf32>, vector<8x8xf32>, vector<8x8xf32> -> vector<8x8xf32>
    %cst_43 = arith.constant 0.353553385 : f32
    %97 = vector.broadcast %cst_43 : f32 to vector<8x8xf32>
    %98 = arith.mulf %96, %97 : vector<8x8xf32>
    %cst_44 = arith.constant -1.000000e+06 : f32
    %99 = vector.broadcast %cst_44 : f32 to vector<8x8xf32>
    %100 = arith.select %16, %98, %99 : vector<8x8xi1>, vector<8x8xf32>
    %cst_45 = arith.constant dense<0xFF800000> : vector<8xf32>
    %101 = vector.multi_reduction <maximumf>, %100, %cst_45 [1] : vector<8x8xf32> to vector<8xf32>
    %102 = vector.shape_cast %101 : vector<8xf32> to vector<8x1xf32>
    %103 = vector.broadcast %102 : vector<8x1xf32> to vector<8x8xf32>
    %104 = arith.subf %100, %103 : vector<8x8xf32>
    %105 = math.exp %104 : vector<8x8xf32>
    %cst_46 = arith.constant dense<0.000000e+00> : vector<8xf32>
    %106 = vector.multi_reduction <add>, %105, %cst_46 [1] : vector<8x8xf32> to vector<8xf32>
    %107 = vector.shape_cast %106 : vector<8xf32> to vector<8x1xf32>
    %108 = tpu.reciprocal %107 {approx = true} : vector<8x1xf32> -> vector<8x1xf32>
    %109 = vector.broadcast %108 : vector<8x1xf32> to vector<8x8xf32>
    %110 = arith.mulf %105, %109 : vector<8x8xf32>
    %cst_47 = arith.constant dense<0.000000e+00> : vector<8x8xf32>
    %111 = tpu.matmul %110, %94, %cst_47 {dimension_numbers = #tpu.dot_dimension_numbers<[1], [0], [0], [1], [0, 0, 1, 1], [], []>} : vector<8x8xf32>, vector<8x8xf32>, vector<8x8xf32> -> vector<8x8xf32>
    %112 = tpu.concatenate %51, %71, %91, %111 in 1 : vector<8x8xf32>, vector<8x8xf32>, vector<8x8xf32>, vector<8x8xf32> -> vector<8x32xf32>
    %113 = vector.extract_strided_slice %26 {offsets = [8, 0], sizes = [8, 32], strides = [1, 1]} : vector<16x32xf32> to vector<8x32xf32>
    %114 = vector.extract_strided_slice %27 {offsets = [8, 0], sizes = [8, 32], strides = [1, 1]} : vector<16x32xf32> to vector<8x32xf32>
    %115 = vector.extract_strided_slice %28 {offsets = [8, 0], sizes = [8, 32], strides = [1, 1]} : vector<16x32xf32> to vector<8x32xf32>
    %116 = vector.extract_strided_slice %113 {offsets = [0, 0], sizes = [8, 8], strides = [1, 1]} : vector<8x32xf32> to vector<8x8xf32>
    %117 = vector.extract_strided_slice %114 {offsets = [0, 0], sizes = [8, 8], strides = [1, 1]} : vector<8x32xf32> to vector<8x8xf32>
    %118 = vector.extract_strided_slice %115 {offsets = [0, 0], sizes = [8, 8], strides = [1, 1]} : vector<8x32xf32> to vector<8x8xf32>
    %119 = tpu.transpose %117, [1, 0] : vector<8x8xf32> -> vector<8x8xf32>
    %cst_48 = arith.constant dense<0.000000e+00> : vector<8x8xf32>
    %120 = tpu.matmul %116, %119, %cst_48 {dimension_numbers = #tpu.dot_dimension_numbers<[1], [0], [0], [1], [0, 0, 1, 1], [], []>} : vector<8x8xf32>, vector<8x8xf32>, vector<8x8xf32> -> vector<8x8xf32>
    %cst_49 = arith.constant 0.353553385 : f32
    %121 = vector.broadcast %cst_49 : f32 to vector<8x8xf32>
    %122 = arith.mulf %120, %121 : vector<8x8xf32>
    %cst_50 = arith.constant -1.000000e+06 : f32
    %123 = vector.broadcast %cst_50 : f32 to vector<8x8xf32>
    %124 = arith.select %16, %122, %123 : vector<8x8xi1>, vector<8x8xf32>
    %cst_51 = arith.constant dense<0xFF800000> : vector<8xf32>
    %125 = vector.multi_reduction <maximumf>, %124, %cst_51 [1] : vector<8x8xf32> to vector<8xf32>
    %126 = vector.shape_cast %125 : vector<8xf32> to vector<8x1xf32>
    %127 = vector.broadcast %126 : vector<8x1xf32> to vector<8x8xf32>
    %128 = arith.subf %124, %127 : vector<8x8xf32>
    %129 = math.exp %128 : vector<8x8xf32>
    %cst_52 = arith.constant dense<0.000000e+00> : vector<8xf32>
    %130 = vector.multi_reduction <add>, %129, %cst_52 [1] : vector<8x8xf32> to vector<8xf32>
    %131 = vector.shape_cast %130 : vector<8xf32> to vector<8x1xf32>
    %132 = tpu.reciprocal %131 {approx = true} : vector<8x1xf32> -> vector<8x1xf32>
    %133 = vector.broadcast %132 : vector<8x1xf32> to vector<8x8xf32>
    %134 = arith.mulf %129, %133 : vector<8x8xf32>
    %cst_53 = arith.constant dense<0.000000e+00> : vector<8x8xf32>
    %135 = tpu.matmul %134, %118, %cst_53 {dimension_numbers = #tpu.dot_dimension_numbers<[1], [0], [0], [1], [0, 0, 1, 1], [], []>} : vector<8x8xf32>, vector<8x8xf32>, vector<8x8xf32> -> vector<8x8xf32>
    %136 = vector.extract_strided_slice %113 {offsets = [0, 8], sizes = [8, 8], strides = [1, 1]} : vector<8x32xf32> to vector<8x8xf32>
    %137 = vector.extract_strided_slice %114 {offsets = [0, 8], sizes = [8, 8], strides = [1, 1]} : vector<8x32xf32> to vector<8x8xf32>
    %138 = vector.extract_strided_slice %115 {offsets = [0, 8], sizes = [8, 8], strides = [1, 1]} : vector<8x32xf32> to vector<8x8xf32>
    %139 = tpu.transpose %137, [1, 0] : vector<8x8xf32> -> vector<8x8xf32>
    %cst_54 = arith.constant dense<0.000000e+00> : vector<8x8xf32>
    %140 = tpu.matmul %136, %139, %cst_54 {dimension_numbers = #tpu.dot_dimension_numbers<[1], [0], [0], [1], [0, 0, 1, 1], [], []>} : vector<8x8xf32>, vector<8x8xf32>, vector<8x8xf32> -> vector<8x8xf32>
    %cst_55 = arith.constant 0.353553385 : f32
    %141 = vector.broadcast %cst_55 : f32 to vector<8x8xf32>
    %142 = arith.mulf %140, %141 : vector<8x8xf32>
    %cst_56 = arith.constant -1.000000e+06 : f32
    %143 = vector.broadcast %cst_56 : f32 to vector<8x8xf32>
    %144 = arith.select %16, %142, %143 : vector<8x8xi1>, vector<8x8xf32>
    %cst_57 = arith.constant dense<0xFF800000> : vector<8xf32>
    %145 = vector.multi_reduction <maximumf>, %144, %cst_57 [1] : vector<8x8xf32> to vector<8xf32>
    %146 = vector.shape_cast %145 : vector<8xf32> to vector<8x1xf32>
    %147 = vector.broadcast %146 : vector<8x1xf32> to vector<8x8xf32>
    %148 = arith.subf %144, %147 : vector<8x8xf32>
    %149 = math.exp %148 : vector<8x8xf32>
    %cst_58 = arith.constant dense<0.000000e+00> : vector<8xf32>
    %150 = vector.multi_reduction <add>, %149, %cst_58 [1] : vector<8x8xf32> to vector<8xf32>
    %151 = vector.shape_cast %150 : vector<8xf32> to vector<8x1xf32>
    %152 = tpu.reciprocal %151 {approx = true} : vector<8x1xf32> -> vector<8x1xf32>
    %153 = vector.broadcast %152 : vector<8x1xf32> to vector<8x8xf32>
    %154 = arith.mulf %149, %153 : vector<8x8xf32>
    %cst_59 = arith.constant dense<0.000000e+00> : vector<8x8xf32>
    %155 = tpu.matmul %154, %138, %cst_59 {dimension_numbers = #tpu.dot_dimension_numbers<[1], [0], [0], [1], [0, 0, 1, 1], [], []>} : vector<8x8xf32>, vector<8x8xf32>, vector<8x8xf32> -> vector<8x8xf32>
    %156 = vector.extract_strided_slice %113 {offsets = [0, 16], sizes = [8, 8], strides = [1, 1]} : vector<8x32xf32> to vector<8x8xf32>
    %157 = vector.extract_strided_slice %114 {offsets = [0, 16], sizes = [8, 8], strides = [1, 1]} : vector<8x32xf32> to vector<8x8xf32>
    %158 = vector.extract_strided_slice %115 {offsets = [0, 16], sizes = [8, 8], strides = [1, 1]} : vector<8x32xf32> to vector<8x8xf32>
    %159 = tpu.transpose %157, [1, 0] : vector<8x8xf32> -> vector<8x8xf32>
    %cst_60 = arith.constant dense<0.000000e+00> : vector<8x8xf32>
    %160 = tpu.matmul %156, %159, %cst_60 {dimension_numbers = #tpu.dot_dimension_numbers<[1], [0], [0], [1], [0, 0, 1, 1], [], []>} : vector<8x8xf32>, vector<8x8xf32>, vector<8x8xf32> -> vector<8x8xf32>
    %cst_61 = arith.constant 0.353553385 : f32
    %161 = vector.broadcast %cst_61 : f32 to vector<8x8xf32>
    %162 = arith.mulf %160, %161 : vector<8x8xf32>
    %cst_62 = arith.constant -1.000000e+06 : f32
    %163 = vector.broadcast %cst_62 : f32 to vector<8x8xf32>
    %164 = arith.select %16, %162, %163 : vector<8x8xi1>, vector<8x8xf32>
    %cst_63 = arith.constant dense<0xFF800000> : vector<8xf32>
    %165 = vector.multi_reduction <maximumf>, %164, %cst_63 [1] : vector<8x8xf32> to vector<8xf32>
    %166 = vector.shape_cast %165 : vector<8xf32> to vector<8x1xf32>
    %167 = vector.broadcast %166 : vector<8x1xf32> to vector<8x8xf32>
    %168 = arith.subf %164, %167 : vector<8x8xf32>
    %169 = math.exp %168 : vector<8x8xf32>
    %cst_64 = arith.constant dense<0.000000e+00> : vector<8xf32>
    %170 = vector.multi_reduction <add>, %169, %cst_64 [1] : vector<8x8xf32> to vector<8xf32>
    %171 = vector.shape_cast %170 : vector<8xf32> to vector<8x1xf32>
    %172 = tpu.reciprocal %171 {approx = true} : vector<8x1xf32> -> vector<8x1xf32>
    %173 = vector.broadcast %172 : vector<8x1xf32> to vector<8x8xf32>
    %174 = arith.mulf %169, %173 : vector<8x8xf32>
    %cst_65 = arith.constant dense<0.000000e+00> : vector<8x8xf32>
    %175 = tpu.matmul %174, %158, %cst_65 {dimension_numbers = #tpu.dot_dimension_numbers<[1], [0], [0], [1], [0, 0, 1, 1], [], []>} : vector<8x8xf32>, vector<8x8xf32>, vector<8x8xf32> -> vector<8x8xf32>
    %176 = vector.extract_strided_slice %113 {offsets = [0, 24], sizes = [8, 8], strides = [1, 1]} : vector<8x32xf32> to vector<8x8xf32>
    %177 = vector.extract_strided_slice %114 {offsets = [0, 24], sizes = [8, 8], strides = [1, 1]} : vector<8x32xf32> to vector<8x8xf32>
    %178 = vector.extract_strided_slice %115 {offsets = [0, 24], sizes = [8, 8], strides = [1, 1]} : vector<8x32xf32> to vector<8x8xf32>
    %179 = tpu.transpose %177, [1, 0] : vector<8x8xf32> -> vector<8x8xf32>
    %cst_66 = arith.constant dense<0.000000e+00> : vector<8x8xf32>
    %180 = tpu.matmul %176, %179, %cst_66 {dimension_numbers = #tpu.dot_dimension_numbers<[1], [0], [0], [1], [0, 0, 1, 1], [], []>} : vector<8x8xf32>, vector<8x8xf32>, vector<8x8xf32> -> vector<8x8xf32>
    %cst_67 = arith.constant 0.353553385 : f32
    %181 = vector.broadcast %cst_67 : f32 to vector<8x8xf32>
    %182 = arith.mulf %180, %181 : vector<8x8xf32>
    %cst_68 = arith.constant -1.000000e+06 : f32
    %183 = vector.broadcast %cst_68 : f32 to vector<8x8xf32>
    %184 = arith.select %16, %182, %183 : vector<8x8xi1>, vector<8x8xf32>
    %cst_69 = arith.constant dense<0xFF800000> : vector<8xf32>
    %185 = vector.multi_reduction <maximumf>, %184, %cst_69 [1] : vector<8x8xf32> to vector<8xf32>
    %186 = vector.shape_cast %185 : vector<8xf32> to vector<8x1xf32>
    %187 = vector.broadcast %186 : vector<8x1xf32> to vector<8x8xf32>
    %188 = arith.subf %184, %187 : vector<8x8xf32>
    %189 = math.exp %188 : vector<8x8xf32>
    %cst_70 = arith.constant dense<0.000000e+00> : vector<8xf32>
    %190 = vector.multi_reduction <add>, %189, %cst_70 [1] : vector<8x8xf32> to vector<8xf32>
    %191 = vector.shape_cast %190 : vector<8xf32> to vector<8x1xf32>
    %192 = tpu.reciprocal %191 {approx = true} : vector<8x1xf32> -> vector<8x1xf32>
    %193 = vector.broadcast %192 : vector<8x1xf32> to vector<8x8xf32>
    %194 = arith.mulf %189, %193 : vector<8x8xf32>
    %cst_71 = arith.constant dense<0.000000e+00> : vector<8x8xf32>
    %195 = tpu.matmul %194, %178, %cst_71 {dimension_numbers = #tpu.dot_dimension_numbers<[1], [0], [0], [1], [0, 0, 1, 1], [], []>} : vector<8x8xf32>, vector<8x8xf32>, vector<8x8xf32> -> vector<8x8xf32>
    %196 = tpu.concatenate %135, %155, %175, %195 in 1 : vector<8x8xf32>, vector<8x8xf32>, vector<8x8xf32>, vector<8x8xf32> -> vector<8x32xf32>
    %197 = tpu.concatenate %112, %196 in 0 : vector<8x32xf32>, vector<8x32xf32> -> vector<16x32xf32>
    %cst_72 = arith.constant dense<0.000000e+00> : vector<16x32xf32>
    %198 = tpu.matmul %197, %24, %cst_72 {dimension_numbers = #tpu.dot_dimension_numbers<[1], [0], [0], [1], [0, 0, 1, 1], [], []>} : vector<16x32xf32>, vector<32x32xf32>, vector<16x32xf32> -> vector<16x32xf32>
    %199 = arith.addf %10, %198 : vector<16x32xf32>
    %200 = vector.extract_strided_slice %18 {offsets = [0, 0], sizes = [1, 32], strides = [1, 1]} : vector<4x32xf32> to vector<1x32xf32>
    %201 = vector.extract_strided_slice %20 {offsets = [0, 0], sizes = [1, 32], strides = [1, 1]} : vector<4x32xf32> to vector<1x32xf32>
    %cst_73 = arith.constant dense<0.000000e+00> : vector<16xf32>
    %202 = vector.multi_reduction <add>, %199, %cst_73 [1] : vector<16x32xf32> to vector<16xf32>
    %203 = vector.shape_cast %202 : vector<16xf32> to vector<16x1xf32>
    %cst_74 = arith.constant 3.200000e+01 : f32
    %204 = vector.broadcast %cst_74 : f32 to vector<16x1xf32>
    %205 = arith.divf %203, %204 : vector<16x1xf32>
    %206 = vector.broadcast %205 : vector<16x1xf32> to vector<16x32xf32>
    %207 = arith.subf %199, %206 : vector<16x32xf32>
    %208 = arith.mulf %207, %207 : vector<16x32xf32>
    %cst_75 = arith.constant dense<0.000000e+00> : vector<16xf32>
    %209 = vector.multi_reduction <add>, %208, %cst_75 [1] : vector<16x32xf32> to vector<16xf32>
    %210 = vector.shape_cast %209 : vector<16xf32> to vector<16x1xf32>
    %cst_76 = arith.constant 3.200000e+01 : f32
    %211 = vector.broadcast %cst_76 : f32 to vector<16x1xf32>
    %212 = arith.divf %210, %211 : vector<16x1xf32>
    %213 = vector.broadcast %205 : vector<16x1xf32> to vector<16x32xf32>
    %214 = arith.subf %199, %213 : vector<16x32xf32>
    %cst_77 = arith.constant 9.99999974E-6 : f32
    %215 = vector.broadcast %cst_77 : f32 to vector<16x1xf32>
    %216 = arith.addf %212, %215 : vector<16x1xf32>
    %217 = math.rsqrt %216 : vector<16x1xf32>
    %218 = vector.broadcast %217 : vector<16x1xf32> to vector<16x32xf32>
    %219 = arith.mulf %214, %218 : vector<16x32xf32>
    %220 = vector.broadcast %200 : vector<1x32xf32> to vector<16x32xf32>
    %221 = arith.mulf %219, %220 : vector<16x32xf32>
    %222 = vector.broadcast %201 : vector<1x32xf32> to vector<16x32xf32>
    %223 = arith.addf %221, %222 : vector<16x32xf32>
    %c0_78 = arith.constant 0 : index
    %c0_79 = arith.constant 0 : index
    %c0_80 = arith.constant 0 : index
    %224 = vector.load %arg14[%c0_78, %c0_79, %c0_80] : memref<2x32x32xf32, #tpu.memory_space<vmem>>, vector<1x32x32xf32>
    %225 = vector.shape_cast %224 : vector<1x32x32xf32> to vector<32x32xf32>
    %c0_81 = arith.constant 0 : index
    %c0_82 = arith.constant 0 : index
    %c0_83 = arith.constant 0 : index
    %226 = vector.load %arg15[%c0_81, %c0_82, %c0_83] : memref<2x32x64xf32, #tpu.memory_space<vmem>>, vector<1x32x64xf32>
    %227 = vector.shape_cast %226 : vector<1x32x64xf32> to vector<32x64xf32>
    %c0_84 = arith.constant 0 : index
    %c0_85 = arith.constant 0 : index
    %c0_86 = arith.constant 0 : index
    %228 = vector.load %arg16[%c0_84, %c0_85, %c0_86] : memref<2x32x32xf32, #tpu.memory_space<vmem>>, vector<1x32x32xf32>
    %229 = vector.shape_cast %228 : vector<1x32x32xf32> to vector<32x32xf32>
    %cst_87 = arith.constant dense<0.000000e+00> : vector<16x32xf32>
    %230 = tpu.matmul %223, %225, %cst_87 {dimension_numbers = #tpu.dot_dimension_numbers<[1], [0], [0], [1], [0, 0, 1, 1], [], []>} : vector<16x32xf32>, vector<32x32xf32>, vector<16x32xf32> -> vector<16x32xf32>
    %cst_88 = arith.constant dense<0.000000e+00> : vector<32x64xf32>
    %231 = tpu.matmul %11, %227, %cst_88 {dimension_numbers = #tpu.dot_dimension_numbers<[1], [0], [0], [1], [0, 0, 1, 1], [], []>} : vector<32x32xf32>, vector<32x64xf32>, vector<32x64xf32> -> vector<32x64xf32>
    %232 = vector.extract_strided_slice %231 {offsets = [0, 0], sizes = [32, 32], strides = [1, 1]} : vector<32x64xf32> to vector<32x32xf32>
    %233 = vector.extract_strided_slice %231 {offsets = [0, 32], sizes = [32, 32], strides = [1, 1]} : vector<32x64xf32> to vector<32x32xf32>
    %234 = tpu.iota {dimensions = array<i32: 1>} : vector<8x16xi32>
    %c0_89 = arith.constant 0 : index
    %235 = memref.load %arg1[%c0_89] : memref<2xi32, #tpu.memory_space<smem>>
    %236 = vector.broadcast %235 : i32 to vector<8x16xi32>
    %237 = arith.cmpi slt, %234, %236 : vector<8x16xi32>
    %c1 = arith.constant 1 : index
    %238 = memref.load %arg1[%c1] : memref<2xi32, #tpu.memory_space<smem>>
    %239 = vector.broadcast %238 : i32 to vector<8x16xi32>
    %240 = arith.cmpi slt, %234, %239 : vector<8x16xi32>
    %241 = vector.extract_strided_slice %230 {offsets = [0, 0], sizes = [8, 32], strides = [1, 1]} : vector<16x32xf32> to vector<8x32xf32>
    %242 = vector.extract_strided_slice %232 {offsets = [0, 0], sizes = [16, 32], strides = [1, 1]} : vector<32x32xf32> to vector<16x32xf32>
    %243 = vector.extract_strided_slice %233 {offsets = [0, 0], sizes = [16, 32], strides = [1, 1]} : vector<32x32xf32> to vector<16x32xf32>
    %244 = vector.extract_strided_slice %241 {offsets = [0, 0], sizes = [8, 8], strides = [1, 1]} : vector<8x32xf32> to vector<8x8xf32>
    %245 = vector.extract_strided_slice %242 {offsets = [0, 0], sizes = [16, 8], strides = [1, 1]} : vector<16x32xf32> to vector<16x8xf32>
    %246 = vector.extract_strided_slice %243 {offsets = [0, 0], sizes = [16, 8], strides = [1, 1]} : vector<16x32xf32> to vector<16x8xf32>
    %247 = tpu.transpose %245, [1, 0] : vector<16x8xf32> -> vector<8x16xf32>
    %cst_90 = arith.constant dense<0.000000e+00> : vector<8x16xf32>
    %248 = tpu.matmul %244, %247, %cst_90 {dimension_numbers = #tpu.dot_dimension_numbers<[1], [0], [0], [1], [0, 0, 1, 1], [], []>} : vector<8x8xf32>, vector<8x16xf32>, vector<8x16xf32> -> vector<8x16xf32>
    %cst_91 = arith.constant 0.353553385 : f32
    %249 = vector.broadcast %cst_91 : f32 to vector<8x16xf32>
    %250 = arith.mulf %248, %249 : vector<8x16xf32>
    %cst_92 = arith.constant -1.000000e+06 : f32
    %251 = vector.broadcast %cst_92 : f32 to vector<8x16xf32>
    %252 = arith.select %237, %250, %251 : vector<8x16xi1>, vector<8x16xf32>
    %cst_93 = arith.constant dense<0xFF800000> : vector<8xf32>
    %253 = vector.multi_reduction <maximumf>, %252, %cst_93 [1] : vector<8x16xf32> to vector<8xf32>
    %254 = vector.shape_cast %253 : vector<8xf32> to vector<8x1xf32>
    %255 = vector.broadcast %254 : vector<8x1xf32> to vector<8x16xf32>
    %256 = arith.subf %252, %255 : vector<8x16xf32>
    %257 = math.exp %256 : vector<8x16xf32>
    %cst_94 = arith.constant dense<0.000000e+00> : vector<8xf32>
    %258 = vector.multi_reduction <add>, %257, %cst_94 [1] : vector<8x16xf32> to vector<8xf32>
    %259 = vector.shape_cast %258 : vector<8xf32> to vector<8x1xf32>
    %260 = tpu.reciprocal %259 {approx = true} : vector<8x1xf32> -> vector<8x1xf32>
    %261 = vector.broadcast %260 : vector<8x1xf32> to vector<8x16xf32>
    %262 = arith.mulf %257, %261 : vector<8x16xf32>
    %cst_95 = arith.constant dense<0.000000e+00> : vector<8x8xf32>
    %263 = tpu.matmul %262, %246, %cst_95 {dimension_numbers = #tpu.dot_dimension_numbers<[1], [0], [0], [1], [0, 0, 1, 1], [], []>} : vector<8x16xf32>, vector<16x8xf32>, vector<8x8xf32> -> vector<8x8xf32>
    %264 = vector.extract_strided_slice %241 {offsets = [0, 8], sizes = [8, 8], strides = [1, 1]} : vector<8x32xf32> to vector<8x8xf32>
    %265 = vector.extract_strided_slice %242 {offsets = [0, 8], sizes = [16, 8], strides = [1, 1]} : vector<16x32xf32> to vector<16x8xf32>
    %266 = vector.extract_strided_slice %243 {offsets = [0, 8], sizes = [16, 8], strides = [1, 1]} : vector<16x32xf32> to vector<16x8xf32>
    %267 = tpu.transpose %265, [1, 0] : vector<16x8xf32> -> vector<8x16xf32>
    %cst_96 = arith.constant dense<0.000000e+00> : vector<8x16xf32>
    %268 = tpu.matmul %264, %267, %cst_96 {dimension_numbers = #tpu.dot_dimension_numbers<[1], [0], [0], [1], [0, 0, 1, 1], [], []>} : vector<8x8xf32>, vector<8x16xf32>, vector<8x16xf32> -> vector<8x16xf32>
    %cst_97 = arith.constant 0.353553385 : f32
    %269 = vector.broadcast %cst_97 : f32 to vector<8x16xf32>
    %270 = arith.mulf %268, %269 : vector<8x16xf32>
    %cst_98 = arith.constant -1.000000e+06 : f32
    %271 = vector.broadcast %cst_98 : f32 to vector<8x16xf32>
    %272 = arith.select %237, %270, %271 : vector<8x16xi1>, vector<8x16xf32>
    %cst_99 = arith.constant dense<0xFF800000> : vector<8xf32>
    %273 = vector.multi_reduction <maximumf>, %272, %cst_99 [1] : vector<8x16xf32> to vector<8xf32>
    %274 = vector.shape_cast %273 : vector<8xf32> to vector<8x1xf32>
    %275 = vector.broadcast %274 : vector<8x1xf32> to vector<8x16xf32>
    %276 = arith.subf %272, %275 : vector<8x16xf32>
    %277 = math.exp %276 : vector<8x16xf32>
    %cst_100 = arith.constant dense<0.000000e+00> : vector<8xf32>
    %278 = vector.multi_reduction <add>, %277, %cst_100 [1] : vector<8x16xf32> to vector<8xf32>
    %279 = vector.shape_cast %278 : vector<8xf32> to vector<8x1xf32>
    %280 = tpu.reciprocal %279 {approx = true} : vector<8x1xf32> -> vector<8x1xf32>
    %281 = vector.broadcast %280 : vector<8x1xf32> to vector<8x16xf32>
    %282 = arith.mulf %277, %281 : vector<8x16xf32>
    %cst_101 = arith.constant dense<0.000000e+00> : vector<8x8xf32>
    %283 = tpu.matmul %282, %266, %cst_101 {dimension_numbers = #tpu.dot_dimension_numbers<[1], [0], [0], [1], [0, 0, 1, 1], [], []>} : vector<8x16xf32>, vector<16x8xf32>, vector<8x8xf32> -> vector<8x8xf32>
    %284 = vector.extract_strided_slice %241 {offsets = [0, 16], sizes = [8, 8], strides = [1, 1]} : vector<8x32xf32> to vector<8x8xf32>
    %285 = vector.extract_strided_slice %242 {offsets = [0, 16], sizes = [16, 8], strides = [1, 1]} : vector<16x32xf32> to vector<16x8xf32>
    %286 = vector.extract_strided_slice %243 {offsets = [0, 16], sizes = [16, 8], strides = [1, 1]} : vector<16x32xf32> to vector<16x8xf32>
    %287 = tpu.transpose %285, [1, 0] : vector<16x8xf32> -> vector<8x16xf32>
    %cst_102 = arith.constant dense<0.000000e+00> : vector<8x16xf32>
    %288 = tpu.matmul %284, %287, %cst_102 {dimension_numbers = #tpu.dot_dimension_numbers<[1], [0], [0], [1], [0, 0, 1, 1], [], []>} : vector<8x8xf32>, vector<8x16xf32>, vector<8x16xf32> -> vector<8x16xf32>
    %cst_103 = arith.constant 0.353553385 : f32
    %289 = vector.broadcast %cst_103 : f32 to vector<8x16xf32>
    %290 = arith.mulf %288, %289 : vector<8x16xf32>
    %cst_104 = arith.constant -1.000000e+06 : f32
    %291 = vector.broadcast %cst_104 : f32 to vector<8x16xf32>
    %292 = arith.select %237, %290, %291 : vector<8x16xi1>, vector<8x16xf32>
    %cst_105 = arith.constant dense<0xFF800000> : vector<8xf32>
    %293 = vector.multi_reduction <maximumf>, %292, %cst_105 [1] : vector<8x16xf32> to vector<8xf32>
    %294 = vector.shape_cast %293 : vector<8xf32> to vector<8x1xf32>
    %295 = vector.broadcast %294 : vector<8x1xf32> to vector<8x16xf32>
    %296 = arith.subf %292, %295 : vector<8x16xf32>
    %297 = math.exp %296 : vector<8x16xf32>
    %cst_106 = arith.constant dense<0.000000e+00> : vector<8xf32>
    %298 = vector.multi_reduction <add>, %297, %cst_106 [1] : vector<8x16xf32> to vector<8xf32>
    %299 = vector.shape_cast %298 : vector<8xf32> to vector<8x1xf32>
    %300 = tpu.reciprocal %299 {approx = true} : vector<8x1xf32> -> vector<8x1xf32>
    %301 = vector.broadcast %300 : vector<8x1xf32> to vector<8x16xf32>
    %302 = arith.mulf %297, %301 : vector<8x16xf32>
    %cst_107 = arith.constant dense<0.000000e+00> : vector<8x8xf32>
    %303 = tpu.matmul %302, %286, %cst_107 {dimension_numbers = #tpu.dot_dimension_numbers<[1], [0], [0], [1], [0, 0, 1, 1], [], []>} : vector<8x16xf32>, vector<16x8xf32>, vector<8x8xf32> -> vector<8x8xf32>
    %304 = vector.extract_strided_slice %241 {offsets = [0, 24], sizes = [8, 8], strides = [1, 1]} : vector<8x32xf32> to vector<8x8xf32>
    %305 = vector.extract_strided_slice %242 {offsets = [0, 24], sizes = [16, 8], strides = [1, 1]} : vector<16x32xf32> to vector<16x8xf32>
    %306 = vector.extract_strided_slice %243 {offsets = [0, 24], sizes = [16, 8], strides = [1, 1]} : vector<16x32xf32> to vector<16x8xf32>
    %307 = tpu.transpose %305, [1, 0] : vector<16x8xf32> -> vector<8x16xf32>
    %cst_108 = arith.constant dense<0.000000e+00> : vector<8x16xf32>
    %308 = tpu.matmul %304, %307, %cst_108 {dimension_numbers = #tpu.dot_dimension_numbers<[1], [0], [0], [1], [0, 0, 1, 1], [], []>} : vector<8x8xf32>, vector<8x16xf32>, vector<8x16xf32> -> vector<8x16xf32>
    %cst_109 = arith.constant 0.353553385 : f32
    %309 = vector.broadcast %cst_109 : f32 to vector<8x16xf32>
    %310 = arith.mulf %308, %309 : vector<8x16xf32>
    %cst_110 = arith.constant -1.000000e+06 : f32
    %311 = vector.broadcast %cst_110 : f32 to vector<8x16xf32>
    %312 = arith.select %237, %310, %311 : vector<8x16xi1>, vector<8x16xf32>
    %cst_111 = arith.constant dense<0xFF800000> : vector<8xf32>
    %313 = vector.multi_reduction <maximumf>, %312, %cst_111 [1] : vector<8x16xf32> to vector<8xf32>
    %314 = vector.shape_cast %313 : vector<8xf32> to vector<8x1xf32>
    %315 = vector.broadcast %314 : vector<8x1xf32> to vector<8x16xf32>
    %316 = arith.subf %312, %315 : vector<8x16xf32>
    %317 = math.exp %316 : vector<8x16xf32>
    %cst_112 = arith.constant dense<0.000000e+00> : vector<8xf32>
    %318 = vector.multi_reduction <add>, %317, %cst_112 [1] : vector<8x16xf32> to vector<8xf32>
    %319 = vector.shape_cast %318 : vector<8xf32> to vector<8x1xf32>
    %320 = tpu.reciprocal %319 {approx = true} : vector<8x1xf32> -> vector<8x1xf32>
    %321 = vector.broadcast %320 : vector<8x1xf32> to vector<8x16xf32>
    %322 = arith.mulf %317, %321 : vector<8x16xf32>
    %cst_113 = arith.constant dense<0.000000e+00> : vector<8x8xf32>
    %323 = tpu.matmul %322, %306, %cst_113 {dimension_numbers = #tpu.dot_dimension_numbers<[1], [0], [0], [1], [0, 0, 1, 1], [], []>} : vector<8x16xf32>, vector<16x8xf32>, vector<8x8xf32> -> vector<8x8xf32>
    %324 = tpu.concatenate %263, %283, %303, %323 in 1 : vector<8x8xf32>, vector<8x8xf32>, vector<8x8xf32>, vector<8x8xf32> -> vector<8x32xf32>
    %325 = vector.extract_strided_slice %230 {offsets = [8, 0], sizes = [8, 32], strides = [1, 1]} : vector<16x32xf32> to vector<8x32xf32>
    %326 = vector.extract_strided_slice %232 {offsets = [16, 0], sizes = [16, 32], strides = [1, 1]} : vector<32x32xf32> to vector<16x32xf32>
    %327 = vector.extract_strided_slice %233 {offsets = [16, 0], sizes = [16, 32], strides = [1, 1]} : vector<32x32xf32> to vector<16x32xf32>
    %328 = vector.extract_strided_slice %325 {offsets = [0, 0], sizes = [8, 8], strides = [1, 1]} : vector<8x32xf32> to vector<8x8xf32>
    %329 = vector.extract_strided_slice %326 {offsets = [0, 0], sizes = [16, 8], strides = [1, 1]} : vector<16x32xf32> to vector<16x8xf32>
    %330 = vector.extract_strided_slice %327 {offsets = [0, 0], sizes = [16, 8], strides = [1, 1]} : vector<16x32xf32> to vector<16x8xf32>
    %331 = tpu.transpose %329, [1, 0] : vector<16x8xf32> -> vector<8x16xf32>
    %cst_114 = arith.constant dense<0.000000e+00> : vector<8x16xf32>
    %332 = tpu.matmul %328, %331, %cst_114 {dimension_numbers = #tpu.dot_dimension_numbers<[1], [0], [0], [1], [0, 0, 1, 1], [], []>} : vector<8x8xf32>, vector<8x16xf32>, vector<8x16xf32> -> vector<8x16xf32>
    %cst_115 = arith.constant 0.353553385 : f32
    %333 = vector.broadcast %cst_115 : f32 to vector<8x16xf32>
    %334 = arith.mulf %332, %333 : vector<8x16xf32>
    %cst_116 = arith.constant -1.000000e+06 : f32
    %335 = vector.broadcast %cst_116 : f32 to vector<8x16xf32>
    %336 = arith.select %240, %334, %335 : vector<8x16xi1>, vector<8x16xf32>
    %cst_117 = arith.constant dense<0xFF800000> : vector<8xf32>
    %337 = vector.multi_reduction <maximumf>, %336, %cst_117 [1] : vector<8x16xf32> to vector<8xf32>
    %338 = vector.shape_cast %337 : vector<8xf32> to vector<8x1xf32>
    %339 = vector.broadcast %338 : vector<8x1xf32> to vector<8x16xf32>
    %340 = arith.subf %336, %339 : vector<8x16xf32>
    %341 = math.exp %340 : vector<8x16xf32>
    %cst_118 = arith.constant dense<0.000000e+00> : vector<8xf32>
    %342 = vector.multi_reduction <add>, %341, %cst_118 [1] : vector<8x16xf32> to vector<8xf32>
    %343 = vector.shape_cast %342 : vector<8xf32> to vector<8x1xf32>
    %344 = tpu.reciprocal %343 {approx = true} : vector<8x1xf32> -> vector<8x1xf32>
    %345 = vector.broadcast %344 : vector<8x1xf32> to vector<8x16xf32>
    %346 = arith.mulf %341, %345 : vector<8x16xf32>
    %cst_119 = arith.constant dense<0.000000e+00> : vector<8x8xf32>
    %347 = tpu.matmul %346, %330, %cst_119 {dimension_numbers = #tpu.dot_dimension_numbers<[1], [0], [0], [1], [0, 0, 1, 1], [], []>} : vector<8x16xf32>, vector<16x8xf32>, vector<8x8xf32> -> vector<8x8xf32>
    %348 = vector.extract_strided_slice %325 {offsets = [0, 8], sizes = [8, 8], strides = [1, 1]} : vector<8x32xf32> to vector<8x8xf32>
    %349 = vector.extract_strided_slice %326 {offsets = [0, 8], sizes = [16, 8], strides = [1, 1]} : vector<16x32xf32> to vector<16x8xf32>
    %350 = vector.extract_strided_slice %327 {offsets = [0, 8], sizes = [16, 8], strides = [1, 1]} : vector<16x32xf32> to vector<16x8xf32>
    %351 = tpu.transpose %349, [1, 0] : vector<16x8xf32> -> vector<8x16xf32>
    %cst_120 = arith.constant dense<0.000000e+00> : vector<8x16xf32>
    %352 = tpu.matmul %348, %351, %cst_120 {dimension_numbers = #tpu.dot_dimension_numbers<[1], [0], [0], [1], [0, 0, 1, 1], [], []>} : vector<8x8xf32>, vector<8x16xf32>, vector<8x16xf32> -> vector<8x16xf32>
    %cst_121 = arith.constant 0.353553385 : f32
    %353 = vector.broadcast %cst_121 : f32 to vector<8x16xf32>
    %354 = arith.mulf %352, %353 : vector<8x16xf32>
    %cst_122 = arith.constant -1.000000e+06 : f32
    %355 = vector.broadcast %cst_122 : f32 to vector<8x16xf32>
    %356 = arith.select %240, %354, %355 : vector<8x16xi1>, vector<8x16xf32>
    %cst_123 = arith.constant dense<0xFF800000> : vector<8xf32>
    %357 = vector.multi_reduction <maximumf>, %356, %cst_123 [1] : vector<8x16xf32> to vector<8xf32>
    %358 = vector.shape_cast %357 : vector<8xf32> to vector<8x1xf32>
    %359 = vector.broadcast %358 : vector<8x1xf32> to vector<8x16xf32>
    %360 = arith.subf %356, %359 : vector<8x16xf32>
    %361 = math.exp %360 : vector<8x16xf32>
    %cst_124 = arith.constant dense<0.000000e+00> : vector<8xf32>
    %362 = vector.multi_reduction <add>, %361, %cst_124 [1] : vector<8x16xf32> to vector<8xf32>
    %363 = vector.shape_cast %362 : vector<8xf32> to vector<8x1xf32>
    %364 = tpu.reciprocal %363 {approx = true} : vector<8x1xf32> -> vector<8x1xf32>
    %365 = vector.broadcast %364 : vector<8x1xf32> to vector<8x16xf32>
    %366 = arith.mulf %361, %365 : vector<8x16xf32>
    %cst_125 = arith.constant dense<0.000000e+00> : vector<8x8xf32>
    %367 = tpu.matmul %366, %350, %cst_125 {dimension_numbers = #tpu.dot_dimension_numbers<[1], [0], [0], [1], [0, 0, 1, 1], [], []>} : vector<8x16xf32>, vector<16x8xf32>, vector<8x8xf32> -> vector<8x8xf32>
    %368 = vector.extract_strided_slice %325 {offsets = [0, 16], sizes = [8, 8], strides = [1, 1]} : vector<8x32xf32> to vector<8x8xf32>
    %369 = vector.extract_strided_slice %326 {offsets = [0, 16], sizes = [16, 8], strides = [1, 1]} : vector<16x32xf32> to vector<16x8xf32>
    %370 = vector.extract_strided_slice %327 {offsets = [0, 16], sizes = [16, 8], strides = [1, 1]} : vector<16x32xf32> to vector<16x8xf32>
    %371 = tpu.transpose %369, [1, 0] : vector<16x8xf32> -> vector<8x16xf32>
    %cst_126 = arith.constant dense<0.000000e+00> : vector<8x16xf32>
    %372 = tpu.matmul %368, %371, %cst_126 {dimension_numbers = #tpu.dot_dimension_numbers<[1], [0], [0], [1], [0, 0, 1, 1], [], []>} : vector<8x8xf32>, vector<8x16xf32>, vector<8x16xf32> -> vector<8x16xf32>
    %cst_127 = arith.constant 0.353553385 : f32
    %373 = vector.broadcast %cst_127 : f32 to vector<8x16xf32>
    %374 = arith.mulf %372, %373 : vector<8x16xf32>
    %cst_128 = arith.constant -1.000000e+06 : f32
    %375 = vector.broadcast %cst_128 : f32 to vector<8x16xf32>
    %376 = arith.select %240, %374, %375 : vector<8x16xi1>, vector<8x16xf32>
    %cst_129 = arith.constant dense<0xFF800000> : vector<8xf32>
    %377 = vector.multi_reduction <maximumf>, %376, %cst_129 [1] : vector<8x16xf32> to vector<8xf32>
    %378 = vector.shape_cast %377 : vector<8xf32> to vector<8x1xf32>
    %379 = vector.broadcast %378 : vector<8x1xf32> to vector<8x16xf32>
    %380 = arith.subf %376, %379 : vector<8x16xf32>
    %381 = math.exp %380 : vector<8x16xf32>
    %cst_130 = arith.constant dense<0.000000e+00> : vector<8xf32>
    %382 = vector.multi_reduction <add>, %381, %cst_130 [1] : vector<8x16xf32> to vector<8xf32>
    %383 = vector.shape_cast %382 : vector<8xf32> to vector<8x1xf32>
    %384 = tpu.reciprocal %383 {approx = true} : vector<8x1xf32> -> vector<8x1xf32>
    %385 = vector.broadcast %384 : vector<8x1xf32> to vector<8x16xf32>
    %386 = arith.mulf %381, %385 : vector<8x16xf32>
    %cst_131 = arith.constant dense<0.000000e+00> : vector<8x8xf32>
    %387 = tpu.matmul %386, %370, %cst_131 {dimension_numbers = #tpu.dot_dimension_numbers<[1], [0], [0], [1], [0, 0, 1, 1], [], []>} : vector<8x16xf32>, vector<16x8xf32>, vector<8x8xf32> -> vector<8x8xf32>
    %388 = vector.extract_strided_slice %325 {offsets = [0, 24], sizes = [8, 8], strides = [1, 1]} : vector<8x32xf32> to vector<8x8xf32>
    %389 = vector.extract_strided_slice %326 {offsets = [0, 24], sizes = [16, 8], strides = [1, 1]} : vector<16x32xf32> to vector<16x8xf32>
    %390 = vector.extract_strided_slice %327 {offsets = [0, 24], sizes = [16, 8], strides = [1, 1]} : vector<16x32xf32> to vector<16x8xf32>
    %391 = tpu.transpose %389, [1, 0] : vector<16x8xf32> -> vector<8x16xf32>
    %cst_132 = arith.constant dense<0.000000e+00> : vector<8x16xf32>
    %392 = tpu.matmul %388, %391, %cst_132 {dimension_numbers = #tpu.dot_dimension_numbers<[1], [0], [0], [1], [0, 0, 1, 1], [], []>} : vector<8x8xf32>, vector<8x16xf32>, vector<8x16xf32> -> vector<8x16xf32>
    %cst_133 = arith.constant 0.353553385 : f32
    %393 = vector.broadcast %cst_133 : f32 to vector<8x16xf32>
    %394 = arith.mulf %392, %393 : vector<8x16xf32>
    %cst_134 = arith.constant -1.000000e+06 : f32
    %395 = vector.broadcast %cst_134 : f32 to vector<8x16xf32>
    %396 = arith.select %240, %394, %395 : vector<8x16xi1>, vector<8x16xf32>
    %cst_135 = arith.constant dense<0xFF800000> : vector<8xf32>
    %397 = vector.multi_reduction <maximumf>, %396, %cst_135 [1] : vector<8x16xf32> to vector<8xf32>
    %398 = vector.shape_cast %397 : vector<8xf32> to vector<8x1xf32>
    %399 = vector.broadcast %398 : vector<8x1xf32> to vector<8x16xf32>
    %400 = arith.subf %396, %399 : vector<8x16xf32>
    %401 = math.exp %400 : vector<8x16xf32>
    %cst_136 = arith.constant dense<0.000000e+00> : vector<8xf32>
    %402 = vector.multi_reduction <add>, %401, %cst_136 [1] : vector<8x16xf32> to vector<8xf32>
    %403 = vector.shape_cast %402 : vector<8xf32> to vector<8x1xf32>
    %404 = tpu.reciprocal %403 {approx = true} : vector<8x1xf32> -> vector<8x1xf32>
    %405 = vector.broadcast %404 : vector<8x1xf32> to vector<8x16xf32>
    %406 = arith.mulf %401, %405 : vector<8x16xf32>
    %cst_137 = arith.constant dense<0.000000e+00> : vector<8x8xf32>
    %407 = tpu.matmul %406, %390, %cst_137 {dimension_numbers = #tpu.dot_dimension_numbers<[1], [0], [0], [1], [0, 0, 1, 1], [], []>} : vector<8x16xf32>, vector<16x8xf32>, vector<8x8xf32> -> vector<8x8xf32>
    %408 = tpu.concatenate %347, %367, %387, %407 in 1 : vector<8x8xf32>, vector<8x8xf32>, vector<8x8xf32>, vector<8x8xf32> -> vector<8x32xf32>
    %409 = tpu.concatenate %324, %408 in 0 : vector<8x32xf32>, vector<8x32xf32> -> vector<16x32xf32>
    %cst_138 = arith.constant dense<0.000000e+00> : vector<16x32xf32>
    %410 = tpu.matmul %409, %229, %cst_138 {dimension_numbers = #tpu.dot_dimension_numbers<[1], [0], [0], [1], [0, 0, 1, 1], [], []>} : vector<16x32xf32>, vector<32x32xf32>, vector<16x32xf32> -> vector<16x32xf32>
    %c0_139 = arith.constant 0 : index
    %c0_140 = arith.constant 0 : index
    %c0_141 = arith.constant 0 : index
    %411 = vector.load %arg17[%c0_139, %c0_140, %c0_141] : memref<2x32x32xf32, #tpu.memory_space<vmem>>, vector<1x32x32xf32>
    %412 = vector.shape_cast %411 : vector<1x32x32xf32> to vector<32x32xf32>
    %c0_142 = arith.constant 0 : index
    %c0_143 = arith.constant 0 : index
    %c0_144 = arith.constant 0 : index
    %413 = vector.load %arg18[%c0_142, %c0_143, %c0_144] : memref<2x32x64xf32, #tpu.memory_space<vmem>>, vector<1x32x64xf32>
    %414 = vector.shape_cast %413 : vector<1x32x64xf32> to vector<32x64xf32>
    %c0_145 = arith.constant 0 : index
    %c0_146 = arith.constant 0 : index
    %c0_147 = arith.constant 0 : index
    %415 = vector.load %arg19[%c0_145, %c0_146, %c0_147] : memref<2x32x32xf32, #tpu.memory_space<vmem>>, vector<1x32x32xf32>
    %416 = vector.shape_cast %415 : vector<1x32x32xf32> to vector<32x32xf32>
    %cst_148 = arith.constant dense<0.000000e+00> : vector<16x32xf32>
    %417 = tpu.matmul %223, %412, %cst_148 {dimension_numbers = #tpu.dot_dimension_numbers<[1], [0], [0], [1], [0, 0, 1, 1], [], []>} : vector<16x32xf32>, vector<32x32xf32>, vector<16x32xf32> -> vector<16x32xf32>
    %cst_149 = arith.constant dense<0.000000e+00> : vector<16x64xf32>
    %418 = tpu.matmul %13, %414, %cst_149 {dimension_numbers = #tpu.dot_dimension_numbers<[1], [0], [0], [1], [0, 0, 1, 1], [], []>} : vector<16x32xf32>, vector<32x64xf32>, vector<16x64xf32> -> vector<16x64xf32>
    %419 = vector.extract_strided_slice %418 {offsets = [0, 0], sizes = [16, 32], strides = [1, 1]} : vector<16x64xf32> to vector<16x32xf32>
    %420 = vector.extract_strided_slice %418 {offsets = [0, 32], sizes = [16, 32], strides = [1, 1]} : vector<16x64xf32> to vector<16x32xf32>
    %421 = tpu.iota {dimensions = array<i32: 1>} : vector<8x8xi32>
    %c0_150 = arith.constant 0 : index
    %422 = memref.load %arg3[%c0_150] : memref<2xi32, #tpu.memory_space<smem>>
    %423 = vector.broadcast %422 : i32 to vector<8x8xi32>
    %424 = arith.cmpi slt, %421, %423 : vector<8x8xi32>
    %c1_151 = arith.constant 1 : index
    %425 = memref.load %arg3[%c1_151] : memref<2xi32, #tpu.memory_space<smem>>
    %426 = vector.broadcast %425 : i32 to vector<8x8xi32>
    %427 = arith.cmpi slt, %421, %426 : vector<8x8xi32>
    %428 = vector.extract_strided_slice %417 {offsets = [0, 0], sizes = [8, 32], strides = [1, 1]} : vector<16x32xf32> to vector<8x32xf32>
    %429 = vector.extract_strided_slice %419 {offsets = [0, 0], sizes = [8, 32], strides = [1, 1]} : vector<16x32xf32> to vector<8x32xf32>
    %430 = vector.extract_strided_slice %420 {offsets = [0, 0], sizes = [8, 32], strides = [1, 1]} : vector<16x32xf32> to vector<8x32xf32>
    %431 = vector.extract_strided_slice %428 {offsets = [0, 0], sizes = [8, 8], strides = [1, 1]} : vector<8x32xf32> to vector<8x8xf32>
    %432 = vector.extract_strided_slice %429 {offsets = [0, 0], sizes = [8, 8], strides = [1, 1]} : vector<8x32xf32> to vector<8x8xf32>
    %433 = vector.extract_strided_slice %430 {offsets = [0, 0], sizes = [8, 8], strides = [1, 1]} : vector<8x32xf32> to vector<8x8xf32>
    %434 = tpu.transpose %432, [1, 0] : vector<8x8xf32> -> vector<8x8xf32>
    %cst_152 = arith.constant dense<0.000000e+00> : vector<8x8xf32>
    %435 = tpu.matmul %431, %434, %cst_152 {dimension_numbers = #tpu.dot_dimension_numbers<[1], [0], [0], [1], [0, 0, 1, 1], [], []>} : vector<8x8xf32>, vector<8x8xf32>, vector<8x8xf32> -> vector<8x8xf32>
    %cst_153 = arith.constant 0.353553385 : f32
    %436 = vector.broadcast %cst_153 : f32 to vector<8x8xf32>
    %437 = arith.mulf %435, %436 : vector<8x8xf32>
    %cst_154 = arith.constant -1.000000e+06 : f32
    %438 = vector.broadcast %cst_154 : f32 to vector<8x8xf32>
    %439 = arith.select %424, %437, %438 : vector<8x8xi1>, vector<8x8xf32>
    %cst_155 = arith.constant dense<0xFF800000> : vector<8xf32>
    %440 = vector.multi_reduction <maximumf>, %439, %cst_155 [1] : vector<8x8xf32> to vector<8xf32>
    %441 = vector.shape_cast %440 : vector<8xf32> to vector<8x1xf32>
    %442 = vector.broadcast %441 : vector<8x1xf32> to vector<8x8xf32>
    %443 = arith.subf %439, %442 : vector<8x8xf32>
    %444 = math.exp %443 : vector<8x8xf32>
    %cst_156 = arith.constant dense<0.000000e+00> : vector<8xf32>
    %445 = vector.multi_reduction <add>, %444, %cst_156 [1] : vector<8x8xf32> to vector<8xf32>
    %446 = vector.shape_cast %445 : vector<8xf32> to vector<8x1xf32>
    %447 = tpu.reciprocal %446 {approx = true} : vector<8x1xf32> -> vector<8x1xf32>
    %448 = vector.broadcast %447 : vector<8x1xf32> to vector<8x8xf32>
    %449 = arith.mulf %444, %448 : vector<8x8xf32>
    %cst_157 = arith.constant dense<0.000000e+00> : vector<8x8xf32>
    %450 = tpu.matmul %449, %433, %cst_157 {dimension_numbers = #tpu.dot_dimension_numbers<[1], [0], [0], [1], [0, 0, 1, 1], [], []>} : vector<8x8xf32>, vector<8x8xf32>, vector<8x8xf32> -> vector<8x8xf32>
    %451 = vector.extract_strided_slice %428 {offsets = [0, 8], sizes = [8, 8], strides = [1, 1]} : vector<8x32xf32> to vector<8x8xf32>
    %452 = vector.extract_strided_slice %429 {offsets = [0, 8], sizes = [8, 8], strides = [1, 1]} : vector<8x32xf32> to vector<8x8xf32>
    %453 = vector.extract_strided_slice %430 {offsets = [0, 8], sizes = [8, 8], strides = [1, 1]} : vector<8x32xf32> to vector<8x8xf32>
    %454 = tpu.transpose %452, [1, 0] : vector<8x8xf32> -> vector<8x8xf32>
    %cst_158 = arith.constant dense<0.000000e+00> : vector<8x8xf32>
    %455 = tpu.matmul %451, %454, %cst_158 {dimension_numbers = #tpu.dot_dimension_numbers<[1], [0], [0], [1], [0, 0, 1, 1], [], []>} : vector<8x8xf32>, vector<8x8xf32>, vector<8x8xf32> -> vector<8x8xf32>
    %cst_159 = arith.constant 0.353553385 : f32
    %456 = vector.broadcast %cst_159 : f32 to vector<8x8xf32>
    %457 = arith.mulf %455, %456 : vector<8x8xf32>
    %cst_160 = arith.constant -1.000000e+06 : f32
    %458 = vector.broadcast %cst_160 : f32 to vector<8x8xf32>
    %459 = arith.select %424, %457, %458 : vector<8x8xi1>, vector<8x8xf32>
    %cst_161 = arith.constant dense<0xFF800000> : vector<8xf32>
    %460 = vector.multi_reduction <maximumf>, %459, %cst_161 [1] : vector<8x8xf32> to vector<8xf32>
    %461 = vector.shape_cast %460 : vector<8xf32> to vector<8x1xf32>
    %462 = vector.broadcast %461 : vector<8x1xf32> to vector<8x8xf32>
    %463 = arith.subf %459, %462 : vector<8x8xf32>
    %464 = math.exp %463 : vector<8x8xf32>
    %cst_162 = arith.constant dense<0.000000e+00> : vector<8xf32>
    %465 = vector.multi_reduction <add>, %464, %cst_162 [1] : vector<8x8xf32> to vector<8xf32>
    %466 = vector.shape_cast %465 : vector<8xf32> to vector<8x1xf32>
    %467 = tpu.reciprocal %466 {approx = true} : vector<8x1xf32> -> vector<8x1xf32>
    %468 = vector.broadcast %467 : vector<8x1xf32> to vector<8x8xf32>
    %469 = arith.mulf %464, %468 : vector<8x8xf32>
    %cst_163 = arith.constant dense<0.000000e+00> : vector<8x8xf32>
    %470 = tpu.matmul %469, %453, %cst_163 {dimension_numbers = #tpu.dot_dimension_numbers<[1], [0], [0], [1], [0, 0, 1, 1], [], []>} : vector<8x8xf32>, vector<8x8xf32>, vector<8x8xf32> -> vector<8x8xf32>
    %471 = vector.extract_strided_slice %428 {offsets = [0, 16], sizes = [8, 8], strides = [1, 1]} : vector<8x32xf32> to vector<8x8xf32>
    %472 = vector.extract_strided_slice %429 {offsets = [0, 16], sizes = [8, 8], strides = [1, 1]} : vector<8x32xf32> to vector<8x8xf32>
    %473 = vector.extract_strided_slice %430 {offsets = [0, 16], sizes = [8, 8], strides = [1, 1]} : vector<8x32xf32> to vector<8x8xf32>
    %474 = tpu.transpose %472, [1, 0] : vector<8x8xf32> -> vector<8x8xf32>
    %cst_164 = arith.constant dense<0.000000e+00> : vector<8x8xf32>
    %475 = tpu.matmul %471, %474, %cst_164 {dimension_numbers = #tpu.dot_dimension_numbers<[1], [0], [0], [1], [0, 0, 1, 1], [], []>} : vector<8x8xf32>, vector<8x8xf32>, vector<8x8xf32> -> vector<8x8xf32>
    %cst_165 = arith.constant 0.353553385 : f32
    %476 = vector.broadcast %cst_165 : f32 to vector<8x8xf32>
    %477 = arith.mulf %475, %476 : vector<8x8xf32>
    %cst_166 = arith.constant -1.000000e+06 : f32
    %478 = vector.broadcast %cst_166 : f32 to vector<8x8xf32>
    %479 = arith.select %424, %477, %478 : vector<8x8xi1>, vector<8x8xf32>
    %cst_167 = arith.constant dense<0xFF800000> : vector<8xf32>
    %480 = vector.multi_reduction <maximumf>, %479, %cst_167 [1] : vector<8x8xf32> to vector<8xf32>
    %481 = vector.shape_cast %480 : vector<8xf32> to vector<8x1xf32>
    %482 = vector.broadcast %481 : vector<8x1xf32> to vector<8x8xf32>
    %483 = arith.subf %479, %482 : vector<8x8xf32>
    %484 = math.exp %483 : vector<8x8xf32>
    %cst_168 = arith.constant dense<0.000000e+00> : vector<8xf32>
    %485 = vector.multi_reduction <add>, %484, %cst_168 [1] : vector<8x8xf32> to vector<8xf32>
    %486 = vector.shape_cast %485 : vector<8xf32> to vector<8x1xf32>
    %487 = tpu.reciprocal %486 {approx = true} : vector<8x1xf32> -> vector<8x1xf32>
    %488 = vector.broadcast %487 : vector<8x1xf32> to vector<8x8xf32>
    %489 = arith.mulf %484, %488 : vector<8x8xf32>
    %cst_169 = arith.constant dense<0.000000e+00> : vector<8x8xf32>
    %490 = tpu.matmul %489, %473, %cst_169 {dimension_numbers = #tpu.dot_dimension_numbers<[1], [0], [0], [1], [0, 0, 1, 1], [], []>} : vector<8x8xf32>, vector<8x8xf32>, vector<8x8xf32> -> vector<8x8xf32>
    %491 = vector.extract_strided_slice %428 {offsets = [0, 24], sizes = [8, 8], strides = [1, 1]} : vector<8x32xf32> to vector<8x8xf32>
    %492 = vector.extract_strided_slice %429 {offsets = [0, 24], sizes = [8, 8], strides = [1, 1]} : vector<8x32xf32> to vector<8x8xf32>
    %493 = vector.extract_strided_slice %430 {offsets = [0, 24], sizes = [8, 8], strides = [1, 1]} : vector<8x32xf32> to vector<8x8xf32>
    %494 = tpu.transpose %492, [1, 0] : vector<8x8xf32> -> vector<8x8xf32>
    %cst_170 = arith.constant dense<0.000000e+00> : vector<8x8xf32>
    %495 = tpu.matmul %491, %494, %cst_170 {dimension_numbers = #tpu.dot_dimension_numbers<[1], [0], [0], [1], [0, 0, 1, 1], [], []>} : vector<8x8xf32>, vector<8x8xf32>, vector<8x8xf32> -> vector<8x8xf32>
    %cst_171 = arith.constant 0.353553385 : f32
    %496 = vector.broadcast %cst_171 : f32 to vector<8x8xf32>
    %497 = arith.mulf %495, %496 : vector<8x8xf32>
    %cst_172 = arith.constant -1.000000e+06 : f32
    %498 = vector.broadcast %cst_172 : f32 to vector<8x8xf32>
    %499 = arith.select %424, %497, %498 : vector<8x8xi1>, vector<8x8xf32>
    %cst_173 = arith.constant dense<0xFF800000> : vector<8xf32>
    %500 = vector.multi_reduction <maximumf>, %499, %cst_173 [1] : vector<8x8xf32> to vector<8xf32>
    %501 = vector.shape_cast %500 : vector<8xf32> to vector<8x1xf32>
    %502 = vector.broadcast %501 : vector<8x1xf32> to vector<8x8xf32>
    %503 = arith.subf %499, %502 : vector<8x8xf32>
    %504 = math.exp %503 : vector<8x8xf32>
    %cst_174 = arith.constant dense<0.000000e+00> : vector<8xf32>
    %505 = vector.multi_reduction <add>, %504, %cst_174 [1] : vector<8x8xf32> to vector<8xf32>
    %506 = vector.shape_cast %505 : vector<8xf32> to vector<8x1xf32>
    %507 = tpu.reciprocal %506 {approx = true} : vector<8x1xf32> -> vector<8x1xf32>
    %508 = vector.broadcast %507 : vector<8x1xf32> to vector<8x8xf32>
    %509 = arith.mulf %504, %508 : vector<8x8xf32>
    %cst_175 = arith.constant dense<0.000000e+00> : vector<8x8xf32>
    %510 = tpu.matmul %509, %493, %cst_175 {dimension_numbers = #tpu.dot_dimension_numbers<[1], [0], [0], [1], [0, 0, 1, 1], [], []>} : vector<8x8xf32>, vector<8x8xf32>, vector<8x8xf32> -> vector<8x8xf32>
    %511 = tpu.concatenate %450, %470, %490, %510 in 1 : vector<8x8xf32>, vector<8x8xf32>, vector<8x8xf32>, vector<8x8xf32> -> vector<8x32xf32>
    %512 = vector.extract_strided_slice %417 {offsets = [8, 0], sizes = [8, 32], strides = [1, 1]} : vector<16x32xf32> to vector<8x32xf32>
    %513 = vector.extract_strided_slice %419 {offsets = [8, 0], sizes = [8, 32], strides = [1, 1]} : vector<16x32xf32> to vector<8x32xf32>
    %514 = vector.extract_strided_slice %420 {offsets = [8, 0], sizes = [8, 32], strides = [1, 1]} : vector<16x32xf32> to vector<8x32xf32>
    %515 = vector.extract_strided_slice %512 {offsets = [0, 0], sizes = [8, 8], strides = [1, 1]} : vector<8x32xf32> to vector<8x8xf32>
    %516 = vector.extract_strided_slice %513 {offsets = [0, 0], sizes = [8, 8], strides = [1, 1]} : vector<8x32xf32> to vector<8x8xf32>
    %517 = vector.extract_strided_slice %514 {offsets = [0, 0], sizes = [8, 8], strides = [1, 1]} : vector<8x32xf32> to vector<8x8xf32>
    %518 = tpu.transpose %516, [1, 0] : vector<8x8xf32> -> vector<8x8xf32>
    %cst_176 = arith.constant dense<0.000000e+00> : vector<8x8xf32>
    %519 = tpu.matmul %515, %518, %cst_176 {dimension_numbers = #tpu.dot_dimension_numbers<[1], [0], [0], [1], [0, 0, 1, 1], [], []>} : vector<8x8xf32>, vector<8x8xf32>, vector<8x8xf32> -> vector<8x8xf32>
    %cst_177 = arith.constant 0.353553385 : f32
    %520 = vector.broadcast %cst_177 : f32 to vector<8x8xf32>
    %521 = arith.mulf %519, %520 : vector<8x8xf32>
    %cst_178 = arith.constant -1.000000e+06 : f32
    %522 = vector.broadcast %cst_178 : f32 to vector<8x8xf32>
    %523 = arith.select %427, %521, %522 : vector<8x8xi1>, vector<8x8xf32>
    %cst_179 = arith.constant dense<0xFF800000> : vector<8xf32>
    %524 = vector.multi_reduction <maximumf>, %523, %cst_179 [1] : vector<8x8xf32> to vector<8xf32>
    %525 = vector.shape_cast %524 : vector<8xf32> to vector<8x1xf32>
    %526 = vector.broadcast %525 : vector<8x1xf32> to vector<8x8xf32>
    %527 = arith.subf %523, %526 : vector<8x8xf32>
    %528 = math.exp %527 : vector<8x8xf32>
    %cst_180 = arith.constant dense<0.000000e+00> : vector<8xf32>
    %529 = vector.multi_reduction <add>, %528, %cst_180 [1] : vector<8x8xf32> to vector<8xf32>
    %530 = vector.shape_cast %529 : vector<8xf32> to vector<8x1xf32>
    %531 = tpu.reciprocal %530 {approx = true} : vector<8x1xf32> -> vector<8x1xf32>
    %532 = vector.broadcast %531 : vector<8x1xf32> to vector<8x8xf32>
    %533 = arith.mulf %528, %532 : vector<8x8xf32>
    %cst_181 = arith.constant dense<0.000000e+00> : vector<8x8xf32>
    %534 = tpu.matmul %533, %517, %cst_181 {dimension_numbers = #tpu.dot_dimension_numbers<[1], [0], [0], [1], [0, 0, 1, 1], [], []>} : vector<8x8xf32>, vector<8x8xf32>, vector<8x8xf32> -> vector<8x8xf32>
    %535 = vector.extract_strided_slice %512 {offsets = [0, 8], sizes = [8, 8], strides = [1, 1]} : vector<8x32xf32> to vector<8x8xf32>
    %536 = vector.extract_strided_slice %513 {offsets = [0, 8], sizes = [8, 8], strides = [1, 1]} : vector<8x32xf32> to vector<8x8xf32>
    %537 = vector.extract_strided_slice %514 {offsets = [0, 8], sizes = [8, 8], strides = [1, 1]} : vector<8x32xf32> to vector<8x8xf32>
    %538 = tpu.transpose %536, [1, 0] : vector<8x8xf32> -> vector<8x8xf32>
    %cst_182 = arith.constant dense<0.000000e+00> : vector<8x8xf32>
    %539 = tpu.matmul %535, %538, %cst_182 {dimension_numbers = #tpu.dot_dimension_numbers<[1], [0], [0], [1], [0, 0, 1, 1], [], []>} : vector<8x8xf32>, vector<8x8xf32>, vector<8x8xf32> -> vector<8x8xf32>
    %cst_183 = arith.constant 0.353553385 : f32
    %540 = vector.broadcast %cst_183 : f32 to vector<8x8xf32>
    %541 = arith.mulf %539, %540 : vector<8x8xf32>
    %cst_184 = arith.constant -1.000000e+06 : f32
    %542 = vector.broadcast %cst_184 : f32 to vector<8x8xf32>
    %543 = arith.select %427, %541, %542 : vector<8x8xi1>, vector<8x8xf32>
    %cst_185 = arith.constant dense<0xFF800000> : vector<8xf32>
    %544 = vector.multi_reduction <maximumf>, %543, %cst_185 [1] : vector<8x8xf32> to vector<8xf32>
    %545 = vector.shape_cast %544 : vector<8xf32> to vector<8x1xf32>
    %546 = vector.broadcast %545 : vector<8x1xf32> to vector<8x8xf32>
    %547 = arith.subf %543, %546 : vector<8x8xf32>
    %548 = math.exp %547 : vector<8x8xf32>
    %cst_186 = arith.constant dense<0.000000e+00> : vector<8xf32>
    %549 = vector.multi_reduction <add>, %548, %cst_186 [1] : vector<8x8xf32> to vector<8xf32>
    %550 = vector.shape_cast %549 : vector<8xf32> to vector<8x1xf32>
    %551 = tpu.reciprocal %550 {approx = true} : vector<8x1xf32> -> vector<8x1xf32>
    %552 = vector.broadcast %551 : vector<8x1xf32> to vector<8x8xf32>
    %553 = arith.mulf %548, %552 : vector<8x8xf32>
    %cst_187 = arith.constant dense<0.000000e+00> : vector<8x8xf32>
    %554 = tpu.matmul %553, %537, %cst_187 {dimension_numbers = #tpu.dot_dimension_numbers<[1], [0], [0], [1], [0, 0, 1, 1], [], []>} : vector<8x8xf32>, vector<8x8xf32>, vector<8x8xf32> -> vector<8x8xf32>
    %555 = vector.extract_strided_slice %512 {offsets = [0, 16], sizes = [8, 8], strides = [1, 1]} : vector<8x32xf32> to vector<8x8xf32>
    %556 = vector.extract_strided_slice %513 {offsets = [0, 16], sizes = [8, 8], strides = [1, 1]} : vector<8x32xf32> to vector<8x8xf32>
    %557 = vector.extract_strided_slice %514 {offsets = [0, 16], sizes = [8, 8], strides = [1, 1]} : vector<8x32xf32> to vector<8x8xf32>
    %558 = tpu.transpose %556, [1, 0] : vector<8x8xf32> -> vector<8x8xf32>
    %cst_188 = arith.constant dense<0.000000e+00> : vector<8x8xf32>
    %559 = tpu.matmul %555, %558, %cst_188 {dimension_numbers = #tpu.dot_dimension_numbers<[1], [0], [0], [1], [0, 0, 1, 1], [], []>} : vector<8x8xf32>, vector<8x8xf32>, vector<8x8xf32> -> vector<8x8xf32>
    %cst_189 = arith.constant 0.353553385 : f32
    %560 = vector.broadcast %cst_189 : f32 to vector<8x8xf32>
    %561 = arith.mulf %559, %560 : vector<8x8xf32>
    %cst_190 = arith.constant -1.000000e+06 : f32
    %562 = vector.broadcast %cst_190 : f32 to vector<8x8xf32>
    %563 = arith.select %427, %561, %562 : vector<8x8xi1>, vector<8x8xf32>
    %cst_191 = arith.constant dense<0xFF800000> : vector<8xf32>
    %564 = vector.multi_reduction <maximumf>, %563, %cst_191 [1] : vector<8x8xf32> to vector<8xf32>
    %565 = vector.shape_cast %564 : vector<8xf32> to vector<8x1xf32>
    %566 = vector.broadcast %565 : vector<8x1xf32> to vector<8x8xf32>
    %567 = arith.subf %563, %566 : vector<8x8xf32>
    %568 = math.exp %567 : vector<8x8xf32>
    %cst_192 = arith.constant dense<0.000000e+00> : vector<8xf32>
    %569 = vector.multi_reduction <add>, %568, %cst_192 [1] : vector<8x8xf32> to vector<8xf32>
    %570 = vector.shape_cast %569 : vector<8xf32> to vector<8x1xf32>
    %571 = tpu.reciprocal %570 {approx = true} : vector<8x1xf32> -> vector<8x1xf32>
    %572 = vector.broadcast %571 : vector<8x1xf32> to vector<8x8xf32>
    %573 = arith.mulf %568, %572 : vector<8x8xf32>
    %cst_193 = arith.constant dense<0.000000e+00> : vector<8x8xf32>
    %574 = tpu.matmul %573, %557, %cst_193 {dimension_numbers = #tpu.dot_dimension_numbers<[1], [0], [0], [1], [0, 0, 1, 1], [], []>} : vector<8x8xf32>, vector<8x8xf32>, vector<8x8xf32> -> vector<8x8xf32>
    %575 = vector.extract_strided_slice %512 {offsets = [0, 24], sizes = [8, 8], strides = [1, 1]} : vector<8x32xf32> to vector<8x8xf32>
    %576 = vector.extract_strided_slice %513 {offsets = [0, 24], sizes = [8, 8], strides = [1, 1]} : vector<8x32xf32> to vector<8x8xf32>
    %577 = vector.extract_strided_slice %514 {offsets = [0, 24], sizes = [8, 8], strides = [1, 1]} : vector<8x32xf32> to vector<8x8xf32>
    %578 = tpu.transpose %576, [1, 0] : vector<8x8xf32> -> vector<8x8xf32>
    %cst_194 = arith.constant dense<0.000000e+00> : vector<8x8xf32>
    %579 = tpu.matmul %575, %578, %cst_194 {dimension_numbers = #tpu.dot_dimension_numbers<[1], [0], [0], [1], [0, 0, 1, 1], [], []>} : vector<8x8xf32>, vector<8x8xf32>, vector<8x8xf32> -> vector<8x8xf32>
    %cst_195 = arith.constant 0.353553385 : f32
    %580 = vector.broadcast %cst_195 : f32 to vector<8x8xf32>
    %581 = arith.mulf %579, %580 : vector<8x8xf32>
    %cst_196 = arith.constant -1.000000e+06 : f32
    %582 = vector.broadcast %cst_196 : f32 to vector<8x8xf32>
    %583 = arith.select %427, %581, %582 : vector<8x8xi1>, vector<8x8xf32>
    %cst_197 = arith.constant dense<0xFF800000> : vector<8xf32>
    %584 = vector.multi_reduction <maximumf>, %583, %cst_197 [1] : vector<8x8xf32> to vector<8xf32>
    %585 = vector.shape_cast %584 : vector<8xf32> to vector<8x1xf32>
    %586 = vector.broadcast %585 : vector<8x1xf32> to vector<8x8xf32>
    %587 = arith.subf %583, %586 : vector<8x8xf32>
    %588 = math.exp %587 : vector<8x8xf32>
    %cst_198 = arith.constant dense<0.000000e+00> : vector<8xf32>
    %589 = vector.multi_reduction <add>, %588, %cst_198 [1] : vector<8x8xf32> to vector<8xf32>
    %590 = vector.shape_cast %589 : vector<8xf32> to vector<8x1xf32>
    %591 = tpu.reciprocal %590 {approx = true} : vector<8x1xf32> -> vector<8x1xf32>
    %592 = vector.broadcast %591 : vector<8x1xf32> to vector<8x8xf32>
    %593 = arith.mulf %588, %592 : vector<8x8xf32>
    %cst_199 = arith.constant dense<0.000000e+00> : vector<8x8xf32>
    %594 = tpu.matmul %593, %577, %cst_199 {dimension_numbers = #tpu.dot_dimension_numbers<[1], [0], [0], [1], [0, 0, 1, 1], [], []>} : vector<8x8xf32>, vector<8x8xf32>, vector<8x8xf32> -> vector<8x8xf32>
    %595 = tpu.concatenate %534, %554, %574, %594 in 1 : vector<8x8xf32>, vector<8x8xf32>, vector<8x8xf32>, vector<8x8xf32> -> vector<8x32xf32>
    %596 = tpu.concatenate %511, %595 in 0 : vector<8x32xf32>, vector<8x32xf32> -> vector<16x32xf32>
    %cst_200 = arith.constant dense<0.000000e+00> : vector<16x32xf32>
    %597 = tpu.matmul %596, %416, %cst_200 {dimension_numbers = #tpu.dot_dimension_numbers<[1], [0], [0], [1], [0, 0, 1, 1], [], []>} : vector<16x32xf32>, vector<32x32xf32>, vector<16x32xf32> -> vector<16x32xf32>
    %598 = arith.addf %223, %410 : vector<16x32xf32>
    %599 = arith.addf %598, %597 : vector<16x32xf32>
    %600 = vector.extract_strided_slice %18 {offsets = [1, 0], sizes = [1, 32], strides = [1, 1]} : vector<4x32xf32> to vector<1x32xf32>
    %601 = vector.extract_strided_slice %20 {offsets = [1, 0], sizes = [1, 32], strides = [1, 1]} : vector<4x32xf32> to vector<1x32xf32>
    %cst_201 = arith.constant dense<0.000000e+00> : vector<16xf32>
    %602 = vector.multi_reduction <add>, %599, %cst_201 [1] : vector<16x32xf32> to vector<16xf32>
    %603 = vector.shape_cast %602 : vector<16xf32> to vector<16x1xf32>
    %cst_202 = arith.constant 3.200000e+01 : f32
    %604 = vector.broadcast %cst_202 : f32 to vector<16x1xf32>
    %605 = arith.divf %603, %604 : vector<16x1xf32>
    %606 = vector.broadcast %605 : vector<16x1xf32> to vector<16x32xf32>
    %607 = arith.subf %599, %606 : vector<16x32xf32>
    %608 = arith.mulf %607, %607 : vector<16x32xf32>
    %cst_203 = arith.constant dense<0.000000e+00> : vector<16xf32>
    %609 = vector.multi_reduction <add>, %608, %cst_203 [1] : vector<16x32xf32> to vector<16xf32>
    %610 = vector.shape_cast %609 : vector<16xf32> to vector<16x1xf32>
    %cst_204 = arith.constant 3.200000e+01 : f32
    %611 = vector.broadcast %cst_204 : f32 to vector<16x1xf32>
    %612 = arith.divf %610, %611 : vector<16x1xf32>
    %613 = vector.broadcast %605 : vector<16x1xf32> to vector<16x32xf32>
    %614 = arith.subf %599, %613 : vector<16x32xf32>
    %cst_205 = arith.constant 9.99999974E-6 : f32
    %615 = vector.broadcast %cst_205 : f32 to vector<16x1xf32>
    %616 = arith.addf %612, %615 : vector<16x1xf32>
    %617 = math.rsqrt %616 : vector<16x1xf32>
    %618 = vector.broadcast %617 : vector<16x1xf32> to vector<16x32xf32>
    %619 = arith.mulf %614, %618 : vector<16x32xf32>
    %620 = vector.broadcast %600 : vector<1x32xf32> to vector<16x32xf32>
    %621 = arith.mulf %619, %620 : vector<16x32xf32>
    %622 = vector.broadcast %601 : vector<1x32xf32> to vector<16x32xf32>
    %623 = arith.addf %621, %622 : vector<16x32xf32>
    %c0_206 = arith.constant 0 : index
    %c0_207 = arith.constant 0 : index
    %c0_208 = arith.constant 0 : index
    %624 = vector.load %arg20[%c0_206, %c0_207, %c0_208] : memref<2x32x32xf32, #tpu.memory_space<vmem>>, vector<1x32x32xf32>
    %625 = vector.shape_cast %624 : vector<1x32x32xf32> to vector<32x32xf32>
    %c0_209 = arith.constant 0 : index
    %c0_210 = arith.constant 0 : index
    %c0_211 = arith.constant 0 : index
    %626 = vector.load %arg21[%c0_209, %c0_210, %c0_211] : memref<2x32x64xf32, #tpu.memory_space<vmem>>, vector<1x32x64xf32>
    %627 = vector.shape_cast %626 : vector<1x32x64xf32> to vector<32x64xf32>
    %c0_212 = arith.constant 0 : index
    %c0_213 = arith.constant 0 : index
    %c0_214 = arith.constant 0 : index
    %628 = vector.load %arg22[%c0_212, %c0_213, %c0_214] : memref<2x32x32xf32, #tpu.memory_space<vmem>>, vector<1x32x32xf32>
    %629 = vector.shape_cast %628 : vector<1x32x32xf32> to vector<32x32xf32>
    %cst_215 = arith.constant dense<0.000000e+00> : vector<16x32xf32>
    %630 = tpu.matmul %623, %625, %cst_215 {dimension_numbers = #tpu.dot_dimension_numbers<[1], [0], [0], [1], [0, 0, 1, 1], [], []>} : vector<16x32xf32>, vector<32x32xf32>, vector<16x32xf32> -> vector<16x32xf32>
    %cst_216 = arith.constant dense<0.000000e+00> : vector<16x64xf32>
    %631 = tpu.matmul %12, %627, %cst_216 {dimension_numbers = #tpu.dot_dimension_numbers<[1], [0], [0], [1], [0, 0, 1, 1], [], []>} : vector<16x32xf32>, vector<32x64xf32>, vector<16x64xf32> -> vector<16x64xf32>
    %632 = vector.extract_strided_slice %631 {offsets = [0, 0], sizes = [16, 32], strides = [1, 1]} : vector<16x64xf32> to vector<16x32xf32>
    %633 = vector.extract_strided_slice %631 {offsets = [0, 32], sizes = [16, 32], strides = [1, 1]} : vector<16x64xf32> to vector<16x32xf32>
    %634 = tpu.iota {dimensions = array<i32: 1>} : vector<8x8xi32>
    %c0_217 = arith.constant 0 : index
    %635 = memref.load %arg2[%c0_217] : memref<2xi32, #tpu.memory_space<smem>>
    %636 = vector.broadcast %635 : i32 to vector<8x8xi32>
    %637 = arith.cmpi slt, %634, %636 : vector<8x8xi32>
    %c1_218 = arith.constant 1 : index
    %638 = memref.load %arg2[%c1_218] : memref<2xi32, #tpu.memory_space<smem>>
    %639 = vector.broadcast %638 : i32 to vector<8x8xi32>
    %640 = arith.cmpi slt, %634, %639 : vector<8x8xi32>
    %641 = vector.extract_strided_slice %630 {offsets = [0, 0], sizes = [8, 32], strides = [1, 1]} : vector<16x32xf32> to vector<8x32xf32>
    %642 = vector.extract_strided_slice %632 {offsets = [0, 0], sizes = [8, 32], strides = [1, 1]} : vector<16x32xf32> to vector<8x32xf32>
    %643 = vector.extract_strided_slice %633 {offsets = [0, 0], sizes = [8, 32], strides = [1, 1]} : vector<16x32xf32> to vector<8x32xf32>
    %644 = vector.extract_strided_slice %641 {offsets = [0, 0], sizes = [8, 8], strides = [1, 1]} : vector<8x32xf32> to vector<8x8xf32>
    %645 = vector.extract_strided_slice %642 {offsets = [0, 0], sizes = [8, 8], strides = [1, 1]} : vector<8x32xf32> to vector<8x8xf32>
    %646 = vector.extract_strided_slice %643 {offsets = [0, 0], sizes = [8, 8], strides = [1, 1]} : vector<8x32xf32> to vector<8x8xf32>
    %647 = tpu.transpose %645, [1, 0] : vector<8x8xf32> -> vector<8x8xf32>
    %cst_219 = arith.constant dense<0.000000e+00> : vector<8x8xf32>
    %648 = tpu.matmul %644, %647, %cst_219 {dimension_numbers = #tpu.dot_dimension_numbers<[1], [0], [0], [1], [0, 0, 1, 1], [], []>} : vector<8x8xf32>, vector<8x8xf32>, vector<8x8xf32> -> vector<8x8xf32>
    %cst_220 = arith.constant 0.353553385 : f32
    %649 = vector.broadcast %cst_220 : f32 to vector<8x8xf32>
    %650 = arith.mulf %648, %649 : vector<8x8xf32>
    %cst_221 = arith.constant -1.000000e+06 : f32
    %651 = vector.broadcast %cst_221 : f32 to vector<8x8xf32>
    %652 = arith.select %637, %650, %651 : vector<8x8xi1>, vector<8x8xf32>
    %cst_222 = arith.constant dense<0xFF800000> : vector<8xf32>
    %653 = vector.multi_reduction <maximumf>, %652, %cst_222 [1] : vector<8x8xf32> to vector<8xf32>
    %654 = vector.shape_cast %653 : vector<8xf32> to vector<8x1xf32>
    %655 = vector.broadcast %654 : vector<8x1xf32> to vector<8x8xf32>
    %656 = arith.subf %652, %655 : vector<8x8xf32>
    %657 = math.exp %656 : vector<8x8xf32>
    %cst_223 = arith.constant dense<0.000000e+00> : vector<8xf32>
    %658 = vector.multi_reduction <add>, %657, %cst_223 [1] : vector<8x8xf32> to vector<8xf32>
    %659 = vector.shape_cast %658 : vector<8xf32> to vector<8x1xf32>
    %660 = tpu.reciprocal %659 {approx = true} : vector<8x1xf32> -> vector<8x1xf32>
    %661 = vector.broadcast %660 : vector<8x1xf32> to vector<8x8xf32>
    %662 = arith.mulf %657, %661 : vector<8x8xf32>
    %cst_224 = arith.constant dense<0.000000e+00> : vector<8x8xf32>
    %663 = tpu.matmul %662, %646, %cst_224 {dimension_numbers = #tpu.dot_dimension_numbers<[1], [0], [0], [1], [0, 0, 1, 1], [], []>} : vector<8x8xf32>, vector<8x8xf32>, vector<8x8xf32> -> vector<8x8xf32>
    %664 = vector.extract_strided_slice %641 {offsets = [0, 8], sizes = [8, 8], strides = [1, 1]} : vector<8x32xf32> to vector<8x8xf32>
    %665 = vector.extract_strided_slice %642 {offsets = [0, 8], sizes = [8, 8], strides = [1, 1]} : vector<8x32xf32> to vector<8x8xf32>
    %666 = vector.extract_strided_slice %643 {offsets = [0, 8], sizes = [8, 8], strides = [1, 1]} : vector<8x32xf32> to vector<8x8xf32>
    %667 = tpu.transpose %665, [1, 0] : vector<8x8xf32> -> vector<8x8xf32>
    %cst_225 = arith.constant dense<0.000000e+00> : vector<8x8xf32>
    %668 = tpu.matmul %664, %667, %cst_225 {dimension_numbers = #tpu.dot_dimension_numbers<[1], [0], [0], [1], [0, 0, 1, 1], [], []>} : vector<8x8xf32>, vector<8x8xf32>, vector<8x8xf32> -> vector<8x8xf32>
    %cst_226 = arith.constant 0.353553385 : f32
    %669 = vector.broadcast %cst_226 : f32 to vector<8x8xf32>
    %670 = arith.mulf %668, %669 : vector<8x8xf32>
    %cst_227 = arith.constant -1.000000e+06 : f32
    %671 = vector.broadcast %cst_227 : f32 to vector<8x8xf32>
    %672 = arith.select %637, %670, %671 : vector<8x8xi1>, vector<8x8xf32>
    %cst_228 = arith.constant dense<0xFF800000> : vector<8xf32>
    %673 = vector.multi_reduction <maximumf>, %672, %cst_228 [1] : vector<8x8xf32> to vector<8xf32>
    %674 = vector.shape_cast %673 : vector<8xf32> to vector<8x1xf32>
    %675 = vector.broadcast %674 : vector<8x1xf32> to vector<8x8xf32>
    %676 = arith.subf %672, %675 : vector<8x8xf32>
    %677 = math.exp %676 : vector<8x8xf32>
    %cst_229 = arith.constant dense<0.000000e+00> : vector<8xf32>
    %678 = vector.multi_reduction <add>, %677, %cst_229 [1] : vector<8x8xf32> to vector<8xf32>
    %679 = vector.shape_cast %678 : vector<8xf32> to vector<8x1xf32>
    %680 = tpu.reciprocal %679 {approx = true} : vector<8x1xf32> -> vector<8x1xf32>
    %681 = vector.broadcast %680 : vector<8x1xf32> to vector<8x8xf32>
    %682 = arith.mulf %677, %681 : vector<8x8xf32>
    %cst_230 = arith.constant dense<0.000000e+00> : vector<8x8xf32>
    %683 = tpu.matmul %682, %666, %cst_230 {dimension_numbers = #tpu.dot_dimension_numbers<[1], [0], [0], [1], [0, 0, 1, 1], [], []>} : vector<8x8xf32>, vector<8x8xf32>, vector<8x8xf32> -> vector<8x8xf32>
    %684 = vector.extract_strided_slice %641 {offsets = [0, 16], sizes = [8, 8], strides = [1, 1]} : vector<8x32xf32> to vector<8x8xf32>
    %685 = vector.extract_strided_slice %642 {offsets = [0, 16], sizes = [8, 8], strides = [1, 1]} : vector<8x32xf32> to vector<8x8xf32>
    %686 = vector.extract_strided_slice %643 {offsets = [0, 16], sizes = [8, 8], strides = [1, 1]} : vector<8x32xf32> to vector<8x8xf32>
    %687 = tpu.transpose %685, [1, 0] : vector<8x8xf32> -> vector<8x8xf32>
    %cst_231 = arith.constant dense<0.000000e+00> : vector<8x8xf32>
    %688 = tpu.matmul %684, %687, %cst_231 {dimension_numbers = #tpu.dot_dimension_numbers<[1], [0], [0], [1], [0, 0, 1, 1], [], []>} : vector<8x8xf32>, vector<8x8xf32>, vector<8x8xf32> -> vector<8x8xf32>
    %cst_232 = arith.constant 0.353553385 : f32
    %689 = vector.broadcast %cst_232 : f32 to vector<8x8xf32>
    %690 = arith.mulf %688, %689 : vector<8x8xf32>
    %cst_233 = arith.constant -1.000000e+06 : f32
    %691 = vector.broadcast %cst_233 : f32 to vector<8x8xf32>
    %692 = arith.select %637, %690, %691 : vector<8x8xi1>, vector<8x8xf32>
    %cst_234 = arith.constant dense<0xFF800000> : vector<8xf32>
    %693 = vector.multi_reduction <maximumf>, %692, %cst_234 [1] : vector<8x8xf32> to vector<8xf32>
    %694 = vector.shape_cast %693 : vector<8xf32> to vector<8x1xf32>
    %695 = vector.broadcast %694 : vector<8x1xf32> to vector<8x8xf32>
    %696 = arith.subf %692, %695 : vector<8x8xf32>
    %697 = math.exp %696 : vector<8x8xf32>
    %cst_235 = arith.constant dense<0.000000e+00> : vector<8xf32>
    %698 = vector.multi_reduction <add>, %697, %cst_235 [1] : vector<8x8xf32> to vector<8xf32>
    %699 = vector.shape_cast %698 : vector<8xf32> to vector<8x1xf32>
    %700 = tpu.reciprocal %699 {approx = true} : vector<8x1xf32> -> vector<8x1xf32>
    %701 = vector.broadcast %700 : vector<8x1xf32> to vector<8x8xf32>
    %702 = arith.mulf %697, %701 : vector<8x8xf32>
    %cst_236 = arith.constant dense<0.000000e+00> : vector<8x8xf32>
    %703 = tpu.matmul %702, %686, %cst_236 {dimension_numbers = #tpu.dot_dimension_numbers<[1], [0], [0], [1], [0, 0, 1, 1], [], []>} : vector<8x8xf32>, vector<8x8xf32>, vector<8x8xf32> -> vector<8x8xf32>
    %704 = vector.extract_strided_slice %641 {offsets = [0, 24], sizes = [8, 8], strides = [1, 1]} : vector<8x32xf32> to vector<8x8xf32>
    %705 = vector.extract_strided_slice %642 {offsets = [0, 24], sizes = [8, 8], strides = [1, 1]} : vector<8x32xf32> to vector<8x8xf32>
    %706 = vector.extract_strided_slice %643 {offsets = [0, 24], sizes = [8, 8], strides = [1, 1]} : vector<8x32xf32> to vector<8x8xf32>
    %707 = tpu.transpose %705, [1, 0] : vector<8x8xf32> -> vector<8x8xf32>
    %cst_237 = arith.constant dense<0.000000e+00> : vector<8x8xf32>
    %708 = tpu.matmul %704, %707, %cst_237 {dimension_numbers = #tpu.dot_dimension_numbers<[1], [0], [0], [1], [0, 0, 1, 1], [], []>} : vector<8x8xf32>, vector<8x8xf32>, vector<8x8xf32> -> vector<8x8xf32>
    %cst_238 = arith.constant 0.353553385 : f32
    %709 = vector.broadcast %cst_238 : f32 to vector<8x8xf32>
    %710 = arith.mulf %708, %709 : vector<8x8xf32>
    %cst_239 = arith.constant -1.000000e+06 : f32
    %711 = vector.broadcast %cst_239 : f32 to vector<8x8xf32>
    %712 = arith.select %637, %710, %711 : vector<8x8xi1>, vector<8x8xf32>
    %cst_240 = arith.constant dense<0xFF800000> : vector<8xf32>
    %713 = vector.multi_reduction <maximumf>, %712, %cst_240 [1] : vector<8x8xf32> to vector<8xf32>
    %714 = vector.shape_cast %713 : vector<8xf32> to vector<8x1xf32>
    %715 = vector.broadcast %714 : vector<8x1xf32> to vector<8x8xf32>
    %716 = arith.subf %712, %715 : vector<8x8xf32>
    %717 = math.exp %716 : vector<8x8xf32>
    %cst_241 = arith.constant dense<0.000000e+00> : vector<8xf32>
    %718 = vector.multi_reduction <add>, %717, %cst_241 [1] : vector<8x8xf32> to vector<8xf32>
    %719 = vector.shape_cast %718 : vector<8xf32> to vector<8x1xf32>
    %720 = tpu.reciprocal %719 {approx = true} : vector<8x1xf32> -> vector<8x1xf32>
    %721 = vector.broadcast %720 : vector<8x1xf32> to vector<8x8xf32>
    %722 = arith.mulf %717, %721 : vector<8x8xf32>
    %cst_242 = arith.constant dense<0.000000e+00> : vector<8x8xf32>
    %723 = tpu.matmul %722, %706, %cst_242 {dimension_numbers = #tpu.dot_dimension_numbers<[1], [0], [0], [1], [0, 0, 1, 1], [], []>} : vector<8x8xf32>, vector<8x8xf32>, vector<8x8xf32> -> vector<8x8xf32>
    %724 = tpu.concatenate %663, %683, %703, %723 in 1 : vector<8x8xf32>, vector<8x8xf32>, vector<8x8xf32>, vector<8x8xf32> -> vector<8x32xf32>
    %725 = vector.extract_strided_slice %630 {offsets = [8, 0], sizes = [8, 32], strides = [1, 1]} : vector<16x32xf32> to vector<8x32xf32>
    %726 = vector.extract_strided_slice %632 {offsets = [8, 0], sizes = [8, 32], strides = [1, 1]} : vector<16x32xf32> to vector<8x32xf32>
    %727 = vector.extract_strided_slice %633 {offsets = [8, 0], sizes = [8, 32], strides = [1, 1]} : vector<16x32xf32> to vector<8x32xf32>
    %728 = vector.extract_strided_slice %725 {offsets = [0, 0], sizes = [8, 8], strides = [1, 1]} : vector<8x32xf32> to vector<8x8xf32>
    %729 = vector.extract_strided_slice %726 {offsets = [0, 0], sizes = [8, 8], strides = [1, 1]} : vector<8x32xf32> to vector<8x8xf32>
    %730 = vector.extract_strided_slice %727 {offsets = [0, 0], sizes = [8, 8], strides = [1, 1]} : vector<8x32xf32> to vector<8x8xf32>
    %731 = tpu.transpose %729, [1, 0] : vector<8x8xf32> -> vector<8x8xf32>
    %cst_243 = arith.constant dense<0.000000e+00> : vector<8x8xf32>
    %732 = tpu.matmul %728, %731, %cst_243 {dimension_numbers = #tpu.dot_dimension_numbers<[1], [0], [0], [1], [0, 0, 1, 1], [], []>} : vector<8x8xf32>, vector<8x8xf32>, vector<8x8xf32> -> vector<8x8xf32>
    %cst_244 = arith.constant 0.353553385 : f32
    %733 = vector.broadcast %cst_244 : f32 to vector<8x8xf32>
    %734 = arith.mulf %732, %733 : vector<8x8xf32>
    %cst_245 = arith.constant -1.000000e+06 : f32
    %735 = vector.broadcast %cst_245 : f32 to vector<8x8xf32>
    %736 = arith.select %640, %734, %735 : vector<8x8xi1>, vector<8x8xf32>
    %cst_246 = arith.constant dense<0xFF800000> : vector<8xf32>
    %737 = vector.multi_reduction <maximumf>, %736, %cst_246 [1] : vector<8x8xf32> to vector<8xf32>
    %738 = vector.shape_cast %737 : vector<8xf32> to vector<8x1xf32>
    %739 = vector.broadcast %738 : vector<8x1xf32> to vector<8x8xf32>
    %740 = arith.subf %736, %739 : vector<8x8xf32>
    %741 = math.exp %740 : vector<8x8xf32>
    %cst_247 = arith.constant dense<0.000000e+00> : vector<8xf32>
    %742 = vector.multi_reduction <add>, %741, %cst_247 [1] : vector<8x8xf32> to vector<8xf32>
    %743 = vector.shape_cast %742 : vector<8xf32> to vector<8x1xf32>
    %744 = tpu.reciprocal %743 {approx = true} : vector<8x1xf32> -> vector<8x1xf32>
    %745 = vector.broadcast %744 : vector<8x1xf32> to vector<8x8xf32>
    %746 = arith.mulf %741, %745 : vector<8x8xf32>
    %cst_248 = arith.constant dense<0.000000e+00> : vector<8x8xf32>
    %747 = tpu.matmul %746, %730, %cst_248 {dimension_numbers = #tpu.dot_dimension_numbers<[1], [0], [0], [1], [0, 0, 1, 1], [], []>} : vector<8x8xf32>, vector<8x8xf32>, vector<8x8xf32> -> vector<8x8xf32>
    %748 = vector.extract_strided_slice %725 {offsets = [0, 8], sizes = [8, 8], strides = [1, 1]} : vector<8x32xf32> to vector<8x8xf32>
    %749 = vector.extract_strided_slice %726 {offsets = [0, 8], sizes = [8, 8], strides = [1, 1]} : vector<8x32xf32> to vector<8x8xf32>
    %750 = vector.extract_strided_slice %727 {offsets = [0, 8], sizes = [8, 8], strides = [1, 1]} : vector<8x32xf32> to vector<8x8xf32>
    %751 = tpu.transpose %749, [1, 0] : vector<8x8xf32> -> vector<8x8xf32>
    %cst_249 = arith.constant dense<0.000000e+00> : vector<8x8xf32>
    %752 = tpu.matmul %748, %751, %cst_249 {dimension_numbers = #tpu.dot_dimension_numbers<[1], [0], [0], [1], [0, 0, 1, 1], [], []>} : vector<8x8xf32>, vector<8x8xf32>, vector<8x8xf32> -> vector<8x8xf32>
    %cst_250 = arith.constant 0.353553385 : f32
    %753 = vector.broadcast %cst_250 : f32 to vector<8x8xf32>
    %754 = arith.mulf %752, %753 : vector<8x8xf32>
    %cst_251 = arith.constant -1.000000e+06 : f32
    %755 = vector.broadcast %cst_251 : f32 to vector<8x8xf32>
    %756 = arith.select %640, %754, %755 : vector<8x8xi1>, vector<8x8xf32>
    %cst_252 = arith.constant dense<0xFF800000> : vector<8xf32>
    %757 = vector.multi_reduction <maximumf>, %756, %cst_252 [1] : vector<8x8xf32> to vector<8xf32>
    %758 = vector.shape_cast %757 : vector<8xf32> to vector<8x1xf32>
    %759 = vector.broadcast %758 : vector<8x1xf32> to vector<8x8xf32>
    %760 = arith.subf %756, %759 : vector<8x8xf32>
    %761 = math.exp %760 : vector<8x8xf32>
    %cst_253 = arith.constant dense<0.000000e+00> : vector<8xf32>
    %762 = vector.multi_reduction <add>, %761, %cst_253 [1] : vector<8x8xf32> to vector<8xf32>
    %763 = vector.shape_cast %762 : vector<8xf32> to vector<8x1xf32>
    %764 = tpu.reciprocal %763 {approx = true} : vector<8x1xf32> -> vector<8x1xf32>
    %765 = vector.broadcast %764 : vector<8x1xf32> to vector<8x8xf32>
    %766 = arith.mulf %761, %765 : vector<8x8xf32>
    %cst_254 = arith.constant dense<0.000000e+00> : vector<8x8xf32>
    %767 = tpu.matmul %766, %750, %cst_254 {dimension_numbers = #tpu.dot_dimension_numbers<[1], [0], [0], [1], [0, 0, 1, 1], [], []>} : vector<8x8xf32>, vector<8x8xf32>, vector<8x8xf32> -> vector<8x8xf32>
    %768 = vector.extract_strided_slice %725 {offsets = [0, 16], sizes = [8, 8], strides = [1, 1]} : vector<8x32xf32> to vector<8x8xf32>
    %769 = vector.extract_strided_slice %726 {offsets = [0, 16], sizes = [8, 8], strides = [1, 1]} : vector<8x32xf32> to vector<8x8xf32>
    %770 = vector.extract_strided_slice %727 {offsets = [0, 16], sizes = [8, 8], strides = [1, 1]} : vector<8x32xf32> to vector<8x8xf32>
    %771 = tpu.transpose %769, [1, 0] : vector<8x8xf32> -> vector<8x8xf32>
    %cst_255 = arith.constant dense<0.000000e+00> : vector<8x8xf32>
    %772 = tpu.matmul %768, %771, %cst_255 {dimension_numbers = #tpu.dot_dimension_numbers<[1], [0], [0], [1], [0, 0, 1, 1], [], []>} : vector<8x8xf32>, vector<8x8xf32>, vector<8x8xf32> -> vector<8x8xf32>
    %cst_256 = arith.constant 0.353553385 : f32
    %773 = vector.broadcast %cst_256 : f32 to vector<8x8xf32>
    %774 = arith.mulf %772, %773 : vector<8x8xf32>
    %cst_257 = arith.constant -1.000000e+06 : f32
    %775 = vector.broadcast %cst_257 : f32 to vector<8x8xf32>
    %776 = arith.select %640, %774, %775 : vector<8x8xi1>, vector<8x8xf32>
    %cst_258 = arith.constant dense<0xFF800000> : vector<8xf32>
    %777 = vector.multi_reduction <maximumf>, %776, %cst_258 [1] : vector<8x8xf32> to vector<8xf32>
    %778 = vector.shape_cast %777 : vector<8xf32> to vector<8x1xf32>
    %779 = vector.broadcast %778 : vector<8x1xf32> to vector<8x8xf32>
    %780 = arith.subf %776, %779 : vector<8x8xf32>
    %781 = math.exp %780 : vector<8x8xf32>
    %cst_259 = arith.constant dense<0.000000e+00> : vector<8xf32>
    %782 = vector.multi_reduction <add>, %781, %cst_259 [1] : vector<8x8xf32> to vector<8xf32>
    %783 = vector.shape_cast %782 : vector<8xf32> to vector<8x1xf32>
    %784 = tpu.reciprocal %783 {approx = true} : vector<8x1xf32> -> vector<8x1xf32>
    %785 = vector.broadcast %784 : vector<8x1xf32> to vector<8x8xf32>
    %786 = arith.mulf %781, %785 : vector<8x8xf32>
    %cst_260 = arith.constant dense<0.000000e+00> : vector<8x8xf32>
    %787 = tpu.matmul %786, %770, %cst_260 {dimension_numbers = #tpu.dot_dimension_numbers<[1], [0], [0], [1], [0, 0, 1, 1], [], []>} : vector<8x8xf32>, vector<8x8xf32>, vector<8x8xf32> -> vector<8x8xf32>
    %788 = vector.extract_strided_slice %725 {offsets = [0, 24], sizes = [8, 8], strides = [1, 1]} : vector<8x32xf32> to vector<8x8xf32>
    %789 = vector.extract_strided_slice %726 {offsets = [0, 24], sizes = [8, 8], strides = [1, 1]} : vector<8x32xf32> to vector<8x8xf32>
    %790 = vector.extract_strided_slice %727 {offsets = [0, 24], sizes = [8, 8], strides = [1, 1]} : vector<8x32xf32> to vector<8x8xf32>
    %791 = tpu.transpose %789, [1, 0] : vector<8x8xf32> -> vector<8x8xf32>
    %cst_261 = arith.constant dense<0.000000e+00> : vector<8x8xf32>
    %792 = tpu.matmul %788, %791, %cst_261 {dimension_numbers = #tpu.dot_dimension_numbers<[1], [0], [0], [1], [0, 0, 1, 1], [], []>} : vector<8x8xf32>, vector<8x8xf32>, vector<8x8xf32> -> vector<8x8xf32>
    %cst_262 = arith.constant 0.353553385 : f32
    %793 = vector.broadcast %cst_262 : f32 to vector<8x8xf32>
    %794 = arith.mulf %792, %793 : vector<8x8xf32>
    %cst_263 = arith.constant -1.000000e+06 : f32
    %795 = vector.broadcast %cst_263 : f32 to vector<8x8xf32>
    %796 = arith.select %640, %794, %795 : vector<8x8xi1>, vector<8x8xf32>
    %cst_264 = arith.constant dense<0xFF800000> : vector<8xf32>
    %797 = vector.multi_reduction <maximumf>, %796, %cst_264 [1] : vector<8x8xf32> to vector<8xf32>
    %798 = vector.shape_cast %797 : vector<8xf32> to vector<8x1xf32>
    %799 = vector.broadcast %798 : vector<8x1xf32> to vector<8x8xf32>
    %800 = arith.subf %796, %799 : vector<8x8xf32>
    %801 = math.exp %800 : vector<8x8xf32>
    %cst_265 = arith.constant dense<0.000000e+00> : vector<8xf32>
    %802 = vector.multi_reduction <add>, %801, %cst_265 [1] : vector<8x8xf32> to vector<8xf32>
    %803 = vector.shape_cast %802 : vector<8xf32> to vector<8x1xf32>
    %804 = tpu.reciprocal %803 {approx = true} : vector<8x1xf32> -> vector<8x1xf32>
    %805 = vector.broadcast %804 : vector<8x1xf32> to vector<8x8xf32>
    %806 = arith.mulf %801, %805 : vector<8x8xf32>
    %cst_266 = arith.constant dense<0.000000e+00> : vector<8x8xf32>
    %807 = tpu.matmul %806, %790, %cst_266 {dimension_numbers = #tpu.dot_dimension_numbers<[1], [0], [0], [1], [0, 0, 1, 1], [], []>} : vector<8x8xf32>, vector<8x8xf32>, vector<8x8xf32> -> vector<8x8xf32>
    %808 = tpu.concatenate %747, %767, %787, %807 in 1 : vector<8x8xf32>, vector<8x8xf32>, vector<8x8xf32>, vector<8x8xf32> -> vector<8x32xf32>
    %809 = tpu.concatenate %724, %808 in 0 : vector<8x32xf32>, vector<8x32xf32> -> vector<16x32xf32>
    %cst_267 = arith.constant dense<0.000000e+00> : vector<16x32xf32>
    %810 = tpu.matmul %809, %629, %cst_267 {dimension_numbers = #tpu.dot_dimension_numbers<[1], [0], [0], [1], [0, 0, 1, 1], [], []>} : vector<16x32xf32>, vector<32x32xf32>, vector<16x32xf32> -> vector<16x32xf32>
    %811 = arith.addf %623, %810 : vector<16x32xf32>
    %812 = vector.extract_strided_slice %18 {offsets = [2, 0], sizes = [1, 32], strides = [1, 1]} : vector<4x32xf32> to vector<1x32xf32>
    %813 = vector.extract_strided_slice %20 {offsets = [2, 0], sizes = [1, 32], strides = [1, 1]} : vector<4x32xf32> to vector<1x32xf32>
    %cst_268 = arith.constant dense<0.000000e+00> : vector<16xf32>
    %814 = vector.multi_reduction <add>, %811, %cst_268 [1] : vector<16x32xf32> to vector<16xf32>
    %815 = vector.shape_cast %814 : vector<16xf32> to vector<16x1xf32>
    %cst_269 = arith.constant 3.200000e+01 : f32
    %816 = vector.broadcast %cst_269 : f32 to vector<16x1xf32>
    %817 = arith.divf %815, %816 : vector<16x1xf32>
    %818 = vector.broadcast %817 : vector<16x1xf32> to vector<16x32xf32>
    %819 = arith.subf %811, %818 : vector<16x32xf32>
    %820 = arith.mulf %819, %819 : vector<16x32xf32>
    %cst_270 = arith.constant dense<0.000000e+00> : vector<16xf32>
    %821 = vector.multi_reduction <add>, %820, %cst_270 [1] : vector<16x32xf32> to vector<16xf32>
    %822 = vector.shape_cast %821 : vector<16xf32> to vector<16x1xf32>
    %cst_271 = arith.constant 3.200000e+01 : f32
    %823 = vector.broadcast %cst_271 : f32 to vector<16x1xf32>
    %824 = arith.divf %822, %823 : vector<16x1xf32>
    %825 = vector.broadcast %817 : vector<16x1xf32> to vector<16x32xf32>
    %826 = arith.subf %811, %825 : vector<16x32xf32>
    %cst_272 = arith.constant 9.99999974E-6 : f32
    %827 = vector.broadcast %cst_272 : f32 to vector<16x1xf32>
    %828 = arith.addf %824, %827 : vector<16x1xf32>
    %829 = math.rsqrt %828 : vector<16x1xf32>
    %830 = vector.broadcast %829 : vector<16x1xf32> to vector<16x32xf32>
    %831 = arith.mulf %826, %830 : vector<16x32xf32>
    %832 = vector.broadcast %812 : vector<1x32xf32> to vector<16x32xf32>
    %833 = arith.mulf %831, %832 : vector<16x32xf32>
    %834 = vector.broadcast %813 : vector<1x32xf32> to vector<16x32xf32>
    %835 = arith.addf %833, %834 : vector<16x32xf32>
    %c0_273 = arith.constant 0 : index
    %c0_274 = arith.constant 0 : index
    %c0_275 = arith.constant 0 : index
    %836 = vector.load %arg25[%c0_273, %c0_274, %c0_275] : memref<2x32x64xf32, #tpu.memory_space<vmem>>, vector<1x32x64xf32>
    %837 = vector.shape_cast %836 : vector<1x32x64xf32> to vector<32x64xf32>
    %cst_276 = arith.constant dense<0.000000e+00> : vector<16x64xf32>
    %838 = tpu.matmul %835, %837, %cst_276 {dimension_numbers = #tpu.dot_dimension_numbers<[1], [0], [0], [1], [0, 0, 1, 1], [], []>} : vector<16x32xf32>, vector<32x64xf32>, vector<16x64xf32> -> vector<16x64xf32>
    %c0_277 = arith.constant 0 : index
    %c0_278 = arith.constant 0 : index
    %c0_279 = arith.constant 0 : index
    %839 = vector.load %arg26[%c0_277, %c0_278, %c0_279] : memref<2x1x64xf32, #tpu.memory_space<vmem>>, vector<1x1x64xf32>
    %840 = vector.shape_cast %839 : vector<1x1x64xf32> to vector<1x64xf32>
    %841 = vector.broadcast %840 : vector<1x64xf32> to vector<16x64xf32>
    %842 = arith.addf %838, %841 : vector<16x64xf32>
    %cst_280 = arith.constant 0.000000e+00 : f32
    %843 = vector.broadcast %cst_280 : f32 to vector<16x64xf32>
    %844 = arith.maximumf %842, %843 : vector<16x64xf32>
    %c0_281 = arith.constant 0 : index
    %c0_282 = arith.constant 0 : index
    %c0_283 = arith.constant 0 : index
    %845 = vector.load %arg27[%c0_281, %c0_282, %c0_283] : memref<2x64x32xf32, #tpu.memory_space<vmem>>, vector<1x64x32xf32>
    %846 = vector.shape_cast %845 : vector<1x64x32xf32> to vector<64x32xf32>
    %cst_284 = arith.constant dense<0.000000e+00> : vector<16x32xf32>
    %847 = tpu.matmul %844, %846, %cst_284 {dimension_numbers = #tpu.dot_dimension_numbers<[1], [0], [0], [1], [0, 0, 1, 1], [], []>} : vector<16x64xf32>, vector<64x32xf32>, vector<16x32xf32> -> vector<16x32xf32>
    %c0_285 = arith.constant 0 : index
    %c0_286 = arith.constant 0 : index
    %c0_287 = arith.constant 0 : index
    %848 = vector.load %arg28[%c0_285, %c0_286, %c0_287] : memref<2x1x32xf32, #tpu.memory_space<vmem>>, vector<1x1x32xf32>
    %849 = vector.shape_cast %848 : vector<1x1x32xf32> to vector<1x32xf32>
    %850 = vector.broadcast %849 : vector<1x32xf32> to vector<16x32xf32>
    %851 = arith.addf %847, %850 : vector<16x32xf32>
    %852 = arith.addf %835, %851 : vector<16x32xf32>
    %853 = vector.extract_strided_slice %18 {offsets = [3, 0], sizes = [1, 32], strides = [1, 1]} : vector<4x32xf32> to vector<1x32xf32>
    %854 = vector.extract_strided_slice %20 {offsets = [3, 0], sizes = [1, 32], strides = [1, 1]} : vector<4x32xf32> to vector<1x32xf32>
    %cst_288 = arith.constant dense<0.000000e+00> : vector<16xf32>
    %855 = vector.multi_reduction <add>, %852, %cst_288 [1] : vector<16x32xf32> to vector<16xf32>
    %856 = vector.shape_cast %855 : vector<16xf32> to vector<16x1xf32>
    %cst_289 = arith.constant 3.200000e+01 : f32
    %857 = vector.broadcast %cst_289 : f32 to vector<16x1xf32>
    %858 = arith.divf %856, %857 : vector<16x1xf32>
    %859 = vector.broadcast %858 : vector<16x1xf32> to vector<16x32xf32>
    %860 = arith.subf %852, %859 : vector<16x32xf32>
    %861 = arith.mulf %860, %860 : vector<16x32xf32>
    %cst_290 = arith.constant dense<0.000000e+00> : vector<16xf32>
    %862 = vector.multi_reduction <add>, %861, %cst_290 [1] : vector<16x32xf32> to vector<16xf32>
    %863 = vector.shape_cast %862 : vector<16xf32> to vector<16x1xf32>
    %cst_291 = arith.constant 3.200000e+01 : f32
    %864 = vector.broadcast %cst_291 : f32 to vector<16x1xf32>
    %865 = arith.divf %863, %864 : vector<16x1xf32>
    %866 = vector.broadcast %858 : vector<16x1xf32> to vector<16x32xf32>
    %867 = arith.subf %852, %866 : vector<16x32xf32>
    %cst_292 = arith.constant 9.99999974E-6 : f32
    %868 = vector.broadcast %cst_292 : f32 to vector<16x1xf32>
    %869 = arith.addf %865, %868 : vector<16x1xf32>
    %870 = math.rsqrt %869 : vector<16x1xf32>
    %871 = vector.broadcast %870 : vector<16x1xf32> to vector<16x32xf32>
    %872 = arith.mulf %867, %871 : vector<16x32xf32>
    %873 = vector.broadcast %853 : vector<1x32xf32> to vector<16x32xf32>
    %874 = arith.mulf %872, %873 : vector<16x32xf32>
    %875 = vector.broadcast %854 : vector<1x32xf32> to vector<16x32xf32>
    %876 = arith.addf %874, %875 : vector<16x32xf32>
    %c1_293 = arith.constant 1 : index
    %c0_294 = arith.constant 0 : index
    %c0_295 = arith.constant 0 : index
    %877 = vector.load %arg23[%c1_293, %c0_294, %c0_295] : memref<2x4x32xf32, #tpu.memory_space<vmem>>, vector<1x4x32xf32>
    %878 = vector.shape_cast %877 : vector<1x4x32xf32> to vector<4x32xf32>
    %c1_296 = arith.constant 1 : index
    %c0_297 = arith.constant 0 : index
    %c0_298 = arith.constant 0 : index
    %879 = vector.load %arg24[%c1_296, %c0_297, %c0_298] : memref<2x4x32xf32, #tpu.memory_space<vmem>>, vector<1x4x32xf32>
    %880 = vector.shape_cast %879 : vector<1x4x32xf32> to vector<4x32xf32>
    %c1_299 = arith.constant 1 : index
    %c0_300 = arith.constant 0 : index
    %c0_301 = arith.constant 0 : index
    %881 = vector.load %arg12[%c1_299, %c0_300, %c0_301] : memref<2x32x96xf32, #tpu.memory_space<vmem>>, vector<1x32x96xf32>
    %882 = vector.shape_cast %881 : vector<1x32x96xf32> to vector<32x96xf32>
    %c1_302 = arith.constant 1 : index
    %c0_303 = arith.constant 0 : index
    %c0_304 = arith.constant 0 : index
    %883 = vector.load %arg13[%c1_302, %c0_303, %c0_304] : memref<2x32x32xf32, #tpu.memory_space<vmem>>, vector<1x32x32xf32>
    %884 = vector.shape_cast %883 : vector<1x32x32xf32> to vector<32x32xf32>
    %cst_305 = arith.constant dense<0.000000e+00> : vector<16x96xf32>
    %885 = tpu.matmul %876, %882, %cst_305 {dimension_numbers = #tpu.dot_dimension_numbers<[1], [0], [0], [1], [0, 0, 1, 1], [], []>} : vector<16x32xf32>, vector<32x96xf32>, vector<16x96xf32> -> vector<16x96xf32>
    %886 = vector.extract_strided_slice %885 {offsets = [0, 0], sizes = [16, 32], strides = [1, 1]} : vector<16x96xf32> to vector<16x32xf32>
    %887 = vector.extract_strided_slice %885 {offsets = [0, 32], sizes = [16, 32], strides = [1, 1]} : vector<16x96xf32> to vector<16x32xf32>
    %888 = vector.extract_strided_slice %885 {offsets = [0, 64], sizes = [16, 32], strides = [1, 1]} : vector<16x96xf32> to vector<16x32xf32>
    %889 = vector.extract_strided_slice %886 {offsets = [0, 0], sizes = [8, 32], strides = [1, 1]} : vector<16x32xf32> to vector<8x32xf32>
    %890 = vector.extract_strided_slice %887 {offsets = [0, 0], sizes = [8, 32], strides = [1, 1]} : vector<16x32xf32> to vector<8x32xf32>
    %891 = vector.extract_strided_slice %888 {offsets = [0, 0], sizes = [8, 32], strides = [1, 1]} : vector<16x32xf32> to vector<8x32xf32>
    %892 = vector.extract_strided_slice %889 {offsets = [0, 0], sizes = [8, 8], strides = [1, 1]} : vector<8x32xf32> to vector<8x8xf32>
    %893 = vector.extract_strided_slice %890 {offsets = [0, 0], sizes = [8, 8], strides = [1, 1]} : vector<8x32xf32> to vector<8x8xf32>
    %894 = vector.extract_strided_slice %891 {offsets = [0, 0], sizes = [8, 8], strides = [1, 1]} : vector<8x32xf32> to vector<8x8xf32>
    %895 = tpu.transpose %893, [1, 0] : vector<8x8xf32> -> vector<8x8xf32>
    %cst_306 = arith.constant dense<0.000000e+00> : vector<8x8xf32>
    %896 = tpu.matmul %892, %895, %cst_306 {dimension_numbers = #tpu.dot_dimension_numbers<[1], [0], [0], [1], [0, 0, 1, 1], [], []>} : vector<8x8xf32>, vector<8x8xf32>, vector<8x8xf32> -> vector<8x8xf32>
    %cst_307 = arith.constant 0.353553385 : f32
    %897 = vector.broadcast %cst_307 : f32 to vector<8x8xf32>
    %898 = arith.mulf %896, %897 : vector<8x8xf32>
    %cst_308 = arith.constant -1.000000e+06 : f32
    %899 = vector.broadcast %cst_308 : f32 to vector<8x8xf32>
    %900 = arith.select %16, %898, %899 : vector<8x8xi1>, vector<8x8xf32>
    %cst_309 = arith.constant dense<0xFF800000> : vector<8xf32>
    %901 = vector.multi_reduction <maximumf>, %900, %cst_309 [1] : vector<8x8xf32> to vector<8xf32>
    %902 = vector.shape_cast %901 : vector<8xf32> to vector<8x1xf32>
    %903 = vector.broadcast %902 : vector<8x1xf32> to vector<8x8xf32>
    %904 = arith.subf %900, %903 : vector<8x8xf32>
    %905 = math.exp %904 : vector<8x8xf32>
    %cst_310 = arith.constant dense<0.000000e+00> : vector<8xf32>
    %906 = vector.multi_reduction <add>, %905, %cst_310 [1] : vector<8x8xf32> to vector<8xf32>
    %907 = vector.shape_cast %906 : vector<8xf32> to vector<8x1xf32>
    %908 = tpu.reciprocal %907 {approx = true} : vector<8x1xf32> -> vector<8x1xf32>
    %909 = vector.broadcast %908 : vector<8x1xf32> to vector<8x8xf32>
    %910 = arith.mulf %905, %909 : vector<8x8xf32>
    %cst_311 = arith.constant dense<0.000000e+00> : vector<8x8xf32>
    %911 = tpu.matmul %910, %894, %cst_311 {dimension_numbers = #tpu.dot_dimension_numbers<[1], [0], [0], [1], [0, 0, 1, 1], [], []>} : vector<8x8xf32>, vector<8x8xf32>, vector<8x8xf32> -> vector<8x8xf32>
    %912 = vector.extract_strided_slice %889 {offsets = [0, 8], sizes = [8, 8], strides = [1, 1]} : vector<8x32xf32> to vector<8x8xf32>
    %913 = vector.extract_strided_slice %890 {offsets = [0, 8], sizes = [8, 8], strides = [1, 1]} : vector<8x32xf32> to vector<8x8xf32>
    %914 = vector.extract_strided_slice %891 {offsets = [0, 8], sizes = [8, 8], strides = [1, 1]} : vector<8x32xf32> to vector<8x8xf32>
    %915 = tpu.transpose %913, [1, 0] : vector<8x8xf32> -> vector<8x8xf32>
    %cst_312 = arith.constant dense<0.000000e+00> : vector<8x8xf32>
    %916 = tpu.matmul %912, %915, %cst_312 {dimension_numbers = #tpu.dot_dimension_numbers<[1], [0], [0], [1], [0, 0, 1, 1], [], []>} : vector<8x8xf32>, vector<8x8xf32>, vector<8x8xf32> -> vector<8x8xf32>
    %cst_313 = arith.constant 0.353553385 : f32
    %917 = vector.broadcast %cst_313 : f32 to vector<8x8xf32>
    %918 = arith.mulf %916, %917 : vector<8x8xf32>
    %cst_314 = arith.constant -1.000000e+06 : f32
    %919 = vector.broadcast %cst_314 : f32 to vector<8x8xf32>
    %920 = arith.select %16, %918, %919 : vector<8x8xi1>, vector<8x8xf32>
    %cst_315 = arith.constant dense<0xFF800000> : vector<8xf32>
    %921 = vector.multi_reduction <maximumf>, %920, %cst_315 [1] : vector<8x8xf32> to vector<8xf32>
    %922 = vector.shape_cast %921 : vector<8xf32> to vector<8x1xf32>
    %923 = vector.broadcast %922 : vector<8x1xf32> to vector<8x8xf32>
    %924 = arith.subf %920, %923 : vector<8x8xf32>
    %925 = math.exp %924 : vector<8x8xf32>
    %cst_316 = arith.constant dense<0.000000e+00> : vector<8xf32>
    %926 = vector.multi_reduction <add>, %925, %cst_316 [1] : vector<8x8xf32> to vector<8xf32>
    %927 = vector.shape_cast %926 : vector<8xf32> to vector<8x1xf32>
    %928 = tpu.reciprocal %927 {approx = true} : vector<8x1xf32> -> vector<8x1xf32>
    %929 = vector.broadcast %928 : vector<8x1xf32> to vector<8x8xf32>
    %930 = arith.mulf %925, %929 : vector<8x8xf32>
    %cst_317 = arith.constant dense<0.000000e+00> : vector<8x8xf32>
    %931 = tpu.matmul %930, %914, %cst_317 {dimension_numbers = #tpu.dot_dimension_numbers<[1], [0], [0], [1], [0, 0, 1, 1], [], []>} : vector<8x8xf32>, vector<8x8xf32>, vector<8x8xf32> -> vector<8x8xf32>
    %932 = vector.extract_strided_slice %889 {offsets = [0, 16], sizes = [8, 8], strides = [1, 1]} : vector<8x32xf32> to vector<8x8xf32>
    %933 = vector.extract_strided_slice %890 {offsets = [0, 16], sizes = [8, 8], strides = [1, 1]} : vector<8x32xf32> to vector<8x8xf32>
    %934 = vector.extract_strided_slice %891 {offsets = [0, 16], sizes = [8, 8], strides = [1, 1]} : vector<8x32xf32> to vector<8x8xf32>
    %935 = tpu.transpose %933, [1, 0] : vector<8x8xf32> -> vector<8x8xf32>
    %cst_318 = arith.constant dense<0.000000e+00> : vector<8x8xf32>
    %936 = tpu.matmul %932, %935, %cst_318 {dimension_numbers = #tpu.dot_dimension_numbers<[1], [0], [0], [1], [0, 0, 1, 1], [], []>} : vector<8x8xf32>, vector<8x8xf32>, vector<8x8xf32> -> vector<8x8xf32>
    %cst_319 = arith.constant 0.353553385 : f32
    %937 = vector.broadcast %cst_319 : f32 to vector<8x8xf32>
    %938 = arith.mulf %936, %937 : vector<8x8xf32>
    %cst_320 = arith.constant -1.000000e+06 : f32
    %939 = vector.broadcast %cst_320 : f32 to vector<8x8xf32>
    %940 = arith.select %16, %938, %939 : vector<8x8xi1>, vector<8x8xf32>
    %cst_321 = arith.constant dense<0xFF800000> : vector<8xf32>
    %941 = vector.multi_reduction <maximumf>, %940, %cst_321 [1] : vector<8x8xf32> to vector<8xf32>
    %942 = vector.shape_cast %941 : vector<8xf32> to vector<8x1xf32>
    %943 = vector.broadcast %942 : vector<8x1xf32> to vector<8x8xf32>
    %944 = arith.subf %940, %943 : vector<8x8xf32>
    %945 = math.exp %944 : vector<8x8xf32>
    %cst_322 = arith.constant dense<0.000000e+00> : vector<8xf32>
    %946 = vector.multi_reduction <add>, %945, %cst_322 [1] : vector<8x8xf32> to vector<8xf32>
    %947 = vector.shape_cast %946 : vector<8xf32> to vector<8x1xf32>
    %948 = tpu.reciprocal %947 {approx = true} : vector<8x1xf32> -> vector<8x1xf32>
    %949 = vector.broadcast %948 : vector<8x1xf32> to vector<8x8xf32>
    %950 = arith.mulf %945, %949 : vector<8x8xf32>
    %cst_323 = arith.constant dense<0.000000e+00> : vector<8x8xf32>
    %951 = tpu.matmul %950, %934, %cst_323 {dimension_numbers = #tpu.dot_dimension_numbers<[1], [0], [0], [1], [0, 0, 1, 1], [], []>} : vector<8x8xf32>, vector<8x8xf32>, vector<8x8xf32> -> vector<8x8xf32>
    %952 = vector.extract_strided_slice %889 {offsets = [0, 24], sizes = [8, 8], strides = [1, 1]} : vector<8x32xf32> to vector<8x8xf32>
    %953 = vector.extract_strided_slice %890 {offsets = [0, 24], sizes = [8, 8], strides = [1, 1]} : vector<8x32xf32> to vector<8x8xf32>
    %954 = vector.extract_strided_slice %891 {offsets = [0, 24], sizes = [8, 8], strides = [1, 1]} : vector<8x32xf32> to vector<8x8xf32>
    %955 = tpu.transpose %953, [1, 0] : vector<8x8xf32> -> vector<8x8xf32>
    %cst_324 = arith.constant dense<0.000000e+00> : vector<8x8xf32>
    %956 = tpu.matmul %952, %955, %cst_324 {dimension_numbers = #tpu.dot_dimension_numbers<[1], [0], [0], [1], [0, 0, 1, 1], [], []>} : vector<8x8xf32>, vector<8x8xf32>, vector<8x8xf32> -> vector<8x8xf32>
    %cst_325 = arith.constant 0.353553385 : f32
    %957 = vector.broadcast %cst_325 : f32 to vector<8x8xf32>
    %958 = arith.mulf %956, %957 : vector<8x8xf32>
    %cst_326 = arith.constant -1.000000e+06 : f32
    %959 = vector.broadcast %cst_326 : f32 to vector<8x8xf32>
    %960 = arith.select %16, %958, %959 : vector<8x8xi1>, vector<8x8xf32>
    %cst_327 = arith.constant dense<0xFF800000> : vector<8xf32>
    %961 = vector.multi_reduction <maximumf>, %960, %cst_327 [1] : vector<8x8xf32> to vector<8xf32>
    %962 = vector.shape_cast %961 : vector<8xf32> to vector<8x1xf32>
    %963 = vector.broadcast %962 : vector<8x1xf32> to vector<8x8xf32>
    %964 = arith.subf %960, %963 : vector<8x8xf32>
    %965 = math.exp %964 : vector<8x8xf32>
    %cst_328 = arith.constant dense<0.000000e+00> : vector<8xf32>
    %966 = vector.multi_reduction <add>, %965, %cst_328 [1] : vector<8x8xf32> to vector<8xf32>
    %967 = vector.shape_cast %966 : vector<8xf32> to vector<8x1xf32>
    %968 = tpu.reciprocal %967 {approx = true} : vector<8x1xf32> -> vector<8x1xf32>
    %969 = vector.broadcast %968 : vector<8x1xf32> to vector<8x8xf32>
    %970 = arith.mulf %965, %969 : vector<8x8xf32>
    %cst_329 = arith.constant dense<0.000000e+00> : vector<8x8xf32>
    %971 = tpu.matmul %970, %954, %cst_329 {dimension_numbers = #tpu.dot_dimension_numbers<[1], [0], [0], [1], [0, 0, 1, 1], [], []>} : vector<8x8xf32>, vector<8x8xf32>, vector<8x8xf32> -> vector<8x8xf32>
    %972 = tpu.concatenate %911, %931, %951, %971 in 1 : vector<8x8xf32>, vector<8x8xf32>, vector<8x8xf32>, vector<8x8xf32> -> vector<8x32xf32>
    %973 = vector.extract_strided_slice %886 {offsets = [8, 0], sizes = [8, 32], strides = [1, 1]} : vector<16x32xf32> to vector<8x32xf32>
    %974 = vector.extract_strided_slice %887 {offsets = [8, 0], sizes = [8, 32], strides = [1, 1]} : vector<16x32xf32> to vector<8x32xf32>
    %975 = vector.extract_strided_slice %888 {offsets = [8, 0], sizes = [8, 32], strides = [1, 1]} : vector<16x32xf32> to vector<8x32xf32>
    %976 = vector.extract_strided_slice %973 {offsets = [0, 0], sizes = [8, 8], strides = [1, 1]} : vector<8x32xf32> to vector<8x8xf32>
    %977 = vector.extract_strided_slice %974 {offsets = [0, 0], sizes = [8, 8], strides = [1, 1]} : vector<8x32xf32> to vector<8x8xf32>
    %978 = vector.extract_strided_slice %975 {offsets = [0, 0], sizes = [8, 8], strides = [1, 1]} : vector<8x32xf32> to vector<8x8xf32>
    %979 = tpu.transpose %977, [1, 0] : vector<8x8xf32> -> vector<8x8xf32>
    %cst_330 = arith.constant dense<0.000000e+00> : vector<8x8xf32>
    %980 = tpu.matmul %976, %979, %cst_330 {dimension_numbers = #tpu.dot_dimension_numbers<[1], [0], [0], [1], [0, 0, 1, 1], [], []>} : vector<8x8xf32>, vector<8x8xf32>, vector<8x8xf32> -> vector<8x8xf32>
    %cst_331 = arith.constant 0.353553385 : f32
    %981 = vector.broadcast %cst_331 : f32 to vector<8x8xf32>
    %982 = arith.mulf %980, %981 : vector<8x8xf32>
    %cst_332 = arith.constant -1.000000e+06 : f32
    %983 = vector.broadcast %cst_332 : f32 to vector<8x8xf32>
    %984 = arith.select %16, %982, %983 : vector<8x8xi1>, vector<8x8xf32>
    %cst_333 = arith.constant dense<0xFF800000> : vector<8xf32>
    %985 = vector.multi_reduction <maximumf>, %984, %cst_333 [1] : vector<8x8xf32> to vector<8xf32>
    %986 = vector.shape_cast %985 : vector<8xf32> to vector<8x1xf32>
    %987 = vector.broadcast %986 : vector<8x1xf32> to vector<8x8xf32>
    %988 = arith.subf %984, %987 : vector<8x8xf32>
    %989 = math.exp %988 : vector<8x8xf32>
    %cst_334 = arith.constant dense<0.000000e+00> : vector<8xf32>
    %990 = vector.multi_reduction <add>, %989, %cst_334 [1] : vector<8x8xf32> to vector<8xf32>
    %991 = vector.shape_cast %990 : vector<8xf32> to vector<8x1xf32>
    %992 = tpu.reciprocal %991 {approx = true} : vector<8x1xf32> -> vector<8x1xf32>
    %993 = vector.broadcast %992 : vector<8x1xf32> to vector<8x8xf32>
    %994 = arith.mulf %989, %993 : vector<8x8xf32>
    %cst_335 = arith.constant dense<0.000000e+00> : vector<8x8xf32>
    %995 = tpu.matmul %994, %978, %cst_335 {dimension_numbers = #tpu.dot_dimension_numbers<[1], [0], [0], [1], [0, 0, 1, 1], [], []>} : vector<8x8xf32>, vector<8x8xf32>, vector<8x8xf32> -> vector<8x8xf32>
    %996 = vector.extract_strided_slice %973 {offsets = [0, 8], sizes = [8, 8], strides = [1, 1]} : vector<8x32xf32> to vector<8x8xf32>
    %997 = vector.extract_strided_slice %974 {offsets = [0, 8], sizes = [8, 8], strides = [1, 1]} : vector<8x32xf32> to vector<8x8xf32>
    %998 = vector.extract_strided_slice %975 {offsets = [0, 8], sizes = [8, 8], strides = [1, 1]} : vector<8x32xf32> to vector<8x8xf32>
    %999 = tpu.transpose %997, [1, 0] : vector<8x8xf32> -> vector<8x8xf32>
    %cst_336 = arith.constant dense<0.000000e+00> : vector<8x8xf32>
    %1000 = tpu.matmul %996, %999, %cst_336 {dimension_numbers = #tpu.dot_dimension_numbers<[1], [0], [0], [1], [0, 0, 1, 1], [], []>} : vector<8x8xf32>, vector<8x8xf32>, vector<8x8xf32> -> vector<8x8xf32>
    %cst_337 = arith.constant 0.353553385 : f32
    %1001 = vector.broadcast %cst_337 : f32 to vector<8x8xf32>
    %1002 = arith.mulf %1000, %1001 : vector<8x8xf32>
    %cst_338 = arith.constant -1.000000e+06 : f32
    %1003 = vector.broadcast %cst_338 : f32 to vector<8x8xf32>
    %1004 = arith.select %16, %1002, %1003 : vector<8x8xi1>, vector<8x8xf32>
    %cst_339 = arith.constant dense<0xFF800000> : vector<8xf32>
    %1005 = vector.multi_reduction <maximumf>, %1004, %cst_339 [1] : vector<8x8xf32> to vector<8xf32>
    %1006 = vector.shape_cast %1005 : vector<8xf32> to vector<8x1xf32>
    %1007 = vector.broadcast %1006 : vector<8x1xf32> to vector<8x8xf32>
    %1008 = arith.subf %1004, %1007 : vector<8x8xf32>
    %1009 = math.exp %1008 : vector<8x8xf32>
    %cst_340 = arith.constant dense<0.000000e+00> : vector<8xf32>
    %1010 = vector.multi_reduction <add>, %1009, %cst_340 [1] : vector<8x8xf32> to vector<8xf32>
    %1011 = vector.shape_cast %1010 : vector<8xf32> to vector<8x1xf32>
    %1012 = tpu.reciprocal %1011 {approx = true} : vector<8x1xf32> -> vector<8x1xf32>
    %1013 = vector.broadcast %1012 : vector<8x1xf32> to vector<8x8xf32>
    %1014 = arith.mulf %1009, %1013 : vector<8x8xf32>
    %cst_341 = arith.constant dense<0.000000e+00> : vector<8x8xf32>
    %1015 = tpu.matmul %1014, %998, %cst_341 {dimension_numbers = #tpu.dot_dimension_numbers<[1], [0], [0], [1], [0, 0, 1, 1], [], []>} : vector<8x8xf32>, vector<8x8xf32>, vector<8x8xf32> -> vector<8x8xf32>
    %1016 = vector.extract_strided_slice %973 {offsets = [0, 16], sizes = [8, 8], strides = [1, 1]} : vector<8x32xf32> to vector<8x8xf32>
    %1017 = vector.extract_strided_slice %974 {offsets = [0, 16], sizes = [8, 8], strides = [1, 1]} : vector<8x32xf32> to vector<8x8xf32>
    %1018 = vector.extract_strided_slice %975 {offsets = [0, 16], sizes = [8, 8], strides = [1, 1]} : vector<8x32xf32> to vector<8x8xf32>
    %1019 = tpu.transpose %1017, [1, 0] : vector<8x8xf32> -> vector<8x8xf32>
    %cst_342 = arith.constant dense<0.000000e+00> : vector<8x8xf32>
    %1020 = tpu.matmul %1016, %1019, %cst_342 {dimension_numbers = #tpu.dot_dimension_numbers<[1], [0], [0], [1], [0, 0, 1, 1], [], []>} : vector<8x8xf32>, vector<8x8xf32>, vector<8x8xf32> -> vector<8x8xf32>
    %cst_343 = arith.constant 0.353553385 : f32
    %1021 = vector.broadcast %cst_343 : f32 to vector<8x8xf32>
    %1022 = arith.mulf %1020, %1021 : vector<8x8xf32>
    %cst_344 = arith.constant -1.000000e+06 : f32
    %1023 = vector.broadcast %cst_344 : f32 to vector<8x8xf32>
    %1024 = arith.select %16, %1022, %1023 : vector<8x8xi1>, vector<8x8xf32>
    %cst_345 = arith.constant dense<0xFF800000> : vector<8xf32>
    %1025 = vector.multi_reduction <maximumf>, %1024, %cst_345 [1] : vector<8x8xf32> to vector<8xf32>
    %1026 = vector.shape_cast %1025 : vector<8xf32> to vector<8x1xf32>
    %1027 = vector.broadcast %1026 : vector<8x1xf32> to vector<8x8xf32>
    %1028 = arith.subf %1024, %1027 : vector<8x8xf32>
    %1029 = math.exp %1028 : vector<8x8xf32>
    %cst_346 = arith.constant dense<0.000000e+00> : vector<8xf32>
    %1030 = vector.multi_reduction <add>, %1029, %cst_346 [1] : vector<8x8xf32> to vector<8xf32>
    %1031 = vector.shape_cast %1030 : vector<8xf32> to vector<8x1xf32>
    %1032 = tpu.reciprocal %1031 {approx = true} : vector<8x1xf32> -> vector<8x1xf32>
    %1033 = vector.broadcast %1032 : vector<8x1xf32> to vector<8x8xf32>
    %1034 = arith.mulf %1029, %1033 : vector<8x8xf32>
    %cst_347 = arith.constant dense<0.000000e+00> : vector<8x8xf32>
    %1035 = tpu.matmul %1034, %1018, %cst_347 {dimension_numbers = #tpu.dot_dimension_numbers<[1], [0], [0], [1], [0, 0, 1, 1], [], []>} : vector<8x8xf32>, vector<8x8xf32>, vector<8x8xf32> -> vector<8x8xf32>
    %1036 = vector.extract_strided_slice %973 {offsets = [0, 24], sizes = [8, 8], strides = [1, 1]} : vector<8x32xf32> to vector<8x8xf32>
    %1037 = vector.extract_strided_slice %974 {offsets = [0, 24], sizes = [8, 8], strides = [1, 1]} : vector<8x32xf32> to vector<8x8xf32>
    %1038 = vector.extract_strided_slice %975 {offsets = [0, 24], sizes = [8, 8], strides = [1, 1]} : vector<8x32xf32> to vector<8x8xf32>
    %1039 = tpu.transpose %1037, [1, 0] : vector<8x8xf32> -> vector<8x8xf32>
    %cst_348 = arith.constant dense<0.000000e+00> : vector<8x8xf32>
    %1040 = tpu.matmul %1036, %1039, %cst_348 {dimension_numbers = #tpu.dot_dimension_numbers<[1], [0], [0], [1], [0, 0, 1, 1], [], []>} : vector<8x8xf32>, vector<8x8xf32>, vector<8x8xf32> -> vector<8x8xf32>
    %cst_349 = arith.constant 0.353553385 : f32
    %1041 = vector.broadcast %cst_349 : f32 to vector<8x8xf32>
    %1042 = arith.mulf %1040, %1041 : vector<8x8xf32>
    %cst_350 = arith.constant -1.000000e+06 : f32
    %1043 = vector.broadcast %cst_350 : f32 to vector<8x8xf32>
    %1044 = arith.select %16, %1042, %1043 : vector<8x8xi1>, vector<8x8xf32>
    %cst_351 = arith.constant dense<0xFF800000> : vector<8xf32>
    %1045 = vector.multi_reduction <maximumf>, %1044, %cst_351 [1] : vector<8x8xf32> to vector<8xf32>
    %1046 = vector.shape_cast %1045 : vector<8xf32> to vector<8x1xf32>
    %1047 = vector.broadcast %1046 : vector<8x1xf32> to vector<8x8xf32>
    %1048 = arith.subf %1044, %1047 : vector<8x8xf32>
    %1049 = math.exp %1048 : vector<8x8xf32>
    %cst_352 = arith.constant dense<0.000000e+00> : vector<8xf32>
    %1050 = vector.multi_reduction <add>, %1049, %cst_352 [1] : vector<8x8xf32> to vector<8xf32>
    %1051 = vector.shape_cast %1050 : vector<8xf32> to vector<8x1xf32>
    %1052 = tpu.reciprocal %1051 {approx = true} : vector<8x1xf32> -> vector<8x1xf32>
    %1053 = vector.broadcast %1052 : vector<8x1xf32> to vector<8x8xf32>
    %1054 = arith.mulf %1049, %1053 : vector<8x8xf32>
    %cst_353 = arith.constant dense<0.000000e+00> : vector<8x8xf32>
    %1055 = tpu.matmul %1054, %1038, %cst_353 {dimension_numbers = #tpu.dot_dimension_numbers<[1], [0], [0], [1], [0, 0, 1, 1], [], []>} : vector<8x8xf32>, vector<8x8xf32>, vector<8x8xf32> -> vector<8x8xf32>
    %1056 = tpu.concatenate %995, %1015, %1035, %1055 in 1 : vector<8x8xf32>, vector<8x8xf32>, vector<8x8xf32>, vector<8x8xf32> -> vector<8x32xf32>
    %1057 = tpu.concatenate %972, %1056 in 0 : vector<8x32xf32>, vector<8x32xf32> -> vector<16x32xf32>
    %cst_354 = arith.constant dense<0.000000e+00> : vector<16x32xf32>
    %1058 = tpu.matmul %1057, %884, %cst_354 {dimension_numbers = #tpu.dot_dimension_numbers<[1], [0], [0], [1], [0, 0, 1, 1], [], []>} : vector<16x32xf32>, vector<32x32xf32>, vector<16x32xf32> -> vector<16x32xf32>
    %1059 = arith.addf %876, %1058 : vector<16x32xf32>
    %1060 = vector.extract_strided_slice %878 {offsets = [0, 0], sizes = [1, 32], strides = [1, 1]} : vector<4x32xf32> to vector<1x32xf32>
    %1061 = vector.extract_strided_slice %880 {offsets = [0, 0], sizes = [1, 32], strides = [1, 1]} : vector<4x32xf32> to vector<1x32xf32>
    %cst_355 = arith.constant dense<0.000000e+00> : vector<16xf32>
    %1062 = vector.multi_reduction <add>, %1059, %cst_355 [1] : vector<16x32xf32> to vector<16xf32>
    %1063 = vector.shape_cast %1062 : vector<16xf32> to vector<16x1xf32>
    %cst_356 = arith.constant 3.200000e+01 : f32
    %1064 = vector.broadcast %cst_356 : f32 to vector<16x1xf32>
    %1065 = arith.divf %1063, %1064 : vector<16x1xf32>
    %1066 = vector.broadcast %1065 : vector<16x1xf32> to vector<16x32xf32>
    %1067 = arith.subf %1059, %1066 : vector<16x32xf32>
    %1068 = arith.mulf %1067, %1067 : vector<16x32xf32>
    %cst_357 = arith.constant dense<0.000000e+00> : vector<16xf32>
    %1069 = vector.multi_reduction <add>, %1068, %cst_357 [1] : vector<16x32xf32> to vector<16xf32>
    %1070 = vector.shape_cast %1069 : vector<16xf32> to vector<16x1xf32>
    %cst_358 = arith.constant 3.200000e+01 : f32
    %1071 = vector.broadcast %cst_358 : f32 to vector<16x1xf32>
    %1072 = arith.divf %1070, %1071 : vector<16x1xf32>
    %1073 = vector.broadcast %1065 : vector<16x1xf32> to vector<16x32xf32>
    %1074 = arith.subf %1059, %1073 : vector<16x32xf32>
    %cst_359 = arith.constant 9.99999974E-6 : f32
    %1075 = vector.broadcast %cst_359 : f32 to vector<16x1xf32>
    %1076 = arith.addf %1072, %1075 : vector<16x1xf32>
    %1077 = math.rsqrt %1076 : vector<16x1xf32>
    %1078 = vector.broadcast %1077 : vector<16x1xf32> to vector<16x32xf32>
    %1079 = arith.mulf %1074, %1078 : vector<16x32xf32>
    %1080 = vector.broadcast %1060 : vector<1x32xf32> to vector<16x32xf32>
    %1081 = arith.mulf %1079, %1080 : vector<16x32xf32>
    %1082 = vector.broadcast %1061 : vector<1x32xf32> to vector<16x32xf32>
    %1083 = arith.addf %1081, %1082 : vector<16x32xf32>
    %c1_360 = arith.constant 1 : index
    %c0_361 = arith.constant 0 : index
    %c0_362 = arith.constant 0 : index
    %1084 = vector.load %arg14[%c1_360, %c0_361, %c0_362] : memref<2x32x32xf32, #tpu.memory_space<vmem>>, vector<1x32x32xf32>
    %1085 = vector.shape_cast %1084 : vector<1x32x32xf32> to vector<32x32xf32>
    %c1_363 = arith.constant 1 : index
    %c0_364 = arith.constant 0 : index
    %c0_365 = arith.constant 0 : index
    %1086 = vector.load %arg15[%c1_363, %c0_364, %c0_365] : memref<2x32x64xf32, #tpu.memory_space<vmem>>, vector<1x32x64xf32>
    %1087 = vector.shape_cast %1086 : vector<1x32x64xf32> to vector<32x64xf32>
    %c1_366 = arith.constant 1 : index
    %c0_367 = arith.constant 0 : index
    %c0_368 = arith.constant 0 : index
    %1088 = vector.load %arg16[%c1_366, %c0_367, %c0_368] : memref<2x32x32xf32, #tpu.memory_space<vmem>>, vector<1x32x32xf32>
    %1089 = vector.shape_cast %1088 : vector<1x32x32xf32> to vector<32x32xf32>
    %cst_369 = arith.constant dense<0.000000e+00> : vector<16x32xf32>
    %1090 = tpu.matmul %1083, %1085, %cst_369 {dimension_numbers = #tpu.dot_dimension_numbers<[1], [0], [0], [1], [0, 0, 1, 1], [], []>} : vector<16x32xf32>, vector<32x32xf32>, vector<16x32xf32> -> vector<16x32xf32>
    %cst_370 = arith.constant dense<0.000000e+00> : vector<32x64xf32>
    %1091 = tpu.matmul %11, %1087, %cst_370 {dimension_numbers = #tpu.dot_dimension_numbers<[1], [0], [0], [1], [0, 0, 1, 1], [], []>} : vector<32x32xf32>, vector<32x64xf32>, vector<32x64xf32> -> vector<32x64xf32>
    %1092 = vector.extract_strided_slice %1091 {offsets = [0, 0], sizes = [32, 32], strides = [1, 1]} : vector<32x64xf32> to vector<32x32xf32>
    %1093 = vector.extract_strided_slice %1091 {offsets = [0, 32], sizes = [32, 32], strides = [1, 1]} : vector<32x64xf32> to vector<32x32xf32>
    %1094 = tpu.iota {dimensions = array<i32: 1>} : vector<8x16xi32>
    %c0_371 = arith.constant 0 : index
    %1095 = memref.load %arg1[%c0_371] : memref<2xi32, #tpu.memory_space<smem>>
    %1096 = vector.broadcast %1095 : i32 to vector<8x16xi32>
    %1097 = arith.cmpi slt, %1094, %1096 : vector<8x16xi32>
    %c1_372 = arith.constant 1 : index
    %1098 = memref.load %arg1[%c1_372] : memref<2xi32, #tpu.memory_space<smem>>
    %1099 = vector.broadcast %1098 : i32 to vector<8x16xi32>
    %1100 = arith.cmpi slt, %1094, %1099 : vector<8x16xi32>
    %1101 = vector.extract_strided_slice %1090 {offsets = [0, 0], sizes = [8, 32], strides = [1, 1]} : vector<16x32xf32> to vector<8x32xf32>
    %1102 = vector.extract_strided_slice %1092 {offsets = [0, 0], sizes = [16, 32], strides = [1, 1]} : vector<32x32xf32> to vector<16x32xf32>
    %1103 = vector.extract_strided_slice %1093 {offsets = [0, 0], sizes = [16, 32], strides = [1, 1]} : vector<32x32xf32> to vector<16x32xf32>
    %1104 = vector.extract_strided_slice %1101 {offsets = [0, 0], sizes = [8, 8], strides = [1, 1]} : vector<8x32xf32> to vector<8x8xf32>
    %1105 = vector.extract_strided_slice %1102 {offsets = [0, 0], sizes = [16, 8], strides = [1, 1]} : vector<16x32xf32> to vector<16x8xf32>
    %1106 = vector.extract_strided_slice %1103 {offsets = [0, 0], sizes = [16, 8], strides = [1, 1]} : vector<16x32xf32> to vector<16x8xf32>
    %1107 = tpu.transpose %1105, [1, 0] : vector<16x8xf32> -> vector<8x16xf32>
    %cst_373 = arith.constant dense<0.000000e+00> : vector<8x16xf32>
    %1108 = tpu.matmul %1104, %1107, %cst_373 {dimension_numbers = #tpu.dot_dimension_numbers<[1], [0], [0], [1], [0, 0, 1, 1], [], []>} : vector<8x8xf32>, vector<8x16xf32>, vector<8x16xf32> -> vector<8x16xf32>
    %cst_374 = arith.constant 0.353553385 : f32
    %1109 = vector.broadcast %cst_374 : f32 to vector<8x16xf32>
    %1110 = arith.mulf %1108, %1109 : vector<8x16xf32>
    %cst_375 = arith.constant -1.000000e+06 : f32
    %1111 = vector.broadcast %cst_375 : f32 to vector<8x16xf32>
    %1112 = arith.select %1097, %1110, %1111 : vector<8x16xi1>, vector<8x16xf32>
    %cst_376 = arith.constant dense<0xFF800000> : vector<8xf32>
    %1113 = vector.multi_reduction <maximumf>, %1112, %cst_376 [1] : vector<8x16xf32> to vector<8xf32>
    %1114 = vector.shape_cast %1113 : vector<8xf32> to vector<8x1xf32>
    %1115 = vector.broadcast %1114 : vector<8x1xf32> to vector<8x16xf32>
    %1116 = arith.subf %1112, %1115 : vector<8x16xf32>
    %1117 = math.exp %1116 : vector<8x16xf32>
    %cst_377 = arith.constant dense<0.000000e+00> : vector<8xf32>
    %1118 = vector.multi_reduction <add>, %1117, %cst_377 [1] : vector<8x16xf32> to vector<8xf32>
    %1119 = vector.shape_cast %1118 : vector<8xf32> to vector<8x1xf32>
    %1120 = tpu.reciprocal %1119 {approx = true} : vector<8x1xf32> -> vector<8x1xf32>
    %1121 = vector.broadcast %1120 : vector<8x1xf32> to vector<8x16xf32>
    %1122 = arith.mulf %1117, %1121 : vector<8x16xf32>
    %cst_378 = arith.constant dense<0.000000e+00> : vector<8x8xf32>
    %1123 = tpu.matmul %1122, %1106, %cst_378 {dimension_numbers = #tpu.dot_dimension_numbers<[1], [0], [0], [1], [0, 0, 1, 1], [], []>} : vector<8x16xf32>, vector<16x8xf32>, vector<8x8xf32> -> vector<8x8xf32>
    %1124 = vector.extract_strided_slice %1101 {offsets = [0, 8], sizes = [8, 8], strides = [1, 1]} : vector<8x32xf32> to vector<8x8xf32>
    %1125 = vector.extract_strided_slice %1102 {offsets = [0, 8], sizes = [16, 8], strides = [1, 1]} : vector<16x32xf32> to vector<16x8xf32>
    %1126 = vector.extract_strided_slice %1103 {offsets = [0, 8], sizes = [16, 8], strides = [1, 1]} : vector<16x32xf32> to vector<16x8xf32>
    %1127 = tpu.transpose %1125, [1, 0] : vector<16x8xf32> -> vector<8x16xf32>
    %cst_379 = arith.constant dense<0.000000e+00> : vector<8x16xf32>
    %1128 = tpu.matmul %1124, %1127, %cst_379 {dimension_numbers = #tpu.dot_dimension_numbers<[1], [0], [0], [1], [0, 0, 1, 1], [], []>} : vector<8x8xf32>, vector<8x16xf32>, vector<8x16xf32> -> vector<8x16xf32>
    %cst_380 = arith.constant 0.353553385 : f32
    %1129 = vector.broadcast %cst_380 : f32 to vector<8x16xf32>
    %1130 = arith.mulf %1128, %1129 : vector<8x16xf32>
    %cst_381 = arith.constant -1.000000e+06 : f32
    %1131 = vector.broadcast %cst_381 : f32 to vector<8x16xf32>
    %1132 = arith.select %1097, %1130, %1131 : vector<8x16xi1>, vector<8x16xf32>
    %cst_382 = arith.constant dense<0xFF800000> : vector<8xf32>
    %1133 = vector.multi_reduction <maximumf>, %1132, %cst_382 [1] : vector<8x16xf32> to vector<8xf32>
    %1134 = vector.shape_cast %1133 : vector<8xf32> to vector<8x1xf32>
    %1135 = vector.broadcast %1134 : vector<8x1xf32> to vector<8x16xf32>
    %1136 = arith.subf %1132, %1135 : vector<8x16xf32>
    %1137 = math.exp %1136 : vector<8x16xf32>
    %cst_383 = arith.constant dense<0.000000e+00> : vector<8xf32>
    %1138 = vector.multi_reduction <add>, %1137, %cst_383 [1] : vector<8x16xf32> to vector<8xf32>
    %1139 = vector.shape_cast %1138 : vector<8xf32> to vector<8x1xf32>
    %1140 = tpu.reciprocal %1139 {approx = true} : vector<8x1xf32> -> vector<8x1xf32>
    %1141 = vector.broadcast %1140 : vector<8x1xf32> to vector<8x16xf32>
    %1142 = arith.mulf %1137, %1141 : vector<8x16xf32>
    %cst_384 = arith.constant dense<0.000000e+00> : vector<8x8xf32>
    %1143 = tpu.matmul %1142, %1126, %cst_384 {dimension_numbers = #tpu.dot_dimension_numbers<[1], [0], [0], [1], [0, 0, 1, 1], [], []>} : vector<8x16xf32>, vector<16x8xf32>, vector<8x8xf32> -> vector<8x8xf32>
    %1144 = vector.extract_strided_slice %1101 {offsets = [0, 16], sizes = [8, 8], strides = [1, 1]} : vector<8x32xf32> to vector<8x8xf32>
    %1145 = vector.extract_strided_slice %1102 {offsets = [0, 16], sizes = [16, 8], strides = [1, 1]} : vector<16x32xf32> to vector<16x8xf32>
    %1146 = vector.extract_strided_slice %1103 {offsets = [0, 16], sizes = [16, 8], strides = [1, 1]} : vector<16x32xf32> to vector<16x8xf32>
    %1147 = tpu.transpose %1145, [1, 0] : vector<16x8xf32> -> vector<8x16xf32>
    %cst_385 = arith.constant dense<0.000000e+00> : vector<8x16xf32>
    %1148 = tpu.matmul %1144, %1147, %cst_385 {dimension_numbers = #tpu.dot_dimension_numbers<[1], [0], [0], [1], [0, 0, 1, 1], [], []>} : vector<8x8xf32>, vector<8x16xf32>, vector<8x16xf32> -> vector<8x16xf32>
    %cst_386 = arith.constant 0.353553385 : f32
    %1149 = vector.broadcast %cst_386 : f32 to vector<8x16xf32>
    %1150 = arith.mulf %1148, %1149 : vector<8x16xf32>
    %cst_387 = arith.constant -1.000000e+06 : f32
    %1151 = vector.broadcast %cst_387 : f32 to vector<8x16xf32>
    %1152 = arith.select %1097, %1150, %1151 : vector<8x16xi1>, vector<8x16xf32>
    %cst_388 = arith.constant dense<0xFF800000> : vector<8xf32>
    %1153 = vector.multi_reduction <maximumf>, %1152, %cst_388 [1] : vector<8x16xf32> to vector<8xf32>
    %1154 = vector.shape_cast %1153 : vector<8xf32> to vector<8x1xf32>
    %1155 = vector.broadcast %1154 : vector<8x1xf32> to vector<8x16xf32>
    %1156 = arith.subf %1152, %1155 : vector<8x16xf32>
    %1157 = math.exp %1156 : vector<8x16xf32>
    %cst_389 = arith.constant dense<0.000000e+00> : vector<8xf32>
    %1158 = vector.multi_reduction <add>, %1157, %cst_389 [1] : vector<8x16xf32> to vector<8xf32>
    %1159 = vector.shape_cast %1158 : vector<8xf32> to vector<8x1xf32>
    %1160 = tpu.reciprocal %1159 {approx = true} : vector<8x1xf32> -> vector<8x1xf32>
    %1161 = vector.broadcast %1160 : vector<8x1xf32> to vector<8x16xf32>
    %1162 = arith.mulf %1157, %1161 : vector<8x16xf32>
    %cst_390 = arith.constant dense<0.000000e+00> : vector<8x8xf32>
    %1163 = tpu.matmul %1162, %1146, %cst_390 {dimension_numbers = #tpu.dot_dimension_numbers<[1], [0], [0], [1], [0, 0, 1, 1], [], []>} : vector<8x16xf32>, vector<16x8xf32>, vector<8x8xf32> -> vector<8x8xf32>
    %1164 = vector.extract_strided_slice %1101 {offsets = [0, 24], sizes = [8, 8], strides = [1, 1]} : vector<8x32xf32> to vector<8x8xf32>
    %1165 = vector.extract_strided_slice %1102 {offsets = [0, 24], sizes = [16, 8], strides = [1, 1]} : vector<16x32xf32> to vector<16x8xf32>
    %1166 = vector.extract_strided_slice %1103 {offsets = [0, 24], sizes = [16, 8], strides = [1, 1]} : vector<16x32xf32> to vector<16x8xf32>
    %1167 = tpu.transpose %1165, [1, 0] : vector<16x8xf32> -> vector<8x16xf32>
    %cst_391 = arith.constant dense<0.000000e+00> : vector<8x16xf32>
    %1168 = tpu.matmul %1164, %1167, %cst_391 {dimension_numbers = #tpu.dot_dimension_numbers<[1], [0], [0], [1], [0, 0, 1, 1], [], []>} : vector<8x8xf32>, vector<8x16xf32>, vector<8x16xf32> -> vector<8x16xf32>
    %cst_392 = arith.constant 0.353553385 : f32
    %1169 = vector.broadcast %cst_392 : f32 to vector<8x16xf32>
    %1170 = arith.mulf %1168, %1169 : vector<8x16xf32>
    %cst_393 = arith.constant -1.000000e+06 : f32
    %1171 = vector.broadcast %cst_393 : f32 to vector<8x16xf32>
    %1172 = arith.select %1097, %1170, %1171 : vector<8x16xi1>, vector<8x16xf32>
    %cst_394 = arith.constant dense<0xFF800000> : vector<8xf32>
    %1173 = vector.multi_reduction <maximumf>, %1172, %cst_394 [1] : vector<8x16xf32> to vector<8xf32>
    %1174 = vector.shape_cast %1173 : vector<8xf32> to vector<8x1xf32>
    %1175 = vector.broadcast %1174 : vector<8x1xf32> to vector<8x16xf32>
    %1176 = arith.subf %1172, %1175 : vector<8x16xf32>
    %1177 = math.exp %1176 : vector<8x16xf32>
    %cst_395 = arith.constant dense<0.000000e+00> : vector<8xf32>
    %1178 = vector.multi_reduction <add>, %1177, %cst_395 [1] : vector<8x16xf32> to vector<8xf32>
    %1179 = vector.shape_cast %1178 : vector<8xf32> to vector<8x1xf32>
    %1180 = tpu.reciprocal %1179 {approx = true} : vector<8x1xf32> -> vector<8x1xf32>
    %1181 = vector.broadcast %1180 : vector<8x1xf32> to vector<8x16xf32>
    %1182 = arith.mulf %1177, %1181 : vector<8x16xf32>
    %cst_396 = arith.constant dense<0.000000e+00> : vector<8x8xf32>
    %1183 = tpu.matmul %1182, %1166, %cst_396 {dimension_numbers = #tpu.dot_dimension_numbers<[1], [0], [0], [1], [0, 0, 1, 1], [], []>} : vector<8x16xf32>, vector<16x8xf32>, vector<8x8xf32> -> vector<8x8xf32>
    %1184 = tpu.concatenate %1123, %1143, %1163, %1183 in 1 : vector<8x8xf32>, vector<8x8xf32>, vector<8x8xf32>, vector<8x8xf32> -> vector<8x32xf32>
    %1185 = vector.extract_strided_slice %1090 {offsets = [8, 0], sizes = [8, 32], strides = [1, 1]} : vector<16x32xf32> to vector<8x32xf32>
    %1186 = vector.extract_strided_slice %1092 {offsets = [16, 0], sizes = [16, 32], strides = [1, 1]} : vector<32x32xf32> to vector<16x32xf32>
    %1187 = vector.extract_strided_slice %1093 {offsets = [16, 0], sizes = [16, 32], strides = [1, 1]} : vector<32x32xf32> to vector<16x32xf32>
    %1188 = vector.extract_strided_slice %1185 {offsets = [0, 0], sizes = [8, 8], strides = [1, 1]} : vector<8x32xf32> to vector<8x8xf32>
    %1189 = vector.extract_strided_slice %1186 {offsets = [0, 0], sizes = [16, 8], strides = [1, 1]} : vector<16x32xf32> to vector<16x8xf32>
    %1190 = vector.extract_strided_slice %1187 {offsets = [0, 0], sizes = [16, 8], strides = [1, 1]} : vector<16x32xf32> to vector<16x8xf32>
    %1191 = tpu.transpose %1189, [1, 0] : vector<16x8xf32> -> vector<8x16xf32>
    %cst_397 = arith.constant dense<0.000000e+00> : vector<8x16xf32>
    %1192 = tpu.matmul %1188, %1191, %cst_397 {dimension_numbers = #tpu.dot_dimension_numbers<[1], [0], [0], [1], [0, 0, 1, 1], [], []>} : vector<8x8xf32>, vector<8x16xf32>, vector<8x16xf32> -> vector<8x16xf32>
    %cst_398 = arith.constant 0.353553385 : f32
    %1193 = vector.broadcast %cst_398 : f32 to vector<8x16xf32>
    %1194 = arith.mulf %1192, %1193 : vector<8x16xf32>
    %cst_399 = arith.constant -1.000000e+06 : f32
    %1195 = vector.broadcast %cst_399 : f32 to vector<8x16xf32>
    %1196 = arith.select %1100, %1194, %1195 : vector<8x16xi1>, vector<8x16xf32>
    %cst_400 = arith.constant dense<0xFF800000> : vector<8xf32>
    %1197 = vector.multi_reduction <maximumf>, %1196, %cst_400 [1] : vector<8x16xf32> to vector<8xf32>
    %1198 = vector.shape_cast %1197 : vector<8xf32> to vector<8x1xf32>
    %1199 = vector.broadcast %1198 : vector<8x1xf32> to vector<8x16xf32>
    %1200 = arith.subf %1196, %1199 : vector<8x16xf32>
    %1201 = math.exp %1200 : vector<8x16xf32>
    %cst_401 = arith.constant dense<0.000000e+00> : vector<8xf32>
    %1202 = vector.multi_reduction <add>, %1201, %cst_401 [1] : vector<8x16xf32> to vector<8xf32>
    %1203 = vector.shape_cast %1202 : vector<8xf32> to vector<8x1xf32>
    %1204 = tpu.reciprocal %1203 {approx = true} : vector<8x1xf32> -> vector<8x1xf32>
    %1205 = vector.broadcast %1204 : vector<8x1xf32> to vector<8x16xf32>
    %1206 = arith.mulf %1201, %1205 : vector<8x16xf32>
    %cst_402 = arith.constant dense<0.000000e+00> : vector<8x8xf32>
    %1207 = tpu.matmul %1206, %1190, %cst_402 {dimension_numbers = #tpu.dot_dimension_numbers<[1], [0], [0], [1], [0, 0, 1, 1], [], []>} : vector<8x16xf32>, vector<16x8xf32>, vector<8x8xf32> -> vector<8x8xf32>
    %1208 = vector.extract_strided_slice %1185 {offsets = [0, 8], sizes = [8, 8], strides = [1, 1]} : vector<8x32xf32> to vector<8x8xf32>
    %1209 = vector.extract_strided_slice %1186 {offsets = [0, 8], sizes = [16, 8], strides = [1, 1]} : vector<16x32xf32> to vector<16x8xf32>
    %1210 = vector.extract_strided_slice %1187 {offsets = [0, 8], sizes = [16, 8], strides = [1, 1]} : vector<16x32xf32> to vector<16x8xf32>
    %1211 = tpu.transpose %1209, [1, 0] : vector<16x8xf32> -> vector<8x16xf32>
    %cst_403 = arith.constant dense<0.000000e+00> : vector<8x16xf32>
    %1212 = tpu.matmul %1208, %1211, %cst_403 {dimension_numbers = #tpu.dot_dimension_numbers<[1], [0], [0], [1], [0, 0, 1, 1], [], []>} : vector<8x8xf32>, vector<8x16xf32>, vector<8x16xf32> -> vector<8x16xf32>
    %cst_404 = arith.constant 0.353553385 : f32
    %1213 = vector.broadcast %cst_404 : f32 to vector<8x16xf32>
    %1214 = arith.mulf %1212, %1213 : vector<8x16xf32>
    %cst_405 = arith.constant -1.000000e+06 : f32
    %1215 = vector.broadcast %cst_405 : f32 to vector<8x16xf32>
    %1216 = arith.select %1100, %1214, %1215 : vector<8x16xi1>, vector<8x16xf32>
    %cst_406 = arith.constant dense<0xFF800000> : vector<8xf32>
    %1217 = vector.multi_reduction <maximumf>, %1216, %cst_406 [1] : vector<8x16xf32> to vector<8xf32>
    %1218 = vector.shape_cast %1217 : vector<8xf32> to vector<8x1xf32>
    %1219 = vector.broadcast %1218 : vector<8x1xf32> to vector<8x16xf32>
    %1220 = arith.subf %1216, %1219 : vector<8x16xf32>
    %1221 = math.exp %1220 : vector<8x16xf32>
    %cst_407 = arith.constant dense<0.000000e+00> : vector<8xf32>
    %1222 = vector.multi_reduction <add>, %1221, %cst_407 [1] : vector<8x16xf32> to vector<8xf32>
    %1223 = vector.shape_cast %1222 : vector<8xf32> to vector<8x1xf32>
    %1224 = tpu.reciprocal %1223 {approx = true} : vector<8x1xf32> -> vector<8x1xf32>
    %1225 = vector.broadcast %1224 : vector<8x1xf32> to vector<8x16xf32>
    %1226 = arith.mulf %1221, %1225 : vector<8x16xf32>
    %cst_408 = arith.constant dense<0.000000e+00> : vector<8x8xf32>
    %1227 = tpu.matmul %1226, %1210, %cst_408 {dimension_numbers = #tpu.dot_dimension_numbers<[1], [0], [0], [1], [0, 0, 1, 1], [], []>} : vector<8x16xf32>, vector<16x8xf32>, vector<8x8xf32> -> vector<8x8xf32>
    %1228 = vector.extract_strided_slice %1185 {offsets = [0, 16], sizes = [8, 8], strides = [1, 1]} : vector<8x32xf32> to vector<8x8xf32>
    %1229 = vector.extract_strided_slice %1186 {offsets = [0, 16], sizes = [16, 8], strides = [1, 1]} : vector<16x32xf32> to vector<16x8xf32>
    %1230 = vector.extract_strided_slice %1187 {offsets = [0, 16], sizes = [16, 8], strides = [1, 1]} : vector<16x32xf32> to vector<16x8xf32>
    %1231 = tpu.transpose %1229, [1, 0] : vector<16x8xf32> -> vector<8x16xf32>
    %cst_409 = arith.constant dense<0.000000e+00> : vector<8x16xf32>
    %1232 = tpu.matmul %1228, %1231, %cst_409 {dimension_numbers = #tpu.dot_dimension_numbers<[1], [0], [0], [1], [0, 0, 1, 1], [], []>} : vector<8x8xf32>, vector<8x16xf32>, vector<8x16xf32> -> vector<8x16xf32>
    %cst_410 = arith.constant 0.353553385 : f32
    %1233 = vector.broadcast %cst_410 : f32 to vector<8x16xf32>
    %1234 = arith.mulf %1232, %1233 : vector<8x16xf32>
    %cst_411 = arith.constant -1.000000e+06 : f32
    %1235 = vector.broadcast %cst_411 : f32 to vector<8x16xf32>
    %1236 = arith.select %1100, %1234, %1235 : vector<8x16xi1>, vector<8x16xf32>
    %cst_412 = arith.constant dense<0xFF800000> : vector<8xf32>
    %1237 = vector.multi_reduction <maximumf>, %1236, %cst_412 [1] : vector<8x16xf32> to vector<8xf32>
    %1238 = vector.shape_cast %1237 : vector<8xf32> to vector<8x1xf32>
    %1239 = vector.broadcast %1238 : vector<8x1xf32> to vector<8x16xf32>
    %1240 = arith.subf %1236, %1239 : vector<8x16xf32>
    %1241 = math.exp %1240 : vector<8x16xf32>
    %cst_413 = arith.constant dense<0.000000e+00> : vector<8xf32>
    %1242 = vector.multi_reduction <add>, %1241, %cst_413 [1] : vector<8x16xf32> to vector<8xf32>
    %1243 = vector.shape_cast %1242 : vector<8xf32> to vector<8x1xf32>
    %1244 = tpu.reciprocal %1243 {approx = true} : vector<8x1xf32> -> vector<8x1xf32>
    %1245 = vector.broadcast %1244 : vector<8x1xf32> to vector<8x16xf32>
    %1246 = arith.mulf %1241, %1245 : vector<8x16xf32>
    %cst_414 = arith.constant dense<0.000000e+00> : vector<8x8xf32>
    %1247 = tpu.matmul %1246, %1230, %cst_414 {dimension_numbers = #tpu.dot_dimension_numbers<[1], [0], [0], [1], [0, 0, 1, 1], [], []>} : vector<8x16xf32>, vector<16x8xf32>, vector<8x8xf32> -> vector<8x8xf32>
    %1248 = vector.extract_strided_slice %1185 {offsets = [0, 24], sizes = [8, 8], strides = [1, 1]} : vector<8x32xf32> to vector<8x8xf32>
    %1249 = vector.extract_strided_slice %1186 {offsets = [0, 24], sizes = [16, 8], strides = [1, 1]} : vector<16x32xf32> to vector<16x8xf32>
    %1250 = vector.extract_strided_slice %1187 {offsets = [0, 24], sizes = [16, 8], strides = [1, 1]} : vector<16x32xf32> to vector<16x8xf32>
    %1251 = tpu.transpose %1249, [1, 0] : vector<16x8xf32> -> vector<8x16xf32>
    %cst_415 = arith.constant dense<0.000000e+00> : vector<8x16xf32>
    %1252 = tpu.matmul %1248, %1251, %cst_415 {dimension_numbers = #tpu.dot_dimension_numbers<[1], [0], [0], [1], [0, 0, 1, 1], [], []>} : vector<8x8xf32>, vector<8x16xf32>, vector<8x16xf32> -> vector<8x16xf32>
    %cst_416 = arith.constant 0.353553385 : f32
    %1253 = vector.broadcast %cst_416 : f32 to vector<8x16xf32>
    %1254 = arith.mulf %1252, %1253 : vector<8x16xf32>
    %cst_417 = arith.constant -1.000000e+06 : f32
    %1255 = vector.broadcast %cst_417 : f32 to vector<8x16xf32>
    %1256 = arith.select %1100, %1254, %1255 : vector<8x16xi1>, vector<8x16xf32>
    %cst_418 = arith.constant dense<0xFF800000> : vector<8xf32>
    %1257 = vector.multi_reduction <maximumf>, %1256, %cst_418 [1] : vector<8x16xf32> to vector<8xf32>
    %1258 = vector.shape_cast %1257 : vector<8xf32> to vector<8x1xf32>
    %1259 = vector.broadcast %1258 : vector<8x1xf32> to vector<8x16xf32>
    %1260 = arith.subf %1256, %1259 : vector<8x16xf32>
    %1261 = math.exp %1260 : vector<8x16xf32>
    %cst_419 = arith.constant dense<0.000000e+00> : vector<8xf32>
    %1262 = vector.multi_reduction <add>, %1261, %cst_419 [1] : vector<8x16xf32> to vector<8xf32>
    %1263 = vector.shape_cast %1262 : vector<8xf32> to vector<8x1xf32>
    %1264 = tpu.reciprocal %1263 {approx = true} : vector<8x1xf32> -> vector<8x1xf32>
    %1265 = vector.broadcast %1264 : vector<8x1xf32> to vector<8x16xf32>
    %1266 = arith.mulf %1261, %1265 : vector<8x16xf32>
    %cst_420 = arith.constant dense<0.000000e+00> : vector<8x8xf32>
    %1267 = tpu.matmul %1266, %1250, %cst_420 {dimension_numbers = #tpu.dot_dimension_numbers<[1], [0], [0], [1], [0, 0, 1, 1], [], []>} : vector<8x16xf32>, vector<16x8xf32>, vector<8x8xf32> -> vector<8x8xf32>
    %1268 = tpu.concatenate %1207, %1227, %1247, %1267 in 1 : vector<8x8xf32>, vector<8x8xf32>, vector<8x8xf32>, vector<8x8xf32> -> vector<8x32xf32>
    %1269 = tpu.concatenate %1184, %1268 in 0 : vector<8x32xf32>, vector<8x32xf32> -> vector<16x32xf32>
    %cst_421 = arith.constant dense<0.000000e+00> : vector<16x32xf32>
    %1270 = tpu.matmul %1269, %1089, %cst_421 {dimension_numbers = #tpu.dot_dimension_numbers<[1], [0], [0], [1], [0, 0, 1, 1], [], []>} : vector<16x32xf32>, vector<32x32xf32>, vector<16x32xf32> -> vector<16x32xf32>
    %c1_422 = arith.constant 1 : index
    %c0_423 = arith.constant 0 : index
    %c0_424 = arith.constant 0 : index
    %1271 = vector.load %arg17[%c1_422, %c0_423, %c0_424] : memref<2x32x32xf32, #tpu.memory_space<vmem>>, vector<1x32x32xf32>
    %1272 = vector.shape_cast %1271 : vector<1x32x32xf32> to vector<32x32xf32>
    %c1_425 = arith.constant 1 : index
    %c0_426 = arith.constant 0 : index
    %c0_427 = arith.constant 0 : index
    %1273 = vector.load %arg18[%c1_425, %c0_426, %c0_427] : memref<2x32x64xf32, #tpu.memory_space<vmem>>, vector<1x32x64xf32>
    %1274 = vector.shape_cast %1273 : vector<1x32x64xf32> to vector<32x64xf32>
    %c1_428 = arith.constant 1 : index
    %c0_429 = arith.constant 0 : index
    %c0_430 = arith.constant 0 : index
    %1275 = vector.load %arg19[%c1_428, %c0_429, %c0_430] : memref<2x32x32xf32, #tpu.memory_space<vmem>>, vector<1x32x32xf32>
    %1276 = vector.shape_cast %1275 : vector<1x32x32xf32> to vector<32x32xf32>
    %cst_431 = arith.constant dense<0.000000e+00> : vector<16x32xf32>
    %1277 = tpu.matmul %1083, %1272, %cst_431 {dimension_numbers = #tpu.dot_dimension_numbers<[1], [0], [0], [1], [0, 0, 1, 1], [], []>} : vector<16x32xf32>, vector<32x32xf32>, vector<16x32xf32> -> vector<16x32xf32>
    %cst_432 = arith.constant dense<0.000000e+00> : vector<16x64xf32>
    %1278 = tpu.matmul %13, %1274, %cst_432 {dimension_numbers = #tpu.dot_dimension_numbers<[1], [0], [0], [1], [0, 0, 1, 1], [], []>} : vector<16x32xf32>, vector<32x64xf32>, vector<16x64xf32> -> vector<16x64xf32>
    %1279 = vector.extract_strided_slice %1278 {offsets = [0, 0], sizes = [16, 32], strides = [1, 1]} : vector<16x64xf32> to vector<16x32xf32>
    %1280 = vector.extract_strided_slice %1278 {offsets = [0, 32], sizes = [16, 32], strides = [1, 1]} : vector<16x64xf32> to vector<16x32xf32>
    %1281 = tpu.iota {dimensions = array<i32: 1>} : vector<8x8xi32>
    %c0_433 = arith.constant 0 : index
    %1282 = memref.load %arg3[%c0_433] : memref<2xi32, #tpu.memory_space<smem>>
    %1283 = vector.broadcast %1282 : i32 to vector<8x8xi32>
    %1284 = arith.cmpi slt, %1281, %1283 : vector<8x8xi32>
    %c1_434 = arith.constant 1 : index
    %1285 = memref.load %arg3[%c1_434] : memref<2xi32, #tpu.memory_space<smem>>
    %1286 = vector.broadcast %1285 : i32 to vector<8x8xi32>
    %1287 = arith.cmpi slt, %1281, %1286 : vector<8x8xi32>
    %1288 = vector.extract_strided_slice %1277 {offsets = [0, 0], sizes = [8, 32], strides = [1, 1]} : vector<16x32xf32> to vector<8x32xf32>
    %1289 = vector.extract_strided_slice %1279 {offsets = [0, 0], sizes = [8, 32], strides = [1, 1]} : vector<16x32xf32> to vector<8x32xf32>
    %1290 = vector.extract_strided_slice %1280 {offsets = [0, 0], sizes = [8, 32], strides = [1, 1]} : vector<16x32xf32> to vector<8x32xf32>
    %1291 = vector.extract_strided_slice %1288 {offsets = [0, 0], sizes = [8, 8], strides = [1, 1]} : vector<8x32xf32> to vector<8x8xf32>
    %1292 = vector.extract_strided_slice %1289 {offsets = [0, 0], sizes = [8, 8], strides = [1, 1]} : vector<8x32xf32> to vector<8x8xf32>
    %1293 = vector.extract_strided_slice %1290 {offsets = [0, 0], sizes = [8, 8], strides = [1, 1]} : vector<8x32xf32> to vector<8x8xf32>
    %1294 = tpu.transpose %1292, [1, 0] : vector<8x8xf32> -> vector<8x8xf32>
    %cst_435 = arith.constant dense<0.000000e+00> : vector<8x8xf32>
    %1295 = tpu.matmul %1291, %1294, %cst_435 {dimension_numbers = #tpu.dot_dimension_numbers<[1], [0], [0], [1], [0, 0, 1, 1], [], []>} : vector<8x8xf32>, vector<8x8xf32>, vector<8x8xf32> -> vector<8x8xf32>
    %cst_436 = arith.constant 0.353553385 : f32
    %1296 = vector.broadcast %cst_436 : f32 to vector<8x8xf32>
    %1297 = arith.mulf %1295, %1296 : vector<8x8xf32>
    %cst_437 = arith.constant -1.000000e+06 : f32
    %1298 = vector.broadcast %cst_437 : f32 to vector<8x8xf32>
    %1299 = arith.select %1284, %1297, %1298 : vector<8x8xi1>, vector<8x8xf32>
    %cst_438 = arith.constant dense<0xFF800000> : vector<8xf32>
    %1300 = vector.multi_reduction <maximumf>, %1299, %cst_438 [1] : vector<8x8xf32> to vector<8xf32>
    %1301 = vector.shape_cast %1300 : vector<8xf32> to vector<8x1xf32>
    %1302 = vector.broadcast %1301 : vector<8x1xf32> to vector<8x8xf32>
    %1303 = arith.subf %1299, %1302 : vector<8x8xf32>
    %1304 = math.exp %1303 : vector<8x8xf32>
    %cst_439 = arith.constant dense<0.000000e+00> : vector<8xf32>
    %1305 = vector.multi_reduction <add>, %1304, %cst_439 [1] : vector<8x8xf32> to vector<8xf32>
    %1306 = vector.shape_cast %1305 : vector<8xf32> to vector<8x1xf32>
    %1307 = tpu.reciprocal %1306 {approx = true} : vector<8x1xf32> -> vector<8x1xf32>
    %1308 = vector.broadcast %1307 : vector<8x1xf32> to vector<8x8xf32>
    %1309 = arith.mulf %1304, %1308 : vector<8x8xf32>
    %cst_440 = arith.constant dense<0.000000e+00> : vector<8x8xf32>
    %1310 = tpu.matmul %1309, %1293, %cst_440 {dimension_numbers = #tpu.dot_dimension_numbers<[1], [0], [0], [1], [0, 0, 1, 1], [], []>} : vector<8x8xf32>, vector<8x8xf32>, vector<8x8xf32> -> vector<8x8xf32>
    %1311 = vector.extract_strided_slice %1288 {offsets = [0, 8], sizes = [8, 8], strides = [1, 1]} : vector<8x32xf32> to vector<8x8xf32>
    %1312 = vector.extract_strided_slice %1289 {offsets = [0, 8], sizes = [8, 8], strides = [1, 1]} : vector<8x32xf32> to vector<8x8xf32>
    %1313 = vector.extract_strided_slice %1290 {offsets = [0, 8], sizes = [8, 8], strides = [1, 1]} : vector<8x32xf32> to vector<8x8xf32>
    %1314 = tpu.transpose %1312, [1, 0] : vector<8x8xf32> -> vector<8x8xf32>
    %cst_441 = arith.constant dense<0.000000e+00> : vector<8x8xf32>
    %1315 = tpu.matmul %1311, %1314, %cst_441 {dimension_numbers = #tpu.dot_dimension_numbers<[1], [0], [0], [1], [0, 0, 1, 1], [], []>} : vector<8x8xf32>, vector<8x8xf32>, vector<8x8xf32> -> vector<8x8xf32>
    %cst_442 = arith.constant 0.353553385 : f32
    %1316 = vector.broadcast %cst_442 : f32 to vector<8x8xf32>
    %1317 = arith.mulf %1315, %1316 : vector<8x8xf32>
    %cst_443 = arith.constant -1.000000e+06 : f32
    %1318 = vector.broadcast %cst_443 : f32 to vector<8x8xf32>
    %1319 = arith.select %1284, %1317, %1318 : vector<8x8xi1>, vector<8x8xf32>
    %cst_444 = arith.constant dense<0xFF800000> : vector<8xf32>
    %1320 = vector.multi_reduction <maximumf>, %1319, %cst_444 [1] : vector<8x8xf32> to vector<8xf32>
    %1321 = vector.shape_cast %1320 : vector<8xf32> to vector<8x1xf32>
    %1322 = vector.broadcast %1321 : vector<8x1xf32> to vector<8x8xf32>
    %1323 = arith.subf %1319, %1322 : vector<8x8xf32>
    %1324 = math.exp %1323 : vector<8x8xf32>
    %cst_445 = arith.constant dense<0.000000e+00> : vector<8xf32>
    %1325 = vector.multi_reduction <add>, %1324, %cst_445 [1] : vector<8x8xf32> to vector<8xf32>
    %1326 = vector.shape_cast %1325 : vector<8xf32> to vector<8x1xf32>
    %1327 = tpu.reciprocal %1326 {approx = true} : vector<8x1xf32> -> vector<8x1xf32>
    %1328 = vector.broadcast %1327 : vector<8x1xf32> to vector<8x8xf32>
    %1329 = arith.mulf %1324, %1328 : vector<8x8xf32>
    %cst_446 = arith.constant dense<0.000000e+00> : vector<8x8xf32>
    %1330 = tpu.matmul %1329, %1313, %cst_446 {dimension_numbers = #tpu.dot_dimension_numbers<[1], [0], [0], [1], [0, 0, 1, 1], [], []>} : vector<8x8xf32>, vector<8x8xf32>, vector<8x8xf32> -> vector<8x8xf32>
    %1331 = vector.extract_strided_slice %1288 {offsets = [0, 16], sizes = [8, 8], strides = [1, 1]} : vector<8x32xf32> to vector<8x8xf32>
    %1332 = vector.extract_strided_slice %1289 {offsets = [0, 16], sizes = [8, 8], strides = [1, 1]} : vector<8x32xf32> to vector<8x8xf32>
    %1333 = vector.extract_strided_slice %1290 {offsets = [0, 16], sizes = [8, 8], strides = [1, 1]} : vector<8x32xf32> to vector<8x8xf32>
    %1334 = tpu.transpose %1332, [1, 0] : vector<8x8xf32> -> vector<8x8xf32>
    %cst_447 = arith.constant dense<0.000000e+00> : vector<8x8xf32>
    %1335 = tpu.matmul %1331, %1334, %cst_447 {dimension_numbers = #tpu.dot_dimension_numbers<[1], [0], [0], [1], [0, 0, 1, 1], [], []>} : vector<8x8xf32>, vector<8x8xf32>, vector<8x8xf32> -> vector<8x8xf32>
    %cst_448 = arith.constant 0.353553385 : f32
    %1336 = vector.broadcast %cst_448 : f32 to vector<8x8xf32>
    %1337 = arith.mulf %1335, %1336 : vector<8x8xf32>
    %cst_449 = arith.constant -1.000000e+06 : f32
    %1338 = vector.broadcast %cst_449 : f32 to vector<8x8xf32>
    %1339 = arith.select %1284, %1337, %1338 : vector<8x8xi1>, vector<8x8xf32>
    %cst_450 = arith.constant dense<0xFF800000> : vector<8xf32>
    %1340 = vector.multi_reduction <maximumf>, %1339, %cst_450 [1] : vector<8x8xf32> to vector<8xf32>
    %1341 = vector.shape_cast %1340 : vector<8xf32> to vector<8x1xf32>
    %1342 = vector.broadcast %1341 : vector<8x1xf32> to vector<8x8xf32>
    %1343 = arith.subf %1339, %1342 : vector<8x8xf32>
    %1344 = math.exp %1343 : vector<8x8xf32>
    %cst_451 = arith.constant dense<0.000000e+00> : vector<8xf32>
    %1345 = vector.multi_reduction <add>, %1344, %cst_451 [1] : vector<8x8xf32> to vector<8xf32>
    %1346 = vector.shape_cast %1345 : vector<8xf32> to vector<8x1xf32>
    %1347 = tpu.reciprocal %1346 {approx = true} : vector<8x1xf32> -> vector<8x1xf32>
    %1348 = vector.broadcast %1347 : vector<8x1xf32> to vector<8x8xf32>
    %1349 = arith.mulf %1344, %1348 : vector<8x8xf32>
    %cst_452 = arith.constant dense<0.000000e+00> : vector<8x8xf32>
    %1350 = tpu.matmul %1349, %1333, %cst_452 {dimension_numbers = #tpu.dot_dimension_numbers<[1], [0], [0], [1], [0, 0, 1, 1], [], []>} : vector<8x8xf32>, vector<8x8xf32>, vector<8x8xf32> -> vector<8x8xf32>
    %1351 = vector.extract_strided_slice %1288 {offsets = [0, 24], sizes = [8, 8], strides = [1, 1]} : vector<8x32xf32> to vector<8x8xf32>
    %1352 = vector.extract_strided_slice %1289 {offsets = [0, 24], sizes = [8, 8], strides = [1, 1]} : vector<8x32xf32> to vector<8x8xf32>
    %1353 = vector.extract_strided_slice %1290 {offsets = [0, 24], sizes = [8, 8], strides = [1, 1]} : vector<8x32xf32> to vector<8x8xf32>
    %1354 = tpu.transpose %1352, [1, 0] : vector<8x8xf32> -> vector<8x8xf32>
    %cst_453 = arith.constant dense<0.000000e+00> : vector<8x8xf32>
    %1355 = tpu.matmul %1351, %1354, %cst_453 {dimension_numbers = #tpu.dot_dimension_numbers<[1], [0], [0], [1], [0, 0, 1, 1], [], []>} : vector<8x8xf32>, vector<8x8xf32>, vector<8x8xf32> -> vector<8x8xf32>
    %cst_454 = arith.constant 0.353553385 : f32
    %1356 = vector.broadcast %cst_454 : f32 to vector<8x8xf32>
    %1357 = arith.mulf %1355, %1356 : vector<8x8xf32>
    %cst_455 = arith.constant -1.000000e+06 : f32
    %1358 = vector.broadcast %cst_455 : f32 to vector<8x8xf32>
    %1359 = arith.select %1284, %1357, %1358 : vector<8x8xi1>, vector<8x8xf32>
    %cst_456 = arith.constant dense<0xFF800000> : vector<8xf32>
    %1360 = vector.multi_reduction <maximumf>, %1359, %cst_456 [1] : vector<8x8xf32> to vector<8xf32>
    %1361 = vector.shape_cast %1360 : vector<8xf32> to vector<8x1xf32>
    %1362 = vector.broadcast %1361 : vector<8x1xf32> to vector<8x8xf32>
    %1363 = arith.subf %1359, %1362 : vector<8x8xf32>
    %1364 = math.exp %1363 : vector<8x8xf32>
    %cst_457 = arith.constant dense<0.000000e+00> : vector<8xf32>
    %1365 = vector.multi_reduction <add>, %1364, %cst_457 [1] : vector<8x8xf32> to vector<8xf32>
    %1366 = vector.shape_cast %1365 : vector<8xf32> to vector<8x1xf32>
    %1367 = tpu.reciprocal %1366 {approx = true} : vector<8x1xf32> -> vector<8x1xf32>
    %1368 = vector.broadcast %1367 : vector<8x1xf32> to vector<8x8xf32>
    %1369 = arith.mulf %1364, %1368 : vector<8x8xf32>
    %cst_458 = arith.constant dense<0.000000e+00> : vector<8x8xf32>
    %1370 = tpu.matmul %1369, %1353, %cst_458 {dimension_numbers = #tpu.dot_dimension_numbers<[1], [0], [0], [1], [0, 0, 1, 1], [], []>} : vector<8x8xf32>, vector<8x8xf32>, vector<8x8xf32> -> vector<8x8xf32>
    %1371 = tpu.concatenate %1310, %1330, %1350, %1370 in 1 : vector<8x8xf32>, vector<8x8xf32>, vector<8x8xf32>, vector<8x8xf32> -> vector<8x32xf32>
    %1372 = vector.extract_strided_slice %1277 {offsets = [8, 0], sizes = [8, 32], strides = [1, 1]} : vector<16x32xf32> to vector<8x32xf32>
    %1373 = vector.extract_strided_slice %1279 {offsets = [8, 0], sizes = [8, 32], strides = [1, 1]} : vector<16x32xf32> to vector<8x32xf32>
    %1374 = vector.extract_strided_slice %1280 {offsets = [8, 0], sizes = [8, 32], strides = [1, 1]} : vector<16x32xf32> to vector<8x32xf32>
    %1375 = vector.extract_strided_slice %1372 {offsets = [0, 0], sizes = [8, 8], strides = [1, 1]} : vector<8x32xf32> to vector<8x8xf32>
    %1376 = vector.extract_strided_slice %1373 {offsets = [0, 0], sizes = [8, 8], strides = [1, 1]} : vector<8x32xf32> to vector<8x8xf32>
    %1377 = vector.extract_strided_slice %1374 {offsets = [0, 0], sizes = [8, 8], strides = [1, 1]} : vector<8x32xf32> to vector<8x8xf32>
    %1378 = tpu.transpose %1376, [1, 0] : vector<8x8xf32> -> vector<8x8xf32>
    %cst_459 = arith.constant dense<0.000000e+00> : vector<8x8xf32>
    %1379 = tpu.matmul %1375, %1378, %cst_459 {dimension_numbers = #tpu.dot_dimension_numbers<[1], [0], [0], [1], [0, 0, 1, 1], [], []>} : vector<8x8xf32>, vector<8x8xf32>, vector<8x8xf32> -> vector<8x8xf32>
    %cst_460 = arith.constant 0.353553385 : f32
    %1380 = vector.broadcast %cst_460 : f32 to vector<8x8xf32>
    %1381 = arith.mulf %1379, %1380 : vector<8x8xf32>
    %cst_461 = arith.constant -1.000000e+06 : f32
    %1382 = vector.broadcast %cst_461 : f32 to vector<8x8xf32>
    %1383 = arith.select %1287, %1381, %1382 : vector<8x8xi1>, vector<8x8xf32>
    %cst_462 = arith.constant dense<0xFF800000> : vector<8xf32>
    %1384 = vector.multi_reduction <maximumf>, %1383, %cst_462 [1] : vector<8x8xf32> to vector<8xf32>
    %1385 = vector.shape_cast %1384 : vector<8xf32> to vector<8x1xf32>
    %1386 = vector.broadcast %1385 : vector<8x1xf32> to vector<8x8xf32>
    %1387 = arith.subf %1383, %1386 : vector<8x8xf32>
    %1388 = math.exp %1387 : vector<8x8xf32>
    %cst_463 = arith.constant dense<0.000000e+00> : vector<8xf32>
    %1389 = vector.multi_reduction <add>, %1388, %cst_463 [1] : vector<8x8xf32> to vector<8xf32>
    %1390 = vector.shape_cast %1389 : vector<8xf32> to vector<8x1xf32>
    %1391 = tpu.reciprocal %1390 {approx = true} : vector<8x1xf32> -> vector<8x1xf32>
    %1392 = vector.broadcast %1391 : vector<8x1xf32> to vector<8x8xf32>
    %1393 = arith.mulf %1388, %1392 : vector<8x8xf32>
    %cst_464 = arith.constant dense<0.000000e+00> : vector<8x8xf32>
    %1394 = tpu.matmul %1393, %1377, %cst_464 {dimension_numbers = #tpu.dot_dimension_numbers<[1], [0], [0], [1], [0, 0, 1, 1], [], []>} : vector<8x8xf32>, vector<8x8xf32>, vector<8x8xf32> -> vector<8x8xf32>
    %1395 = vector.extract_strided_slice %1372 {offsets = [0, 8], sizes = [8, 8], strides = [1, 1]} : vector<8x32xf32> to vector<8x8xf32>
    %1396 = vector.extract_strided_slice %1373 {offsets = [0, 8], sizes = [8, 8], strides = [1, 1]} : vector<8x32xf32> to vector<8x8xf32>
    %1397 = vector.extract_strided_slice %1374 {offsets = [0, 8], sizes = [8, 8], strides = [1, 1]} : vector<8x32xf32> to vector<8x8xf32>
    %1398 = tpu.transpose %1396, [1, 0] : vector<8x8xf32> -> vector<8x8xf32>
    %cst_465 = arith.constant dense<0.000000e+00> : vector<8x8xf32>
    %1399 = tpu.matmul %1395, %1398, %cst_465 {dimension_numbers = #tpu.dot_dimension_numbers<[1], [0], [0], [1], [0, 0, 1, 1], [], []>} : vector<8x8xf32>, vector<8x8xf32>, vector<8x8xf32> -> vector<8x8xf32>
    %cst_466 = arith.constant 0.353553385 : f32
    %1400 = vector.broadcast %cst_466 : f32 to vector<8x8xf32>
    %1401 = arith.mulf %1399, %1400 : vector<8x8xf32>
    %cst_467 = arith.constant -1.000000e+06 : f32
    %1402 = vector.broadcast %cst_467 : f32 to vector<8x8xf32>
    %1403 = arith.select %1287, %1401, %1402 : vector<8x8xi1>, vector<8x8xf32>
    %cst_468 = arith.constant dense<0xFF800000> : vector<8xf32>
    %1404 = vector.multi_reduction <maximumf>, %1403, %cst_468 [1] : vector<8x8xf32> to vector<8xf32>
    %1405 = vector.shape_cast %1404 : vector<8xf32> to vector<8x1xf32>
    %1406 = vector.broadcast %1405 : vector<8x1xf32> to vector<8x8xf32>
    %1407 = arith.subf %1403, %1406 : vector<8x8xf32>
    %1408 = math.exp %1407 : vector<8x8xf32>
    %cst_469 = arith.constant dense<0.000000e+00> : vector<8xf32>
    %1409 = vector.multi_reduction <add>, %1408, %cst_469 [1] : vector<8x8xf32> to vector<8xf32>
    %1410 = vector.shape_cast %1409 : vector<8xf32> to vector<8x1xf32>
    %1411 = tpu.reciprocal %1410 {approx = true} : vector<8x1xf32> -> vector<8x1xf32>
    %1412 = vector.broadcast %1411 : vector<8x1xf32> to vector<8x8xf32>
    %1413 = arith.mulf %1408, %1412 : vector<8x8xf32>
    %cst_470 = arith.constant dense<0.000000e+00> : vector<8x8xf32>
    %1414 = tpu.matmul %1413, %1397, %cst_470 {dimension_numbers = #tpu.dot_dimension_numbers<[1], [0], [0], [1], [0, 0, 1, 1], [], []>} : vector<8x8xf32>, vector<8x8xf32>, vector<8x8xf32> -> vector<8x8xf32>
    %1415 = vector.extract_strided_slice %1372 {offsets = [0, 16], sizes = [8, 8], strides = [1, 1]} : vector<8x32xf32> to vector<8x8xf32>
    %1416 = vector.extract_strided_slice %1373 {offsets = [0, 16], sizes = [8, 8], strides = [1, 1]} : vector<8x32xf32> to vector<8x8xf32>
    %1417 = vector.extract_strided_slice %1374 {offsets = [0, 16], sizes = [8, 8], strides = [1, 1]} : vector<8x32xf32> to vector<8x8xf32>
    %1418 = tpu.transpose %1416, [1, 0] : vector<8x8xf32> -> vector<8x8xf32>
    %cst_471 = arith.constant dense<0.000000e+00> : vector<8x8xf32>
    %1419 = tpu.matmul %1415, %1418, %cst_471 {dimension_numbers = #tpu.dot_dimension_numbers<[1], [0], [0], [1], [0, 0, 1, 1], [], []>} : vector<8x8xf32>, vector<8x8xf32>, vector<8x8xf32> -> vector<8x8xf32>
    %cst_472 = arith.constant 0.353553385 : f32
    %1420 = vector.broadcast %cst_472 : f32 to vector<8x8xf32>
    %1421 = arith.mulf %1419, %1420 : vector<8x8xf32>
    %cst_473 = arith.constant -1.000000e+06 : f32
    %1422 = vector.broadcast %cst_473 : f32 to vector<8x8xf32>
    %1423 = arith.select %1287, %1421, %1422 : vector<8x8xi1>, vector<8x8xf32>
    %cst_474 = arith.constant dense<0xFF800000> : vector<8xf32>
    %1424 = vector.multi_reduction <maximumf>, %1423, %cst_474 [1] : vector<8x8xf32> to vector<8xf32>
    %1425 = vector.shape_cast %1424 : vector<8xf32> to vector<8x1xf32>
    %1426 = vector.broadcast %1425 : vector<8x1xf32> to vector<8x8xf32>
    %1427 = arith.subf %1423, %1426 : vector<8x8xf32>
    %1428 = math.exp %1427 : vector<8x8xf32>
    %cst_475 = arith.constant dense<0.000000e+00> : vector<8xf32>
    %1429 = vector.multi_reduction <add>, %1428, %cst_475 [1] : vector<8x8xf32> to vector<8xf32>
    %1430 = vector.shape_cast %1429 : vector<8xf32> to vector<8x1xf32>
    %1431 = tpu.reciprocal %1430 {approx = true} : vector<8x1xf32> -> vector<8x1xf32>
    %1432 = vector.broadcast %1431 : vector<8x1xf32> to vector<8x8xf32>
    %1433 = arith.mulf %1428, %1432 : vector<8x8xf32>
    %cst_476 = arith.constant dense<0.000000e+00> : vector<8x8xf32>
    %1434 = tpu.matmul %1433, %1417, %cst_476 {dimension_numbers = #tpu.dot_dimension_numbers<[1], [0], [0], [1], [0, 0, 1, 1], [], []>} : vector<8x8xf32>, vector<8x8xf32>, vector<8x8xf32> -> vector<8x8xf32>
    %1435 = vector.extract_strided_slice %1372 {offsets = [0, 24], sizes = [8, 8], strides = [1, 1]} : vector<8x32xf32> to vector<8x8xf32>
    %1436 = vector.extract_strided_slice %1373 {offsets = [0, 24], sizes = [8, 8], strides = [1, 1]} : vector<8x32xf32> to vector<8x8xf32>
    %1437 = vector.extract_strided_slice %1374 {offsets = [0, 24], sizes = [8, 8], strides = [1, 1]} : vector<8x32xf32> to vector<8x8xf32>
    %1438 = tpu.transpose %1436, [1, 0] : vector<8x8xf32> -> vector<8x8xf32>
    %cst_477 = arith.constant dense<0.000000e+00> : vector<8x8xf32>
    %1439 = tpu.matmul %1435, %1438, %cst_477 {dimension_numbers = #tpu.dot_dimension_numbers<[1], [0], [0], [1], [0, 0, 1, 1], [], []>} : vector<8x8xf32>, vector<8x8xf32>, vector<8x8xf32> -> vector<8x8xf32>
    %cst_478 = arith.constant 0.353553385 : f32
    %1440 = vector.broadcast %cst_478 : f32 to vector<8x8xf32>
    %1441 = arith.mulf %1439, %1440 : vector<8x8xf32>
    %cst_479 = arith.constant -1.000000e+06 : f32
    %1442 = vector.broadcast %cst_479 : f32 to vector<8x8xf32>
    %1443 = arith.select %1287, %1441, %1442 : vector<8x8xi1>, vector<8x8xf32>
    %cst_480 = arith.constant dense<0xFF800000> : vector<8xf32>
    %1444 = vector.multi_reduction <maximumf>, %1443, %cst_480 [1] : vector<8x8xf32> to vector<8xf32>
    %1445 = vector.shape_cast %1444 : vector<8xf32> to vector<8x1xf32>
    %1446 = vector.broadcast %1445 : vector<8x1xf32> to vector<8x8xf32>
    %1447 = arith.subf %1443, %1446 : vector<8x8xf32>
    %1448 = math.exp %1447 : vector<8x8xf32>
    %cst_481 = arith.constant dense<0.000000e+00> : vector<8xf32>
    %1449 = vector.multi_reduction <add>, %1448, %cst_481 [1] : vector<8x8xf32> to vector<8xf32>
    %1450 = vector.shape_cast %1449 : vector<8xf32> to vector<8x1xf32>
    %1451 = tpu.reciprocal %1450 {approx = true} : vector<8x1xf32> -> vector<8x1xf32>
    %1452 = vector.broadcast %1451 : vector<8x1xf32> to vector<8x8xf32>
    %1453 = arith.mulf %1448, %1452 : vector<8x8xf32>
    %cst_482 = arith.constant dense<0.000000e+00> : vector<8x8xf32>
    %1454 = tpu.matmul %1453, %1437, %cst_482 {dimension_numbers = #tpu.dot_dimension_numbers<[1], [0], [0], [1], [0, 0, 1, 1], [], []>} : vector<8x8xf32>, vector<8x8xf32>, vector<8x8xf32> -> vector<8x8xf32>
    %1455 = tpu.concatenate %1394, %1414, %1434, %1454 in 1 : vector<8x8xf32>, vector<8x8xf32>, vector<8x8xf32>, vector<8x8xf32> -> vector<8x32xf32>
    %1456 = tpu.concatenate %1371, %1455 in 0 : vector<8x32xf32>, vector<8x32xf32> -> vector<16x32xf32>
    %cst_483 = arith.constant dense<0.000000e+00> : vector<16x32xf32>
    %1457 = tpu.matmul %1456, %1276, %cst_483 {dimension_numbers = #tpu.dot_dimension_numbers<[1], [0], [0], [1], [0, 0, 1, 1], [], []>} : vector<16x32xf32>, vector<32x32xf32>, vector<16x32xf32> -> vector<16x32xf32>
    %1458 = arith.addf %1083, %1270 : vector<16x32xf32>
    %1459 = arith.addf %1458, %1457 : vector<16x32xf32>
    %1460 = vector.extract_strided_slice %878 {offsets = [1, 0], sizes = [1, 32], strides = [1, 1]} : vector<4x32xf32> to vector<1x32xf32>
    %1461 = vector.extract_strided_slice %880 {offsets = [1, 0], sizes = [1, 32], strides = [1, 1]} : vector<4x32xf32> to vector<1x32xf32>
    %cst_484 = arith.constant dense<0.000000e+00> : vector<16xf32>
    %1462 = vector.multi_reduction <add>, %1459, %cst_484 [1] : vector<16x32xf32> to vector<16xf32>
    %1463 = vector.shape_cast %1462 : vector<16xf32> to vector<16x1xf32>
    %cst_485 = arith.constant 3.200000e+01 : f32
    %1464 = vector.broadcast %cst_485 : f32 to vector<16x1xf32>
    %1465 = arith.divf %1463, %1464 : vector<16x1xf32>
    %1466 = vector.broadcast %1465 : vector<16x1xf32> to vector<16x32xf32>
    %1467 = arith.subf %1459, %1466 : vector<16x32xf32>
    %1468 = arith.mulf %1467, %1467 : vector<16x32xf32>
    %cst_486 = arith.constant dense<0.000000e+00> : vector<16xf32>
    %1469 = vector.multi_reduction <add>, %1468, %cst_486 [1] : vector<16x32xf32> to vector<16xf32>
    %1470 = vector.shape_cast %1469 : vector<16xf32> to vector<16x1xf32>
    %cst_487 = arith.constant 3.200000e+01 : f32
    %1471 = vector.broadcast %cst_487 : f32 to vector<16x1xf32>
    %1472 = arith.divf %1470, %1471 : vector<16x1xf32>
    %1473 = vector.broadcast %1465 : vector<16x1xf32> to vector<16x32xf32>
    %1474 = arith.subf %1459, %1473 : vector<16x32xf32>
    %cst_488 = arith.constant 9.99999974E-6 : f32
    %1475 = vector.broadcast %cst_488 : f32 to vector<16x1xf32>
    %1476 = arith.addf %1472, %1475 : vector<16x1xf32>
    %1477 = math.rsqrt %1476 : vector<16x1xf32>
    %1478 = vector.broadcast %1477 : vector<16x1xf32> to vector<16x32xf32>
    %1479 = arith.mulf %1474, %1478 : vector<16x32xf32>
    %1480 = vector.broadcast %1460 : vector<1x32xf32> to vector<16x32xf32>
    %1481 = arith.mulf %1479, %1480 : vector<16x32xf32>
    %1482 = vector.broadcast %1461 : vector<1x32xf32> to vector<16x32xf32>
    %1483 = arith.addf %1481, %1482 : vector<16x32xf32>
    %c1_489 = arith.constant 1 : index
    %c0_490 = arith.constant 0 : index
    %c0_491 = arith.constant 0 : index
    %1484 = vector.load %arg20[%c1_489, %c0_490, %c0_491] : memref<2x32x32xf32, #tpu.memory_space<vmem>>, vector<1x32x32xf32>
    %1485 = vector.shape_cast %1484 : vector<1x32x32xf32> to vector<32x32xf32>
    %c1_492 = arith.constant 1 : index
    %c0_493 = arith.constant 0 : index
    %c0_494 = arith.constant 0 : index
    %1486 = vector.load %arg21[%c1_492, %c0_493, %c0_494] : memref<2x32x64xf32, #tpu.memory_space<vmem>>, vector<1x32x64xf32>
    %1487 = vector.shape_cast %1486 : vector<1x32x64xf32> to vector<32x64xf32>
    %c1_495 = arith.constant 1 : index
    %c0_496 = arith.constant 0 : index
    %c0_497 = arith.constant 0 : index
    %1488 = vector.load %arg22[%c1_495, %c0_496, %c0_497] : memref<2x32x32xf32, #tpu.memory_space<vmem>>, vector<1x32x32xf32>
    %1489 = vector.shape_cast %1488 : vector<1x32x32xf32> to vector<32x32xf32>
    %cst_498 = arith.constant dense<0.000000e+00> : vector<16x32xf32>
    %1490 = tpu.matmul %1483, %1485, %cst_498 {dimension_numbers = #tpu.dot_dimension_numbers<[1], [0], [0], [1], [0, 0, 1, 1], [], []>} : vector<16x32xf32>, vector<32x32xf32>, vector<16x32xf32> -> vector<16x32xf32>
    %cst_499 = arith.constant dense<0.000000e+00> : vector<16x64xf32>
    %1491 = tpu.matmul %12, %1487, %cst_499 {dimension_numbers = #tpu.dot_dimension_numbers<[1], [0], [0], [1], [0, 0, 1, 1], [], []>} : vector<16x32xf32>, vector<32x64xf32>, vector<16x64xf32> -> vector<16x64xf32>
    %1492 = vector.extract_strided_slice %1491 {offsets = [0, 0], sizes = [16, 32], strides = [1, 1]} : vector<16x64xf32> to vector<16x32xf32>
    %1493 = vector.extract_strided_slice %1491 {offsets = [0, 32], sizes = [16, 32], strides = [1, 1]} : vector<16x64xf32> to vector<16x32xf32>
    %1494 = tpu.iota {dimensions = array<i32: 1>} : vector<8x8xi32>
    %c0_500 = arith.constant 0 : index
    %1495 = memref.load %arg2[%c0_500] : memref<2xi32, #tpu.memory_space<smem>>
    %1496 = vector.broadcast %1495 : i32 to vector<8x8xi32>
    %1497 = arith.cmpi slt, %1494, %1496 : vector<8x8xi32>
    %c1_501 = arith.constant 1 : index
    %1498 = memref.load %arg2[%c1_501] : memref<2xi32, #tpu.memory_space<smem>>
    %1499 = vector.broadcast %1498 : i32 to vector<8x8xi32>
    %1500 = arith.cmpi slt, %1494, %1499 : vector<8x8xi32>
    %1501 = vector.extract_strided_slice %1490 {offsets = [0, 0], sizes = [8, 32], strides = [1, 1]} : vector<16x32xf32> to vector<8x32xf32>
    %1502 = vector.extract_strided_slice %1492 {offsets = [0, 0], sizes = [8, 32], strides = [1, 1]} : vector<16x32xf32> to vector<8x32xf32>
    %1503 = vector.extract_strided_slice %1493 {offsets = [0, 0], sizes = [8, 32], strides = [1, 1]} : vector<16x32xf32> to vector<8x32xf32>
    %1504 = vector.extract_strided_slice %1501 {offsets = [0, 0], sizes = [8, 8], strides = [1, 1]} : vector<8x32xf32> to vector<8x8xf32>
    %1505 = vector.extract_strided_slice %1502 {offsets = [0, 0], sizes = [8, 8], strides = [1, 1]} : vector<8x32xf32> to vector<8x8xf32>
    %1506 = vector.extract_strided_slice %1503 {offsets = [0, 0], sizes = [8, 8], strides = [1, 1]} : vector<8x32xf32> to vector<8x8xf32>
    %1507 = tpu.transpose %1505, [1, 0] : vector<8x8xf32> -> vector<8x8xf32>
    %cst_502 = arith.constant dense<0.000000e+00> : vector<8x8xf32>
    %1508 = tpu.matmul %1504, %1507, %cst_502 {dimension_numbers = #tpu.dot_dimension_numbers<[1], [0], [0], [1], [0, 0, 1, 1], [], []>} : vector<8x8xf32>, vector<8x8xf32>, vector<8x8xf32> -> vector<8x8xf32>
    %cst_503 = arith.constant 0.353553385 : f32
    %1509 = vector.broadcast %cst_503 : f32 to vector<8x8xf32>
    %1510 = arith.mulf %1508, %1509 : vector<8x8xf32>
    %cst_504 = arith.constant -1.000000e+06 : f32
    %1511 = vector.broadcast %cst_504 : f32 to vector<8x8xf32>
    %1512 = arith.select %1497, %1510, %1511 : vector<8x8xi1>, vector<8x8xf32>
    %cst_505 = arith.constant dense<0xFF800000> : vector<8xf32>
    %1513 = vector.multi_reduction <maximumf>, %1512, %cst_505 [1] : vector<8x8xf32> to vector<8xf32>
    %1514 = vector.shape_cast %1513 : vector<8xf32> to vector<8x1xf32>
    %1515 = vector.broadcast %1514 : vector<8x1xf32> to vector<8x8xf32>
    %1516 = arith.subf %1512, %1515 : vector<8x8xf32>
    %1517 = math.exp %1516 : vector<8x8xf32>
    %cst_506 = arith.constant dense<0.000000e+00> : vector<8xf32>
    %1518 = vector.multi_reduction <add>, %1517, %cst_506 [1] : vector<8x8xf32> to vector<8xf32>
    %1519 = vector.shape_cast %1518 : vector<8xf32> to vector<8x1xf32>
    %1520 = tpu.reciprocal %1519 {approx = true} : vector<8x1xf32> -> vector<8x1xf32>
    %1521 = vector.broadcast %1520 : vector<8x1xf32> to vector<8x8xf32>
    %1522 = arith.mulf %1517, %1521 : vector<8x8xf32>
    %cst_507 = arith.constant dense<0.000000e+00> : vector<8x8xf32>
    %1523 = tpu.matmul %1522, %1506, %cst_507 {dimension_numbers = #tpu.dot_dimension_numbers<[1], [0], [0], [1], [0, 0, 1, 1], [], []>} : vector<8x8xf32>, vector<8x8xf32>, vector<8x8xf32> -> vector<8x8xf32>
    %1524 = vector.extract_strided_slice %1501 {offsets = [0, 8], sizes = [8, 8], strides = [1, 1]} : vector<8x32xf32> to vector<8x8xf32>
    %1525 = vector.extract_strided_slice %1502 {offsets = [0, 8], sizes = [8, 8], strides = [1, 1]} : vector<8x32xf32> to vector<8x8xf32>
    %1526 = vector.extract_strided_slice %1503 {offsets = [0, 8], sizes = [8, 8], strides = [1, 1]} : vector<8x32xf32> to vector<8x8xf32>
    %1527 = tpu.transpose %1525, [1, 0] : vector<8x8xf32> -> vector<8x8xf32>
    %cst_508 = arith.constant dense<0.000000e+00> : vector<8x8xf32>
    %1528 = tpu.matmul %1524, %1527, %cst_508 {dimension_numbers = #tpu.dot_dimension_numbers<[1], [0], [0], [1], [0, 0, 1, 1], [], []>} : vector<8x8xf32>, vector<8x8xf32>, vector<8x8xf32> -> vector<8x8xf32>
    %cst_509 = arith.constant 0.353553385 : f32
    %1529 = vector.broadcast %cst_509 : f32 to vector<8x8xf32>
    %1530 = arith.mulf %1528, %1529 : vector<8x8xf32>
    %cst_510 = arith.constant -1.000000e+06 : f32
    %1531 = vector.broadcast %cst_510 : f32 to vector<8x8xf32>
    %1532 = arith.select %1497, %1530, %1531 : vector<8x8xi1>, vector<8x8xf32>
    %cst_511 = arith.constant dense<0xFF800000> : vector<8xf32>
    %1533 = vector.multi_reduction <maximumf>, %1532, %cst_511 [1] : vector<8x8xf32> to vector<8xf32>
    %1534 = vector.shape_cast %1533 : vector<8xf32> to vector<8x1xf32>
    %1535 = vector.broadcast %1534 : vector<8x1xf32> to vector<8x8xf32>
    %1536 = arith.subf %1532, %1535 : vector<8x8xf32>
    %1537 = math.exp %1536 : vector<8x8xf32>
    %cst_512 = arith.constant dense<0.000000e+00> : vector<8xf32>
    %1538 = vector.multi_reduction <add>, %1537, %cst_512 [1] : vector<8x8xf32> to vector<8xf32>
    %1539 = vector.shape_cast %1538 : vector<8xf32> to vector<8x1xf32>
    %1540 = tpu.reciprocal %1539 {approx = true} : vector<8x1xf32> -> vector<8x1xf32>
    %1541 = vector.broadcast %1540 : vector<8x1xf32> to vector<8x8xf32>
    %1542 = arith.mulf %1537, %1541 : vector<8x8xf32>
    %cst_513 = arith.constant dense<0.000000e+00> : vector<8x8xf32>
    %1543 = tpu.matmul %1542, %1526, %cst_513 {dimension_numbers = #tpu.dot_dimension_numbers<[1], [0], [0], [1], [0, 0, 1, 1], [], []>} : vector<8x8xf32>, vector<8x8xf32>, vector<8x8xf32> -> vector<8x8xf32>
    %1544 = vector.extract_strided_slice %1501 {offsets = [0, 16], sizes = [8, 8], strides = [1, 1]} : vector<8x32xf32> to vector<8x8xf32>
    %1545 = vector.extract_strided_slice %1502 {offsets = [0, 16], sizes = [8, 8], strides = [1, 1]} : vector<8x32xf32> to vector<8x8xf32>
    %1546 = vector.extract_strided_slice %1503 {offsets = [0, 16], sizes = [8, 8], strides = [1, 1]} : vector<8x32xf32> to vector<8x8xf32>
    %1547 = tpu.transpose %1545, [1, 0] : vector<8x8xf32> -> vector<8x8xf32>
    %cst_514 = arith.constant dense<0.000000e+00> : vector<8x8xf32>
    %1548 = tpu.matmul %1544, %1547, %cst_514 {dimension_numbers = #tpu.dot_dimension_numbers<[1], [0], [0], [1], [0, 0, 1, 1], [], []>} : vector<8x8xf32>, vector<8x8xf32>, vector<8x8xf32> -> vector<8x8xf32>
    %cst_515 = arith.constant 0.353553385 : f32
    %1549 = vector.broadcast %cst_515 : f32 to vector<8x8xf32>
    %1550 = arith.mulf %1548, %1549 : vector<8x8xf32>
    %cst_516 = arith.constant -1.000000e+06 : f32
    %1551 = vector.broadcast %cst_516 : f32 to vector<8x8xf32>
    %1552 = arith.select %1497, %1550, %1551 : vector<8x8xi1>, vector<8x8xf32>
    %cst_517 = arith.constant dense<0xFF800000> : vector<8xf32>
    %1553 = vector.multi_reduction <maximumf>, %1552, %cst_517 [1] : vector<8x8xf32> to vector<8xf32>
    %1554 = vector.shape_cast %1553 : vector<8xf32> to vector<8x1xf32>
    %1555 = vector.broadcast %1554 : vector<8x1xf32> to vector<8x8xf32>
    %1556 = arith.subf %1552, %1555 : vector<8x8xf32>
    %1557 = math.exp %1556 : vector<8x8xf32>
    %cst_518 = arith.constant dense<0.000000e+00> : vector<8xf32>
    %1558 = vector.multi_reduction <add>, %1557, %cst_518 [1] : vector<8x8xf32> to vector<8xf32>
    %1559 = vector.shape_cast %1558 : vector<8xf32> to vector<8x1xf32>
    %1560 = tpu.reciprocal %1559 {approx = true} : vector<8x1xf32> -> vector<8x1xf32>
    %1561 = vector.broadcast %1560 : vector<8x1xf32> to vector<8x8xf32>
    %1562 = arith.mulf %1557, %1561 : vector<8x8xf32>
    %cst_519 = arith.constant dense<0.000000e+00> : vector<8x8xf32>
    %1563 = tpu.matmul %1562, %1546, %cst_519 {dimension_numbers = #tpu.dot_dimension_numbers<[1], [0], [0], [1], [0, 0, 1, 1], [], []>} : vector<8x8xf32>, vector<8x8xf32>, vector<8x8xf32> -> vector<8x8xf32>
    %1564 = vector.extract_strided_slice %1501 {offsets = [0, 24], sizes = [8, 8], strides = [1, 1]} : vector<8x32xf32> to vector<8x8xf32>
    %1565 = vector.extract_strided_slice %1502 {offsets = [0, 24], sizes = [8, 8], strides = [1, 1]} : vector<8x32xf32> to vector<8x8xf32>
    %1566 = vector.extract_strided_slice %1503 {offsets = [0, 24], sizes = [8, 8], strides = [1, 1]} : vector<8x32xf32> to vector<8x8xf32>
    %1567 = tpu.transpose %1565, [1, 0] : vector<8x8xf32> -> vector<8x8xf32>
    %cst_520 = arith.constant dense<0.000000e+00> : vector<8x8xf32>
    %1568 = tpu.matmul %1564, %1567, %cst_520 {dimension_numbers = #tpu.dot_dimension_numbers<[1], [0], [0], [1], [0, 0, 1, 1], [], []>} : vector<8x8xf32>, vector<8x8xf32>, vector<8x8xf32> -> vector<8x8xf32>
    %cst_521 = arith.constant 0.353553385 : f32
    %1569 = vector.broadcast %cst_521 : f32 to vector<8x8xf32>
    %1570 = arith.mulf %1568, %1569 : vector<8x8xf32>
    %cst_522 = arith.constant -1.000000e+06 : f32
    %1571 = vector.broadcast %cst_522 : f32 to vector<8x8xf32>
    %1572 = arith.select %1497, %1570, %1571 : vector<8x8xi1>, vector<8x8xf32>
    %cst_523 = arith.constant dense<0xFF800000> : vector<8xf32>
    %1573 = vector.multi_reduction <maximumf>, %1572, %cst_523 [1] : vector<8x8xf32> to vector<8xf32>
    %1574 = vector.shape_cast %1573 : vector<8xf32> to vector<8x1xf32>
    %1575 = vector.broadcast %1574 : vector<8x1xf32> to vector<8x8xf32>
    %1576 = arith.subf %1572, %1575 : vector<8x8xf32>
    %1577 = math.exp %1576 : vector<8x8xf32>
    %cst_524 = arith.constant dense<0.000000e+00> : vector<8xf32>
    %1578 = vector.multi_reduction <add>, %1577, %cst_524 [1] : vector<8x8xf32> to vector<8xf32>
    %1579 = vector.shape_cast %1578 : vector<8xf32> to vector<8x1xf32>
    %1580 = tpu.reciprocal %1579 {approx = true} : vector<8x1xf32> -> vector<8x1xf32>
    %1581 = vector.broadcast %1580 : vector<8x1xf32> to vector<8x8xf32>
    %1582 = arith.mulf %1577, %1581 : vector<8x8xf32>
    %cst_525 = arith.constant dense<0.000000e+00> : vector<8x8xf32>
    %1583 = tpu.matmul %1582, %1566, %cst_525 {dimension_numbers = #tpu.dot_dimension_numbers<[1], [0], [0], [1], [0, 0, 1, 1], [], []>} : vector<8x8xf32>, vector<8x8xf32>, vector<8x8xf32> -> vector<8x8xf32>
    %1584 = tpu.concatenate %1523, %1543, %1563, %1583 in 1 : vector<8x8xf32>, vector<8x8xf32>, vector<8x8xf32>, vector<8x8xf32> -> vector<8x32xf32>
    %1585 = vector.extract_strided_slice %1490 {offsets = [8, 0], sizes = [8, 32], strides = [1, 1]} : vector<16x32xf32> to vector<8x32xf32>
    %1586 = vector.extract_strided_slice %1492 {offsets = [8, 0], sizes = [8, 32], strides = [1, 1]} : vector<16x32xf32> to vector<8x32xf32>
    %1587 = vector.extract_strided_slice %1493 {offsets = [8, 0], sizes = [8, 32], strides = [1, 1]} : vector<16x32xf32> to vector<8x32xf32>
    %1588 = vector.extract_strided_slice %1585 {offsets = [0, 0], sizes = [8, 8], strides = [1, 1]} : vector<8x32xf32> to vector<8x8xf32>
    %1589 = vector.extract_strided_slice %1586 {offsets = [0, 0], sizes = [8, 8], strides = [1, 1]} : vector<8x32xf32> to vector<8x8xf32>
    %1590 = vector.extract_strided_slice %1587 {offsets = [0, 0], sizes = [8, 8], strides = [1, 1]} : vector<8x32xf32> to vector<8x8xf32>
    %1591 = tpu.transpose %1589, [1, 0] : vector<8x8xf32> -> vector<8x8xf32>
    %cst_526 = arith.constant dense<0.000000e+00> : vector<8x8xf32>
    %1592 = tpu.matmul %1588, %1591, %cst_526 {dimension_numbers = #tpu.dot_dimension_numbers<[1], [0], [0], [1], [0, 0, 1, 1], [], []>} : vector<8x8xf32>, vector<8x8xf32>, vector<8x8xf32> -> vector<8x8xf32>
    %cst_527 = arith.constant 0.353553385 : f32
    %1593 = vector.broadcast %cst_527 : f32 to vector<8x8xf32>
    %1594 = arith.mulf %1592, %1593 : vector<8x8xf32>
    %cst_528 = arith.constant -1.000000e+06 : f32
    %1595 = vector.broadcast %cst_528 : f32 to vector<8x8xf32>
    %1596 = arith.select %1500, %1594, %1595 : vector<8x8xi1>, vector<8x8xf32>
    %cst_529 = arith.constant dense<0xFF800000> : vector<8xf32>
    %1597 = vector.multi_reduction <maximumf>, %1596, %cst_529 [1] : vector<8x8xf32> to vector<8xf32>
    %1598 = vector.shape_cast %1597 : vector<8xf32> to vector<8x1xf32>
    %1599 = vector.broadcast %1598 : vector<8x1xf32> to vector<8x8xf32>
    %1600 = arith.subf %1596, %1599 : vector<8x8xf32>
    %1601 = math.exp %1600 : vector<8x8xf32>
    %cst_530 = arith.constant dense<0.000000e+00> : vector<8xf32>
    %1602 = vector.multi_reduction <add>, %1601, %cst_530 [1] : vector<8x8xf32> to vector<8xf32>
    %1603 = vector.shape_cast %1602 : vector<8xf32> to vector<8x1xf32>
    %1604 = tpu.reciprocal %1603 {approx = true} : vector<8x1xf32> -> vector<8x1xf32>
    %1605 = vector.broadcast %1604 : vector<8x1xf32> to vector<8x8xf32>
    %1606 = arith.mulf %1601, %1605 : vector<8x8xf32>
    %cst_531 = arith.constant dense<0.000000e+00> : vector<8x8xf32>
    %1607 = tpu.matmul %1606, %1590, %cst_531 {dimension_numbers = #tpu.dot_dimension_numbers<[1], [0], [0], [1], [0, 0, 1, 1], [], []>} : vector<8x8xf32>, vector<8x8xf32>, vector<8x8xf32> -> vector<8x8xf32>
    %1608 = vector.extract_strided_slice %1585 {offsets = [0, 8], sizes = [8, 8], strides = [1, 1]} : vector<8x32xf32> to vector<8x8xf32>
    %1609 = vector.extract_strided_slice %1586 {offsets = [0, 8], sizes = [8, 8], strides = [1, 1]} : vector<8x32xf32> to vector<8x8xf32>
    %1610 = vector.extract_strided_slice %1587 {offsets = [0, 8], sizes = [8, 8], strides = [1, 1]} : vector<8x32xf32> to vector<8x8xf32>
    %1611 = tpu.transpose %1609, [1, 0] : vector<8x8xf32> -> vector<8x8xf32>
    %cst_532 = arith.constant dense<0.000000e+00> : vector<8x8xf32>
    %1612 = tpu.matmul %1608, %1611, %cst_532 {dimension_numbers = #tpu.dot_dimension_numbers<[1], [0], [0], [1], [0, 0, 1, 1], [], []>} : vector<8x8xf32>, vector<8x8xf32>, vector<8x8xf32> -> vector<8x8xf32>
    %cst_533 = arith.constant 0.353553385 : f32
    %1613 = vector.broadcast %cst_533 : f32 to vector<8x8xf32>
    %1614 = arith.mulf %1612, %1613 : vector<8x8xf32>
    %cst_534 = arith.constant -1.000000e+06 : f32
    %1615 = vector.broadcast %cst_534 : f32 to vector<8x8xf32>
    %1616 = arith.select %1500, %1614, %1615 : vector<8x8xi1>, vector<8x8xf32>
    %cst_535 = arith.constant dense<0xFF800000> : vector<8xf32>
    %1617 = vector.multi_reduction <maximumf>, %1616, %cst_535 [1] : vector<8x8xf32> to vector<8xf32>
    %1618 = vector.shape_cast %1617 : vector<8xf32> to vector<8x1xf32>
    %1619 = vector.broadcast %1618 : vector<8x1xf32> to vector<8x8xf32>
    %1620 = arith.subf %1616, %1619 : vector<8x8xf32>
    %1621 = math.exp %1620 : vector<8x8xf32>
    %cst_536 = arith.constant dense<0.000000e+00> : vector<8xf32>
    %1622 = vector.multi_reduction <add>, %1621, %cst_536 [1] : vector<8x8xf32> to vector<8xf32>
    %1623 = vector.shape_cast %1622 : vector<8xf32> to vector<8x1xf32>
    %1624 = tpu.reciprocal %1623 {approx = true} : vector<8x1xf32> -> vector<8x1xf32>
    %1625 = vector.broadcast %1624 : vector<8x1xf32> to vector<8x8xf32>
    %1626 = arith.mulf %1621, %1625 : vector<8x8xf32>
    %cst_537 = arith.constant dense<0.000000e+00> : vector<8x8xf32>
    %1627 = tpu.matmul %1626, %1610, %cst_537 {dimension_numbers = #tpu.dot_dimension_numbers<[1], [0], [0], [1], [0, 0, 1, 1], [], []>} : vector<8x8xf32>, vector<8x8xf32>, vector<8x8xf32> -> vector<8x8xf32>
    %1628 = vector.extract_strided_slice %1585 {offsets = [0, 16], sizes = [8, 8], strides = [1, 1]} : vector<8x32xf32> to vector<8x8xf32>
    %1629 = vector.extract_strided_slice %1586 {offsets = [0, 16], sizes = [8, 8], strides = [1, 1]} : vector<8x32xf32> to vector<8x8xf32>
    %1630 = vector.extract_strided_slice %1587 {offsets = [0, 16], sizes = [8, 8], strides = [1, 1]} : vector<8x32xf32> to vector<8x8xf32>
    %1631 = tpu.transpose %1629, [1, 0] : vector<8x8xf32> -> vector<8x8xf32>
    %cst_538 = arith.constant dense<0.000000e+00> : vector<8x8xf32>
    %1632 = tpu.matmul %1628, %1631, %cst_538 {dimension_numbers = #tpu.dot_dimension_numbers<[1], [0], [0], [1], [0, 0, 1, 1], [], []>} : vector<8x8xf32>, vector<8x8xf32>, vector<8x8xf32> -> vector<8x8xf32>
    %cst_539 = arith.constant 0.353553385 : f32
    %1633 = vector.broadcast %cst_539 : f32 to vector<8x8xf32>
    %1634 = arith.mulf %1632, %1633 : vector<8x8xf32>
    %cst_540 = arith.constant -1.000000e+06 : f32
    %1635 = vector.broadcast %cst_540 : f32 to vector<8x8xf32>
    %1636 = arith.select %1500, %1634, %1635 : vector<8x8xi1>, vector<8x8xf32>
    %cst_541 = arith.constant dense<0xFF800000> : vector<8xf32>
    %1637 = vector.multi_reduction <maximumf>, %1636, %cst_541 [1] : vector<8x8xf32> to vector<8xf32>
    %1638 = vector.shape_cast %1637 : vector<8xf32> to vector<8x1xf32>
    %1639 = vector.broadcast %1638 : vector<8x1xf32> to vector<8x8xf32>
    %1640 = arith.subf %1636, %1639 : vector<8x8xf32>
    %1641 = math.exp %1640 : vector<8x8xf32>
    %cst_542 = arith.constant dense<0.000000e+00> : vector<8xf32>
    %1642 = vector.multi_reduction <add>, %1641, %cst_542 [1] : vector<8x8xf32> to vector<8xf32>
    %1643 = vector.shape_cast %1642 : vector<8xf32> to vector<8x1xf32>
    %1644 = tpu.reciprocal %1643 {approx = true} : vector<8x1xf32> -> vector<8x1xf32>
    %1645 = vector.broadcast %1644 : vector<8x1xf32> to vector<8x8xf32>
    %1646 = arith.mulf %1641, %1645 : vector<8x8xf32>
    %cst_543 = arith.constant dense<0.000000e+00> : vector<8x8xf32>
    %1647 = tpu.matmul %1646, %1630, %cst_543 {dimension_numbers = #tpu.dot_dimension_numbers<[1], [0], [0], [1], [0, 0, 1, 1], [], []>} : vector<8x8xf32>, vector<8x8xf32>, vector<8x8xf32> -> vector<8x8xf32>
    %1648 = vector.extract_strided_slice %1585 {offsets = [0, 24], sizes = [8, 8], strides = [1, 1]} : vector<8x32xf32> to vector<8x8xf32>
    %1649 = vector.extract_strided_slice %1586 {offsets = [0, 24], sizes = [8, 8], strides = [1, 1]} : vector<8x32xf32> to vector<8x8xf32>
    %1650 = vector.extract_strided_slice %1587 {offsets = [0, 24], sizes = [8, 8], strides = [1, 1]} : vector<8x32xf32> to vector<8x8xf32>
    %1651 = tpu.transpose %1649, [1, 0] : vector<8x8xf32> -> vector<8x8xf32>
    %cst_544 = arith.constant dense<0.000000e+00> : vector<8x8xf32>
    %1652 = tpu.matmul %1648, %1651, %cst_544 {dimension_numbers = #tpu.dot_dimension_numbers<[1], [0], [0], [1], [0, 0, 1, 1], [], []>} : vector<8x8xf32>, vector<8x8xf32>, vector<8x8xf32> -> vector<8x8xf32>
    %cst_545 = arith.constant 0.353553385 : f32
    %1653 = vector.broadcast %cst_545 : f32 to vector<8x8xf32>
    %1654 = arith.mulf %1652, %1653 : vector<8x8xf32>
    %cst_546 = arith.constant -1.000000e+06 : f32
    %1655 = vector.broadcast %cst_546 : f32 to vector<8x8xf32>
    %1656 = arith.select %1500, %1654, %1655 : vector<8x8xi1>, vector<8x8xf32>
    %cst_547 = arith.constant dense<0xFF800000> : vector<8xf32>
    %1657 = vector.multi_reduction <maximumf>, %1656, %cst_547 [1] : vector<8x8xf32> to vector<8xf32>
    %1658 = vector.shape_cast %1657 : vector<8xf32> to vector<8x1xf32>
    %1659 = vector.broadcast %1658 : vector<8x1xf32> to vector<8x8xf32>
    %1660 = arith.subf %1656, %1659 : vector<8x8xf32>
    %1661 = math.exp %1660 : vector<8x8xf32>
    %cst_548 = arith.constant dense<0.000000e+00> : vector<8xf32>
    %1662 = vector.multi_reduction <add>, %1661, %cst_548 [1] : vector<8x8xf32> to vector<8xf32>
    %1663 = vector.shape_cast %1662 : vector<8xf32> to vector<8x1xf32>
    %1664 = tpu.reciprocal %1663 {approx = true} : vector<8x1xf32> -> vector<8x1xf32>
    %1665 = vector.broadcast %1664 : vector<8x1xf32> to vector<8x8xf32>
    %1666 = arith.mulf %1661, %1665 : vector<8x8xf32>
    %cst_549 = arith.constant dense<0.000000e+00> : vector<8x8xf32>
    %1667 = tpu.matmul %1666, %1650, %cst_549 {dimension_numbers = #tpu.dot_dimension_numbers<[1], [0], [0], [1], [0, 0, 1, 1], [], []>} : vector<8x8xf32>, vector<8x8xf32>, vector<8x8xf32> -> vector<8x8xf32>
    %1668 = tpu.concatenate %1607, %1627, %1647, %1667 in 1 : vector<8x8xf32>, vector<8x8xf32>, vector<8x8xf32>, vector<8x8xf32> -> vector<8x32xf32>
    %1669 = tpu.concatenate %1584, %1668 in 0 : vector<8x32xf32>, vector<8x32xf32> -> vector<16x32xf32>
    %cst_550 = arith.constant dense<0.000000e+00> : vector<16x32xf32>
    %1670 = tpu.matmul %1669, %1489, %cst_550 {dimension_numbers = #tpu.dot_dimension_numbers<[1], [0], [0], [1], [0, 0, 1, 1], [], []>} : vector<16x32xf32>, vector<32x32xf32>, vector<16x32xf32> -> vector<16x32xf32>
    %1671 = arith.addf %1483, %1670 : vector<16x32xf32>
    %1672 = vector.extract_strided_slice %878 {offsets = [2, 0], sizes = [1, 32], strides = [1, 1]} : vector<4x32xf32> to vector<1x32xf32>
    %1673 = vector.extract_strided_slice %880 {offsets = [2, 0], sizes = [1, 32], strides = [1, 1]} : vector<4x32xf32> to vector<1x32xf32>
    %cst_551 = arith.constant dense<0.000000e+00> : vector<16xf32>
    %1674 = vector.multi_reduction <add>, %1671, %cst_551 [1] : vector<16x32xf32> to vector<16xf32>
    %1675 = vector.shape_cast %1674 : vector<16xf32> to vector<16x1xf32>
    %cst_552 = arith.constant 3.200000e+01 : f32
    %1676 = vector.broadcast %cst_552 : f32 to vector<16x1xf32>
    %1677 = arith.divf %1675, %1676 : vector<16x1xf32>
    %1678 = vector.broadcast %1677 : vector<16x1xf32> to vector<16x32xf32>
    %1679 = arith.subf %1671, %1678 : vector<16x32xf32>
    %1680 = arith.mulf %1679, %1679 : vector<16x32xf32>
    %cst_553 = arith.constant dense<0.000000e+00> : vector<16xf32>
    %1681 = vector.multi_reduction <add>, %1680, %cst_553 [1] : vector<16x32xf32> to vector<16xf32>
    %1682 = vector.shape_cast %1681 : vector<16xf32> to vector<16x1xf32>
    %cst_554 = arith.constant 3.200000e+01 : f32
    %1683 = vector.broadcast %cst_554 : f32 to vector<16x1xf32>
    %1684 = arith.divf %1682, %1683 : vector<16x1xf32>
    %1685 = vector.broadcast %1677 : vector<16x1xf32> to vector<16x32xf32>
    %1686 = arith.subf %1671, %1685 : vector<16x32xf32>
    %cst_555 = arith.constant 9.99999974E-6 : f32
    %1687 = vector.broadcast %cst_555 : f32 to vector<16x1xf32>
    %1688 = arith.addf %1684, %1687 : vector<16x1xf32>
    %1689 = math.rsqrt %1688 : vector<16x1xf32>
    %1690 = vector.broadcast %1689 : vector<16x1xf32> to vector<16x32xf32>
    %1691 = arith.mulf %1686, %1690 : vector<16x32xf32>
    %1692 = vector.broadcast %1672 : vector<1x32xf32> to vector<16x32xf32>
    %1693 = arith.mulf %1691, %1692 : vector<16x32xf32>
    %1694 = vector.broadcast %1673 : vector<1x32xf32> to vector<16x32xf32>
    %1695 = arith.addf %1693, %1694 : vector<16x32xf32>
    %c1_556 = arith.constant 1 : index
    %c0_557 = arith.constant 0 : index
    %c0_558 = arith.constant 0 : index
    %1696 = vector.load %arg25[%c1_556, %c0_557, %c0_558] : memref<2x32x64xf32, #tpu.memory_space<vmem>>, vector<1x32x64xf32>
    %1697 = vector.shape_cast %1696 : vector<1x32x64xf32> to vector<32x64xf32>
    %cst_559 = arith.constant dense<0.000000e+00> : vector<16x64xf32>
    %1698 = tpu.matmul %1695, %1697, %cst_559 {dimension_numbers = #tpu.dot_dimension_numbers<[1], [0], [0], [1], [0, 0, 1, 1], [], []>} : vector<16x32xf32>, vector<32x64xf32>, vector<16x64xf32> -> vector<16x64xf32>
    %c1_560 = arith.constant 1 : index
    %c0_561 = arith.constant 0 : index
    %c0_562 = arith.constant 0 : index
    %1699 = vector.load %arg26[%c1_560, %c0_561, %c0_562] : memref<2x1x64xf32, #tpu.memory_space<vmem>>, vector<1x1x64xf32>
    %1700 = vector.shape_cast %1699 : vector<1x1x64xf32> to vector<1x64xf32>
    %1701 = vector.broadcast %1700 : vector<1x64xf32> to vector<16x64xf32>
    %1702 = arith.addf %1698, %1701 : vector<16x64xf32>
    %cst_563 = arith.constant 0.000000e+00 : f32
    %1703 = vector.broadcast %cst_563 : f32 to vector<16x64xf32>
    %1704 = arith.maximumf %1702, %1703 : vector<16x64xf32>
    %c1_564 = arith.constant 1 : index
    %c0_565 = arith.constant 0 : index
    %c0_566 = arith.constant 0 : index
    %1705 = vector.load %arg27[%c1_564, %c0_565, %c0_566] : memref<2x64x32xf32, #tpu.memory_space<vmem>>, vector<1x64x32xf32>
    %1706 = vector.shape_cast %1705 : vector<1x64x32xf32> to vector<64x32xf32>
    %cst_567 = arith.constant dense<0.000000e+00> : vector<16x32xf32>
    %1707 = tpu.matmul %1704, %1706, %cst_567 {dimension_numbers = #tpu.dot_dimension_numbers<[1], [0], [0], [1], [0, 0, 1, 1], [], []>} : vector<16x64xf32>, vector<64x32xf32>, vector<16x32xf32> -> vector<16x32xf32>
    %c1_568 = arith.constant 1 : index
    %c0_569 = arith.constant 0 : index
    %c0_570 = arith.constant 0 : index
    %1708 = vector.load %arg28[%c1_568, %c0_569, %c0_570] : memref<2x1x32xf32, #tpu.memory_space<vmem>>, vector<1x1x32xf32>
    %1709 = vector.shape_cast %1708 : vector<1x1x32xf32> to vector<1x32xf32>
    %1710 = vector.broadcast %1709 : vector<1x32xf32> to vector<16x32xf32>
    %1711 = arith.addf %1707, %1710 : vector<16x32xf32>
    %1712 = arith.addf %1695, %1711 : vector<16x32xf32>
    %1713 = vector.extract_strided_slice %878 {offsets = [3, 0], sizes = [1, 32], strides = [1, 1]} : vector<4x32xf32> to vector<1x32xf32>
    %1714 = vector.extract_strided_slice %880 {offsets = [3, 0], sizes = [1, 32], strides = [1, 1]} : vector<4x32xf32> to vector<1x32xf32>
    %cst_571 = arith.constant dense<0.000000e+00> : vector<16xf32>
    %1715 = vector.multi_reduction <add>, %1712, %cst_571 [1] : vector<16x32xf32> to vector<16xf32>
    %1716 = vector.shape_cast %1715 : vector<16xf32> to vector<16x1xf32>
    %cst_572 = arith.constant 3.200000e+01 : f32
    %1717 = vector.broadcast %cst_572 : f32 to vector<16x1xf32>
    %1718 = arith.divf %1716, %1717 : vector<16x1xf32>
    %1719 = vector.broadcast %1718 : vector<16x1xf32> to vector<16x32xf32>
    %1720 = arith.subf %1712, %1719 : vector<16x32xf32>
    %1721 = arith.mulf %1720, %1720 : vector<16x32xf32>
    %cst_573 = arith.constant dense<0.000000e+00> : vector<16xf32>
    %1722 = vector.multi_reduction <add>, %1721, %cst_573 [1] : vector<16x32xf32> to vector<16xf32>
    %1723 = vector.shape_cast %1722 : vector<16xf32> to vector<16x1xf32>
    %cst_574 = arith.constant 3.200000e+01 : f32
    %1724 = vector.broadcast %cst_574 : f32 to vector<16x1xf32>
    %1725 = arith.divf %1723, %1724 : vector<16x1xf32>
    %1726 = vector.broadcast %1718 : vector<16x1xf32> to vector<16x32xf32>
    %1727 = arith.subf %1712, %1726 : vector<16x32xf32>
    %cst_575 = arith.constant 9.99999974E-6 : f32
    %1728 = vector.broadcast %cst_575 : f32 to vector<16x1xf32>
    %1729 = arith.addf %1725, %1728 : vector<16x1xf32>
    %1730 = math.rsqrt %1729 : vector<16x1xf32>
    %1731 = vector.broadcast %1730 : vector<16x1xf32> to vector<16x32xf32>
    %1732 = arith.mulf %1727, %1731 : vector<16x32xf32>
    %1733 = vector.broadcast %1713 : vector<1x32xf32> to vector<16x32xf32>
    %1734 = arith.mulf %1732, %1733 : vector<16x32xf32>
    %1735 = vector.broadcast %1714 : vector<1x32xf32> to vector<16x32xf32>
    %1736 = arith.addf %1734, %1735 : vector<16x32xf32>
    %c0_576 = arith.constant 0 : index
    %c0_577 = arith.constant 0 : index
    %1737 = vector.load %arg10[%c0_576, %c0_577] : memref<32x128xf32, #tpu.memory_space<vmem>>, vector<32x128xf32>
    %cst_578 = arith.constant dense<0.000000e+00> : vector<16x128xf32>
    %1738 = tpu.matmul %1736, %1737, %cst_578 {dimension_numbers = #tpu.dot_dimension_numbers<[1], [0], [0], [1], [0, 0, 1, 1], [], []>} : vector<16x32xf32>, vector<32x128xf32>, vector<16x128xf32> -> vector<16x128xf32>
    %c0_579 = arith.constant 0 : index
    %c0_580 = arith.constant 0 : index
    %1739 = vector.load %arg11[%c0_579, %c0_580] : memref<1x128xf32, #tpu.memory_space<vmem>>, vector<1x128xf32>
    %1740 = vector.broadcast %1739 : vector<1x128xf32> to vector<16x128xf32>
    %1741 = arith.addf %1738, %1740 : vector<16x128xf32>
    %c0_581 = arith.constant 0 : index
    %c0_582 = arith.constant 0 : index
    %1742 = vector.load %arg29[%c0_581, %c0_582] : memref<16x128xf32, #tpu.memory_space<vmem>>, vector<16x128xf32>
    tpu.vector_store %arg29[%c0_581, %c0_582], %1741 {strides = array<i32>} : memref<16x128xf32, #tpu.memory_space<vmem>>, vector<16x128xf32>,
    return
  }
  func.func @transform_0(%arg0: i32, %arg1: memref<2xi32, #tpu.memory_space<smem>>, %arg2: memref<2xi32, #tpu.memory_space<smem>>, %arg3: memref<2xi32, #tpu.memory_space<smem>>) -> (i32, i32) {
    %c0_i32 = arith.constant 0 : i32
    %c0_i32_0 = arith.constant 0 : i32
    %c0_i32_1 = arith.constant 0 : i32
    return %c0_i32, %c0_i32_0 : i32, i32
  }
  func.func @transform_1(%arg0: i32, %arg1: memref<2xi32, #tpu.memory_space<smem>>, %arg2: memref<2xi32, #tpu.memory_space<smem>>, %arg3: memref<2xi32, #tpu.memory_space<smem>>) -> (i32, i32) {
    %c0_i32 = arith.constant 0 : i32
    %c0_i32_0 = arith.constant 0 : i32
    %c0_i32_1 = arith.constant 0 : i32
    return %c0_i32, %c0_i32_0 : i32, i32
  }
  func.func @transform_2(%arg0: i32, %arg1: memref<2xi32, #tpu.memory_space<smem>>, %arg2: memref<2xi32, #tpu.memory_space<smem>>, %arg3: memref<2xi32, #tpu.memory_space<smem>>) -> (i32, i32) {
    %c0_i32 = arith.constant 0 : i32
    %c0_i32_0 = arith.constant 0 : i32
    %c0_i32_1 = arith.constant 0 : i32
    return %c0_i32, %c0_i32_0 : i32, i32
  }
  func.func @transform_3(%arg0: i32, %arg1: memref<2xi32, #tpu.memory_space<smem>>, %arg2: memref<2xi32, #tpu.memory_space<smem>>, %arg3: memref<2xi32, #tpu.memory_space<smem>>) -> (i32, i32) {
    %c0_i32 = arith.constant 0 : i32
    %c0_i32_0 = arith.constant 0 : i32
    %c0_i32_1 = arith.constant 0 : i32
    return %c0_i32, %c0_i32_0 : i32, i32
  }
  func.func @transform_4(%arg0: i32, %arg1: memref<2xi32, #tpu.memory_space<smem>>, %arg2: memref<2xi32, #tpu.memory_space<smem>>, %arg3: memref<2xi32, #tpu.memory_space<smem>>) -> (i32, i32) {
    %c0_i32 = arith.constant 0 : i32
    %c0_i32_0 = arith.constant 0 : i32
    %c0_i32_1 = arith.constant 0 : i32
    return %c0_i32, %c0_i32_0 : i32, i32
  }
  func.func @transform_5(%arg0: i32, %arg1: memref<2xi32, #tpu.memory_space<smem>>, %arg2: memref<2xi32, #tpu.memory_space<smem>>, %arg3: memref<2xi32, #tpu.memory_space<smem>>) -> (i32, i32) {
    %c0_i32 = arith.constant 0 : i32
    %c0_i32_0 = arith.constant 0 : i32
    %c0_i32_1 = arith.constant 0 : i32
    return %c0_i32, %c0_i32_0 : i32, i32
  }
  func.func @transform_6(%arg0: i32, %arg1: memref<2xi32, #tpu.memory_space<smem>>, %arg2: memref<2xi32, #tpu.memory_space<smem>>, %arg3: memref<2xi32, #tpu.memory_space<smem>>) -> (i32, i32) {
    %c0_i32 = arith.constant 0 : i32
    %c0_i32_0 = arith.constant 0 : i32
    %c0_i32_1 = arith.constant 0 : i32
    return %c0_i32, %c0_i32_0 : i32, i32
  }
  func.func @transform_7(%arg0: i32, %arg1: memref<2xi32, #tpu.memory_space<smem>>, %arg2: memref<2xi32, #tpu.memory_space<smem>>, %arg3: memref<2xi32, #tpu.memory_space<smem>>) -> (i32, i32) {
    %c0_i32 = arith.constant 0 : i32
    %c0_i32_0 = arith.constant 0 : i32
    %c0_i32_1 = arith.constant 0 : i32
    return %c0_i32, %c0_i32_0 : i32, i32
  }
  func.func @transform_8(%arg0: i32, %arg1: memref<2xi32, #tpu.memory_space<smem>>, %arg2: memref<2xi32, #tpu.memory_space<smem>>, %arg3: memref<2xi32, #tpu.memory_space<smem>>) -> (i32, i32, i32) {
    %c0_i32 = arith.constant 0 : i32
    %c0_i32_0 = arith.constant 0 : i32
    %c0_i32_1 = arith.constant 0 : i32
    %c0_i32_2 = arith.constant 0 : i32
    return %c0_i32, %c0_i32_0, %c0_i32_1 : i32, i32, i32
  }
  func.func @transform_9(%arg0: i32, %arg1: memref<2xi32, #tpu.memory_space<smem>>, %arg2: memref<2xi32, #tpu.memory_space<smem>>, %arg3: memref<2xi32, #tpu.memory_space<smem>>) -> (i32, i32, i32) {
    %c0_i32 = arith.constant 0 : i32
    %c0_i32_0 = arith.constant 0 : i32
    %c0_i32_1 = arith.constant 0 : i32
    %c0_i32_2 = arith.constant 0 : i32
    return %c0_i32, %c0_i32_0, %c0_i32_1 : i32, i32, i32
  }
  func.func @transform_10(%arg0: i32, %arg1: memref<2xi32, #tpu.memory_space<smem>>, %arg2: memref<2xi32, #tpu.memory_space<smem>>, %arg3: memref<2xi32, #tpu.memory_space<smem>>) -> (i32, i32, i32) {
    %c0_i32 = arith.constant 0 : i32
    %c0_i32_0 = arith.constant 0 : i32
    %c0_i32_1 = arith.constant 0 : i32
    %c0_i32_2 = arith.constant 0 : i32
    return %c0_i32, %c0_i32_0, %c0_i32_1 : i32, i32, i32
  }
  func.func @transform_11(%arg0: i32, %arg1: memref<2xi32, #tpu.memory_space<smem>>, %arg2: memref<2xi32, #tpu.memory_space<smem>>, %arg3: memref<2xi32, #tpu.memory_space<smem>>) -> (i32, i32, i32) {
    %c0_i32 = arith.constant 0 : i32
    %c0_i32_0 = arith.constant 0 : i32
    %c0_i32_1 = arith.constant 0 : i32
    %c0_i32_2 = arith.constant 0 : i32
    return %c0_i32, %c0_i32_0, %c0_i32_1 : i32, i32, i32
  }
  func.func @transform_12(%arg0: i32, %arg1: memref<2xi32, #tpu.memory_space<smem>>, %arg2: memref<2xi32, #tpu.memory_space<smem>>, %arg3: memref<2xi32, #tpu.memory_space<smem>>) -> (i32, i32, i32) {
    %c0_i32 = arith.constant 0 : i32
    %c0_i32_0 = arith.constant 0 : i32
    %c0_i32_1 = arith.constant 0 : i32
    %c0_i32_2 = arith.constant 0 : i32
    return %c0_i32, %c0_i32_0, %c0_i32_1 : i32, i32, i32
  }
  func.func @transform_13(%arg0: i32, %arg1: memref<2xi32, #tpu.memory_space<smem>>, %arg2: memref<2xi32, #tpu.memory_space<smem>>, %arg3: memref<2xi32, #tpu.memory_space<smem>>) -> (i32, i32, i32) {
    %c0_i32 = arith.constant 0 : i32
    %c0_i32_0 = arith.constant 0 : i32
    %c0_i32_1 = arith.constant 0 : i32
    %c0_i32_2 = arith.constant 0 : i32
    return %c0_i32, %c0_i32_0, %c0_i32_1 : i32, i32, i32
  }
  func.func @transform_14(%arg0: i32, %arg1: memref<2xi32, #tpu.memory_space<smem>>, %arg2: memref<2xi32, #tpu.memory_space<smem>>, %arg3: memref<2xi32, #tpu.memory_space<smem>>) -> (i32, i32, i32) {
    %c0_i32 = arith.constant 0 : i32
    %c0_i32_0 = arith.constant 0 : i32
    %c0_i32_1 = arith.constant 0 : i32
    %c0_i32_2 = arith.constant 0 : i32
    return %c0_i32, %c0_i32_0, %c0_i32_1 : i32, i32, i32
  }
  func.func @transform_15(%arg0: i32, %arg1: memref<2xi32, #tpu.memory_space<smem>>, %arg2: memref<2xi32, #tpu.memory_space<smem>>, %arg3: memref<2xi32, #tpu.memory_space<smem>>) -> (i32, i32, i32) {
    %c0_i32 = arith.constant 0 : i32
    %c0_i32_0 = arith.constant 0 : i32
    %c0_i32_1 = arith.constant 0 : i32
    %c0_i32_2 = arith.constant 0 : i32
    return %c0_i32, %c0_i32_0, %c0_i32_1 : i32, i32, i32
  }
  func.func @transform_16(%arg0: i32, %arg1: memref<2xi32, #tpu.memory_space<smem>>, %arg2: memref<2xi32, #tpu.memory_space<smem>>, %arg3: memref<2xi32, #tpu.memory_space<smem>>) -> (i32, i32, i32) {
    %c0_i32 = arith.constant 0 : i32
    %c0_i32_0 = arith.constant 0 : i32
    %c0_i32_1 = arith.constant 0 : i32
    %c0_i32_2 = arith.constant 0 : i32
    return %c0_i32, %c0_i32_0, %c0_i32_1 : i32, i32, i32
  }
  func.func @transform_17(%arg0: i32, %arg1: memref<2xi32, #tpu.memory_space<smem>>, %arg2: memref<2xi32, #tpu.memory_space<smem>>, %arg3: memref<2xi32, #tpu.memory_space<smem>>) -> (i32, i32, i32) {
    %c0_i32 = arith.constant 0 : i32
    %c0_i32_0 = arith.constant 0 : i32
    %c0_i32_1 = arith.constant 0 : i32
    %c0_i32_2 = arith.constant 0 : i32
    return %c0_i32, %c0_i32_0, %c0_i32_1 : i32, i32, i32
  }
  func.func @transform_18(%arg0: i32, %arg1: memref<2xi32, #tpu.memory_space<smem>>, %arg2: memref<2xi32, #tpu.memory_space<smem>>, %arg3: memref<2xi32, #tpu.memory_space<smem>>) -> (i32, i32, i32) {
    %c0_i32 = arith.constant 0 : i32
    %c0_i32_0 = arith.constant 0 : i32
    %c0_i32_1 = arith.constant 0 : i32
    %c0_i32_2 = arith.constant 0 : i32
    return %c0_i32, %c0_i32_0, %c0_i32_1 : i32, i32, i32
  }
  func.func @transform_19(%arg0: i32, %arg1: memref<2xi32, #tpu.memory_space<smem>>, %arg2: memref<2xi32, #tpu.memory_space<smem>>, %arg3: memref<2xi32, #tpu.memory_space<smem>>) -> (i32, i32, i32) {
    %c0_i32 = arith.constant 0 : i32
    %c0_i32_0 = arith.constant 0 : i32
    %c0_i32_1 = arith.constant 0 : i32
    %c0_i32_2 = arith.constant 0 : i32
    return %c0_i32, %c0_i32_0, %c0_i32_1 : i32, i32, i32
  }
  func.func @transform_20(%arg0: i32, %arg1: memref<2xi32, #tpu.memory_space<smem>>, %arg2: memref<2xi32, #tpu.memory_space<smem>>, %arg3: memref<2xi32, #tpu.memory_space<smem>>) -> (i32, i32, i32) {
    %c0_i32 = arith.constant 0 : i32
    %c0_i32_0 = arith.constant 0 : i32
    %c0_i32_1 = arith.constant 0 : i32
    %c0_i32_2 = arith.constant 0 : i32
    return %c0_i32, %c0_i32_0, %c0_i32_1 : i32, i32, i32
  }
  func.func @transform_21(%arg0: i32, %arg1: memref<2xi32, #tpu.memory_space<smem>>, %arg2: memref<2xi32, #tpu.memory_space<smem>>, %arg3: memref<2xi32, #tpu.memory_space<smem>>) -> (i32, i32, i32) {
    %c0_i32 = arith.constant 0 : i32
    %c0_i32_0 = arith.constant 0 : i32
    %c0_i32_1 = arith.constant 0 : i32
    %c0_i32_2 = arith.constant 0 : i32
    return %c0_i32, %c0_i32_0, %c0_i32_1 : i32, i32, i32
  }
  func.func @transform_22(%arg0: i32, %arg1: memref<2xi32, #tpu.memory_space<smem>>, %arg2: memref<2xi32, #tpu.memory_space<smem>>, %arg3: memref<2xi32, #tpu.memory_space<smem>>) -> (i32, i32, i32) {
    %c0_i32 = arith.constant 0 : i32
    %c0_i32_0 = arith.constant 0 : i32
    %c0_i32_1 = arith.constant 0 : i32
    %c0_i32_2 = arith.constant 0 : i32
    return %c0_i32, %c0_i32_0, %c0_i32_1 : i32, i32, i32
  }
  func.func @transform_23(%arg0: i32, %arg1: memref<2xi32, #tpu.memory_space<smem>>, %arg2: memref<2xi32, #tpu.memory_space<smem>>, %arg3: memref<2xi32, #tpu.memory_space<smem>>) -> (i32, i32, i32) {
    %c0_i32 = arith.constant 0 : i32
    %c0_i32_0 = arith.constant 0 : i32
    %c0_i32_1 = arith.constant 0 : i32
    %c0_i32_2 = arith.constant 0 : i32
    return %c0_i32, %c0_i32_0, %c0_i32_1 : i32, i32, i32
  }
  func.func @transform_24(%arg0: i32, %arg1: memref<2xi32, #tpu.memory_space<smem>>, %arg2: memref<2xi32, #tpu.memory_space<smem>>, %arg3: memref<2xi32, #tpu.memory_space<smem>>) -> (i32, i32, i32) {
    %c0_i32 = arith.constant 0 : i32
    %c0_i32_0 = arith.constant 0 : i32
    %c0_i32_1 = arith.constant 0 : i32
    %c0_i32_2 = arith.constant 0 : i32
    return %c0_i32, %c0_i32_0, %c0_i32_1 : i32, i32, i32
  }
  func.func @transform_25(%arg0: i32, %arg1: memref<2xi32, #tpu.memory_space<smem>>, %arg2: memref<2xi32, #tpu.memory_space<smem>>, %arg3: memref<2xi32, #tpu.memory_space<smem>>) -> (i32, i32) {
    %c0_i32 = arith.constant 0 : i32
    %c0_i32_0 = arith.constant 0 : i32
    %c0_i32_1 = arith.constant 0 : i32
    return %c0_i32, %c0_i32_0 : i32, i32
  }
}

</mosaic_0001>

<bundles_post_ra>
// kernel: keywords_guided_decoder_forward.1
= control target key start
LH: loop header
LB: loop body
LE: loop exit
PB: predicated region body
PF: predicated region fallthrough
CT: control target
= control target key end

     0   :  { %s19485_s0 = inlined_call_operand.vmem [shape: s32[2], index: 0, kind: input, shape index: {}]   ;;  %s19486_s3 = inlined_call_operand.vmem [shape: s32[16,1], index: 3, kind: input, shape index: {}]   ;;  %s19487_s4 = inlined_call_operand.hbm [shape: f32[32,32], index: 4, kind: input, shape index: {}]   ;;  %s19488_s5 = inlined_call_operand.hbm [shape: f32[16,32], index: 5, kind: input, shape index: {}]   ;;  %s19489_s6 = inlined_call_operand.hbm [shape: f32[16,32], index: 6, kind: input, shape index: {}]   ;;  %s19490_s7 = inlined_call_operand.vmem [shape: f32[64,32], index: 7, kind: input, shape index: {}]   ;;  %s19491_s8 = inlined_call_operand.vmem [shape: f32[64,32], index: 8, kind: input, shape index: {}]   ;;  %s19492_s9 = inlined_call_operand.hbm [shape: f32[32,128], index: 9, kind: input, shape index: {}]   ;;  %s19493_s10 = inlined_call_operand.hbm [shape: f32[1,128], index: 10, kind: input, shape index: {}]   ;;  %s19494_s11 = inlined_call_operand.vmem [shape: f32[2,32,96], index: 11, kind: input, shape index: {}]   ;;  %s19495_s12 = inlined_call_operand.vmem [shape: f32[2,32,32], index: 12, kind: input, shape index: {}]   ;;  %s19496_s13 = inlined_call_operand.vmem [shape: f32[2,32,32], index: 13, kind: input, shape index: {}]   ;;  %s19497_s14 = inlined_call_operand.vmem [shape: f32[2,32,64], index: 14, kind: input, shape index: {}]   ;;  %s19498_s15 = inlined_call_operand.vmem [shape: f32[2,32,32], index: 15, kind: input, shape index: {}]   ;;  %s19499_s16 = inlined_call_operand.vmem [shape: f32[2,32,32], index: 16, kind: input, shape index: {}]   ;;  %s19500_s17 = inlined_call_operand.hbm [shape: f32[2,32,64], index: 17, kind: input, shape index: {}]   ;;  %s19501_s18 = inlined_call_operand.hbm [shape: f32[2,32,32], index: 18, kind: input, shape index: {}]   ;;  %s19502_s19 = inlined_call_operand.hbm [shape: f32[2,32,32], index: 19, kind: input, shape index: {}]   ;;  %s19503_s20 = inlined_call_operand.hbm [shape: f32[2,32,64], index: 20, kind: input, shape index: {}]   ;;  %s19504_s21 = inlined_call_operand.hbm [shape: f32[2,32,32], index: 21, kind: input, shape index: {}]   ;;  %s19505_s22 = inlined_call_operand.vmem [shape: f32[2,4,32], index: 22, kind: input, shape index: {}]   ;;  %s19506_s23 = inlined_call_operand.hbm [shape: f32[2,4,32], index: 23, kind: input, shape index: {}]   ;;  %s19507_s24 = inlined_call_operand.hbm [shape: f32[2,32,64], index: 24, kind: input, shape index: {}]   ;;  %s19508_s25 = inlined_call_operand.vmem [shape: f32[2,1,64], index: 25, kind: input, shape index: {}]   ;;  %s19509_s26 = inlined_call_operand.vmem [shape: f32[2,64,32], index: 26, kind: input, shape index: {}]   ;;  %s19510_s27 = inlined_call_operand.vmem [shape: f32[2,1,32], index: 27, kind: input, shape index: {}]   ;;  %s19511_s28 = inlined_call_operand.vmem [shape: f32[16,128], index: 28, kind: output, shape index: {}]   ;;  %s19512_s1 = inlined_call_operand.vmem [shape: s32[2], index: 1, kind: input, shape index: {}]   ;;  %s19513_s2 = inlined_call_operand.hbm [shape: s32[2], index: 2, kind: input, shape index: {}]  }
   0x1   :  { %19534 = sst [smem:[#allocation33_spill]] %s19485_s0 }
   0x2   :  { %19535 = sst [smem:[#allocation34_spill]] %s19486_s3 }
   0x3   :  { %19536 = sst [smem:[#allocation35_spill]] %s19487_s4 }
   0x4   :  { %19537 = sst [smem:[#allocation36_spill]] %s19488_s5 }
   0x5   :  { %19538 = sst [smem:[#allocation37_spill]] %s19489_s6 }
   0x6   :  { %19539 = sst [smem:[#allocation38_spill]] %s19490_s7 }
   0x7   :  { %19540 = sst [smem:[#allocation39_spill]] %s19491_s8  ;;  %s37_s8 = sshll.u32 %s19512_s1, 4  ;;  %s38_s8 = int_to_ptr.vmem [resolvable:$true] %s37_s8 }
   0x8   :  { %19541 = sst [smem:[#allocation40_spill]] %s19492_s9 }
   0x9   :  { %19542 = sst [smem:[#allocation41_spill]] %s19493_s10 }
   0xa   :  { %19543 = sst [smem:[#allocation42_spill]] %s19494_s11  ;;  %s19548_s11 = sld [smem:[#allocation33_spill]] }
   0xb   :  { %19544 = sst [smem:[#allocation43_spill]] %s19495_s12 }
   0xc   :  { %19545 = sst [smem:[#allocation44_spill]] %s19496_s13 }
   0xd   :  { %19546 = sst [smem:[#allocation45_spill]] %s19497_s14 }
   0xe   :  { %19547 = sst [smem:[#allocation46_spill]] %s19498_s15 }
  0x10   :  { %s33_s15 = sshll.u32 %s19548_s11, 4  ;;  %s34_s15 = int_to_ptr.vmem [resolvable:$true] %s33_s15 }
  0x11   :  { %s16772_s12 = scalar_lea.vmem %s34_s15, 16  ;;  %p16777_p1 = scmp.lt.s32.totalorder %s34_s15, %s34_s15 }
  0x12   :  { %p16773_p0 = scmp.ne.s32.totalorder %s34_s15, %s16772_s12  ;;  %p16778_p2 = scmp.lt.s32.totalorder %s16772_s12, %s16772_s12 }
  0x14   :  { %p16779_p3 = por %p16778_p2, %p16777_p1 }
  0x16   :  { %p16780_p4 = pnand %p16779_p3, %p16773_p0 }
  0x18   :  { %16783 = shalt.err (!%p16780_p4)  }
  0x19   :  { %s17086_s0 = smov [#allocation3]   ;;  %s16784_s13 = scalar_lea.vmem %s38_s8, 16 }
  0x1a   :  { %36 = dma.vmem_to_smem %s34_s15, 16, %s17086_s0, [#allocation2] }
  0x1b   :  { %p16785_p5 = scmp.ne.s32.totalorder %s38_s8, %s16784_s13  ;;  %p16789_p6 = scmp.lt.s32.totalorder %s38_s8, %s38_s8 }
  0x1c   :  { %p16790_p7 = scmp.lt.s32.totalorder %s16784_s13, %s16784_s13 }
  0x1e   :  { %p16791_p8 = por %p16790_p7, %p16789_p6 }
  0x20   :  { %p16792_p9 = pnand %p16791_p8, %p16785_p5 }
  0x22   :  { %16795 = shalt.err (!%p16792_p9)  }
  0x23   :  { %s17087_s29 = smov [#allocation4]   ;;  %s16796_s9 = scalar_lea.hbm %s19513_s2, 16 }
  0x24   :  { %40 = dma.vmem_to_smem %s38_s8, 16, %s17087_s29, [#allocation2] }
  0x25   :  { %p16797_p10 = scmp.ne.s32.totalorder %s19513_s2, %s16796_s9  ;;  %p16800_p11 = scmp.lt.u32.totalorder %s16796_s9, %s19513_s2 }
  0x27   :  { %p16802_p12 = pnand %p16800_p11, %p16797_p10 }
  0x29   :  { %16805 = shalt.err (!%p16802_p12)  }
  0x2a   :  { %s17088_s15 = smov [#allocation5]  }
  0x2b   :  { %42 = dma.hbm_to_smem %s19513_s2, 16, %s17088_s15, [#allocation2] }
  0x2c   :  { %17070 = dma.done.wait [#allocation2], 48 }
  0x2d   :  { %17071 = vsyncadd [#allocation2], 4294967248 }
  0x2e   :  { %44 = sfence }
  0x2f   :  { %45 = vsyncpa [#allocation7], 0 }
  0x30   :  { %46 = vsyncpa [#allocation9], 0 }
  0x31   :  { %47 = vsyncpa [#allocation12], 0 }
  0x32   :  { %48 = vsyncpa [#allocation15], 0 }
  0x33   :  { %49 = vsyncpa [#allocation18], 0 }
  0x34   :  { %50 = vsyncpa [#allocation21], 0 }
  0x35   :  { %51 = vsyncpa [#allocation24], 0  ;;  %s17089_s30 = smov [#allocation8]   ;;  %s17090_s8 = smov [#allocation11]  }
  0x36   :  { %s71_s5 = sshll.u32 %s17089_s30, 4  ;;  %s99_s12 = sshll.u32 %s17090_s8, 4  ;;  %s72_s5 = int_to_ptr.vmem [resolvable:$true] %s71_s5  ;;  %s17284_s12 = int_to_ptr.vmem [resolvable:$true] %s99_s12 }
  0x37   :  { %s19549_s2 = sld [smem:[#allocation36_spill]] }
  0x3d   :  { %s16806_s29 = scalar_lea.hbm %s19549_s2, 256 }
  0x3e   :  { %p16807_p13 = scmp.ne.s32.totalorder %s19549_s2, %s16806_s29  ;;  %p16810_p0 = scmp.lt.u32.totalorder %s16806_s29, %s19549_s2 }
  0x40   :  { %p16812_p1 = pnand %p16810_p0, %p16807_p13 }
  0x42   :  { %16815 = shalt.err (!%p16812_p1)
}
  0x43   :  { %s16816_s3 = scalar_lea.vmem %s72_s5, 256  ;;  %p16821_p3 = scmp.lt.s32.totalorder %s72_s5, %s72_s5 }
  0x44   :  { %p16817_p2 = scmp.ne.s32.totalorder %s72_s5, %s16816_s3  ;;  %p16822_p4 = scmp.lt.s32.totalorder %s16816_s3, %s16816_s3 }
  0x46   :  { %p16823_p5 = por %p16822_p4, %p16821_p3 }
  0x48   :  { %p16824_p6 = pnand %p16823_p5, %p16817_p2 }
  0x4a   :  { %16827 = shalt.err (!%p16824_p6)
}
  0x4b   :  { %s17091_s6 = smov 128   ;;  %s17092_s10 = smov 8  }
  0x4c   :  { %77 = dma.hbm_to_vmem [thread:$0]  %s19549_s2, 256, %s72_s5, [#allocation9], %s17091_s6, %s17091_s6, %s17092_s10  }
  0x4d   :  { %s19550_s8 = sld [smem:[#allocation40_spill]] }
  0x53   :  { %s16828_s0 = scalar_lea.hbm %s19550_s8, 512 }
  0x54   :  { %p16829_p7 = scmp.ne.s32.totalorder %s19550_s8, %s16828_s0  ;;  %p16832_p8 = scmp.lt.u32.totalorder %s16828_s0, %s19550_s8 }
  0x56   :  { %p16834_p9 = pnand %p16832_p8, %p16829_p7 }
  0x58   :  { %16837 = shalt.err (!%p16834_p9)
}
  0x59   :  { %s16838_s9 = scalar_lea.vmem %s17284_s12, 512  ;;  %p16843_p11 = scmp.lt.s32.totalorder %s17284_s12, %s17284_s12 }
  0x5a   :  { %p16839_p10 = scmp.ne.s32.totalorder %s17284_s12, %s16838_s9  ;;  %p16844_p12 = scmp.lt.s32.totalorder %s16838_s9, %s16838_s9 }
  0x5c   :  { %p16845_p13 = por %p16844_p12, %p16843_p11 }
  0x5e   :  { %p16846_p0 = pnand %p16845_p13, %p16839_p10 }
  0x60   :  { %16849 = shalt.err (!%p16846_p0)
}
  0x61   :  { %105 = dma.hbm_to_vmem [thread:$0]  %s19550_s8, 512, %s17284_s12, [#allocation12], %s17091_s6, %s17091_s6, %s17092_s10  }
  0x62   :  { %s17093_s14 = smov [#allocation14]   ;;  %s17094_s15 = smov [#allocation17]  }
  0x63   :  { %s133_s3 = sshll.u32 %s17093_s14, 4  ;;  %s157_s7 = sshll.u32 %s17094_s15, 4  ;;  %s134_s3 = int_to_ptr.vmem [resolvable:$true] %s133_s3  ;;  %s17321_s7 = int_to_ptr.vmem [resolvable:$true] %s157_s7 }
  0x64   :  { %s16850_s0 = scalar_lea.hbm %s19500_s17, 1024 }
  0x65   :  { %p16851_p1 = scmp.ne.s32.totalorder %s19500_s17, %s16850_s0  ;;  %p16854_p2 = scmp.lt.u32.totalorder %s16850_s0, %s19500_s17 }
  0x67   :  { %p16856_p3 = pnand %p16854_p2, %p16851_p1 }
  0x69   :  { %16859 = shalt.err (!%p16856_p3)
}
  0x6a   :  { %s16860_s12 = scalar_lea.vmem %s134_s3, 1024  ;;  %p16865_p5 = scmp.lt.s32.totalorder %s134_s3, %s134_s3 }
  0x6b   :  { %p16861_p4 = scmp.ne.s32.totalorder %s134_s3, %s16860_s12  ;;  %p16866_p6 = scmp.lt.s32.totalorder %s16860_s12, %s16860_s12 }
  0x6d   :  { %p16867_p7 = por %p16866_p6, %p16865_p5 }
  0x6f   :  { %p16868_p8 = pnand %p16867_p7, %p16861_p4 }
  0x71   :  { %16871 = shalt.err (!%p16868_p8)
}
  0x72   :  { %139 = dma.hbm_to_vmem [thread:$0]  %s19500_s17, 1024, %s134_s3, [#allocation15], %s17091_s6, %s17091_s6, %s17092_s10  }
  0x73   :  { %s16872_s14 = scalar_lea.hbm %s19502_s19, 1024 }
  0x74   :  { %p16873_p9 = scmp.ne.s32.totalorder %s19502_s19, %s16872_s14  ;;  %p16876_p10 = scmp.lt.u32.totalorder %s16872_s14, %s19502_s19 }
  0x76   :  { %p16878_p11 = pnand %p16876_p10, %p16873_p9 }
  0x78   :  { %16881 = shalt.err (!%p16878_p11)
}
  0x79   :  { %s16882_s13 = scalar_lea.vmem %s17321_s7, 1024  ;;  %p16887_p13 = scmp.lt.s32.totalorder %s17321_s7, %s17321_s7 }
  0x7a   :  { %p16883_p12 = scmp.ne.s32.totalorder %s17321_s7, %s16882_s13  ;;  %p16888_p0 = scmp.lt.s32.totalorder %s16882_s13, %s16882_s13 }
  0x7c   :  { %p16889_p1 = por %p16888_p0, %p16887_p13 }
  0x7e   :  { %p16890_p2 = pnand %p16889_p1, %p16883_p12 }
  0x80   :  { %16893 = shalt.err (!%p16890_p2)
}
  0x81   :  { %163 = dma.hbm_to_vmem [thread:$0]  %s19502_s19, 1024, %s17321_s7, [#allocation18], %s17091_s6, %s17091_s6, %s17092_s10  }
  0x82   :  { %s17095_s29 = smov [#allocation20]   ;;  %s17096_s4 = smov [#allocation6]  }
  0x83   :  { %s181_s1 = sshll.u32 %s17095_s29, 4  ;;  %s59_s12 = sshll.u32 %s17096_s4, 4  ;;  %s182_s1 = int_to_ptr.vmem [resolvable:$true] %s181_s1  ;;  %s17358_s12 = int_to_ptr.vmem [resolvable:$true] %s59_s12 }
  0x84   :  { %s16894_s5 = scalar_lea.hbm %s19504_s21, 1024 }
  0x85   :  { %p16895_p3 = scmp.ne.s32.totalorder %s19504_s21, %s16894_s5  ;;  %p16898_p4 = scmp.lt.u32.totalorder %s16894_s5, %s19504_s21 }
  0x87   :  { %p16900_p5 = pnand %p16898_p4, %p16895_p3 }
  0x89   :  { %16903 = shalt.err (!%p16900_p5)
}
  0x8a   :  { %s16904_s19 = scalar_lea.vmem %s182_s1, 1024  ;;  %p16909_p7 = scmp.lt.s32.totalorder %s182_s1, %s182_s1 }
  0x8b   :  { %p16905_p6 = scmp.ne.s32.totalorder %s182_s1, %s16904_s19  ;;  %p16910_p8 = scmp.lt.s32.totalorder %s16904_s19, %s16904_s19 }
  0x8d   :  { %p16911_p9 = por %p16910_p8, %p16909_p7 }
  0x8f   :  { %p16912_p10 = pnand %p16911_p9, %p16905_p6 }
  0x91   :  { %16915 = shalt.err (!%p16912_p10)
}
  0x92   :  { %187 = dma.hbm_to_vmem [thread:$0]  %s19504_s21, 1024, %s182_s1, [#allocation21], %s17091_s6, %s17091_s6, %s17092_s10  }
  0x93   :  { %s19551_s17 = sld [smem:[#allocation35_spill]] }
  0x99   :  { %s16916_s3 = scalar_lea.hbm %s19551_s17, 512 }
  0x9a   :  { %p16917_p11 = scmp.ne.s32.totalorder %s19551_s17, %s16916_s3  ;;  %p16920_p12 = scmp.lt.u32.totalorder %s16916_s3, %s19551_s17 }
  0x9c   :  { %p16922_p13 = pnand %p16920_p12, %p16917_p11 }
  0x9e   :  { %16925 = shalt.err (!%p16922_p13)
}
  0x9f   :  { %s16926_s5 = scalar_lea.vmem %s17358_s12, 512  ;;  %p16931_p1 = scmp.lt.s32.totalorder %s17358_s12, %s17358_s12 }
  0xa0   :  { %p16927_p0 = scmp.ne.s32.totalorder %s17358_s12, %s16926_s5  ;;  %p16932_p2 = scmp.lt.s32.totalorder %s16926_s5, %s16926_s5 }
  0xa2   :  { %p16933_p3 = por %p16932_p2, %p16931_p1 }
  0xa4   :  { %p16934_p4 = pnand %p16933_p3, %p16927_p0 }
  0xa6   :  { %16937 = shalt.err (!%p16934_p4)
}
  0xa7   :  { %65 = dma.hbm_to_vmem [thread:$0]  %s19551_s17, 512, %s17358_s12, [#allocation7], %s17091_s6, %s17091_s6, %s17092_s10  }
  0xa8   :  { %s17097_s2 = smov [#allocation10]   ;;  %s17098_s15 = smov [#allocation13]  }
  0xa9   :  { %s83_s14 = sshll.u32 %s17097_s2, 4  ;;  %s112_s11 = sshll.u32 %s17098_s15, 4  ;;  %s84_s14 = int_to_ptr.vmem [resolvable:$true] %s83_s14  ;;  %s113_s11 = int_to_ptr.vmem [resolvable:$true] %s112_s11 }
  0xaa   :  { %s19552_s30 = sld [smem:[#allocation37_spill]] }
  0xb0   :  { %s16938_s0 = scalar_lea.hbm %s19552_s30, 256 }
  0xb1   :  { %p16939_p5 = scmp.ne.s32.totalorder %s19552_s30, %s16938_s0  ;;  %p16942_p6 = scmp.lt.u32.totalorder %s16938_s0, %s19552_s30 }
  0xb3   :  { %p16944_p7 = pnand %p16942_p6, %p16939_p5 }
  0xb5   :  { %16947 = shalt.err (!%p16944_p7)
}
  0xb6   :  { %s16948_s12 = scalar_lea.vmem %s84_s14, 256  ;;  %p16953_p9 = scmp.lt.s32.totalorder %s84_s14, %s84_s14 }
  0xb7   :  { %p16949_p8 = scmp.ne.s32.totalorder %s84_s14, %s16948_s12  ;;  %p16954_p10 = scmp.lt.s32.totalorder %s16948_s12, %s16948_s12 }
  0xb9   :  { %p16955_p11 = por %p16954_p10, %p16953_p9 }
  0xbb   :  { %p16956_p12 = pnand %p16955_p11, %p16949_p8 }
  0xbd   :  { %16959 = shalt.err (!%p16956_p12)
}
  0xbe   :  { %89 = dma.hbm_to_vmem [thread:$0]  %s19552_s30, 256, %s84_s14, [#allocation9], %s17091_s6, %s17091_s6, %s17092_s10  }
  0xbf   :  { %s19553_s21 = sld [smem:[#allocation41_spill]] }
  0xc5   :  { %s16960_s1 = scalar_lea.hbm %s19553_s21, 16 }
  0xc6   :  { %p16961_p13 = scmp.ne.s32.totalorder %s19553_s21, %s16960_s1  ;;  %p16964_p0 = scmp.lt.u32.totalorder %s16960_s1, %s19553_s21 }
  0xc8   :  { %p16966_p1 = pnand %p16964_p0, %p16961_p13 }
  0xca   :  { %16969 = shalt.err (!%p16966_p1)
}
  0xcb   :  { %s16970_s0 = scalar_lea.vmem %s113_s11, 16  ;;  %s16974_s13 = scalar_lea.vmem %s113_s11, 32 }
  0xcc   :  { %p16971_p2 = scmp.ne.s32.totalorder %s113_s11, %s16970_s0  ;;  %p16975_p3 = scmp.lt.s32.totalorder %s113_s11, %s113_s11 }
  0xcd   :  { %p16976_p4 = scmp.lt.s32.totalorder %s16974_s13, %s16970_s0 }
  0xcf   :  { %p16977_p5 = por %p16976_p4, %p16975_p3 }
  0xd1   :  { %p16978_p6 = pnand %p16977_p5, %p16971_p2 }
  0xd3   :  { %16981 = shalt.err (!%p16978_p6)
}
  0xd4   :  { %115 = dma.hbm_to_vmem [thread:$0]  %s19553_s21, 16, %s113_s11, [#allocation12]  }
  0xd5   :  { %s17099_s3 = smov [#allocation16]   ;;  %s17100_s4 = smov [#allocation19]  }
  0xd6   :  { %s145_s29 = sshll.u32 %s17099_s3, 4  ;;  %s169_s12 = sshll.u32 %s17100_s4, 4  ;;  %s146_s29 = int_to_ptr.vmem [resolvable:$true] %s145_s29  ;;  %s17422_s12 = int_to_ptr.vmem [resolvable:$true] %s169_s12 }
  0xd7   :  { %s16982_s9 = scalar_lea.hbm %s19501_s18, 1024 }
  0xd8   :  { %p16983_p7 = scmp.ne.s32.totalorder %s19501_s18, %s16982_s9  ;;  %p16986_p8 = scmp.lt.u32.totalorder %s16982_s9, %s19501_s18 }
  0xda   :  { %p16988_p9 = pnand %p16986_p8, %p16983_p7 }
  0xdc   :  { %16991 = shalt.err (!%p16988_p9)
}
  0xdd   :  { %s16992_s11 = scalar_lea.vmem %s146_s29, 1024  ;;  %p16997_p11 = scmp.lt.s32.totalorder %s146_s29, %s146_s29 }
  0xde   :  { %p16993_p10 = scmp.ne.s32.totalorder %s146_s29, %s16992_s11  ;;  %p16998_p12 = scmp.lt.s32.totalorder %s16992_s11, %s16992_s11 }
  0xe0   :  { %p16999_p13 = por %p16998_p12, %p16997_p11 }
  0xe2   :  { %p17000_p0 = pnand %p16999_p13, %p16993_p10 }
  0xe4   :  { %17003 = shalt.err (!%p17000_p0)
}
  0xe5   :  { %151 = dma.hbm_to_vmem [thread:$0]  %s19501_s18, 1024, %s146_s29, [#allocation15], %s17091_s6, %s17091_s6, %s17092_s10  }
  0xe6   :  { %s17004_s13 = scalar_lea.hbm %s19503_s20, 1024 }
  0xe7   :  { %p17005_p1 = scmp.ne.s32.totalorder %s19503_s20, %s17004_s13  ;;  %p17008_p2 = scmp.lt.u32.totalorder %s17004_s13, %s19503_s20 }
  0xe9   :  { %p17010_p3 = pnand %p17008_p2, %p17005_p1 }
  0xeb   :  { %17013 = shalt.err (!%p17010_p3)
}
  0xec   :  { %s17014_s17 = scalar_lea.vmem %s17422_s12, 1024  ;;  %p17019_p5 = scmp.lt.s32.totalorder %s17422_s12, %s17422_s12 }
  0xed   :  { %p17015_p4 = scmp.ne.s32.totalorder %s17422_s12, %s17014_s17  ;;  %p17020_p6 = scmp.lt.s32.totalorder %s17014_s17, %s17014_s17 }
  0xef   :  { %p17021_p7 = por %p17020_p6, %p17019_p5 }
  0xf1   :  { %p17022_p8 = pnand %p17021_p7, %p17015_p4 }
  0xf3   :  { %17025 = shalt.err (!%p17022_p8)
}
  0xf4   :  { %175 = dma.hbm_to_vmem [thread:$0]  %s19503_s20, 1024, %s17422_s12, [#allocation18], %s17091_s6, %s17091_s6, %s17092_s10  }
  0xf5   :  { %s17101_s8 = smov [#allocation22]   ;;  %s17026_s2 = scalar_lea.hbm %s19506_s23, 128 }
  0xf6   :  { %s195_s9 = sshll.u32 %s17101_s8, 4  ;;  %p17027_p9 = scmp.ne.s32.totalorder %s19506_s23, %s17026_s2  ;;  %s196_s9 = int_to_ptr.vmem [resolvable:$true] %s195_s9 }
  0xf7   :  { %p17030_p10 = scmp.lt.u32.totalorder %s17026_s2, %s19506_s23 }
  0xf9   :  { %p17032_p11 = pnand %p17030_p10, %p17027_p9 }
  0xfb   :  { %17035 = shalt.err (!%p17032_p11)
}
  0xfc   :  { %s17036_s7 = scalar_lea.vmem %s196_s9, 128  ;;  %p17041_p13 = scmp.lt.s32.totalorder %s196_s9, %s196_s9 }
  0xfd   :  { %p17037_p12 = scmp.ne.s32.totalorder %s196_s9, %s17036_s7  ;;  %p17042_p0 = scmp.lt.s32.totalorder %s17036_s7, %s17036_s7 }
  0xff   :  { %p17043_p1 = por %p17042_p0, %p17041_p13 }
 0x101   :  { %p17044_p2 = pnand %p17043_p1, %p17037_p12 }
 0x103   :  { %17047 = shalt.err (!%p17044_p2)
}
 0x104   :  { %s17102_s20 = smov 64   ;;  %s17103_s12 = smov 4  }
 0x105   :  { %201 = dma.hbm_to_vmem [thread:$0]  %s19506_s23, 128, %s196_s9, [#allocation21], %s17102_s20, %s17102_s20, %s17103_s12  }
 0x106   :  { %s17104_s14 = smov [#allocation23]   ;;  %s17048_s17 = scalar_lea.hbm %s19507_s24, 1024 }
 0x107   :  { %s207_s30 = sshll.u32 %s17104_s14, 4  ;;  %p17049_p3 = scmp.ne.s32.totalorder %s19507_s24, %s17048_s17  ;;  %s208_s30 = int_to_ptr.vmem [resolvable:$true] %s207_s30 }
 0x108   :  { %p17052_p4 = scmp.lt.u32.totalorder %s17048_s17, %s19507_s24 }
 0x10a   :  { %p17054_p5 = pnand %p17052_p4, %p17049_p3 }
 0x10c   :  { %17057 = shalt.err (!%p17054_p5)
}
 0x10d   :  { %s17058_s1 = scalar_lea.vmem %s208_s30, 1024  ;;  %p17063_p7 = scmp.lt.s32.totalorder %s208_s30, %s208_s30 }
 0x10e   :  { %p17059_p6 = scmp.ne.s32.totalorder %s208_s30, %s17058_s1  ;;  %p17064_p8 = scmp.lt.s32.totalorder %s17058_s1, %s17058_s1 }
 0x110   :  { %p17065_p9 = por %p17064_p8, %p17063_p7 }
 0x112   :  { %p17066_p10 = pnand %p17065_p9, %p17059_p6 }
 0x114   :  { %17069 = shalt.err (!%p17066_p10)
}
 0x115   :  { %213 = dma.hbm_to_vmem [thread:$0]  %s19507_s24, 1024, %s208_s30, [#allocation24], %s17091_s6, %s17091_s6, %s17092_s10  }
 0x116   :  { %17072 = dma.done.wait [#allocation7], 512  }
 0x117   :  { %17073 = vsyncadd [#allocation7], 4294966784 }
 0x118   :  { %17074 = dma.done.wait [#allocation9], 512  }
 0x119   :  { %17075 = vsyncadd [#allocation9], 4294966784 }
 0x11a   :  { %17076 = dma.done.wait [#allocation12], 528  }
 0x11b   :  { %17077 = vsyncadd [#allocation12], 4294966768 }
 0x11c   :  { %17078 = dma.done.wait [#allocation15], 2048  }
 0x11d   :  { %17079 = vsyncadd [#allocation15], 4294965248 }
 0x11e   :  { %17080 = dma.done.wait [#allocation18], 2048  }
 0x11f   :  { %17081 = vsyncadd [#allocation18], 4294965248 }
 0x120   :  { %17082 = dma.done.wait [#allocation21], 1152  }
 0x121   :  { %17083 = vsyncadd [#allocation21], 4294966144 }
 0x122   :  { %17084 = dma.done.wait [#allocation24], 1024  }
 0x123   :  { %17085 = vsyncadd [#allocation24], 4294966272  ;;  %v17105_v0 = vmov 0   ;;  %s19554_s11 = sld [smem:[#allocation34_spill]]  ;;  %s19555_s21 = sld [smem:[#allocation38_spill]]  ;;  %v17106_v18 = vmov 0.0   ;;  %v258_v19 = vlaneseq }
 0x124   :  { %16331 = vset.pattern.permute.xlu0 %v17105_v0  ;;  %s19556_s15 = sld [smem:[#allocation42_spill]]  ;;  %vm281_vm0 = vcmask 523264   ;;  %s19557_s13 = sld [smem:[#allocation39_spill]]  ;;  %vm384_vm3 = vcmask 261120   ;;  %vm17107_vm4 = vmmov 0   ;;  %vm469_vm5 = vcmask 64512  }
 0x125   :  { %v17525_v20 = vand.u32 127, %v258_v19  ;;  %s17108_s14 = smov 96   ;;  %v17567_v36 = vshrl.u32 %v258_v19, 7  ;;  %s17109_s30 = smov 88   ;;  %vm1147_vm7 = vcmask 130048   ;;  %vm1149_vm8 = vcmask 195584   ;;  %vm17822_vm9 = vmpackc.low %vm469_vm5, %vm469_vm5 }
 0x126   :  { %s17110_s3 = smov 120   ;;  %s17111_s4 = smov 112  }
 0x127   :  { %vm17571_vm6 = vcmp.le.s32.totalorder %v17525_v20, %v17567_v36  ;;  %s17112_s17 = smov 104   ;;  %s17113_s18 = smov 80  }
 0x128   :  { %s17114_s29 = smov 72   ;;  %s19526_s8 = smov 48  }
 0x129   :  { %v256_v1 = vld [vmem:[%s19554_s11] sm:$0xff]  ;;  %v273_v3 = vld [vmem:[%s19555_s21 + $0x8] sm:$0xff]  ;;  %v274_v4 = vld [vmem:[%s19555_s21 + $0x10] sm:$0xff]  ;;  %s17116_s5 = smov 56   ;;  %s19528_s1 = smov 40  }
 0x12a   :  { %v272_v2 = vld [vmem:[%s19555_s21] sm:$0xff]  ;;  %261 = vperm.xlu0 %16331, %v256_v1   ;;  %v275_v5 = vld [vmem:[%s19555_s21 + $0x18] sm:$0xff]  ;;  %v257_v6 = vld [vmem:[%s19554_s11 + $0x8] sm:$0xff]  ;;  %s19560_s2 = sld [smem:[#allocation43_spill]]  ;;  %s19532_s6 = smov 16  }
 0x12b   :  { %v15928_v7 = vpack.c.bf16 %v273_v3, %v272_v2  ;;  %v15932_v8 = vpack.c.bf16 %v275_v5, %v274_v4  ;;  %v276_v9 = vld [vmem:[%s19555_s21 + $0x20] sm:$0xff]  ;;  %v277_v10 = vld [vmem:[%s19555_s21 + $0x28] sm:$0xff]  ;;  %v278_v12 = vld [vmem:[%s19555_s21 + $0x30] sm:$0xff]  ;;  %s19530_s0 = smov 24   ;;  %s19561_s9 = sld [smem:[#allocation45_spill]] }
 0x12c   :  { %v15936_v11 = vpack.c.bf16 %v277_v10, %v276_v9  ;;  %v279_v13 = vld [vmem:[%s19555_s21 + $0x38] sm:$0xff]  ;;  %v376_v14 = vld [vmem:[%s19556_s15] sm:$0xff]  ;;  %v377_v15 = vld [vmem:[%s19556_s15 + $0x8] sm:$0xff]  ;;  %s19562_s11 = sld [smem:[#allocation44_spill]]  ;;  %s2145_s23 = sld [smem:[#allocation3]] }
 0x12d   :  { %15929 = vmatprep.subr.bf16.mxu0 %v15928_v7  ;;  %v15944_v16 = vpack.c.bf16 %v377_v15, %v376_v14  ;;  %v15940_v17 = vpack.c.bf16 %v279_v13, %v278_v12  ;;  %v378_v25 = vld [vmem:[%s19556_s15 + $0x10] sm:$0xff]  ;;  %v379_v26 = vld [vmem:[%s19556_s15 + $0x18] sm:$0xff]  ;;  %v280_v28 = vld [vmem:[%s19557_s13] sm:$0xff]  ;;  %s14139_s24 = sld [smem:[#allocation3 + $0x1]]  ;;  %s19569_s7 = sld [smem:[#allocation46_spill]] }
 0x12e   :  { %264 = vperm.xlu0 %16331, %v257_v6   ;;  %15931 = vmatpush3.bf16.msra.mxu0 %v15928_v7  ;;  %v15948_v27 = vpack.c.bf16 %v379_v26, %v378_v25  ;;  %s14178_s21 = sld [smem:[#allocation5 + $0x1]] }
 0x12f   :  { %15933 = vmatprep.subr.bf16.mxu0 %v15932_v8  ;;  %15945 = vmatprep.subr.bf16.mxu1 %v15944_v16  ;;  %s14209_s13 = sld [smem:[#allocation4 + $0x1]] }
 0x130   :  { %15947 = vmatpush3.bf16.msra.mxu1 %v15944_v16 }
 0x131   :  { %15949 = vmatprep.subr.bf16.mxu1 %v15948_v27 }
 0x132   :  { %15935 = vmatpush3.bf16.msra.mxu0 %v15932_v8 }
 0x133   :  { %15937 = vmatprep.subr.bf16.mxu0 %v15936_v11 }
 0x134   :  { %15951 = vmatpush3.bf16.msra.mxu1 %v15948_v27 }
 0x135   :  { %14916 = vmatprep.subr.mxu1 %v17106_v18 }
 0x136   :  { %15939 = vmatpush3.bf16.msra.mxu0 %v15936_v11 }
 0x137   :  { %15941 = vmatprep.subr.bf16.mxu0 %v15940_v17 }
 0x13a   :  { %15943 = vmatpush3.bf16.msra.mxu0 %v15940_v17 }
 0x13b   :  { %14936 = vmatprep.subr.mxu0 %v17106_v18 }
 0x1a9   :  { %v262_v21 = vpop.permute.xlu0 %261 }
 0x1aa   :  { %vm266_vm1 = vcmp.eq.s32.totalorder %v17525_v20, %v262_v21 }
 0x1ab   :  { %v14101_v22 = vsel %vm266_vm1, 1.0, %v17106_v18 }
 0x1ac   :  { %14902 = vmatprep.mubr.msk.f32.mxu0 %vm281_vm0, %v14101_v22 }
 0x1ad   :  { %v265_v23 = vpop.permute.xlu0 %264 }
 0x1ae   :  { %vm267_vm2 = vcmp.eq.s32.totalorder %v17525_v20, %v265_v23 }
 0x1af   :  { %v14102_v24 = vsel %vm267_vm2, 1.0, %v17106_v18 }
 0x1b0   :  { %14903 = vmatmul.mubr.msk.f32.vlgmr.msra.gmra.mrb[0].mxu0 %vm281_vm0, %v14102_v24 }
 0x1b1   :  { %14938 = vmatprep.mubr.msk.f32.mxu0 %vm17107_vm4, %v17106_v18 }
 0x283   :  { %v14904_v29 = vpop.f32.mrb[0].mxu0 }
 0x284   :  { %v354_v30 = vpop.f32.mrb[1].mxu0  ;;  %v17545_v32 = vadd.f32 %v14904_v29, %v280_v28 }
 0x285   :  { %v17543_v31 = vadd.f32 %v354_v30, %v280_v28 }
 0x287   :  { %14913 = vmatprep.mubr.msk.f32.mxu1 %vm384_vm3, %v17543_v31 }
 0x288   :  { %14914 = vmatmul.mubr.msk.f32.vlgmr.msra.gmra.mrb[0].mxu1 %vm384_vm3, %v17545_v32 }
 0x289   :  { %14918 = vmatprep.mubr.msk.f32.mxu1 %vm17107_vm4, %v17106_v18 }
 0x35b   :  { %v17555_v33 = vpop.f32.mrb[0].mxu1 }
 0x35c   :  { %v17557_v34 = vpop.f32.mrb[1].mxu1 }
 0x35d   :  { %467 = vrot.lane.b32.xlu1 %v17557_v34, %s17108_s14 }
 0x3cf   :  { %v468_v35 = vpop.permute.xlu1 %467 }
 0x3d0   :  { %14917 = vmatpush3.xpose.msk.msra.mxu1 %vm469_vm5, %v468_v35 }
 0x3d1   :  { %14921 = vmatprep.subr.mxu1 %v17106_v18 }
 0x3d3   :  { %14919 = vmatmul.mubr.msk.f32.vlgmr.msra.gmra.mrb[2].mxu1 %vm469_vm5, %v17557_v34 }
 0x3d4   :  { %14923 = vmatprep.mubr.msk.f32.mxu1 %vm17107_vm4, %v17106_v18 }
 0x4a6   :  { %v540_v38 = vpop.f32.mrb[2].mxu1 }
 0x4a7   :  { %v544_v39 = vmul.f32 0.35355338, %v540_v38  ;;  %v14920_v40 = vpop.f32.mrb[3].mxu1 }
 0x4a9   :  { %v545_v41 = vsel %vm17571_vm6, %v544_v39, -1000000.0 }
 0x4aa   :  { %v546_v42 = vsel %vm469_vm5, %v545_v41, -inf }
 0x4ab   :  { %547 = vmax.xlane.f32.xlu1 %v546_v42 }
 0x4bc   :  { %635 = vrot.lane.b32.xlu1 %v17557_v34, %s17109_s30 }
 0x4c0   :  { %633 = vrot.lane.b32.xlu1 %v17557_v34, %s17110_s3 }
 0x4c4   :  { %800 = vrot.lane.b32.xlu1 %v17557_v34, %s17111_s4 }
 0x4c8   :  { %967 = vrot.lane.b32.xlu1 %v17557_v34, %s17112_s17 }
 0x4cc   :  { %1319 = vrot.lane.b32.xlu1 %v17555_v33, %s17109_s30 }
 0x4d0   :  { %1486 = vrot.lane.b32.xlu1 %v17555_v33, %s17113_s18 }
 0x4d4   :  { %1653 = vrot.lane.b32.xlu1 %v17555_v33, %s17114_s29 }
 0x538   :  { %v548_v43 = vpop.xlane.xlu1 %547 }
 0x539   :  { %v549_v44 = vsub.f32 %v545_v41, %v548_v43 }
 0x53b   :  { %v550_v45 = vmul.f32 1.442695, %v549_v44 }
 0x53c   :  { %v636_v48 = vpop.permute.xlu1 %635 }
 0x53d   :  { %16472 = vpow2.f32 %v550_v45 }
 0x540   :  { %v634_v49 = vpop.permute.xlu1 %633 }
 0x544   :  { %v801_v51 = vpop.permute.xlu1 %800 }
 0x547   :  { %v16473_v46 = vpop.eup %16472 }
 0x548   :  { %v552_v47 = vsel %vm469_vm5, %v16473_v46, 0.0  ;;  %v968_v54 = vpop.permute.xlu1 %967 }
 0x549   :  { %553 = vadd.xlane.f32.xlu0 %v552_v47 }
 0x54c   :  { %v1320_v58 = vpop.permute.xlu1 %1319 }
 0x550   :  { %v1487_v61 = vpop.permute.xlu1 %1486 }
 0x554   :  { %v1654_v63 = vpop.permute.xlu1 %1653 }
 0x55f   :  { %557 = vrot.lane.b32.xlu0 %v17557_v34, %s17102_s20 }
 0x563   :  { %802 = vrot.lane.b32.xlu0 %v17557_v34, %s17113_s18 }
 0x567   :  { %969 = vrot.lane.b32.xlu0 %v17557_v34, %s17114_s29 }
 0x56b   :  { %1152 = vrot.lane.b32.xlu0 %v17555_v33, %s17108_s14 }
 0x56f   :  { %1317 = vrot.lane.b32.xlu0 %v17555_v33, %s17110_s3 }
 0x573   :  { %1484 = vrot.lane.b32.xlu0 %v17555_v33, %s17111_s4 }
 0x577   :  { %1651 = vrot.lane.b32.xlu0 %v17555_v33, %s17112_s17 }
 0x5d6   :  { %v554_v50 = vpop.xlane.xlu0 %553 }
 0x5d7   :  { %16474 = vrcp.f32 %v554_v50 }
 0x5da   :  { %v558_v52 = vpop.permute.xlu0 %557 }
 0x5db   :  { %14922 = vmatpush3.msra.mxu1 %v558_v52 }
 0x5dc   :  { %14926 = vmatprep.subr.mxu1 %v17106_v18 }
 0x5de   :  { %v803_v53 = vpop.permute.xlu0 %802 }
 0x5df   :  { %14937 = vmatpush3.xpose.msk.msra.mxu0 %vm469_vm5, %v803_v53 }
 0x5e0   :  { %14946 = vmatprep.subr.mxu0 %v17106_v18 }
 0x5e1   :  { %v16475_v55 = vpop.eup %16474 }
 0x5e2   :  { %v970_v56 = vpop.permute.xlu0 %969  ;;  %14939 = vmatmul.mubr.msk.f32.vlgmr.msra.gmra.mrb[2].mxu0 %vm469_vm5, %v801_v51  ;;  %v556_v57 = vmul.f32 %v16475_v55, %v16473_v46 }
 0x5e3   :  { %14947 = vmatpush3.xpose.msk.msra.mxu0 %vm469_vm5, %v970_v56  ;;  %14948 = vmatprep.mubr.msk.f32.mxu0 %vm17107_vm4, %v17106_v18 }
 0x5e4   :  { %14924 = vmatmul.mubr.msk.f32.vlgmr.msra.gmra.mrb[4].mxu1 %vm469_vm5, %v556_v57  ;;  %14956 = vmatprep.subr.mxu0 %v17106_v18 }
 0x5e5   :  { %14927 = vmatpush3.xpose.msk.msra.mxu1 %vm469_vm5, %v636_v48  ;;  %14928 = vmatprep.mubr.msk.f32.mxu1 %vm17107_vm4, %v17106_v18 }
 0x5e6   :  { %v1153_v59 = vpop.permute.xlu0 %1152  ;;  %14949 = vmatmul.mubr.msk.f32.vlgmr.msra.gmra.mrb[4].mxu0 %vm469_vm5, %v968_v54  ;;  %14931 = vmatprep.subr.mxu1 %v17106_v18 }
 0x5e7   :  { %14957 = vmatpush3.xpose.msk.msra.mxu0 %vm469_vm5, %v1153_v59  ;;  %14958 = vmatprep.mubr.msk.f32.mxu0 %vm17107_vm4, %v17106_v18 }
 0x5e8   :  { %14929 = vmatmul.mubr.msk.f32.vlgmr.msra.gmra.mrb[6].mxu1 %vm469_vm5, %v634_v49  ;;  %14966 = vmatprep.subr.mxu0 %v17106_v18 }
 0x5e9   :  { %14933 = vmatprep.mubr.msk.f32.mxu1 %vm17107_vm4, %v17106_v18 }
 0x5ea   :  { %v1318_v60 = vpop.permute.xlu0 %1317  ;;  %14959 = vmatmul.mubr.msk.f32.vlgmr.msra.gmra.mrb[6].mxu0 %vm469_vm5, %v17555_v33 }
 0x5eb   :  { %14967 = vmatpush3.xpose.msk.msra.mxu0 %vm469_vm5, %v1320_v58  ;;  %14968 = vmatprep.mubr.msk.f32.mxu0 %vm17107_vm4, %v17106_v18 }
 0x5ec   :  { %14976 = vmatprep.subr.mxu0 %v17106_v18 }
 0x5ee   :  { %14969 = vmatmul.mubr.msk.f32.vlgmr.msra.gmra.mrb[8].mxu0 %vm469_vm5, %v1318_v60  ;;  %v1485_v62 = vpop.permute.xlu0 %1484 }
 0x5ef   :  { %14977 = vmatpush3.xpose.msk.msra.mxu0 %vm469_vm5, %v1487_v61  ;;  %14978 = vmatprep.mubr.msk.f32.mxu0 %vm17107_vm4, %v17106_v18 }
 0x5f0   :  { %14986 = vmatprep.subr.mxu0 %v17106_v18 }
 0x5f2   :  { %14979 = vmatmul.mubr.msk.f32.vlgmr.msra.gmra.mrb[10].mxu0 %vm469_vm5, %v1485_v62  ;;  %v1652_v0 = vpop.permute.xlu0 %1651 }
 0x5f3   :  { %14987 = vmatpush3.xpose.msk.msra.mxu0 %vm469_vm5, %v1654_v63  ;;  %14988 = vmatprep.mubr.msk.f32.mxu0 %vm17107_vm4, %v17106_v18 }
 0x5f6   :  { %14989 = vmatmul.mubr.msk.f32.vlgmr.msra.gmra.mrb[12].mxu0 %vm469_vm5, %v1652_v0 }
 0x6b5   :  { %v874_v1 = vpop.f32.mrb[2].mxu0 }
 0x6b6   :  { %v878_v2 = vmul.f32 0.35355338, %v874_v1  ;;  %v14940_v3 = vpop.f32.mrb[3].mxu0 }
 0x6b7   :  { %v17644_v4 = vpop.f32.mrb[4].mxu1 }
 0x6b8   :  { %v14925_v5 = vpop.f32.mrb[5].mxu1  ;;  %v879_v6 = vsel %vm17571_vm6, %v878_v2, -1000000.0 }
 0x6b9   :  { %v1041_v7 = vpop.f32.mrb[4].mxu0  ;;  %v880_v8 = vsel %vm469_vm5, %v879_v6, -inf }
 0x6ba   :  { %v1045_v9 = vmul.f32 0.35355338, %v1041_v7  ;;  %881 = vmax.xlane.f32.xlu0 %v880_v8  ;;  %v14950_v10 = vpop.f32.mrb[5].mxu0 }
 0x6bb   :  { %v707_v11 = vpop.f32.mrb[6].mxu1 }
 0x6bc   :  { %v711_v12 = vmul.f32 0.35355338, %v707_v11  ;;  %v14930_v13 = vpop.f32.mrb[7].mxu1  ;;  %v1046_v14 = vsel %vm17571_vm6, %v1045_v9, -1000000.0 }
 0x6bd   :  { %v1224_v15 = vpop.f32.mrb[6].mxu0  ;;  %v1047_v16 = vsel %vm469_vm5, %v1046_v14, -inf }
 0x6be   :  { %v1228_v17 = vmul.f32 0.35355338, %v1224_v15  ;;  %1048 = vmax.xlane.f32.xlu0 %v1047_v16  ;;  %v14960_v19 = vpop.f32.mrb[7].mxu0  ;;  %v17654_v21 = vsel %vm17571_vm6, %v711_v12, -1000000.0 }
 0x6bf   :  { %v713_v22 = vsel %vm469_vm5, %v17654_v21, -inf }
 0x6c0   :  { %714 = vmax.xlane.f32.xlu1 %v713_v22  ;;  %v1229_v23 = vsel %vm17571_vm6, %v1228_v17, -1000000.0 }
 0x6c1   :  { %v1391_v24 = vpop.f32.mrb[8].mxu0  ;;  %v1230_v27 = vsel %vm469_vm5, %v1229_v23, -inf }
 0x6c2   :  { %v1395_v25 = vmul.f32 0.35355338, %v1391_v24  ;;  %v14970_v26 = vpop.f32.mrb[9].mxu0 }
 0x6c4   :  { %1231 = vmax.xlane.f32.xlu1 %v1230_v27  ;;  %v1396_v28 = vsel %vm17571_vm6, %v1395_v25, -1000000.0 }
 0x6c5   :  { %v1558_v29 = vpop.f32.mrb[10].mxu0  ;;  %v1397_v30 = vsel %vm469_vm5, %v1396_v28, -inf }
 0x6c6   :  { %v1562_v35 = vmul.f32 0.35355338, %v1558_v29  ;;  %1398 = vmax.xlane.f32.xlu0 %v1397_v30  ;;  %v14980_v38 = vpop.f32.mrb[11].mxu0 }
 0x6c8   :  { %v1563_v39 = vsel %vm17571_vm6, %v1562_v35, -1000000.0 }
 0x6c9   :  { %v1725_v40 = vpop.f32.mrb[12].mxu0  ;;  %v1564_v41 = vsel %vm469_vm5, %v1563_v39, -inf }
 0x6ca   :  { %v1729_v42 = vmul.f32 0.35355338, %v1725_v40  ;;  %v14990_v43 = vpop.f32.mrb[13].mxu0  ;;  %1565 = vmax.xlane.f32.xlu1 %v1564_v41 }
 0x6cc   :  { %v1730_v44 = vsel %vm17571_vm6, %v1729_v42, -1000000.0 }
 0x6cd   :  { %v1731_v45 = vsel %vm469_vm5, %v1730_v44, -inf }
 0x6ce   :  { %1732 = vmax.xlane.f32.xlu0 %v1731_v45 }
 0x747   :  { %v882_v46 = vpop.xlane.xlu0 %881 }
 0x748   :  { %v883_v47 = vsub.f32 %v879_v6, %v882_v46 }
 0x74a   :  { %v884_v48 = vmul.f32 1.442695, %v883_v47 }
 0x74b   :  { %v1049_v49 = vpop.xlane.xlu0 %1048 }
 0x74c   :  { %16476 = vpow2.f32 %v884_v48  ;;  %v1050_v50 = vsub.f32 %v1046_v14, %v1049_v49 }
 0x74d   :  { %v715_v51 = vpop.xlane.xlu1 %714 }
 0x74e   :  { %v1051_v52 = vmul.f32 1.442695, %v1050_v50  ;;  %v716_v14 = vsub.f32 %v17654_v21, %v715_v51 }
 0x750   :  { %16478 = vpow2.f32 %v1051_v52  ;;  %v717_v15 = vmul.f32 1.442695, %v716_v14 }
 0x751   :  { %v1232_v53 = vpop.xlane.xlu1 %1231 }
 0x752   :  { %v1233_v54 = vsub.f32 %v1229_v23, %v1232_v53 }
 0x753   :  { %v1399_v55 = vpop.xlane.xlu0 %1398 }
 0x754   :  { %v1234_v56 = vmul.f32 1.442695, %v1233_v54  ;;  %v1400_v57 = vsub.f32 %v1396_v28, %v1399_v55  ;;  %v380_v54 = vld [vmem:[%s19560_s2] sm:$0xff]  ;;  %v381_v55 = vld [vmem:[%s19560_s2 + $0x8] sm:$0xff] }
 0x756   :  { %v17670_v58 = vpop.eup %16476  ;;  %16480 = vpow2.f32 %v1234_v56  ;;  %v1401_v59 = vmul.f32 1.442695, %v1400_v57  ;;  %v15952_v57 = vpack.c.bf16 %v381_v55, %v380_v54  ;;  %v17120_v54 = vmov 0.0|0.0  }
 0x757   :  { %v1566_v60 = vpop.xlane.xlu1 %1565  ;;  %v886_v61 = vsel %vm469_vm5, %v17670_v58, 0.0 }
 0x758   :  { %16482 = vpow2.f32 %v1401_v59  ;;  %v1567_v62 = vsub.f32 %v1563_v39, %v1566_v60  ;;  %887 = vadd.xlane.f32.xlu0 %v886_v61  ;;  %15953 = vmatprep.subr.bf16.mxu0 %v15952_v57  ;;  %v382_v59 = vld [vmem:[%s19560_s2 + $0x10] sm:$0xff]  ;;  %v383_v60 = vld [vmem:[%s19560_s2 + $0x18] sm:$0xff] }
 0x759   :  { %15955 = vmatpush3.bf16.msra.mxu0 %v15952_v57 }
 0x75a   :  { %v17674_v63 = vpop.eup %16478  ;;  %v1568_v0 = vmul.f32 1.442695, %v1567_v62  ;;  %v15956_v62 = vpack.c.bf16 %v383_v60, %v382_v59 }
 0x75b   :  { %v1733_v1 = vpop.xlane.xlu0 %1732  ;;  %v1053_v2 = vsel %vm469_vm5, %v17674_v63, 0.0 }
 0x75c   :  { %16484 = vpow2.f32 %v1568_v0  ;;  %v1734_v3 = vsub.f32 %v1730_v44, %v1733_v1  ;;  %1054 = vadd.xlane.f32.xlu1 %v1053_v2  ;;  %15957 = vmatprep.subr.bf16.mxu0 %v15956_v62 }
 0x75d   :  { %15959 = vmatpush3.bf16.msra.mxu0 %v15956_v62  ;;  %v374_v62 = vld [vmem:[%s19505_s22] sm:$0xf] }
 0x75e   :  { %v1735_v5 = vmul.f32 1.442695, %v1734_v3 }
 0x760   :  { %v17678_v6 = vpop.eup %16480  ;;  %16486 = vpow2.f32 %v1735_v5 }
 0x761   :  { %v1236_v7 = vsel %vm469_vm5, %v17678_v6, 0.0  ;;  %16488 = vpow2.f32 %v717_v15 }
 0x762   :  { %v17682_v8 = vpop.eup %16482  ;;  %1237 = vadd.xlane.f32.xlu0 %v1236_v7 }
 0x763   :  { %v1403_v9 = vsel %vm469_vm5, %v17682_v8, 0.0 }
 0x764   :  { %1404 = vadd.xlane.f32.xlu1 %v1403_v9 }
 0x766   :  { %v17686_v10 = vpop.eup %16484 }
 0x767   :  { %v1570_v11 = vsel %vm469_vm5, %v17686_v10, 0.0 }
 0x768   :  { %1571 = vadd.xlane.f32.xlu0 %v1570_v11 }
 0x76a   :  { %v17690_v12 = vpop.eup %16486 }
 0x76b   :  { %v1737_v13 = vsel %vm469_vm5, %v17690_v12, 0.0  ;;  %v16489_v16 = vpop.eup %16488 }
 0x76c   :  { %1738 = vadd.xlane.f32.xlu1 %v1737_v13  ;;  %v719_v17 = vsel %vm469_vm5, %v16489_v16, 0.0 }
 0x77d   :  { %891 = vrot.lane.b32.xlu1 %v17557_v34, %s19526_s8 }
 0x77e   :  { %724 = vrot.lane.b32.xlu0 %v17557_v34, %s17116_s5 }
 0x782   :  { %1241 = vrot.lane.b32.xlu0 %v17555_v33, %s17102_s20 }
 0x786   :  { %1575 = vrot.lane.b32.xlu0 %v17555_v33, %s19526_s8  ;;  %s5481_s8 = sld [smem:[#allocation4]] }
 0x7a1   :  { %720 = vadd.xlane.f32.xlu1 %v719_v17 }
 0x7b2   :  { %1058 = vrot.lane.b32.xlu1 %v17557_v34, %s19528_s1 }
 0x7b6   :  { %1408 = vrot.lane.b32.xlu1 %v17555_v33, %s17116_s5 }
 0x7ba   :  { %1742 = vrot.lane.b32.xlu1 %v17555_v33, %s19528_s1  ;;  %s3816_s1 = sld [smem:[#allocation5]] }
 0x7e5   :  { %v888_v19 = vpop.xlane.xlu0 %887 }
 0x7e9   :  { %v1055_v24 = vpop.xlane.xlu1 %1054 }
 0x7ef   :  { %v1238_v22 = vpop.xlane.xlu0 %1237 }
 0x7f1   :  { %v1405_v25 = vpop.xlane.xlu1 %1404 }
 0x7f5   :  { %v1572_v23 = vpop.xlane.xlu0 %1571 }
 0x7f9   :  { %v725_v21 = vpop.permute.xlu0 %724  ;;  %v1739_v26 = vpop.xlane.xlu1 %1738 }
 0x7fa   :  { %14932 = vmatpush3.msra.mxu1 %v725_v21 }
 0x7fb   :  { %14941 = vmatprep.subr.mxu1 %v17106_v18 }
 0x7fd   :  { %v892_v27 = vpop.permute.xlu1 %891  ;;  %v1242_v41 = vpop.permute.xlu0 %1241 }
 0x801   :  { %v1576_v47 = vpop.permute.xlu0 %1575 }
 0x82e   :  { %v721_v28 = vpop.xlane.xlu1 %720 }
 0x82f   :  { %16490 = vrcp.f32 %v721_v28  ;;  %v1959_v28 = vld [vmem:[%s19561_s9] sm:$0xff] }
 0x830   :  { %16492 = vrcp.f32 %v888_v19 }
 0x831   :  { %16494 = vrcp.f32 %v1055_v24 }
 0x832   :  { %16496 = vrcp.f32 %v1238_v22  ;;  %v1059_v38 = vpop.permute.xlu1 %1058 }
 0x833   :  { %16498 = vrcp.f32 %v1405_v25 }
 0x834   :  { %16500 = vrcp.f32 %v1572_v23 }
 0x835   :  { %16502 = vrcp.f32 %v1739_v26 }
 0x836   :  { %v1409_v44 = vpop.permute.xlu1 %1408 }
 0x839   :  { %v16491_v34 = vpop.eup %16490 }
 0x83a   :  { %v723_v29 = vmul.f32 %v16491_v34, %v16489_v16  ;;  %v16493_v30 = vpop.eup %16492  ;;  %v1743_v50 = vpop.permute.xlu1 %1742  ;;  %v1960_v34 = vld [vmem:[%s19561_s9 + $0x8] sm:$0xff] }
 0x83b   :  { %v890_v33 = vmul.f32 %v16493_v30, %v17670_v58  ;;  %v16495_v35 = vpop.eup %16494 }
 0x83c   :  { %14934 = vmatmul.mubr.msk.f32.vlgmr.msra.gmra.mrb[8].mxu1 %vm469_vm5, %v723_v29  ;;  %v1057_v39 = vmul.f32 %v16495_v35, %v17674_v63  ;;  %v16497_v40 = vpop.eup %16496  ;;  %v15968_v29 = vpack.c.bf16 %v1960_v34, %v1959_v28 }
 0x83d   :  { %14942 = vmatpush3.msra.mxu1 %v892_v27  ;;  %14943 = vmatprep.mubr.msk.f32.mxu1 %vm17107_vm4, %v17106_v18  ;;  %v1240_v42 = vmul.f32 %v16497_v40, %v17678_v6  ;;  %v16499_v43 = vpop.eup %16498 }
 0x83e   :  { %14951 = vmatprep.subr.mxu1 %v17106_v18  ;;  %v1407_v45 = vmul.f32 %v16499_v43, %v17682_v8  ;;  %v16501_v46 = vpop.eup %16500  ;;  %15969 = vmatprep.subr.bf16.mxu0 %v15968_v29  ;;  %v1961_v43 = vld [vmem:[%s19561_s9 + $0x10] sm:$0xff] }
 0x83f   :  { %v1574_v48 = vmul.f32 %v16501_v46, %v17686_v10  ;;  %v16503_v49 = vpop.eup %16502  ;;  %v363_v46 = vld [vmem:[#allocation6] sm:$0xff] }
 0x840   :  { %14944 = vmatmul.mubr.msk.f32.vlgmr.msra.gmra.mrb[10].mxu1 %vm469_vm5, %v890_v33  ;;  %v1741_v51 = vmul.f32 %v16503_v49, %v17690_v12  ;;  %v1956_v49 = vld [vmem:[%s19562_s11 + $0x8] sm:$0xff] }
 0x841   :  { %14952 = vmatpush3.msra.mxu1 %v1059_v38  ;;  %14953 = vmatprep.mubr.msk.f32.mxu1 %vm17107_vm4, %v17106_v18 }
 0x842   :  { %14961 = vmatprep.subr.mxu1 %v17106_v18 }
 0x844   :  { %14954 = vmatmul.mubr.msk.f32.vlgmr.msra.gmra.mrb[12].mxu1 %vm469_vm5, %v1057_v39 }
 0x845   :  { %14962 = vmatpush3.msra.mxu1 %v1242_v41  ;;  %14963 = vmatprep.mubr.msk.f32.mxu1 %vm17107_vm4, %v17106_v18 }
 0x846   :  { %14971 = vmatprep.subr.mxu1 %v17106_v18 }
 0x848   :  { %14964 = vmatmul.mubr.msk.f32.vlgmr.msra.gmra.mrb[14].mxu1 %vm469_vm5, %v1240_v42 }
 0x849   :  { %14972 = vmatpush3.msra.mxu1 %v1409_v44  ;;  %14973 = vmatprep.mubr.msk.f32.mxu1 %vm17107_vm4, %v17106_v18  ;;  %v1962_v44 = vld [vmem:[%s19561_s9 + $0x18] sm:$0xff] }
 0x84a   :  { %14981 = vmatprep.subr.mxu1 %v17106_v18 }
 0x84c   :  { %14974 = vmatmul.mubr.msk.f32.vlgmr.msra.gmra.mrb[16].mxu1 %vm469_vm5, %v1407_v45  ;;  %v15972_v45 = vpack.c.bf16 %v1962_v44, %v1961_v43 }
 0x84d   :  { %14982 = vmatpush3.msra.mxu1 %v1576_v47  ;;  %14983 = vmatprep.mubr.msk.f32.mxu1 %vm17107_vm4, %v17106_v18  ;;  %v364_v47 = vld [vmem:[#allocation6 + $0x8] sm:$0xff] }
 0x84e   :  { %14991 = vmatprep.subr.mxu1 %v17106_v18 }
 0x850   :  { %14984 = vmatmul.mubr.msk.f32.vlgmr.msra.gmra.mrb[18].mxu1 %vm469_vm5, %v1574_v48  ;;  %v1955_v48 = vld [vmem:[%s19562_s11] sm:$0xff] }
 0x851   :  { %14992 = vmatpush3.msra.mxu1 %v1743_v50  ;;  %14993 = vmatprep.mubr.msk.f32.mxu1 %vm17107_vm4, %v17106_v18  ;;  %v15960_v50 = vpack.c.bf16 %v1956_v49, %v1955_v48 }
 0x853   :  { %15961 = vmatprep.subr.bf16.mxu1 %v15960_v50 }
 0x854   :  { %14994 = vmatmul.mubr.msk.f32.vlgmr.msra.gmra.mrb[20].mxu1 %vm469_vm5, %v1741_v51  ;;  %v1957_v51 = vld [vmem:[%s19562_s11 + $0x10] sm:$0xff] }
 0x855   :  { %15963 = vmatpush3.bf16.msra.mxu1 %v15960_v50 }
 0x90f   :  { %v796_v52 = vpop.f32.mrb[8].mxu1 }
 0x910   :  { %1135 = vrot.lane.b32.xlu0 %v796_v52, %s17092_s10  ;;  %v14935_v53 = vpop.f32.mrb[9].mxu1  ;;  %v1958_v52 = vld [vmem:[%s19562_s11 + $0x18] sm:$0xff] }
 0x911   :  { %v15964_v53 = vpack.c.bf16 %v1958_v52, %v1957_v51 }
 0x913   :  { %v963_v56 = vpop.f32.mrb[10].mxu1  ;;  %15965 = vmatprep.subr.bf16.mxu1 %v15964_v53 }
 0x914   :  { %1139 = vrot.lane.b32.xlu1 %v963_v56, %s19532_s6  ;;  %v14945_v58 = vpop.f32.mrb[11].mxu1  ;;  %15967 = vmatpush3.bf16.msra.mxu1 %v15964_v53 }
 0x915   :  { %15976 = vmatprep.subr.bf16.mxu1 %v17120_v54 }
 0x917   :  { %v1130_v61 = vpop.f32.mrb[12].mxu1 }
 0x918   :  { %1143 = vrot.lane.b32.xlu1 %v1130_v61, %s19530_s0  ;;  %v14955_v63 = vpop.f32.mrb[13].mxu1  ;;  %v17803_v61 = vsub.s32 0, %v17567_v36 }
 0x919   :  { %v375_v63 = vld [vmem:[#allocation22] sm:$0xf] }
 0x91b   :  { %v1313_v0 = vpop.f32.mrb[14].mxu1 }
 0x91c   :  { %v14965_v1 = vpop.f32.mrb[15].mxu1 }
 0x91f   :  { %v1480_v2 = vpop.f32.mrb[16].mxu1 }
 0x920   :  { %1819 = vrot.lane.b32.xlu0 %v1480_v2, %s17092_s10  ;;  %v14975_v3 = vpop.f32.mrb[17].mxu1 }
 0x921   :  { %v1952_v3 = vrot.slane %v375_v63, %v17803_v61 }
 0x923   :  { %v1647_v5 = vpop.f32.mrb[18].mxu1 }
 0x924   :  { %1823 = vrot.lane.b32.xlu0 %v1647_v5, %s19532_s6  ;;  %v14985_v6 = vpop.f32.mrb[19].mxu1 }
 0x927   :  { %v1814_v7 = vpop.f32.mrb[20].mxu1 }
 0x928   :  { %1827 = vrot.lane.b32.xlu1 %v1814_v7, %s19530_s0  ;;  %v14995_v8 = vpop.f32.mrb[21].mxu1 }
 0x982   :  { %v1136_v9 = vpop.permute.xlu0 %1135 }
 0x983   :  { %v1146_v11 = vsel %vm469_vm5, %v17644_v4, %v1136_v9 }
 0x986   :  { %v1140_v10 = vpop.permute.xlu1 %1139 }
 0x987   :  { %v1148_v12 = vsel %vm1147_vm7, %v1146_v11, %v1140_v10 }
 0x98a   :  { %v1144_v13 = vpop.permute.xlu1 %1143 }
 0x98b   :  { %v1150_v14 = vsel %vm1149_vm8, %v1148_v12, %v1144_v13 }
 0x98c   :  { %15004 = vmatprep.mubr.msk.f32.mxu0 %vm384_vm3, %v1150_v14 }
 0x992   :  { %v1820_v15 = vpop.permute.xlu0 %1819 }
 0x993   :  { %v1830_v17 = vsel %vm469_vm5, %v1313_v0, %v1820_v15  ;;  %v1946_v0 = vrot.slane %v374_v62, %v17803_v61 }
 0x996   :  { %v1824_v16 = vpop.permute.xlu0 %1823 }
 0x997   :  { %v1831_v19 = vsel %vm1147_vm7, %v1830_v17, %v1824_v16  ;;  %v365_v16 = vld [vmem:[#allocation6 + $0x10] sm:$0xff]  ;;  %v366_v17 = vld [vmem:[#allocation6 + $0x18] sm:$0xff] }
 0x99a   :  { %v1828_v22 = vpop.permute.xlu1 %1827 }
 0x99b   :  { %v1832_v23 = vsel %vm1149_vm8, %v1831_v19, %v1828_v22 }
 0x99c   :  { %15005 = vmatmul.mubr.msk.f32.vlgmr.msra.gmra.mrb[14].mxu0 %vm384_vm3, %v1832_v23 }
 0x99d   :  { %15971 = vmatpush3.bf16.msra.mxu0 %v15968_v29  ;;  %15026 = vmatprep.mubr.msk.f32.mxu0 %vm384_vm3, %v363_v46 }
 0x99e   :  { %15973 = vmatprep.subr.bf16.mxu0 %v15972_v45 }
 0x9a1   :  { %15975 = vmatpush3.bf16.msra.mxu0 %v15972_v45 }
 0x9a2   :  { %15983 = vmatprep.subr.bf16.mxu0 %v17120_v54 }
 0x9a4   :  { %15027 = vmatmul.mubr.msk.f32.vlgmr.msra.gmra.mrb[16].mxu0 %vm384_vm3, %v364_v47 }
 0x9a5   :  { %15029 = vmatprep.mubr.msk.f32.mxu0 %vm384_vm3, %v365_v16 }
 0x9a8   :  { %15030 = vmatmul.mubr.msk.f32.gmra.mrb[18].mxu0 %vm384_vm3, %v366_v17 }
 0x9a9   :  { %15050 = vmatprep.mubr.msk.f32.mxu0 %vm17107_vm4, %v17106_v18 }
 0xa6f   :  { %v15006_v21 = vpop.f32.mrb[14].mxu0 }
 0xa70   :  { %v1915_v4 = vadd.f32 %v15006_v21, %v17545_v32  ;;  %v1905_v24 = vpop.f32.mrb[15].mxu0 }
 0xa71   :  { %v1914_v25 = vadd.f32 %v1905_v24, %v17543_v31 }
 0xa72   :  { %v1919_v26 = vsel %vm384_vm3, %v1915_v4, 0.0 }
 0xa73   :  { %1920 = vadd.xlane.f32.xlu1 %v1919_v26  ;;  %v1916_v27 = vsel %vm384_vm3, %v1914_v25, 0.0 }
 0xa74   :  { %1917 = vadd.xlane.f32.xlu0 %v1916_v27 }
 0xa77   :  { %v15028_v11 = vpop.f32.mrb[16].mxu0 }
 0xa78   :  { %v2126_v12 = vpop.f32.mrb[17].mxu0 }
 0xa79   :  { %v17826_v14 = vpack.i.bf16 %v15028_v11, %v2126_v12  ;;  %v15977_v15 = vpack.c.bf16 %v15028_v11, %v2126_v12 }
 0xa84   :  { %16333 = vrot.lane.b32.xlu1 %v17826_v14, %s17110_s3 }
 0xa88   :  { %16338 = vrot.lane.b32.xlu1 %v17826_v14, %s17111_s4 }
 0xb00   :  { %v1921_v32 = vpop.xlane.xlu1 %1920 }
 0xb01   :  { %v1924_v30 = vmul.f32 0.03125, %v1921_v32  ;;  %v1918_v31 = vpop.xlane.xlu0 %1917 }
 0xb02   :  { %v1923_v33 = vmul.f32 0.03125, %v1918_v31 }
 0xb03   :  { %v1926_v35 = vsub.f32 %v1915_v4, %v1924_v30 }
 0xb04   :  { %v1925_v38 = vsub.f32 %v1914_v25, %v1923_v33  ;;  %v16334_v19 = vpop.permute.xlu1 %16333  ;;  %v17854_v25 = vpop.f32.mrb[18].mxu0 }
 0xb05   :  { %v1928_v41 = vmul.f32 %v1926_v35, %v1926_v35  ;;  %v16336_v22 = vunpack.i.h.bf16 %v16334_v19  ;;  %v16335_v23 = vunpack.i.l.bf16 %v16334_v19  ;;  %v17856_v26 = vpop.f32.mrb[19].mxu0 }
 0xb06   :  { %v1927_v39 = vmul.f32 %v1925_v38, %v1925_v38  ;;  %v17869_v31 = vpack.i.bf16 %v17854_v25, %v17856_v26  ;;  %v16005_v33 = vpack.c.bf16 %v17854_v25, %v17856_v26 }
 0xb07   :  { %v1932_v42 = vsel %vm384_vm3, %v1928_v41, 0.0  ;;  %v15984_v21 = vpack.c.bf16 %v16336_v22, %v16335_v23 }
 0xb08   :  { %v1929_v40 = vsel %vm384_vm3, %v1927_v39, 0.0  ;;  %v16339_v27 = vpop.permute.xlu1 %16338 }
 0xb09   :  { %1930 = vadd.xlane.f32.xlu0 %v1929_v40  ;;  %15986 = vmatpush3.bf16.xpose.msk.msra.mxu0 %vm17822_vm9, %v15984_v21  ;;  %v16341_v28 = vunpack.i.h.bf16 %v16339_v27  ;;  %v16340_v34 = vunpack.i.l.bf16 %v16339_v27 }
 0xb0a   :  { %15990 = vmatprep.subr.bf16.mxu0 %v17120_v54 }
 0xb0b   :  { %v15991_v29 = vpack.c.bf16 %v16341_v28, %v16340_v34 }
 0xb0d   :  { %1933 = vadd.xlane.f32.xlu0 %v1932_v42 }
 0xb96   :  { %v1931_v55 = vpop.xlane.xlu0 %1930 }
 0xb97   :  { %v1935_v56 = vmul.f32 0.03125, %v1931_v55 }
 0xb99   :  { %v1937_v57 = vadd.f32 1e-05, %v1935_v56 }
 0xb9a   :  { %v1934_v58 = vpop.xlane.xlu0 %1933 }
 0xb9b   :  { %16504 = vrsqrt.f32 %v1937_v57  ;;  %v1936_v59 = vmul.f32 0.03125, %v1934_v58 }
 0xb9d   :  { %v1938_v60 = vadd.f32 1e-05, %v1936_v59 }
 0xb9f   :  { %16506 = vrsqrt.f32 %v1938_v60 }
 0xba5   :  { %v16505_v1 = vpop.eup %16504 }
 0xba6   :  { %v1941_v2 = vmul.f32 %v16505_v1, %v1925_v38 }
 0xba8   :  { %v1947_v5 = vmul.f32 %v1946_v0, %v1941_v2 }
 0xba9   :  { %v16507_v6 = vpop.eup %16506 }
 0xbaa   :  { %v1942_v7 = vmul.f32 %v16507_v6, %v1926_v35  ;;  %v17810_v8 = vadd.f32 %v1952_v3, %v1947_v5  ;;  %v2146_v35 = vstv %s2145_s23 }
 0xbab   :  { %vm17874_vm10 = vcmp.lt.s32.totalorder %v17525_v20, %v2146_v35 }
 0xbac   :  { %v1948_v9 = vmul.f32 %v1946_v0, %v1942_v7  ;;  %15015 = vmatprep.mubr.msk.f32.mxu1 %vm384_vm3, %v17810_v8 }
 0xbae   :  { %v17814_v10 = vadd.f32 %v1952_v3, %v1948_v9 }
 0xbb0   :  { %15016 = vmatmul.mubr.msk.f32.vlgmr.msra.gmra.mrb[22].mxu1 %vm384_vm3, %v17814_v10 }
 0xbb1   :  { %15036 = vmatprep.mubr.msk.f32.mxu1 %vm17107_vm4, %v17106_v18  ;;  %15979 = vmatpush3.bf16.xpose.msk.msra.mxu1 %vm17822_vm9, %v15977_v15 }
 0xbb2   :  { %15980 = vmatprep.subr.bf16.mxu1 %v17120_v54 }
 0xc83   :  { %v17842_v4 = vpop.f32.mrb[22].mxu1 }
 0xc84   :  { %v17844_v24 = vpop.f32.mrb[23].mxu1 }
 0xc85   :  { %2496 = vrot.lane.b32.xlu1 %v17844_v24, %s17111_s4  ;;  %2322 = vrot.lane.b32.xlu0 %v17844_v24, %s17110_s3 }
 0xc86   :  { %15037 = vmatmul.mubr.msk.f32.vlgmr.msra.gmra.mrb[24].mxu1 %vm469_vm5, %v17844_v24 }
 0xc87   :  { %15043 = vmatprep.mubr.msk.f32.mxu1 %vm17107_vm4, %v17106_v18 }
 0xcf7   :  { %v2323_v32 = vpop.permute.xlu0 %2322  ;;  %v2497_v30 = vpop.permute.xlu1 %2496 }
 0xcf8   :  { %15051 = vmatmul.mubr.msk.f32.vlgmr.msra.gmra.mrb[20].mxu0 %vm469_vm5, %v2323_v32 }
 0xcf9   :  { %15993 = vmatpush3.bf16.xpose.msk.msra.mxu0 %vm17822_vm9, %v15991_v29  ;;  %15064 = vmatprep.mubr.msk.f32.mxu0 %vm17107_vm4, %v17106_v18 }
 0xcfa   :  { %16001 = vmatprep.subr.bf16.mxu0 %v17120_v54 }
 0xd00   :  { %15065 = vmatmul.mubr.msk.f32.vlgmr.msra.gmra.mrb[22].mxu0 %vm469_vm5, %v2497_v30 }
 0xd01   :  { %15085 = vmatprep.mubr.msk.f32.mxu0 %vm17107_vm4, %v17106_v18 }
 0xd59   :  { %v2226_v38 = vpop.f32.mrb[24].mxu1 }
 0xd5a   :  { %v2230_v40 = vmul.f32 0.35355338, %v2226_v38  ;;  %v15038_v41 = vpop.f32.mrb[25].mxu1 }
 0xd5c   :  { %v2231_v42 = vsel %vm17874_vm10, %v2230_v40, -1000000.0 }
 0xd5d   :  { %v2232_v43 = vsel %vm1147_vm7, %v2231_v42, -inf }
 0xd5e   :  { %2233 = vmax.xlane.f32.xlu0 %v2232_v43 }
 0xdcb   :  { %v2400_v44 = vpop.f32.mrb[20].mxu0 }
 0xdcc   :  { %v2404_v45 = vmul.f32 0.35355338, %v2400_v44  ;;  %v15052_v46 = vpop.f32.mrb[21].mxu0 }
 0xdce   :  { %v2405_v47 = vsel %vm17874_vm10, %v2404_v45, -1000000.0 }
 0xdcf   :  { %v2406_v48 = vsel %vm1147_vm7, %v2405_v47, -inf }
 0xdd0   :  { %2407 = vmax.xlane.f32.xlu1 %v2406_v48 }
 0xdd3   :  { %v2574_v49 = vpop.f32.mrb[22].mxu0 }
 0xdd4   :  { %v2578_v50 = vmul.f32 0.35355338, %v2574_v49  ;;  %v15066_v51 = vpop.f32.mrb[23].mxu0 }
 0xdd6   :  { %v2579_v52 = vsel %vm17874_vm10, %v2578_v50, -1000000.0 }
 0xdd7   :  { %v2580_v53 = vsel %vm1147_vm7, %v2579_v52, -inf }
 0xdd8   :  { %2581 = vmax.xlane.f32.xlu0 %v2580_v53 }
 0xde1   :  { %16343 = vrot.lane.b32.xlu1 %v17826_v14, %s17108_s14 }
 0xdeb   :  { %v2234_v55 = vpop.xlane.xlu0 %2233 }
 0xdec   :  { %v2235_v56 = vsub.f32 %v2231_v42, %v2234_v55 }
 0xdee   :  { %v2236_v57 = vmul.f32 1.442695, %v2235_v56 }
 0xdf0   :  { %16508 = vpow2.f32 %v2236_v57 }
 0xdfa   :  { %v16509_v58 = vpop.eup %16508 }
 0xdfb   :  { %v2238_v59 = vsel %vm1147_vm7, %v16509_v58, 0.0 }
 0xdfc   :  { %2239 = vadd.xlane.f32.xlu0 %v2238_v59 }
 0xe5d   :  { %v2408_v60 = vpop.xlane.xlu1 %2407 }
 0xe5e   :  { %v2409_v62 = vsub.f32 %v2405_v47, %v2408_v60 }
 0xe60   :  { %v2410_v63 = vmul.f32 1.442695, %v2409_v62 }
 0xe61   :  { %v16344_v0 = vpop.permute.xlu1 %16343 }
 0xe62   :  { %16510 = vpow2.f32 %v2410_v63  ;;  %v16346_v1 = vunpack.i.h.bf16 %v16344_v0  ;;  %v16345_v2 = vunpack.i.l.bf16 %v16344_v0 }
 0xe64   :  { %v15981_v3 = vpack.c.bf16 %v16346_v1, %v16345_v2 }
 0xe65   :  { %v2582_v5 = vpop.xlane.xlu0 %2581 }
 0xe66   :  { %v2583_v6 = vsub.f32 %v2579_v52, %v2582_v5  ;;  %15982 = vmatpush3.bf16.msra.mxu1 %v15981_v3 }
 0xe67   :  { %15987 = vmatprep.subr.bf16.mxu1 %v17120_v54 }
 0xe68   :  { %v2584_v7 = vmul.f32 1.442695, %v2583_v6 }
 0xe6a   :  { %16512 = vpow2.f32 %v2584_v7 }
 0xe6c   :  { %v16511_v9 = vpop.eup %16510 }
 0xe6d   :  { %v2412_v11 = vsel %vm1147_vm7, %v16511_v9, 0.0 }
 0xe6e   :  { %2413 = vadd.xlane.f32.xlu1 %v2412_v11 }
 0xe74   :  { %v16513_v12 = vpop.eup %16512 }
 0xe75   :  { %v2586_v15 = vsel %vm1147_vm7, %v16513_v12, 0.0 }
 0xe76   :  { %2587 = vadd.xlane.f32.xlu0 %v2586_v15 }
 0xe7f   :  { %16353 = vrot.lane.b32.xlu1 %v17826_v14, %s17113_s18 }
 0xe83   :  { %16358 = vrot.lane.b32.xlu1 %v17826_v14, %s17112_s17 }
 0xe89   :  { %v2240_v16 = vpop.xlane.xlu0 %2239 }
 0xe8a   :  { %16514 = vrcp.f32 %v2240_v16 }
 0xe8c   :  { %16348 = vrot.lane.b32.xlu0 %v17826_v14, %s17109_s30 }
 0xe90   :  { %2670 = vrot.lane.b32.xlu0 %v17844_v24, %s17112_s17 }
 0xe94   :  { %v16515_v17 = vpop.eup %16514 }
 0xe95   :  { %v2242_v19 = vmul.f32 %v16515_v17, %v16509_v58 }
 0xe97   :  { %15044 = vmatmul.mubr.msk.f32.vlgmr.msra.gmra.mrb[26].mxu1 %vm1147_vm7, %v2242_v19 }
 0xe98   :  { %15057 = vmatprep.mubr.msk.f32.mxu1 %vm17107_vm4, %v17106_v18 }
 0xefb   :  { %v2414_v22 = vpop.xlane.xlu1 %2413 }
 0xefc   :  { %16516 = vrcp.f32 %v2414_v22 }
 0xeff   :  { %v16354_v21 = vpop.permute.xlu1 %16353 }
 0xf00   :  { %v16356_v32 = vunpack.i.h.bf16 %v16354_v21  ;;  %v16355_v30 = vunpack.i.l.bf16 %v16354_v21 }
 0xf02   :  { %v15995_v40 = vpack.c.bf16 %v16356_v32, %v16355_v30 }
 0xf03   :  { %v2588_v23 = vpop.xlane.xlu0 %2587  ;;  %v16359_v41 = vpop.permute.xlu1 %16358 }
 0xf04   :  { %16518 = vrcp.f32 %v2588_v23  ;;  %v16361_v43 = vunpack.i.h.bf16 %v16359_v41  ;;  %v16360_v44 = vunpack.i.l.bf16 %v16359_v41 }
 0xf06   :  { %v16517_v29 = vpop.eup %16516  ;;  %v15998_v45 = vpack.c.bf16 %v16361_v43, %v16360_v44 }
 0xf07   :  { %v16349_v27 = vpop.permute.xlu0 %16348  ;;  %v2416_v24 = vmul.f32 %v16517_v29, %v16511_v9 }
 0xf08   :  { %v16351_v28 = vunpack.i.h.bf16 %v16349_v27  ;;  %v16350_v34 = vunpack.i.l.bf16 %v16349_v27 }
 0xf0a   :  { %v15988_v35 = vpack.c.bf16 %v16351_v28, %v16350_v34 }
 0xf0b   :  { %v2671_v46 = vpop.permute.xlu0 %2670 }
 0xf0c   :  { %15989 = vmatpush3.bf16.msra.mxu1 %v15988_v35 }
 0xf0d   :  { %15994 = vmatprep.subr.bf16.mxu1 %v17120_v54 }
 0xf0e   :  { %v16519_v38 = vpop.eup %16518 }
 0xf0f   :  { %15058 = vmatmul.mubr.msk.f32.vlgmr.msra.gmra.mrb[28].mxu1 %vm1147_vm7, %v2416_v24  ;;  %v2590_v42 = vmul.f32 %v16519_v38, %v16513_v12  ;;  %v2149_v12 = vstv %s14139_s24 }
 0xf10   :  { %15996 = vmatpush3.bf16.msra.mxu1 %v15995_v40  ;;  %15071 = vmatprep.mubr.msk.f32.mxu1 %vm17107_vm4, %v17106_v18  ;;  %vm17951_vm11 = vcmp.lt.s32.totalorder %v17525_v20, %v2149_v12 }
 0xf11   :  { %15997 = vmatprep.subr.bf16.mxu1 %v17120_v54 }
 0xf13   :  { %15072 = vmatmul.mubr.msk.f32.vlgmr.msra.gmra.mrb[30].mxu1 %vm1147_vm7, %v2590_v42 }
 0xf14   :  { %15078 = vmatprep.mubr.msk.f32.mxu1 %vm17107_vm4, %v17106_v18 }
 0xf19   :  { %16000 = vmatpush3.bf16.xpose.msk.msra.mxu1 %vm17822_vm9, %v15998_v45 }
 0xf1a   :  { %16008 = vmatprep.subr.bf16.mxu1 %v17120_v54 }
 0xf20   :  { %15079 = vmatmul.mubr.msk.f32.vlgmr.msra.gmra.mrb[32].mxu1 %vm469_vm5, %v2671_v46 }
 0xf21   :  { %15099 = vmatprep.mubr.msk.f32.mxu1 %vm17107_vm4, %v17106_v18 }
 0xf6a   :  { %v17918_v47 = vpop.f32.mrb[26].mxu1 }
 0xf6b   :  { %v15045_v48 = vpop.f32.mrb[27].mxu1 }
 0xfe2   :  { %v17920_v49 = vpop.f32.mrb[28].mxu1 }
 0xfe3   :  { %v15059_v50 = vpop.f32.mrb[29].mxu1 }
 0xfe6   :  { %v17922_v51 = vpop.f32.mrb[30].mxu1 }
 0xfe7   :  { %v15073_v52 = vpop.f32.mrb[31].mxu1 }
 0xff3   :  { %v2748_v53 = vpop.f32.mrb[32].mxu1 }
 0xff4   :  { %v2752_v55 = vmul.f32 0.35355338, %v2748_v53  ;;  %v15080_v56 = vpop.f32.mrb[33].mxu1 }
 0xff6   :  { %v2753_v57 = vsel %vm17874_vm10, %v2752_v55, -1000000.0 }
 0xff7   :  { %v2754_v58 = vsel %vm1147_vm7, %v2753_v57, -inf }
 0xff8   :  { %2755 = vmax.xlane.f32.xlu1 %v2754_v58 }
0x1085   :  { %v2756_v59 = vpop.xlane.xlu1 %2755 }
0x1086   :  { %v2757_v60 = vsub.f32 %v2753_v57, %v2756_v59 }
0x1088   :  { %v2758_v62 = vmul.f32 1.442695, %v2757_v60 }
0x108a   :  { %16520 = vpow2.f32 %v2758_v62 }
0x1094   :  { %v16521_v63 = vpop.eup %16520 }
0x1095   :  { %v2760_v0 = vsel %vm1147_vm7, %v16521_v63, 0.0 }
0x1096   :  { %2761 = vadd.xlane.f32.xlu0 %v2760_v0 }
0x10ac   :  { %16363 = vrot.lane.b32.xlu0 %v17826_v14, %s17114_s29 }
0x10b0   :  { %16373 = vrot.lane.b32.xlu0 %v17869_v31, %s17110_s3 }
0x10b4   :  { %3030 = vrot.lane.b32.xlu0 %v17842_v4, %s17110_s3 }
0x1123   :  { %v2762_v1 = vpop.xlane.xlu0 %2761 }
0x1124   :  { %16522 = vrcp.f32 %v2762_v1 }
0x1127   :  { %v16364_v2 = vpop.permute.xlu0 %16363 }
0x1128   :  { %v16366_v3 = vunpack.i.h.bf16 %v16364_v2  ;;  %v16365_v5 = vunpack.i.l.bf16 %v16364_v2 }
0x112a   :  { %v16002_v6 = vpack.c.bf16 %v16366_v3, %v16365_v5 }
0x112b   :  { %v16374_v35 = vpop.permute.xlu0 %16373 }
0x112c   :  { %16003 = vmatpush3.bf16.msra.mxu0 %v16002_v6  ;;  %v16376_v38 = vunpack.i.h.bf16 %v16374_v35  ;;  %v16375_v40 = vunpack.i.l.bf16 %v16374_v35 }
0x112d   :  { %16004 = vmatprep.subr.bf16.mxu0 %v17120_v54 }
0x112e   :  { %v16523_v7 = vpop.eup %16522  ;;  %v16012_v42 = vpack.c.bf16 %v16376_v38, %v16375_v40  ;;  %v3648_v40 = vld [vmem:[%s19499_s16] sm:$0xff] }
0x112f   :  { %v2764_v9 = vmul.f32 %v16523_v7, %v16521_v63  ;;  %v3031_v43 = vpop.permute.xlu0 %3030 }
0x1131   :  { %15086 = vmatmul.mubr.msk.f32.vlgmr.msra.gmra.mrb[24].mxu0 %vm1147_vm7, %v2764_v9 }
0x1132   :  { %15092 = vmatprep.mubr.msk.f32.mxu0 %vm17107_vm4, %v17106_v18 }
0x1135   :  { %16007 = vmatpush3.bf16.xpose.msk.msra.mxu0 %vm17822_vm9, %v16005_v33 }
0x1136   :  { %16015 = vmatprep.subr.bf16.mxu0 %v17120_v54 }
0x113c   :  { %15093 = vmatmul.mubr.msk.f32.vlgmr.msra.gmra.mrb[26].mxu0 %vm469_vm5, %v17842_v4 }
0x113d   :  { %15113 = vmatprep.mubr.msk.f32.mxu0 %vm17107_vm4, %v17106_v18 }
0x1204   :  { %v17948_v14 = vpop.f32.mrb[24].mxu0 }
0x1205   :  { %v15087_v11 = vpop.f32.mrb[25].mxu0 }
0x120f   :  { %v2934_v15 = vpop.f32.mrb[26].mxu0 }
0x1210   :  { %v2938_v26 = vmul.f32 0.35355338, %v2934_v15  ;;  %v15094_v33 = vpop.f32.mrb[27].mxu0 }
0x1212   :  { %v2939_v16 = vsel %vm17951_vm11, %v2938_v26, -1000000.0 }
0x1213   :  { %v2940_v17 = vsel %vm1147_vm7, %v2939_v16, -inf }
0x1214   :  { %2941 = vmax.xlane.f32.xlu1 %v2940_v17 }
0x12a1   :  { %v2942_v19 = vpop.xlane.xlu1 %2941 }
0x12a2   :  { %v2943_v22 = vsub.f32 %v2939_v16, %v2942_v19 }
0x12a4   :  { %v2944_v23 = vmul.f32 1.442695, %v2943_v22 }
0x12a6   :  { %16524 = vpow2.f32 %v2944_v23 }
0x12b0   :  { %v16525_v21 = vpop.eup %16524 }
0x12b1   :  { %v2946_v27 = vsel %vm1147_vm7, %v16525_v21, 0.0 }
0x12b2   :  { %2947 = vadd.xlane.f32.xlu1 %v2946_v27 }
0x12c3   :  { %16368 = vrot.lane.b32.xlu1 %v17869_v31, %s17108_s14 }
0x133f   :  { %v2948_v28 = vpop.xlane.xlu1 %2947 }
0x1340   :  { %16526 = vrcp.f32 %v2948_v28 }
0x1343   :  { %v16369_v34 = vpop.permute.xlu1 %16368 }
0x1344   :  { %v16371_v29 = vunpack.i.h.bf16 %v16369_v34  ;;  %v16370_v32 = vunpack.i.l.bf16 %v16369_v34 }
0x1346   :  { %v16009_v30 = vpack.c.bf16 %v16371_v29, %v16370_v32 }
0x1348   :  { %16010 = vmatpush3.bf16.msra.mxu1 %v16009_v30 }
0x1349   :  { %16011 = vmatprep.subr.bf16.mxu1 %v17120_v54 }
0x134a   :  { %v16527_v24 = vpop.eup %16526 }
0x134b   :  { %v2950_v41 = vmul.f32 %v16527_v24, %v16525_v21 }
0x134d   :  { %15100 = vmatmul.mubr.msk.f32.vlgmr.msra.gmra.mrb[34].mxu1 %vm1147_vm7, %v2950_v41  ;;  %v3649_v41 = vld [vmem:[%s19499_s16 + $0x8] sm:$0xff] }
0x134e   :  { %15106 = vmatprep.mubr.msk.f32.mxu1 %vm17107_vm4, %v17106_v18 }
0x1351   :  { %16014 = vmatpush3.bf16.xpose.msk.msra.mxu1 %vm17822_vm9, %v16012_v42 }
0x1352   :  { %16022 = vmatprep.subr.bf16.mxu1 %v17120_v54 }
0x1358   :  { %15107 = vmatmul.mubr.msk.f32.vlgmr.msra.gmra.mrb[36].mxu1 %vm469_vm5, %v3031_v43 }
0x1359   :  { %15127 = vmatprep.mubr.msk.f32.mxu1 %vm17107_vm4, %v17106_v18 }
0x1420   :  { %v17971_v44 = vpop.f32.mrb[34].mxu1 }
0x1421   :  { %v15101_v45 = vpop.f32.mrb[35].mxu1 }
0x1422   :  { %v16040_v45 = vpack.c.bf16 %v3649_v41, %v3648_v40 }
0x142b   :  { %v3108_v46 = vpop.f32.mrb[36].mxu1 }
0x142c   :  { %v3112_v48 = vmul.f32 0.35355338, %v3108_v46  ;;  %v15108_v50 = vpop.f32.mrb[37].mxu1 }
0x142d   :  { %v3651_v50 = vld [vmem:[%s19499_s16 + $0x18] sm:$0xff] }
0x142e   :  { %v3113_v52 = vsel %vm17951_vm11, %v3112_v48, -1000000.0  ;;  %v3650_v48 = vld [vmem:[%s19499_s16 + $0x10] sm:$0xff] }
0x142f   :  { %v3114_v53 = vsel %vm1147_vm7, %v3113_v52, -inf }
0x1430   :  { %3115 = vmax.xlane.f32.xlu1 %v3114_v53 }
0x1441   :  { %16383 = vrot.lane.b32.xlu1 %v17869_v31, %s17111_s4 }
0x1445   :  { %3204 = vrot.lane.b32.xlu1 %v17842_v4, %s17111_s4 }
0x14bd   :  { %v3116_v55 = vpop.xlane.xlu1 %3115 }
0x14be   :  { %v3117_v56 = vsub.f32 %v3113_v52, %v3116_v55  ;;  %v16044_v52 = vpack.c.bf16 %v3651_v50, %v3650_v48  ;;  %v370_v48 = vld [vmem:[#allocation10 + $0x8] sm:$0xff] }
0x14c0   :  { %v3118_v57 = vmul.f32 1.442695, %v3117_v56 }
0x14c1   :  { %v16384_v2 = vpop.permute.xlu1 %16383 }
0x14c2   :  { %16528 = vpow2.f32 %v3118_v57  ;;  %v16386_v5 = vunpack.i.h.bf16 %v16384_v2  ;;  %v16385_v6 = vunpack.i.l.bf16 %v16384_v2 }
0x14c4   :  { %v16019_v9 = vpack.c.bf16 %v16386_v5, %v16385_v6 }
0x14c5   :  { %v3205_v11 = vpop.permute.xlu1 %3204 }
0x14cc   :  { %v16529_v58 = vpop.eup %16528 }
0x14cd   :  { %v3120_v59 = vsel %vm1147_vm7, %v16529_v58, 0.0 }
0x14ce   :  { %3121 = vadd.xlane.f32.xlu0 %v3120_v59 }
0x14e4   :  { %16378 = vrot.lane.b32.xlu0 %v17869_v31, %s17109_s30 }
0x155b   :  { %v3122_v60 = vpop.xlane.xlu0 %3121 }
0x155c   :  { %16530 = vrcp.f32 %v3122_v60 }
0x155f   :  { %v16379_v62 = vpop.permute.xlu0 %16378 }
0x1560   :  { %v16381_v63 = vunpack.i.h.bf16 %v16379_v62  ;;  %v16380_v0 = vunpack.i.l.bf16 %v16379_v62 }
0x1562   :  { %v16016_v1 = vpack.c.bf16 %v16381_v63, %v16380_v0 }
0x1564   :  { %16017 = vmatpush3.bf16.msra.mxu0 %v16016_v1 }
0x1565   :  { %16018 = vmatprep.subr.bf16.mxu0 %v17120_v54 }
0x1566   :  { %v16531_v3 = vpop.eup %16530 }
0x1567   :  { %v3124_v7 = vmul.f32 %v16531_v3, %v16529_v58 }
0x1569   :  { %15114 = vmatmul.mubr.msk.f32.vlgmr.msra.gmra.mrb[28].mxu0 %vm1147_vm7, %v3124_v7 }
0x156a   :  { %15120 = vmatprep.mubr.msk.f32.mxu0 %vm17107_vm4, %v17106_v18 }
0x156d   :  { %16021 = vmatpush3.bf16.xpose.msk.msra.mxu0 %vm17822_vm9, %v16019_v9 }
0x156e   :  { %16029 = vmatprep.subr.bf16.mxu0 %v17120_v54 }
0x1574   :  { %15121 = vmatmul.mubr.msk.f32.vlgmr.msra.gmra.mrb[30].mxu0 %vm469_vm5, %v3205_v11 }
0x1575   :  { %15141 = vmatprep.mubr.msk.f32.mxu0 %vm17107_vm4, %v17106_v18 }
0x163c   :  { %v17993_v12 = vpop.f32.mrb[28].mxu0 }
0x163d   :  { %v15115_v15 = vpop.f32.mrb[29].mxu0 }
0x1647   :  { %v3282_v26 = vpop.f32.mrb[30].mxu0 }
0x1648   :  { %v3286_v33 = vmul.f32 0.35355338, %v3282_v26  ;;  %v15122_v16 = vpop.f32.mrb[31].mxu0 }
0x164a   :  { %v3287_v17 = vsel %vm17951_vm11, %v3286_v33, -1000000.0 }
0x164b   :  { %v3288_v19 = vsel %vm1147_vm7, %v3287_v17, -inf }
0x164c   :  { %3289 = vmax.xlane.f32.xlu0 %v3288_v19  ;;  %v1963_v19 = vld [vmem:[%s19569_s7] sm:$0xff] }
0x1662   :  { %16388 = vrot.lane.b32.xlu0 %v17869_v31, %s17113_s18 }
0x1666   :  { %3378 = vrot.lane.b32.xlu0 %v17842_v4, %s17112_s17 }
0x16d9   :  { %v3290_v22 = vpop.xlane.xlu0 %3289 }
0x16da   :  { %v3291_v23 = vsub.f32 %v3287_v17, %v3290_v22  ;;  %v1964_v22 = vld [vmem:[%s19569_s7 + $0x8] sm:$0xff] }
0x16dc   :  { %v3292_v21 = vmul.f32 1.442695, %v3291_v23  ;;  %v16032_v23 = vpack.c.bf16 %v1964_v22, %v1963_v19 }
0x16dd   :  { %v16389_v27 = vpop.permute.xlu0 %16388 }
0x16de   :  { %16532 = vpow2.f32 %v3292_v21  ;;  %v16391_v28 = vunpack.i.h.bf16 %v16389_v27  ;;  %v16390_v34 = vunpack.i.l.bf16 %v16389_v27  ;;  %v1966_v21 = vld [vmem:[%s19569_s7 + $0x18] sm:$0xff] }
0x16e0   :  { %v16023_v29 = vpack.c.bf16 %v16391_v28, %v16390_v34  ;;  %v3652_v28 = vld [vmem:[#allocation14] sm:$0xff]  ;;  %v3653_v34 = vld [vmem:[#allocation14 + $0x8] sm:$0xff] }
0x16e1   :  { %v3379_v53 = vpop.permute.xlu0 %3378 }
0x16e2   :  { %16024 = vmatpush3.bf16.msra.mxu1 %v16023_v29  ;;  %v16048_v29 = vpack.c.bf16 %v3653_v34, %v3652_v28 }
0x16e3   :  { %16025 = vmatprep.subr.bf16.mxu1 %v17120_v54 }
0x16e8   :  { %v16533_v32 = vpop.eup %16532 }
0x16e9   :  { %v3294_v30 = vsel %vm1147_vm7, %v16533_v32, 0.0 }
0x16ea   :  { %3295 = vadd.xlane.f32.xlu1 %v3294_v30 }
0x16fb   :  { %16393 = vrot.lane.b32.xlu1 %v17869_v31, %s17112_s17 }
0x1777   :  { %v3296_v35 = vpop.xlane.xlu1 %3295 }
0x1778   :  { %16534 = vrcp.f32 %v3296_v35 }
0x177b   :  { %v16394_v4 = vpop.permute.xlu1 %16393 }
0x177c   :  { %v16396_v24 = vunpack.i.h.bf16 %v16394_v4  ;;  %v16395_v38 = vunpack.i.l.bf16 %v16394_v4 }
0x177e   :  { %v16026_v46 = vpack.c.bf16 %v16396_v24, %v16395_v38  ;;  %v3654_v24 = vld [vmem:[#allocation14 + $0x10] sm:$0xff]  ;;  %v3655_v38 = vld [vmem:[#allocation14 + $0x18] sm:$0xff] }
0x1782   :  { %v16535_v42 = vpop.eup %16534 }
0x1783   :  { %v3298_v43 = vmul.f32 %v16535_v42, %v16533_v32 }
0x1785   :  { %15128 = vmatmul.mubr.msk.f32.vlgmr.msra.gmra.mrb[38].mxu1 %vm1147_vm7, %v3298_v43  ;;  %v16052_v43 = vpack.c.bf16 %v3655_v38, %v3654_v24 }
0x1786   :  { %16028 = vmatpush3.bf16.xpose.msk.msra.mxu1 %vm17822_vm9, %v16026_v46  ;;  %15134 = vmatprep.mubr.msk.f32.mxu1 %vm17107_vm4, %v17106_v18 }
0x1787   :  { %16041 = vmatprep.subr.bf16.mxu1 %v16040_v45 }
0x178d   :  { %15135 = vmatmul.mubr.msk.f32.vlgmr.msra.gmra.mrb[40].mxu1 %vm469_vm5, %v3379_v53 }
0x178e   :  { %16043 = vmatpush3.bf16.msra.mxu1 %v16040_v45  ;;  %15163 = vmatprep.mubr.msk.f32.mxu1 %vm384_vm3, %v17810_v8  ;;  %v369_v45 = vld [vmem:[#allocation10] sm:$0xff] }
0x178f   :  { %16045 = vmatprep.subr.bf16.mxu1 %v16044_v52 }
0x1792   :  { %16047 = vmatpush3.bf16.msra.mxu1 %v16044_v52 }
0x1793   :  { %15177 = vmatprep.subr.mxu1 %v17106_v18 }
0x1795   :  { %15164 = vmatmul.mubr.msk.f32.vlgmr.msra.gmra.mrb[42].mxu1 %vm384_vm3, %v17814_v10 }
0x1796   :  { %15179 = vmatprep.mubr.msk.f32.mxu1 %vm17107_vm4, %v17106_v18 }
0x1858   :  { %v3374_v55 = vpop.f32.mrb[38].mxu1 }
0x1859   :  { %v15129_v56 = vpop.f32.mrb[39].mxu1 }
0x1860   :  { %v3456_v57 = vpop.f32.mrb[40].mxu1 }
0x1861   :  { %v3460_v58 = vmul.f32 0.35355338, %v3456_v57  ;;  %v15136_v59 = vpop.f32.mrb[41].mxu1 }
0x1863   :  { %v3461_v60 = vsel %vm17951_vm11, %v3460_v58, -1000000.0 }
0x1864   :  { %v3462_v62 = vsel %vm1147_vm7, %v3461_v60, -inf }
0x1865   :  { %3463 = vmax.xlane.f32.xlu1 %v3462_v62 }
0x1868   :  { %v18034_v63 = vpop.f32.mrb[42].mxu1 }
0x1869   :  { %v18036_v0 = vpop.f32.mrb[43].mxu1 }
0x1876   :  { %2845 = vrot.lane.b32.xlu1 %v17920_v49, %s17092_s10 }
0x187a   :  { %2849 = vrot.lane.b32.xlu1 %v17922_v51, %s19532_s6 }
0x187e   :  { %2853 = vrot.lane.b32.xlu1 %v17948_v14, %s19530_s0 }
0x18f2   :  { %v3464_v1 = vpop.xlane.xlu1 %3463 }
0x18f3   :  { %v3465_v2 = vsub.f32 %v3461_v60, %v3464_v1 }
0x18f5   :  { %v3466_v3 = vmul.f32 1.442695, %v3465_v2 }
0x18f6   :  { %v2846_v49 = vpop.permute.xlu1 %2845 }
0x18f7   :  { %16536 = vpow2.f32 %v3466_v3  ;;  %v2856_v16 = vsel %vm469_vm5, %v17918_v47, %v2846_v49  ;;  %v1965_v47 = vld [vmem:[%s19569_s7 + $0x10] sm:$0xff]  ;;  %v3817_v3 = vstv %s3816_s1 }
0x18f8   :  { %v16036_v27 = vpack.c.bf16 %v1966_v21, %v1965_v47  ;;  %vm18154_vm12 = vcmp.lt.s32.totalorder %v17525_v20, %v3817_v3  ;;  %v3820_v21 = vstv %s14178_s21 }
0x18f9   :  { %vm18170_vm13 = vcmp.lt.s32.totalorder %v17525_v20, %v3820_v21 }
0x18fa   :  { %v2850_v7 = vpop.permute.xlu1 %2849 }
0x18fb   :  { %v2857_v17 = vsel %vm1147_vm7, %v2856_v16, %v2850_v7 }
0x18fe   :  { %v2854_v33 = vpop.permute.xlu1 %2853 }
0x1901   :  { %v16537_v5 = vpop.eup %16536 }
0x1902   :  { %v3468_v6 = vsel %vm1147_vm7, %v16537_v5, 0.0 }
0x1903   :  { %3469 = vadd.xlane.f32.xlu0 %v3468_v6 }
0x1919   :  { %16398 = vrot.lane.b32.xlu0 %v17869_v31, %s17114_s29 }
0x191d   :  { %3553 = vrot.lane.b32.xlu0 %v17993_v12, %s17092_s10  ;;  %v2858_v12 = vsel %vm1149_vm8, %v2857_v17, %v2854_v33 }
0x1921   :  { %3557 = vrot.lane.b32.xlu0 %v3374_v55, %s19532_s6 }
0x1990   :  { %v3470_v51 = vpop.xlane.xlu0 %3469 }
0x1991   :  { %16538 = vrcp.f32 %v3470_v51 }
0x1994   :  { %v16399_v14 = vpop.permute.xlu0 %16398 }
0x1995   :  { %v16401_v9 = vunpack.i.h.bf16 %v16399_v14  ;;  %v16400_v11 = vunpack.i.l.bf16 %v16399_v14 }
0x1997   :  { %v16030_v15 = vpack.c.bf16 %v16401_v9, %v16400_v11 }
0x1998   :  { %v3554_v35 = vpop.permute.xlu0 %3553 }
0x1999   :  { %16031 = vmatpush3.bf16.msra.mxu0 %v16030_v15  ;;  %v3564_v40 = vsel %vm469_vm5, %v17971_v44, %v3554_v35 }
0x199a   :  { %16033 = vmatprep.subr.bf16.mxu0 %v16032_v23 }
0x199b   :  { %v16539_v26 = vpop.eup %16538 }
0x199c   :  { %v3472_v31 = vmul.f32 %v16539_v26, %v16537_v5  ;;  %v3558_v4 = vpop.permute.xlu0 %3557 }
0x199d   :  { %v3565_v41 = vsel %vm1147_vm7, %v3564_v40, %v3558_v4 }
0x199e   :  { %15142 = vmatmul.mubr.msk.f32.vlgmr.msra.gmra.mrb[32].mxu0 %vm1147_vm7, %v3472_v31 }
0x199f   :  { %15152 = vmatprep.mubr.msk.f32.mxu0 %vm384_vm3, %v2858_v12  ;;  %16035 = vmatpush3.bf16.msra.mxu0 %v16032_v23 }
0x19a0   :  { %16037 = vmatprep.subr.bf16.mxu0 %v16036_v27 }
0x19a3   :  { %16039 = vmatpush3.bf16.msra.mxu0 %v16036_v27 }
0x19a4   :  { %16049 = vmatprep.subr.bf16.mxu0 %v16048_v29 }
0x1a71   :  { %v3548_v32 = vpop.f32.mrb[32].mxu0 }
0x1a72   :  { %3561 = vrot.lane.b32.xlu1 %v3548_v32, %s19530_s0  ;;  %v15143_v30 = vpop.f32.mrb[33].mxu0 }
0x1a76   :  { %3987 = vrot.lane.b32.xlu1 %v18036_v0, %s17110_s3 }
0x1a7a   :  { %4154 = vrot.lane.b32.xlu1 %v18036_v0, %s17111_s4 }
0x1a7e   :  { %4321 = vrot.lane.b32.xlu1 %v18036_v0, %s17112_s17 }
0x1a82   :  { %4668 = vrot.lane.b32.xlu1 %v18034_v63, %s17110_s3 }
0x1a86   :  { %4835 = vrot.lane.b32.xlu1 %v18034_v63, %s17111_s4 }
0x1a8a   :  { %5002 = vrot.lane.b32.xlu1 %v18034_v63, %s17112_s17 }
0x1ae4   :  { %v3562_v42 = vpop.permute.xlu1 %3561 }
0x1ae5   :  { %v3566_v46 = vsel %vm1149_vm8, %v3565_v41, %v3562_v42 }
0x1ae6   :  { %15153 = vmatmul.mubr.msk.f32.vlgmr.msra.gmra.mrb[34].mxu0 %vm384_vm3, %v3566_v46 }
0x1ae7   :  { %16051 = vmatpush3.bf16.msra.mxu0 %v16048_v29  ;;  %15174 = vmatprep.mubr.msk.f32.mxu0 %vm384_vm3, %v369_v45 }
0x1ae8   :  { %16053 = vmatprep.subr.bf16.mxu0 %v16052_v43  ;;  %v3988_v52 = vpop.permute.xlu1 %3987 }
0x1aeb   :  { %16055 = vmatpush3.bf16.msra.mxu0 %v16052_v43 }
0x1aec   :  { %15187 = vmatprep.subr.mxu0 %v17106_v18  ;;  %v4155_v55 = vpop.permute.xlu1 %4154 }
0x1aee   :  { %15175 = vmatmul.mubr.msk.f32.vlgmr.msra.gmra.mrb[36].mxu0 %vm384_vm3, %v370_v48 }
0x1aef   :  { %15189 = vmatprep.mubr.msk.f32.mxu0 %vm17107_vm4, %v17106_v18 }
0x1af0   :  { %v4322_v58 = vpop.permute.xlu1 %4321 }
0x1af4   :  { %v4669_v60 = vpop.permute.xlu1 %4668 }
0x1af8   :  { %v4836_v1 = vpop.permute.xlu1 %4835 }
0x1bc1   :  { %v18091_v44 = vpop.f32.mrb[36].mxu0 }
0x1bc2   :  { %v18093_v50 = vpop.f32.mrb[37].mxu0 }
0x1bc3   :  { %3989 = vrot.lane.b32.xlu0 %v18093_v50, %s17110_s3  ;;  %15178 = vmatpush3.xpose.msk.msra.mxu1 %vm469_vm5, %v18093_v50 }
0x1bc4   :  { %4078 = vrot.lane.b32.xlu1 %v18093_v50, %s17109_s30  ;;  %15182 = vmatprep.subr.mxu1 %v17106_v18 }
0x1bc6   :  { %15180 = vmatmul.mubr.msk.f32.vlgmr.msra.gmra.mrb[44].mxu1 %vm469_vm5, %v18036_v0 }
0x1bc7   :  { %4156 = vrot.lane.b32.xlu0 %v18093_v50, %s17111_s4  ;;  %15184 = vmatprep.mubr.msk.f32.mxu1 %vm17107_vm4, %v17106_v18 }
0x1bcb   :  { %4323 = vrot.lane.b32.xlu0 %v18093_v50, %s17112_s17 }
0x1bcf   :  { %4670 = vrot.lane.b32.xlu0 %v18091_v44, %s17110_s3 }
0x1bd3   :  { %4837 = vrot.lane.b32.xlu0 %v18091_v44, %s17111_s4 }
0x1bd7   :  { %5004 = vrot.lane.b32.xlu0 %v18091_v44, %s17112_s17 }
0x1bdb   :  { %3911 = vrot.lane.b32.xlu0 %v18093_v50, %s17108_s14 }
0x1c35   :  { %v3990_v53 = vpop.permute.xlu0 %3989 }
0x1c36   :  { %15188 = vmatpush3.xpose.msk.msra.mxu0 %vm469_vm5, %v3990_v53 }
0x1c37   :  { %15197 = vmatprep.subr.mxu0 %v17106_v18 }
0x1c39   :  { %v4157_v56 = vpop.permute.xlu0 %4156  ;;  %15190 = vmatmul.mubr.msk.f32.vlgmr.msra.gmra.mrb[38].mxu0 %vm469_vm5, %v3988_v52 }
0x1c3a   :  { %15198 = vmatpush3.xpose.msk.msra.mxu0 %vm469_vm5, %v4157_v56  ;;  %15199 = vmatprep.mubr.msk.f32.mxu0 %vm17107_vm4, %v17106_v18 }
0x1c3b   :  { %15207 = vmatprep.subr.mxu0 %v17106_v18 }
0x1c3d   :  { %v4324_v57 = vpop.permute.xlu0 %4323  ;;  %15200 = vmatmul.mubr.msk.f32.vlgmr.msra.gmra.mrb[40].mxu0 %vm469_vm5, %v4155_v55 }
0x1c3e   :  { %15208 = vmatpush3.xpose.msk.msra.mxu0 %vm469_vm5, %v4324_v57  ;;  %15209 = vmatprep.mubr.msk.f32.mxu0 %vm17107_vm4, %v17106_v18 }
0x1c3f   :  { %15217 = vmatprep.subr.mxu0 %v17106_v18 }
0x1c41   :  { %v4671_v59 = vpop.permute.xlu0 %4670  ;;  %15210 = vmatmul.mubr.msk.f32.vlgmr.msra.gmra.mrb[42].mxu0 %vm469_vm5, %v4322_v58 }
0x1c42   :  { %15218 = vmatpush3.xpose.msk.msra.mxu0 %vm469_vm5, %v18091_v44  ;;  %15219 = vmatprep.mubr.msk.f32.mxu0 %vm17107_vm4, %v17106_v18 }
0x1c43   :  { %15227 = vmatprep.subr.mxu0 %v17106_v18 }
0x1c45   :  { %v4838_v62 = vpop.permute.xlu0 %4837  ;;  %15220 = vmatmul.mubr.msk.f32.vlgmr.msra.gmra.mrb[44].mxu0 %vm469_vm5, %v18034_v63  ;;  %v5003_v63 = vpop.permute.xlu1 %5002 }
0x1c46   :  { %15228 = vmatpush3.xpose.msk.msra.mxu0 %vm469_vm5, %v4671_v59  ;;  %15229 = vmatprep.mubr.msk.f32.mxu0 %vm17107_vm4, %v17106_v18 }
0x1c47   :  { %15237 = vmatprep.subr.mxu0 %v17106_v18 }
0x1c49   :  { %v5005_v0 = vpop.permute.xlu0 %5004  ;;  %15230 = vmatmul.mubr.msk.f32.vlgmr.msra.gmra.mrb[46].mxu0 %vm469_vm5, %v4669_v60 }
0x1c4a   :  { %15238 = vmatpush3.xpose.msk.msra.mxu0 %vm469_vm5, %v4838_v62  ;;  %15239 = vmatprep.mubr.msk.f32.mxu0 %vm17107_vm4, %v17106_v18 }
0x1c4b   :  { %15247 = vmatprep.subr.mxu0 %v17106_v18 }
0x1c4d   :  { %v3912_v2 = vpop.permute.xlu0 %3911  ;;  %15240 = vmatmul.mubr.msk.f32.vlgmr.msra.gmra.mrb[48].mxu0 %vm469_vm5, %v4836_v1 }
0x1c4e   :  { %15183 = vmatpush3.msra.mxu1 %v3912_v2  ;;  %15248 = vmatpush3.xpose.msk.msra.mxu0 %vm469_vm5, %v5005_v0  ;;  %v4079_v2 = vpop.permute.xlu1 %4078 }
0x1c4f   :  { %15249 = vmatprep.mubr.msk.f32.mxu0 %vm17107_vm4, %v17106_v18  ;;  %15192 = vmatprep.subr.mxu1 %v17106_v18 }
0x1c51   :  { %15250 = vmatmul.mubr.msk.f32.vlgmr.msra.gmra.mrb[50].mxu0 %vm469_vm5, %v5003_v63 }
0x1c99   :  { %v3894_v6 = vpop.f32.mrb[44].mxu1 }
0x1c9a   :  { %v3898_v49 = vmul.f32 0.35355338, %v3894_v6  ;;  %v15181_v51 = vpop.f32.mrb[45].mxu1 }
0x1c9c   :  { %v3899_v14 = vsel %vm18154_vm12, %v3898_v49, -1000000.0 }
0x1c9d   :  { %v3900_v7 = vsel %vm469_vm5, %v3899_v14, -inf }
0x1c9e   :  { %3901 = vmax.xlane.f32.xlu0 %v3900_v7 }
0x1d0c   :  { %v4061_v9 = vpop.f32.mrb[38].mxu0 }
0x1d0d   :  { %v4065_v11 = vmul.f32 0.35355338, %v4061_v9  ;;  %v15191_v15 = vpop.f32.mrb[39].mxu0 }
0x1d0f   :  { %v4066_v26 = vsel %vm18154_vm12, %v4065_v11, -1000000.0 }
0x1d10   :  { %v4228_v33 = vpop.f32.mrb[40].mxu0  ;;  %v4067_v16 = vsel %vm469_vm5, %v4066_v26, -inf }
0x1d11   :  { %v4232_v31 = vmul.f32 0.35355338, %v4228_v33  ;;  %4068 = vmax.xlane.f32.xlu1 %v4067_v16  ;;  %v15201_v17 = vpop.f32.mrb[41].mxu0 }
0x1d13   :  { %v4233_v12 = vsel %vm18154_vm12, %v4232_v31, -1000000.0 }
0x1d14   :  { %v4395_v19 = vpop.f32.mrb[42].mxu0  ;;  %v4234_v22 = vsel %vm469_vm5, %v4233_v12, -inf }
0x1d15   :  { %v4399_v47 = vmul.f32 0.35355338, %v4395_v19  ;;  %v15211_v23 = vpop.f32.mrb[43].mxu0  ;;  %4235 = vmax.xlane.f32.xlu0 %v4234_v22 }
0x1d17   :  { %v4400_v27 = vsel %vm18154_vm12, %v4399_v47, -1000000.0 }
0x1d18   :  { %v4575_v34 = vpop.f32.mrb[44].mxu0  ;;  %v4401_v29 = vsel %vm469_vm5, %v4400_v27, -inf }
0x1d19   :  { %v4579_v32 = vmul.f32 0.35355338, %v4575_v34  ;;  %v15221_v30 = vpop.f32.mrb[45].mxu0  ;;  %4402 = vmax.xlane.f32.xlu0 %v4401_v29 }
0x1d1b   :  { %v4580_v35 = vsel %vm18170_vm13, %v4579_v32, -1000000.0 }
0x1d1c   :  { %v4742_v4 = vpop.f32.mrb[46].mxu0  ;;  %v4581_v24 = vsel %vm469_vm5, %v4580_v35, -inf }
0x1d1d   :  { %v4746_v38 = vmul.f32 0.35355338, %v4742_v4  ;;  %4582 = vmax.xlane.f32.xlu1 %v4581_v24  ;;  %v15231_v40 = vpop.f32.mrb[47].mxu0 }
0x1d1f   :  { %v4747_v41 = vsel %vm18170_vm13, %v4746_v38, -1000000.0 }
0x1d20   :  { %v4909_v42 = vpop.f32.mrb[48].mxu0  ;;  %v4748_v43 = vsel %vm469_vm5, %v4747_v41, -inf }
0x1d21   :  { %v4913_v45 = vmul.f32 0.35355338, %v4909_v42  ;;  %v15241_v46 = vpop.f32.mrb[49].mxu0  ;;  %4749 = vmax.xlane.f32.xlu0 %v4748_v43 }
0x1d23   :  { %v4914_v48 = vsel %vm18170_vm13, %v4913_v45, -1000000.0 }
0x1d24   :  { %v5076_v52 = vpop.f32.mrb[50].mxu0  ;;  %v4915_v53 = vsel %vm469_vm5, %v4914_v48, -inf }
0x1d25   :  { %v5080_v55 = vmul.f32 0.35355338, %v5076_v52  ;;  %4916 = vmax.xlane.f32.xlu1 %v4915_v53  ;;  %v15251_v56 = vpop.f32.mrb[51].mxu0 }
0x1d27   :  { %v5081_v57 = vsel %vm18170_vm13, %v5080_v55, -1000000.0 }
0x1d28   :  { %v5082_v58 = vsel %vm469_vm5, %v5081_v57, -inf }
0x1d29   :  { %5083 = vmax.xlane.f32.xlu0 %v5082_v58 }
0x1d2b   :  { %v3902_v59 = vpop.xlane.xlu0 %3901 }
0x1d2c   :  { %v3903_v60 = vsub.f32 %v3899_v14, %v3902_v59 }
0x1d2e   :  { %v3904_v62 = vmul.f32 1.442695, %v3903_v60 }
0x1d30   :  { %16540 = vpow2.f32 %v3904_v62 }
0x1d36   :  { %4412 = vrot.lane.b32.xlu1 %v18093_v50, %s17114_s29 }
0x1d3a   :  { %v16541_v0 = vpop.eup %16540 }
0x1d3b   :  { %v3906_v1 = vsel %vm469_vm5, %v16541_v0, 0.0 }
0x1d3f   :  { %4245 = vrot.lane.b32.xlu0 %v18093_v50, %s17113_s18 }
0x1d5a   :  { %3907 = vadd.xlane.f32.xlu1 %v3906_v1 }
0x1d9e   :  { %v4069_v63 = vpop.xlane.xlu1 %4068 }
0x1d9f   :  { %v4070_v3 = vsub.f32 %v4066_v26, %v4069_v63 }
0x1da1   :  { %v4071_v6 = vmul.f32 1.442695, %v4070_v3 }
0x1da2   :  { %v4236_v49 = vpop.xlane.xlu0 %4235 }
0x1da3   :  { %16542 = vpow2.f32 %v4071_v6  ;;  %v4237_v51 = vsub.f32 %v4233_v12, %v4236_v49 }
0x1da5   :  { %v4238_v7 = vmul.f32 1.442695, %v4237_v51 }
0x1da6   :  { %v4403_v9 = vpop.xlane.xlu0 %4402 }
0x1da7   :  { %16544 = vpow2.f32 %v4238_v7  ;;  %v4404_v11 = vsub.f32 %v4400_v27, %v4403_v9 }
0x1da9   :  { %v4405_v50 = vmul.f32 1.442695, %v4404_v11 }
0x1daa   :  { %v4583_v17 = vpop.xlane.xlu1 %4582 }
0x1dab   :  { %16546 = vpow2.f32 %v4405_v50  ;;  %v4584_v12 = vsub.f32 %v4580_v35, %v4583_v17 }
0x1dad   :  { %v16543_v14 = vpop.eup %16542  ;;  %v4585_v23 = vmul.f32 1.442695, %v4584_v12 }
0x1dae   :  { %v4073_v15 = vsel %vm469_vm5, %v16543_v14, 0.0  ;;  %v4750_v19 = vpop.xlane.xlu0 %4749 }
0x1daf   :  { %4074 = vadd.xlane.f32.xlu0 %v4073_v15  ;;  %v4751_v47 = vsub.f32 %v4747_v41, %v4750_v19  ;;  %16548 = vpow2.f32 %v4585_v23 }
0x1db1   :  { %v16545_v33 = vpop.eup %16544  ;;  %v4752_v34 = vmul.f32 1.442695, %v4751_v47 }
0x1db2   :  { %v4240_v16 = vsel %vm469_vm5, %v16545_v33, 0.0  ;;  %v4917_v22 = vpop.xlane.xlu1 %4916 }
0x1db3   :  { %4241 = vadd.xlane.f32.xlu1 %v4240_v16  ;;  %v4918_v21 = vsub.f32 %v4914_v48, %v4917_v22  ;;  %16550 = vpow2.f32 %v4752_v34  ;;  %v3657_v34 = vld [vmem:[#allocation16 + $0x8] sm:$0xff] }
0x1db5   :  { %v18194_v31 = vpop.eup %16546  ;;  %v4919_v29 = vmul.f32 1.442695, %v4918_v21 }
0x1db6   :  { %v4407_v26 = vsel %vm469_vm5, %v18194_v31, 0.0  ;;  %v5084_v27 = vpop.xlane.xlu0 %5083  ;;  %v4413_v4 = vpop.permute.xlu1 %4412 }
0x1db7   :  { %4408 = vadd.xlane.f32.xlu0 %v4407_v26  ;;  %v5085_v32 = vsub.f32 %v5081_v57, %v5084_v27  ;;  %16552 = vpow2.f32 %v4919_v29  ;;  %v3656_v27 = vld [vmem:[#allocation16] sm:$0xff] }
0x1db8   :  { %v16056_v29 = vpack.c.bf16 %v3657_v34, %v3656_v27  ;;  %v5309_v27 = vld [vmem:[#allocation17 + $0x10] sm:$0xff]  ;;  %v5310_v34 = vld [vmem:[#allocation17 + $0x18] sm:$0xff] }
0x1db9   :  { %v5086_v30 = vmul.f32 1.442695, %v5085_v32  ;;  %v16549_v24 = vpop.eup %16548  ;;  %v3658_v32 = vld [vmem:[#allocation16 + $0x10] sm:$0xff] }
0x1dba   :  { %v4587_v35 = vsel %vm469_vm5, %v16549_v24, 0.0  ;;  %v4246_v53 = vpop.permute.xlu0 %4245  ;;  %16057 = vmatprep.subr.bf16.mxu0 %v16056_v29 }
0x1dbb   :  { %16554 = vpow2.f32 %v5086_v30  ;;  %16059 = vmatpush3.bf16.msra.mxu0 %v16056_v29  ;;  %v3659_v30 = vld [vmem:[#allocation16 + $0x18] sm:$0xff]  ;;  %v16068_v29 = vpack.c.bf16 %v5310_v34, %v5309_v27 }
0x1dbd   :  { %v18202_v38 = vpop.eup %16550 }
0x1dbe   :  { %v4754_v43 = vsel %vm469_vm5, %v18202_v38, 0.0 }
0x1dc1   :  { %v18205_v42 = vpop.eup %16552 }
0x1dc2   :  { %v4921_v41 = vsel %vm469_vm5, %v18205_v42, 0.0 }
0x1dc4   :  { %4759 = vrot.lane.b32.xlu1 %v18091_v44, %s17109_s30 }
0x1dc5   :  { %v18211_v45 = vpop.eup %16554 }
0x1dc6   :  { %v5088_v46 = vsel %vm469_vm5, %v18211_v45, 0.0 }
0x1dcd   :  { %4592 = vrot.lane.b32.xlu0 %v18091_v44, %s17108_s14 }
0x1de7   :  { %v3908_v40 = vpop.xlane.xlu1 %3907 }
0x1de8   :  { %16556 = vrcp.f32 %v3908_v40  ;;  %4588 = vadd.xlane.f32.xlu1 %v4587_v35 }
0x1dec   :  { %4922 = vadd.xlane.f32.xlu1 %v4921_v41  ;;  %4755 = vadd.xlane.f32.xlu0 %v4754_v43 }
0x1df0   :  { %5089 = vadd.xlane.f32.xlu1 %v5088_v46 }
0x1df2   :  { %v16557_v48 = vpop.eup %16556 }
0x1df3   :  { %v3910_v52 = vmul.f32 %v16557_v48, %v16541_v0 }
0x1df5   :  { %15185 = vmatmul.mubr.msk.f32.vlgmr.msra.gmra.mrb[46].mxu1 %vm469_vm5, %v3910_v52 }
0x1df6   :  { %15193 = vmatpush3.msra.mxu1 %v4079_v2  ;;  %15194 = vmatprep.mubr.msk.f32.mxu1 %vm17107_vm4, %v17106_v18 }
0x1df7   :  { %15202 = vmatprep.subr.mxu1 %v17106_v18 }
0x1e01   :  { %5093 = vrot.lane.b32.xlu1 %v18091_v44, %s17114_s29 }
0x1e02   :  { %4926 = vrot.lane.b32.xlu0 %v18091_v44, %s17113_s18 }
0x1e3c   :  { %v4075_v55 = vpop.xlane.xlu0 %4074 }
0x1e3d   :  { %16558 = vrcp.f32 %v4075_v55 }
0x1e40   :  { %v4242_v56 = vpop.xlane.xlu1 %4241 }
0x1e41   :  { %16560 = vrcp.f32 %v4242_v56 }
0x1e44   :  { %v4409_v57 = vpop.xlane.xlu0 %4408  ;;  %v4760_v2 = vpop.permute.xlu1 %4759 }
0x1e45   :  { %16562 = vrcp.f32 %v4409_v57 }
0x1e47   :  { %v16559_v58 = vpop.eup %16558 }
0x1e48   :  { %v4077_v59 = vmul.f32 %v16559_v58, %v16543_v14  ;;  %v4593_v1 = vpop.permute.xlu0 %4592 }
0x1e4a   :  { %15195 = vmatmul.mubr.msk.f32.vlgmr.msra.gmra.mrb[48].mxu1 %vm469_vm5, %v4077_v59 }
0x1e4b   :  { %v16561_v60 = vpop.eup %16560  ;;  %15203 = vmatpush3.msra.mxu1 %v4246_v53  ;;  %15204 = vmatprep.mubr.msk.f32.mxu1 %vm17107_vm4, %v17106_v18 }
0x1e4c   :  { %15212 = vmatprep.subr.mxu1 %v17106_v18  ;;  %v4244_v62 = vmul.f32 %v16561_v60, %v16545_v33 }
0x1e4e   :  { %15205 = vmatmul.mubr.msk.f32.vlgmr.msra.gmra.mrb[50].mxu1 %vm469_vm5, %v4244_v62 }
0x1e4f   :  { %v16563_v44 = vpop.eup %16562  ;;  %15213 = vmatpush3.msra.mxu1 %v4413_v4  ;;  %15214 = vmatprep.mubr.msk.f32.mxu1 %vm17107_vm4, %v17106_v18  ;;  %v16060_v4 = vpack.c.bf16 %v3659_v30, %v3658_v32 }
0x1e50   :  { %15222 = vmatprep.subr.mxu1 %v17106_v18  ;;  %v4411_v0 = vmul.f32 %v16563_v44, %v18194_v31 }
0x1e51   :  { %16061 = vmatprep.subr.bf16.mxu0 %v16060_v4 }
0x1e52   :  { %15215 = vmatmul.mubr.msk.f32.vlgmr.msra.gmra.mrb[52].mxu1 %vm469_vm5, %v4411_v0  ;;  %16063 = vmatpush3.bf16.msra.mxu0 %v16060_v4 }
0x1e53   :  { %15223 = vmatpush3.msra.mxu1 %v4593_v1  ;;  %15224 = vmatprep.mubr.msk.f32.mxu1 %vm17107_vm4, %v17106_v18 }
0x1e54   :  { %15232 = vmatprep.subr.mxu1 %v17106_v18 }
0x1e75   :  { %v4589_v63 = vpop.xlane.xlu1 %4588 }
0x1e76   :  { %16564 = vrcp.f32 %v4589_v63 }
0x1e79   :  { %v4923_v3 = vpop.xlane.xlu1 %4922  ;;  %v4756_v6 = vpop.xlane.xlu0 %4755 }
0x1e7a   :  { %16566 = vrcp.f32 %v4756_v6 }
0x1e7b   :  { %16568 = vrcp.f32 %v4923_v3 }
0x1e7d   :  { %v5090_v49 = vpop.xlane.xlu1 %5089  ;;  %v4927_v14 = vpop.permute.xlu0 %4926 }
0x1e7e   :  { %16570 = vrcp.f32 %v5090_v49 }
0x1e80   :  { %v16565_v51 = vpop.eup %16564 }
0x1e81   :  { %v4591_v7 = vmul.f32 %v16565_v51, %v16549_v24  ;;  %v5094_v16 = vpop.permute.xlu1 %5093 }
0x1e83   :  { %15225 = vmatmul.mubr.msk.f32.vlgmr.msra.gmra.mrb[54].mxu1 %vm469_vm5, %v4591_v7 }
0x1e84   :  { %15233 = vmatpush3.msra.mxu1 %v4760_v2  ;;  %15234 = vmatprep.mubr.msk.f32.mxu1 %vm17107_vm4, %v17106_v18  ;;  %v16567_v9 = vpop.eup %16566 }
0x1e85   :  { %15242 = vmatprep.subr.mxu1 %v17106_v18  ;;  %v4758_v11 = vmul.f32 %v16567_v9, %v18202_v38  ;;  %v16569_v50 = vpop.eup %16568 }
0x1e86   :  { %v4925_v15 = vmul.f32 %v16569_v50, %v18205_v42 }
0x1e87   :  { %15235 = vmatmul.mubr.msk.f32.vlgmr.msra.gmra.mrb[56].mxu1 %vm469_vm5, %v4758_v11 }
0x1e88   :  { %15243 = vmatpush3.msra.mxu1 %v4927_v14  ;;  %15244 = vmatprep.mubr.msk.f32.mxu1 %vm17107_vm4, %v17106_v18  ;;  %v16571_v33 = vpop.eup %16570 }
0x1e89   :  { %15252 = vmatprep.subr.mxu1 %v17106_v18  ;;  %v5092_v31 = vmul.f32 %v16571_v33, %v18211_v45 }
0x1e8b   :  { %15245 = vmatmul.mubr.msk.f32.vlgmr.msra.gmra.mrb[58].mxu1 %vm469_vm5, %v4925_v15 }
0x1e8c   :  { %15253 = vmatpush3.msra.mxu1 %v5094_v16  ;;  %15254 = vmatprep.mubr.msk.f32.mxu1 %vm17107_vm4, %v17106_v18  ;;  %v5312_v16 = vld [vmem:[#allocation19 + $0x8] sm:$0xff] }
0x1e8f   :  { %15255 = vmatmul.mubr.msk.f32.vlgmr.msra.gmra.mrb[60].mxu1 %vm469_vm5, %v5092_v31 }
0x1ec8   :  { %v3983_v26 = vpop.f32.mrb[46].mxu1 }
0x1ec9   :  { %v15186_v17 = vpop.f32.mrb[47].mxu1 }
0x1eca   :  { %v5314_v17 = vld [vmem:[#allocation19 + $0x18] sm:$0xff] }
0x1f1d   :  { %v4150_v12 = vpop.f32.mrb[48].mxu1 }
0x1f1e   :  { %4489 = vrot.lane.b32.xlu0 %v4150_v12, %s17092_s10  ;;  %v15196_v19 = vpop.f32.mrb[49].mxu1 }
0x1f1f   :  { %v367_v19 = vld [vmem:[#allocation8] sm:$0xff] }
0x1f21   :  { %v4317_v22 = vpop.f32.mrb[50].mxu1 }
0x1f22   :  { %4493 = vrot.lane.b32.xlu1 %v4317_v22, %s19532_s6  ;;  %v15206_v47 = vpop.f32.mrb[51].mxu1  ;;  %v5307_v22 = vld [vmem:[#allocation17] sm:$0xff] }
0x1f23   :  { %v5308_v47 = vld [vmem:[#allocation17 + $0x8] sm:$0xff] }
0x1f25   :  { %v4484_v23 = vpop.f32.mrb[52].mxu1 }
0x1f26   :  { %4497 = vrot.lane.b32.xlu1 %v4484_v23, %s19530_s0  ;;  %v15216_v21 = vpop.f32.mrb[53].mxu1  ;;  %v368_v23 = vld [vmem:[#allocation8 + $0x8] sm:$0xff] }
0x1f27   :  { %v16064_v21 = vpack.c.bf16 %v5308_v47, %v5307_v22 }
0x1f29   :  { %16065 = vmatprep.subr.bf16.mxu1 %v16064_v21 }
0x1f2a   :  { %16067 = vmatpush3.bf16.msra.mxu1 %v16064_v21 }
0x1f2b   :  { %16069 = vmatprep.subr.bf16.mxu1 %v16068_v29 }
0x1f2e   :  { %16071 = vmatpush3.bf16.msra.mxu1 %v16068_v29 }
0x1f2f   :  { %15290 = vmatprep.subr.mxu1 %v17106_v18 }
0x1f56   :  { %v4664_v24 = vpop.f32.mrb[54].mxu1 }
0x1f57   :  { %v15226_v38 = vpop.f32.mrb[55].mxu1 }
0x1f5a   :  { %v4831_v40 = vpop.f32.mrb[56].mxu1 }
0x1f5b   :  { %5170 = vrot.lane.b32.xlu0 %v4831_v40, %s17092_s10  ;;  %v15236_v35 = vpop.f32.mrb[57].mxu1 }
0x1f5c   :  { %v18278_v35 = vsub.s32 1, %v17567_v36 }
0x1f5e   :  { %v4998_v42 = vpop.f32.mrb[58].mxu1 }
0x1f5f   :  { %5174 = vrot.lane.b32.xlu0 %v4998_v42, %s19532_s6  ;;  %v15246_v41 = vpop.f32.mrb[59].mxu1  ;;  %v18283_v42 = vld [vmem:[%s19505_s22] sm:$0xf] }
0x1f60   :  { %v5298_v41 = vrot.slane %v18283_v42, %v18278_v35 }
0x1f62   :  { %v5165_v43 = vpop.f32.mrb[60].mxu1 }
0x1f63   :  { %5178 = vrot.lane.b32.xlu1 %v5165_v43, %s19530_s0  ;;  %v15256_v45 = vpop.f32.mrb[61].mxu1 }
0x1f90   :  { %v4490_v46 = vpop.permute.xlu0 %4489 }
0x1f91   :  { %v4500_v52 = vsel %vm469_vm5, %v3983_v26, %v4490_v46  ;;  %v5313_v26 = vld [vmem:[#allocation19 + $0x10] sm:$0xff]  ;;  %v18287_v46 = vld [vmem:[#allocation22] sm:$0xf] }
0x1f92   :  { %v16076_v12 = vpack.c.bf16 %v5314_v17, %v5313_v26 }
0x1f94   :  { %v4494_v48 = vpop.permute.xlu1 %4493 }
0x1f95   :  { %v4501_v53 = vsel %vm1147_vm7, %v4500_v52, %v4494_v48  ;;  %v5304_v48 = vrot.slane %v18287_v46, %v18278_v35 }
0x1f98   :  { %v4498_v55 = vpop.permute.xlu1 %4497 }
0x1f99   :  { %v4502_v56 = vsel %vm1149_vm8, %v4501_v53, %v4498_v55 }
0x1f9a   :  { %15265 = vmatprep.mubr.msk.f32.mxu0 %vm384_vm3, %v4502_v56 }
0x1fcd   :  { %v5171_v57 = vpop.permute.xlu0 %5170 }
0x1fce   :  { %v5181_v59 = vsel %vm469_vm5, %v4664_v24, %v5171_v57 }
0x1fd1   :  { %v5175_v58 = vpop.permute.xlu0 %5174 }
0x1fd2   :  { %v5182_v60 = vsel %vm1147_vm7, %v5181_v59, %v5175_v58 }
0x1fd5   :  { %v5179_v62 = vpop.permute.xlu1 %5178 }
0x1fd6   :  { %v5183_v44 = vsel %vm1149_vm8, %v5182_v60, %v5179_v62 }
0x1fd7   :  { %15266 = vmatmul.mubr.msk.f32.vlgmr.msra.gmra.mrb[34].mxu0 %vm384_vm3, %v5183_v44 }
0x1fd8   :  { %15287 = vmatprep.mubr.msk.f32.mxu0 %vm384_vm3, %v367_v19 }
0x20aa   :  { %v15267_v0 = vpop.f32.mrb[34].mxu0 }
0x20ab   :  { %v16288_v1 = vadd.f32 %v15267_v0, %v17814_v10  ;;  %v5256_v2 = vpop.f32.mrb[35].mxu0 }
0x20ac   :  { %v16289_v63 = vadd.f32 %v5256_v2, %v17810_v8  ;;  %v5311_v8 = vld [vmem:[#allocation19] sm:$0xff] }
0x20ad   :  { %v5272_v3 = vsel %vm384_vm3, %v16288_v1, 0.0  ;;  %v16072_v31 = vpack.c.bf16 %v5312_v16, %v5311_v8 }
0x20ae   :  { %5273 = vadd.xlane.f32.xlu1 %v5272_v3  ;;  %v5269_v6 = vsel %vm384_vm3, %v16289_v63, 0.0 }
0x20af   :  { %5270 = vadd.xlane.f32.xlu0 %v5269_v6  ;;  %16073 = vmatprep.subr.bf16.mxu0 %v16072_v31 }
0x20b0   :  { %16075 = vmatpush3.bf16.msra.mxu0 %v16072_v31 }
0x20b1   :  { %16077 = vmatprep.subr.bf16.mxu0 %v16076_v12 }
0x20b4   :  { %16079 = vmatpush3.bf16.msra.mxu0 %v16076_v12 }
0x20b5   :  { %15300 = vmatprep.subr.mxu0 %v17106_v18 }
0x20b7   :  { %15288 = vmatmul.mubr.msk.f32.vlgmr.msra.gmra.mrb[52].mxu0 %vm384_vm3, %v368_v23 }
0x20b8   :  { %15302 = vmatprep.mubr.msk.f32.mxu0 %vm17107_vm4, %v17106_v18 }
0x213b   :  { %v5274_v49 = vpop.xlane.xlu1 %5273 }
0x213c   :  { %v5276_v51 = vmul.f32 0.03125, %v5274_v49  ;;  %v5271_v7 = vpop.xlane.xlu0 %5270 }
0x213d   :  { %v5275_v9 = vmul.f32 0.03125, %v5271_v7 }
0x213e   :  { %v5278_v11 = vsub.f32 %v16288_v1, %v5276_v51 }
0x213f   :  { %v5277_v50 = vsub.f32 %v16289_v63, %v5275_v9 }
0x2140   :  { %v5280_v33 = vmul.f32 %v5278_v11, %v5278_v11 }
0x2141   :  { %v5279_v14 = vmul.f32 %v5277_v50, %v5277_v50 }
0x2142   :  { %v5284_v10 = vsel %vm384_vm3, %v5280_v33, 0.0 }
0x2143   :  { %v5281_v15 = vsel %vm384_vm3, %v5279_v14, 0.0 }
0x2144   :  { %5282 = vadd.xlane.f32.xlu0 %v5281_v15  ;;  %v5482_v15 = vstv %s5481_s8  ;;  %s19579_s8 = smov 48  }
0x2145   :  { %vm18368_vm14 = vcmp.lt.s32.totalorder %v17525_v20, %v5482_v15 }
0x2148   :  { %5285 = vadd.xlane.f32.xlu0 %v5284_v10 }
0x218a   :  { %v18301_v59 = vpop.f32.mrb[52].mxu0 }
0x218b   :  { %v18303_v60 = vpop.f32.mrb[53].mxu0 }
0x218c   :  { %5654 = vrot.lane.b32.xlu1 %v18303_v60, %s17110_s3 }
0x2190   :  { %5821 = vrot.lane.b32.xlu1 %v18303_v60, %s17111_s4 }
0x21d1   :  { %v5283_v32 = vpop.xlane.xlu0 %5282 }
0x21d2   :  { %v5287_v30 = vmul.f32 0.03125, %v5283_v32 }
0x21d4   :  { %v5289_v4 = vadd.f32 1e-05, %v5287_v30 }
0x21d5   :  { %v5286_v24 = vpop.xlane.xlu0 %5285 }
0x21d6   :  { %16572 = vrsqrt.f32 %v5289_v4  ;;  %v5288_v38 = vmul.f32 0.03125, %v5286_v24  ;;  %v5485_v24 = vstv %s14209_s13 }
0x21d7   :  { %vm18384_vm15 = vcmp.lt.s32.totalorder %v17525_v20, %v5485_v24 }
0x21d8   :  { %v5290_v40 = vadd.f32 1e-05, %v5288_v38 }
0x21da   :  { %16574 = vrsqrt.f32 %v5290_v40 }
0x21e0   :  { %v16573_v43 = vpop.eup %16572 }
0x21e1   :  { %v5293_v45 = vmul.f32 %v16573_v43, %v5277_v50 }
0x21e3   :  { %v5299_v52 = vmul.f32 %v5298_v41, %v5293_v45 }
0x21e4   :  { %v16575_v53 = vpop.eup %16574 }
0x21e5   :  { %v5294_v55 = vmul.f32 %v16575_v53, %v5278_v11  ;;  %v18291_v56 = vadd.f32 %v5304_v48, %v5299_v52 }
0x21e7   :  { %v5300_v57 = vmul.f32 %v5298_v41, %v5294_v55  ;;  %15276 = vmatprep.mubr.msk.f32.mxu1 %vm384_vm3, %v18291_v56 }
0x21e9   :  { %v18295_v58 = vadd.f32 %v5304_v48, %v5300_v57 }
0x21eb   :  { %15277 = vmatmul.mubr.msk.f32.vlgmr.msra.gmra.mrb[62].mxu1 %vm384_vm3, %v18295_v58 }
0x21ec   :  { %15292 = vmatprep.mubr.msk.f32.mxu1 %vm17107_vm4, %v17106_v18  ;;  %15291 = vmatpush3.xpose.msk.msra.mxu1 %vm469_vm5, %v18303_v60 }
0x21ed   :  { %15295 = vmatprep.subr.mxu1 %v17106_v18 }
0x21fe   :  { %v5655_v62 = vpop.permute.xlu1 %5654 }
0x21ff   :  { %15301 = vmatpush3.xpose.msk.msra.mxu0 %vm469_vm5, %v5655_v62 }
0x2200   :  { %15310 = vmatprep.subr.mxu0 %v17106_v18 }
0x2202   :  { %v5822_v1 = vpop.permute.xlu1 %5821 }
0x22be   :  { %v15278_v44 = vpop.f32.mrb[62].mxu1 }
0x22bf   :  { %v5391_v0 = vpop.f32.mrb[63].mxu1 }
0x22c0   :  { %5819 = vrot.lane.b32.xlu1 %v5391_v0, %s17111_s4  ;;  %5652 = vrot.lane.b32.xlu0 %v5391_v0, %s17110_s3 }
0x22c1   :  { %15293 = vmatmul.mubr.msk.f32.vlgmr.msra.gmra.mrb[64].mxu1 %vm469_vm5, %v5391_v0 }
0x22c2   :  { %15297 = vmatprep.mubr.msk.f32.mxu1 %vm17107_vm4, %v17106_v18 }
0x22c4   :  { %5986 = vrot.lane.b32.xlu1 %v5391_v0, %s17112_s17  ;;  %5988 = vrot.lane.b32.xlu0 %v18303_v60, %s17112_s17 }
0x22c8   :  { %6333 = vrot.lane.b32.xlu1 %v15278_v44, %s17110_s3  ;;  %6335 = vrot.lane.b32.xlu0 %v18301_v59, %s17110_s3 }
0x22cc   :  { %6500 = vrot.lane.b32.xlu1 %v15278_v44, %s17111_s4  ;;  %6502 = vrot.lane.b32.xlu0 %v18301_v59, %s17111_s4 }
0x22d0   :  { %6667 = vrot.lane.b32.xlu1 %v15278_v44, %s17112_s17  ;;  %6669 = vrot.lane.b32.xlu0 %v18301_v59, %s17112_s17 }
0x22d4   :  { %5743 = vrot.lane.b32.xlu1 %v18303_v60, %s17109_s30  ;;  %5576 = vrot.lane.b32.xlu0 %v18303_v60, %s17108_s14 }
0x2332   :  { %v5820_v2 = vpop.permute.xlu1 %5819  ;;  %v5653_v63 = vpop.permute.xlu0 %5652 }
0x2333   :  { %15303 = vmatmul.mubr.msk.f32.vlgmr.msra.gmra.mrb[54].mxu0 %vm469_vm5, %v5653_v63 }
0x2334   :  { %15311 = vmatpush3.xpose.msk.msra.mxu0 %vm469_vm5, %v5822_v1  ;;  %15312 = vmatprep.mubr.msk.f32.mxu0 %vm17107_vm4, %v17106_v18 }
0x2335   :  { %15320 = vmatprep.subr.mxu0 %v17106_v18 }
0x2336   :  { %v5989_v3 = vpop.permute.xlu0 %5988  ;;  %v5987_v6 = vpop.permute.xlu1 %5986 }
0x2337   :  { %15313 = vmatmul.mubr.msk.f32.vlgmr.msra.gmra.mrb[56].mxu0 %vm469_vm5, %v5820_v2 }
0x2338   :  { %15321 = vmatpush3.xpose.msk.msra.mxu0 %vm469_vm5, %v5989_v3  ;;  %15322 = vmatprep.mubr.msk.f32.mxu0 %vm17107_vm4, %v17106_v18 }
0x2339   :  { %15330 = vmatprep.subr.mxu0 %v17106_v18 }
0x233a   :  { %v6336_v49 = vpop.permute.xlu0 %6335  ;;  %v6334_v51 = vpop.permute.xlu1 %6333 }
0x233b   :  { %15323 = vmatmul.mubr.msk.f32.vlgmr.msra.gmra.mrb[58].mxu0 %vm469_vm5, %v5987_v6 }
0x233c   :  { %15331 = vmatpush3.xpose.msk.msra.mxu0 %vm469_vm5, %v18301_v59  ;;  %15332 = vmatprep.mubr.msk.f32.mxu0 %vm17107_vm4, %v17106_v18 }
0x233d   :  { %15340 = vmatprep.subr.mxu0 %v17106_v18 }
0x233e   :  { %v6503_v7 = vpop.permute.xlu0 %6502  ;;  %v6501_v11 = vpop.permute.xlu1 %6500 }
0x233f   :  { %15333 = vmatmul.mubr.msk.f32.vlgmr.msra.gmra.mrb[60].mxu0 %vm469_vm5, %v15278_v44 }
0x2340   :  { %15341 = vmatpush3.xpose.msk.msra.mxu0 %vm469_vm5, %v6336_v49  ;;  %15342 = vmatprep.mubr.msk.f32.mxu0 %vm17107_vm4, %v17106_v18 }
0x2341   :  { %15350 = vmatprep.subr.mxu0 %v17106_v18 }
0x2342   :  { %v6670_v9 = vpop.permute.xlu0 %6669  ;;  %v6668_v14 = vpop.permute.xlu1 %6667 }
0x2343   :  { %15343 = vmatmul.mubr.msk.f32.vlgmr.msra.gmra.mrb[62].mxu0 %vm469_vm5, %v6334_v51 }
0x2344   :  { %15351 = vmatpush3.xpose.msk.msra.mxu0 %vm469_vm5, %v6503_v7  ;;  %15352 = vmatprep.mubr.msk.f32.mxu0 %vm17107_vm4, %v17106_v18 }
0x2345   :  { %15360 = vmatprep.subr.mxu0 %v17106_v18 }
0x2346   :  { %v5577_v50 = vpop.permute.xlu0 %5576 }
0x2347   :  { %15296 = vmatpush3.msra.mxu1 %v5577_v50  ;;  %15353 = vmatmul.mubr.msk.f32.vlgmr.msra.gmra.mrb[64].mxu0 %vm469_vm5, %v6501_v11 }
0x2348   :  { %15361 = vmatpush3.xpose.msk.msra.mxu0 %vm469_vm5, %v6670_v9  ;;  %15362 = vmatprep.mubr.msk.f32.mxu0 %vm17107_vm4, %v17106_v18 }
0x2349   :  { %15305 = vmatprep.subr.mxu1 %v17106_v18 }
0x234b   :  { %15363 = vmatmul.mubr.msk.f32.vlgmr.msra.gmra.mrb[66].mxu0 %vm469_vm5, %v6668_v14 }
0x2394   :  { %v5559_v10 = vpop.f32.mrb[64].mxu1 }
0x2395   :  { %v5563_v8 = vmul.f32 0.35355338, %v5559_v10  ;;  %v15294_v16 = vpop.f32.mrb[65].mxu1 }
0x2397   :  { %v5564_v31 = vsel %vm18368_vm14, %v5563_v8, -1000000.0  ;;  %v5744_v8 = vpop.permute.xlu1 %5743 }
0x2398   :  { %v5565_v26 = vsel %vm469_vm5, %v5564_v31, -inf }
0x2399   :  { %5566 = vmax.xlane.f32.xlu0 %v5565_v26 }
0x2406   :  { %v5726_v17 = vpop.f32.mrb[54].mxu0 }
0x2407   :  { %v5730_v12 = vmul.f32 0.35355338, %v5726_v17  ;;  %v15304_v19 = vpop.f32.mrb[55].mxu0 }
0x2409   :  { %v5731_v22 = vsel %vm18368_vm14, %v5730_v12, -1000000.0 }
0x240a   :  { %v5893_v47 = vpop.f32.mrb[56].mxu0  ;;  %v5732_v23 = vsel %vm469_vm5, %v5731_v22, -inf }
0x240b   :  { %v5897_v21 = vmul.f32 0.35355338, %v5893_v47  ;;  %5733 = vmax.xlane.f32.xlu1 %v5732_v23  ;;  %v15314_v27 = vpop.f32.mrb[57].mxu0 }
0x240d   :  { %v5898_v34 = vsel %vm18368_vm14, %v5897_v21, -1000000.0 }
0x240e   :  { %v6060_v29 = vpop.f32.mrb[58].mxu0  ;;  %v5899_v32 = vsel %vm469_vm5, %v5898_v34, -inf }
0x240f   :  { %v6064_v30 = vmul.f32 0.35355338, %v6060_v29  ;;  %v15324_v4 = vpop.f32.mrb[59].mxu0  ;;  %5900 = vmax.xlane.f32.xlu0 %v5899_v32 }
0x2411   :  { %v6065_v38 = vsel %vm18368_vm14, %v6064_v30, -1000000.0 }
0x2412   :  { %v6240_v41 = vpop.f32.mrb[60].mxu0  ;;  %v6066_v43 = vsel %vm469_vm5, %v6065_v38, -inf }
0x2413   :  { %v6244_v45 = vmul.f32 0.35355338, %v6240_v41  ;;  %v15334_v48 = vpop.f32.mrb[61].mxu0  ;;  %6067 = vmax.xlane.f32.xlu0 %v6066_v43 }
0x2415   :  { %v6245_v52 = vsel %vm18384_vm15, %v6244_v45, -1000000.0 }
0x2416   :  { %v6407_v53 = vpop.f32.mrb[62].mxu0  ;;  %v6246_v55 = vsel %vm469_vm5, %v6245_v52, -inf }
0x2417   :  { %v6411_v57 = vmul.f32 0.35355338, %v6407_v53  ;;  %6247 = vmax.xlane.f32.xlu1 %v6246_v55  ;;  %v15344_v62 = vpop.f32.mrb[63].mxu0 }
0x2419   :  { %v6412_v20 = vsel %vm18384_vm15, %v6411_v57, -1000000.0 }
0x241a   :  { %v6574_v44 = vpop.f32.mrb[64].mxu0  ;;  %v6413_v0 = vsel %vm469_vm5, %v6412_v20, -inf }
0x241b   :  { %v6578_v1 = vmul.f32 0.35355338, %v6574_v44  ;;  %v15354_v2 = vpop.f32.mrb[65].mxu0  ;;  %6414 = vmax.xlane.f32.xlu0 %v6413_v0 }
0x241d   :  { %v6579_v63 = vsel %vm18384_vm15, %v6578_v1, -1000000.0 }
0x241e   :  { %v6741_v3 = vpop.f32.mrb[66].mxu0  ;;  %v6580_v6 = vsel %vm469_vm5, %v6579_v63, -inf }
0x241f   :  { %v6745_v49 = vmul.f32 0.35355338, %v6741_v3  ;;  %6581 = vmax.xlane.f32.xlu1 %v6580_v6  ;;  %v15364_v51 = vpop.f32.mrb[67].mxu0 }
0x2421   :  { %v6746_v7 = vsel %vm18384_vm15, %v6745_v49, -1000000.0 }
0x2422   :  { %v6747_v9 = vsel %vm469_vm5, %v6746_v7, -inf }
0x2423   :  { %6748 = vmax.xlane.f32.xlu0 %v6747_v9 }
0x2426   :  { %v5567_v11 = vpop.xlane.xlu0 %5566 }
0x2427   :  { %v5568_v50 = vsub.f32 %v5564_v31, %v5567_v11 }
0x2429   :  { %v5569_v14 = vmul.f32 1.442695, %v5568_v50 }
0x242b   :  { %16576 = vpow2.f32 %v5569_v14 }
0x2430   :  { %6077 = vrot.lane.b32.xlu1 %v18303_v60, %s17114_s29 }
0x2435   :  { %v16577_v15 = vpop.eup %16576 }
0x2436   :  { %v5571_v10 = vsel %vm469_vm5, %v16577_v15, 0.0 }
0x2439   :  { %5910 = vrot.lane.b32.xlu0 %v18303_v60, %s17113_s18 }
0x2454   :  { %5572 = vadd.xlane.f32.xlu1 %v5571_v10 }
0x2498   :  { %v5734_v16 = vpop.xlane.xlu1 %5733 }
0x2499   :  { %v5735_v26 = vsub.f32 %v5731_v22, %v5734_v16 }
0x249b   :  { %v5736_v17 = vmul.f32 1.442695, %v5735_v26 }
0x249c   :  { %v5901_v12 = vpop.xlane.xlu0 %5900 }
0x249d   :  { %16578 = vpow2.f32 %v5736_v17  ;;  %v5902_v19 = vsub.f32 %v5898_v34, %v5901_v12 }
0x249f   :  { %v5903_v47 = vmul.f32 1.442695, %v5902_v19 }
0x24a0   :  { %v6068_v23 = vpop.xlane.xlu0 %6067 }
0x24a1   :  { %16580 = vpow2.f32 %v5903_v47  ;;  %v6069_v21 = vsub.f32 %v6065_v38, %v6068_v23 }
0x24a3   :  { %v6070_v60 = vmul.f32 1.442695, %v6069_v21 }
0x24a4   :  { %v6248_v34 = vpop.xlane.xlu1 %6247 }
0x24a5   :  { %16582 = vpow2.f32 %v6070_v60  ;;  %v6249_v4 = vsub.f32 %v6245_v52, %v6248_v34 }
0x24a7   :  { %v16579_v31 = vpop.eup %16578  ;;  %v6250_v43 = vmul.f32 1.442695, %v6249_v4 }
0x24a8   :  { %v5738_v27 = vsel %vm469_vm5, %v16579_v31, 0.0  ;;  %v6415_v24 = vpop.xlane.xlu0 %6414 }
0x24a9   :  { %5739 = vadd.xlane.f32.xlu0 %v5738_v27  ;;  %v6416_v41 = vsub.f32 %v6412_v20, %v6415_v24  ;;  %16584 = vpow2.f32 %v6250_v43 }
0x24ab   :  { %v16581_v29 = vpop.eup %16580  ;;  %v6417_v53 = vmul.f32 1.442695, %v6416_v41 }
0x24ac   :  { %v5905_v32 = vsel %vm469_vm5, %v16581_v29, 0.0  ;;  %v6582_v38 = vpop.xlane.xlu1 %6581 }
0x24ad   :  { %5906 = vadd.xlane.f32.xlu1 %v5905_v32  ;;  %v6583_v45 = vsub.f32 %v6579_v63, %v6582_v38  ;;  %16586 = vpow2.f32 %v6417_v53 }
0x24af   :  { %v18408_v30 = vpop.eup %16582  ;;  %v6584_v55 = vmul.f32 1.442695, %v6583_v45 }
0x24b0   :  { %v6072_v22 = vsel %vm469_vm5, %v18408_v30, 0.0  ;;  %v6749_v48 = vpop.xlane.xlu0 %6748  ;;  %v6078_v44 = vpop.permute.xlu1 %6077 }
0x24b1   :  { %6073 = vadd.xlane.f32.xlu0 %v6072_v22  ;;  %v6750_v57 = vsub.f32 %v6746_v7, %v6749_v48  ;;  %16588 = vpow2.f32 %v6584_v55 }
0x24b3   :  { %v6751_v62 = vmul.f32 1.442695, %v6750_v57  ;;  %v16585_v0 = vpop.eup %16584 }
0x24b4   :  { %v6252_v52 = vsel %vm469_vm5, %v16585_v0, 0.0  ;;  %v5911_v9 = vpop.permute.xlu0 %5910 }
0x24b5   :  { %16590 = vpow2.f32 %v6751_v62  ;;  %v5315_v62 = vld [vmem:[#allocation20] sm:$0xff] }
0x24b7   :  { %v18416_v1 = vpop.eup %16586 }
0x24b8   :  { %v6419_v63 = vsel %vm469_vm5, %v18416_v1, 0.0 }
0x24bb   :  { %v18419_v3 = vpop.eup %16588 }
0x24bc   :  { %v6586_v20 = vsel %vm469_vm5, %v18419_v3, 0.0 }
0x24be   :  { %6424 = vrot.lane.b32.xlu1 %v18301_v59, %s17109_s30 }
0x24bf   :  { %v18425_v6 = vpop.eup %16590 }
0x24c0   :  { %v6753_v49 = vsel %vm469_vm5, %v18425_v6, 0.0 }
0x24c7   :  { %6257 = vrot.lane.b32.xlu0 %v18301_v59, %s17108_s14 }
0x24e1   :  { %v5573_v2 = vpop.xlane.xlu1 %5572 }
0x24e2   :  { %16592 = vrcp.f32 %v5573_v2  ;;  %6253 = vadd.xlane.f32.xlu1 %v6252_v52  ;;  %v5318_v2 = vld [vmem:[#allocation20 + $0x18] sm:$0xff] }
0x24e6   :  { %6587 = vadd.xlane.f32.xlu1 %v6586_v20  ;;  %6420 = vadd.xlane.f32.xlu0 %v6419_v63 }
0x24ea   :  { %6754 = vadd.xlane.f32.xlu1 %v6753_v49 }
0x24ec   :  { %v16593_v51 = vpop.eup %16592 }
0x24ed   :  { %v5575_v7 = vmul.f32 %v16593_v51, %v16577_v15 }
0x24ef   :  { %15298 = vmatmul.mubr.msk.f32.vlgmr.msra.gmra.mrb[66].mxu1 %vm469_vm5, %v5575_v7 }
0x24f0   :  { %15306 = vmatpush3.msra.mxu1 %v5744_v8  ;;  %15307 = vmatprep.mubr.msk.f32.mxu1 %vm17107_vm4, %v17106_v18 }
0x24f1   :  { %15315 = vmatprep.subr.mxu1 %v17106_v18 }
0x24fb   :  { %6758 = vrot.lane.b32.xlu1 %v18301_v59, %s17114_s29 }
0x24fc   :  { %6591 = vrot.lane.b32.xlu0 %v18301_v59, %s17113_s18 }
0x2536   :  { %v5740_v11 = vpop.xlane.xlu0 %5739 }
0x2537   :  { %16594 = vrcp.f32 %v5740_v11 }
0x253a   :  { %v5907_v50 = vpop.xlane.xlu1 %5906 }
0x253b   :  { %16596 = vrcp.f32 %v5907_v50 }
0x253e   :  { %v6074_v14 = vpop.xlane.xlu0 %6073  ;;  %v6425_v12 = vpop.permute.xlu1 %6424 }
0x253f   :  { %16598 = vrcp.f32 %v6074_v14 }
0x2541   :  { %v16595_v15 = vpop.eup %16594 }
0x2542   :  { %v5742_v10 = vmul.f32 %v16595_v15, %v16579_v31  ;;  %v6258_v17 = vpop.permute.xlu0 %6257 }
0x2544   :  { %15308 = vmatmul.mubr.msk.f32.vlgmr.msra.gmra.mrb[68].mxu1 %vm469_vm5, %v5742_v10 }
0x2545   :  { %v16597_v8 = vpop.eup %16596  ;;  %15316 = vmatpush3.msra.mxu1 %v5911_v9  ;;  %15317 = vmatprep.mubr.msk.f32.mxu1 %vm17107_vm4, %v17106_v18 }
0x2546   :  { %15325 = vmatprep.subr.mxu1 %v17106_v18  ;;  %v5909_v16 = vmul.f32 %v16597_v8, %v16581_v29 }
0x2548   :  { %15318 = vmatmul.mubr.msk.f32.vlgmr.msra.gmra.mrb[70].mxu1 %vm469_vm5, %v5909_v16 }
0x2549   :  { %v16599_v59 = vpop.eup %16598  ;;  %15326 = vmatpush3.msra.mxu1 %v6078_v44  ;;  %15327 = vmatprep.mubr.msk.f32.mxu1 %vm17107_vm4, %v17106_v18  ;;  %v5316_v44 = vld [vmem:[#allocation20 + $0x8] sm:$0xff] }
0x254a   :  { %15335 = vmatprep.subr.mxu1 %v17106_v18  ;;  %v6076_v26 = vmul.f32 %v16599_v59, %v18408_v30 }
0x254c   :  { %15328 = vmatmul.mubr.msk.f32.vlgmr.msra.gmra.mrb[72].mxu1 %vm469_vm5, %v6076_v26 }
0x254d   :  { %15336 = vmatpush3.msra.mxu1 %v6258_v17  ;;  %15337 = vmatprep.mubr.msk.f32.mxu1 %vm17107_vm4, %v17106_v18 }
0x254e   :  { %15345 = vmatprep.subr.mxu1 %v17106_v18 }
0x256f   :  { %v6254_v19 = vpop.xlane.xlu1 %6253 }
0x2570   :  { %16600 = vrcp.f32 %v6254_v19 }
0x2573   :  { %v6588_v47 = vpop.xlane.xlu1 %6587  ;;  %v6421_v23 = vpop.xlane.xlu0 %6420 }
0x2574   :  { %16602 = vrcp.f32 %v6421_v23 }
0x2575   :  { %16604 = vrcp.f32 %v6588_v47 }
0x2577   :  { %v6755_v21 = vpop.xlane.xlu1 %6754  ;;  %v6592_v30 = vpop.permute.xlu0 %6591 }
0x2578   :  { %16606 = vrcp.f32 %v6755_v21 }
0x257a   :  { %v16601_v60 = vpop.eup %16600 }
0x257b   :  { %v6256_v31 = vmul.f32 %v16601_v60, %v16585_v0  ;;  %v6759_v4 = vpop.permute.xlu1 %6758  ;;  %v16080_v0 = vpack.c.bf16 %v5316_v44, %v5315_v62  ;;  %v7065_v62 = vld [vmem:[%s19509_s26 + $0x8] sm:$0xff]  ;;  %v7066_v44 = vld [vmem:[%s19509_s26 + $0x10] sm:$0xff] }
0x257d   :  { %15338 = vmatmul.mubr.msk.f32.vlgmr.msra.gmra.mrb[74].mxu1 %vm469_vm5, %v6256_v31  ;;  %16081 = vmatprep.subr.bf16.mxu0 %v16080_v0 }
0x257e   :  { %15346 = vmatpush3.msra.mxu1 %v6425_v12  ;;  %15347 = vmatprep.mubr.msk.f32.mxu1 %vm17107_vm4, %v17106_v18  ;;  %v16603_v27 = vpop.eup %16602 }
0x257f   :  { %15355 = vmatprep.subr.mxu1 %v17106_v18  ;;  %v6423_v29 = vmul.f32 %v16603_v27, %v18416_v1  ;;  %v16605_v32 = vpop.eup %16604  ;;  %16083 = vmatpush3.bf16.msra.mxu0 %v16080_v0  ;;  %v5317_v1 = vld [vmem:[#allocation20 + $0x10] sm:$0xff] }
0x2580   :  { %v6590_v22 = vmul.f32 %v16605_v32, %v18419_v3  ;;  %v16084_v52 = vpack.c.bf16 %v5318_v2, %v5317_v1  ;;  %v7067_v1 = vld [vmem:[%s19509_s26 + $0x18] sm:$0xff] }
0x2581   :  { %15348 = vmatmul.mubr.msk.f32.vlgmr.msra.gmra.mrb[76].mxu1 %vm469_vm5, %v6423_v29  ;;  %v16100_v2 = vpack.c.bf16 %v7067_v1, %v7066_v44 }
0x2582   :  { %15356 = vmatpush3.msra.mxu1 %v6592_v30  ;;  %15357 = vmatprep.mubr.msk.f32.mxu1 %vm17107_vm4, %v17106_v18  ;;  %v16607_v34 = vpop.eup %16606 }
0x2583   :  { %15365 = vmatprep.subr.mxu1 %v17106_v18  ;;  %v6757_v24 = vmul.f32 %v16607_v34, %v18425_v6  ;;  %16085 = vmatprep.subr.bf16.mxu0 %v16084_v52 }
0x2584   :  { %16087 = vmatpush3.bf16.msra.mxu0 %v16084_v52  ;;  %v7068_v52 = vld [vmem:[%s19509_s26 + $0x20] sm:$0xff] }
0x2585   :  { %15358 = vmatmul.mubr.msk.f32.vlgmr.msra.gmra.mrb[78].mxu1 %vm469_vm5, %v6590_v22 }
0x2586   :  { %15366 = vmatpush3.msra.mxu1 %v6759_v4  ;;  %15367 = vmatprep.mubr.msk.f32.mxu1 %vm17107_vm4, %v17106_v18 }
0x2589   :  { %15368 = vmatmul.mubr.msk.f32.vlgmr.msra.gmra.mrb[80].mxu1 %vm469_vm5, %v6757_v24 }
0x25c2   :  { %v5648_v38 = vpop.f32.mrb[66].mxu1 }
0x25c3   :  { %v15299_v41 = vpop.f32.mrb[67].mxu1 }
0x2617   :  { %v5815_v43 = vpop.f32.mrb[68].mxu1 }
0x2618   :  { %6154 = vrot.lane.b32.xlu0 %v5815_v43, %s17092_s10  ;;  %v15309_v45 = vpop.f32.mrb[69].mxu1  ;;  %v6971_v43 = vld [vmem:[#allocation23 + $0x8] sm:$0xff] }
0x261b   :  { %v5982_v48 = vpop.f32.mrb[70].mxu1 }
0x261c   :  { %6158 = vrot.lane.b32.xlu1 %v5982_v48, %s19532_s6  ;;  %v15319_v53 = vpop.f32.mrb[71].mxu1  ;;  %v6972_v48 = vld [vmem:[#allocation23 + $0x10] sm:$0xff] }
0x261d   :  { %v6973_v53 = vld [vmem:[#allocation23 + $0x18] sm:$0xff] }
0x261f   :  { %v6149_v55 = vpop.f32.mrb[72].mxu1 }
0x2620   :  { %6162 = vrot.lane.b32.xlu1 %v6149_v55, %s19530_s0  ;;  %v15329_v57 = vpop.f32.mrb[73].mxu1  ;;  %v16092_v55 = vpack.c.bf16 %v6973_v53, %v6972_v48 }
0x2621   :  { %v7064_v57 = vld [vmem:[%s19509_s26] sm:$0xff] }
0x2622   :  { %v16096_v0 = vpack.c.bf16 %v7065_v62, %v7064_v57 }
0x2624   :  { %16097 = vmatprep.subr.bf16.mxu0 %v16096_v0 }
0x2650   :  { %v6329_v3 = vpop.f32.mrb[74].mxu1 }
0x2651   :  { %v15339_v20 = vpop.f32.mrb[75].mxu1 }
0x2654   :  { %v6496_v63 = vpop.f32.mrb[76].mxu1 }
0x2655   :  { %6835 = vrot.lane.b32.xlu0 %v6496_v63, %s17092_s10  ;;  %v15349_v6 = vpop.f32.mrb[77].mxu1 }
0x2658   :  { %v6663_v49 = vpop.f32.mrb[78].mxu1 }
0x2659   :  { %6839 = vrot.lane.b32.xlu0 %v6663_v49, %s19532_s6  ;;  %v15359_v51 = vpop.f32.mrb[79].mxu1 }
0x265c   :  { %v6830_v7 = vpop.f32.mrb[80].mxu1 }
0x265d   :  { %6843 = vrot.lane.b32.xlu1 %v6830_v7, %s19530_s0  ;;  %v15369_v9 = vpop.f32.mrb[81].mxu1 }
0x268a   :  { %v6155_v11 = vpop.permute.xlu0 %6154 }
0x268b   :  { %v6165_v14 = vsel %vm469_vm5, %v5648_v38, %v6155_v11  ;;  %v18504_v11 = vsub.s32 2, %v17567_v36 }
0x268e   :  { %v6159_v50 = vpop.permute.xlu1 %6158 }
0x268f   :  { %v6166_v15 = vsel %vm1147_vm7, %v6165_v14, %v6159_v50  ;;  %v6961_v50 = vrot.slane %v18283_v42, %v18504_v11 }
0x2692   :  { %v6163_v10 = vpop.permute.xlu1 %6162 }
0x2693   :  { %v6167_v8 = vsel %vm1149_vm8, %v6166_v15, %v6163_v10  ;;  %v6967_v10 = vrot.slane %v18287_v46, %v18504_v11 }
0x2694   :  { %15378 = vmatprep.mubr.msk.f32.mxu0 %vm384_vm3, %v6167_v8 }
0x26c7   :  { %v6836_v16 = vpop.permute.xlu0 %6835 }
0x26c8   :  { %v6846_v26 = vsel %vm469_vm5, %v6329_v3, %v6836_v16  ;;  %v7069_v3 = vld [vmem:[%s19509_s26 + $0x28] sm:$0xff] }
0x26c9   :  { %v16104_v20 = vpack.c.bf16 %v7069_v3, %v7068_v52  ;;  %v14243_v52 = vld [vmem:[%s19556_s15 + $0x20] sm:$0xff]  ;;  %v14244_v3 = vld [vmem:[%s19556_s15 + $0x28] sm:$0xff] }
0x26cb   :  { %v6840_v59 = vpop.permute.xlu0 %6839 }
0x26cc   :  { %v6847_v17 = vsel %vm1147_vm7, %v6846_v26, %v6840_v59 }
0x26cf   :  { %v6844_v12 = vpop.permute.xlu1 %6843 }
0x26d0   :  { %v6848_v19 = vsel %vm1149_vm8, %v6847_v17, %v6844_v12 }
0x26d1   :  { %15379 = vmatmul.mubr.msk.f32.vlgmr.msra.gmra.mrb[68].mxu0 %vm384_vm3, %v6848_v19  ;;  %v7070_v19 = vld [vmem:[%s19509_s26 + $0x30] sm:$0xff] }
0x26d2   :  { %16099 = vmatpush3.bf16.msra.mxu0 %v16096_v0 }
0x26d3   :  { %16101 = vmatprep.subr.bf16.mxu0 %v16100_v2 }
0x26d6   :  { %16103 = vmatpush3.bf16.msra.mxu0 %v16100_v2 }
0x26d7   :  { %16105 = vmatprep.subr.bf16.mxu0 %v16104_v20 }
0x26da   :  { %16107 = vmatpush3.bf16.msra.mxu0 %v16104_v20  ;;  %v16112_v20 = vpack.c.bf16 %v14244_v3, %v14243_v52 }
0x27a4   :  { %v15380_v47 = vpop.f32.mrb[68].mxu0 }
0x27a5   :  { %v6931_v23 = vadd.f32 %v15380_v47, %v18295_v58  ;;  %v6921_v21 = vpop.f32.mrb[69].mxu0  ;;  %v7071_v47 = vld [vmem:[%s19509_s26 + $0x38] sm:$0xff] }
0x27a6   :  { %v6930_v60 = vadd.f32 %v6921_v21, %v18291_v56  ;;  %v6970_v56 = vld [vmem:[#allocation23] sm:$0xff]  ;;  %v14236_v21 = vld [vmem:[%s19508_s25] ss:$0 sm:$0xff] }
0x27a7   :  { %v6935_v31 = vsel %vm384_vm3, %v6931_v23, 0.0  ;;  %v16088_v45 = vpack.c.bf16 %v6971_v43, %v6970_v56 }
0x27a8   :  { %6936 = vadd.xlane.f32.xlu1 %v6935_v31  ;;  %v6932_v27 = vsel %vm384_vm3, %v6930_v60, 0.0 }
0x27a9   :  { %6933 = vadd.xlane.f32.xlu0 %v6932_v27  ;;  %16089 = vmatprep.subr.bf16.mxu1 %v16088_v45 }
0x27aa   :  { %16091 = vmatpush3.bf16.msra.mxu1 %v16088_v45 }
0x27ab   :  { %16093 = vmatprep.subr.bf16.mxu1 %v16092_v55 }
0x27ae   :  { %16095 = vmatpush3.bf16.msra.mxu1 %v16092_v55 }
0x27af   :  { %16113 = vmatprep.subr.bf16.mxu1 %v16112_v20 }
0x2835   :  { %v6937_v29 = vpop.xlane.xlu1 %6936 }
0x2836   :  { %v6939_v32 = vmul.f32 0.03125, %v6937_v29  ;;  %v6934_v30 = vpop.xlane.xlu0 %6933 }
0x2837   :  { %v6938_v22 = vmul.f32 0.03125, %v6934_v30 }
0x2838   :  { %v6941_v34 = vsub.f32 %v6931_v23, %v6939_v32  ;;  %v16108_v23 = vpack.c.bf16 %v7071_v47, %v7070_v19 }
0x2839   :  { %v6940_v4 = vsub.f32 %v6930_v60, %v6938_v22  ;;  %v14239_v22 = vld [vmem:[%s19510_s27] ss:$0 sm:$0xff] }
0x283a   :  { %v6943_v41 = vmul.f32 %v6941_v34, %v6941_v34  ;;  %16109 = vmatprep.subr.bf16.mxu0 %v16108_v23 }
0x283b   :  { %v6942_v24 = vmul.f32 %v6940_v4, %v6940_v4  ;;  %16111 = vmatpush3.bf16.msra.mxu0 %v16108_v23 }
0x283c   :  { %v6947_v58 = vsel %vm384_vm3, %v6943_v41, 0.0  ;;  %15432 = vmatprep.subr.mxu0 %v17106_v18 }
0x283d   :  { %v6944_v38 = vsel %vm384_vm3, %v6942_v24, 0.0 }
0x283e   :  { %6945 = vadd.xlane.f32.xlu0 %v6944_v38 }
0x2842   :  { %6948 = vadd.xlane.f32.xlu0 %v6947_v58 }
0x28cb   :  { %v6946_v63 = vpop.xlane.xlu0 %6945 }
0x28cc   :  { %v6950_v6 = vmul.f32 0.03125, %v6946_v63  ;;  %v14245_v63 = vld [vmem:[%s19556_s15 + $0x30] sm:$0xff] }
0x28ce   :  { %v6952_v49 = vadd.f32 1e-05, %v6950_v6  ;;  %v14246_v6 = vld [vmem:[%s19556_s15 + $0x38] sm:$0xff]  ;;  %s19578_s15 = smov 40  }
0x28cf   :  { %v6949_v51 = vpop.xlane.xlu0 %6948 }
0x28d0   :  { %16608 = vrsqrt.f32 %v6952_v49  ;;  %v6951_v7 = vmul.f32 0.03125, %v6949_v51  ;;  %v16116_v49 = vpack.c.bf16 %v14246_v6, %v14245_v63 }
0x28d2   :  { %v6953_v9 = vadd.f32 1e-05, %v6951_v7 }
0x28d4   :  { %16610 = vrsqrt.f32 %v6953_v9 }
0x28da   :  { %v16609_v14 = vpop.eup %16608 }
0x28db   :  { %v6956_v15 = vmul.f32 %v16609_v14, %v6940_v4 }
0x28dd   :  { %v6962_v8 = vmul.f32 %v6961_v50, %v6956_v15 }
0x28de   :  { %v16611_v16 = vpop.eup %16610 }
0x28df   :  { %v6957_v59 = vmul.f32 %v16611_v16, %v6941_v34  ;;  %v6968_v26 = vadd.f32 %v6967_v10, %v6962_v8 }
0x28e1   :  { %v6963_v17 = vmul.f32 %v6961_v50, %v6957_v59  ;;  %15389 = vmatprep.mubr.msk.f32.mxu1 %vm384_vm3, %v6968_v26 }
0x28e3   :  { %v6969_v12 = vadd.f32 %v6967_v10, %v6963_v17  ;;  %v18547_v10 = vsub.s32 3, %v17567_v36 }
0x28e5   :  { %15390 = vmatmul.mubr.msk.f32.vlgmr.msra.gmra.mrb[82].mxu1 %vm384_vm3, %v6969_v12  ;;  %v7191_v8 = vrot.slane %v18283_v42, %v18547_v10 }
0x28e6   :  { %16115 = vmatpush3.bf16.msra.mxu1 %v16112_v20 }
0x28e7   :  { %16117 = vmatprep.subr.bf16.mxu1 %v16116_v49 }
0x28ea   :  { %16119 = vmatpush3.bf16.msra.mxu1 %v16116_v49 }
0x28eb   :  { %15422 = vmatprep.subr.mxu1 %v17106_v18 }
0x29b8   :  { %v15391_v60 = vpop.f32.mrb[82].mxu1 }
0x29b9   :  { %v7059_v31 = vadd.f32 %v15391_v60, %v14236_v21  ;;  %v7053_v27 = vpop.f32.mrb[83].mxu1 }
0x29ba   :  { %v7054_v29 = vadd.f32 %v14236_v21, %v7053_v27 }
0x29bb   :  { %v7063_v30 = vmax.f32 %v7059_v31, 0.0 }
0x29bc   :  { %v7062_v32 = vmax.f32 %v7054_v29, 0.0 }
0x29be   :  { %15408 = vmatprep.mubr.msk.f32.mxu0 %vm281_vm0, %v7062_v32 }
0x29bf   :  { %15409 = vmatmul.mubr.msk.f32.vlgmr.msra.gmra.mrb[70].mxu0 %vm281_vm0, %v7063_v30 }
0x29c0   :  { %15434 = vmatprep.mubr.msk.f32.mxu0 %vm17107_vm4, %v17106_v18 }
0x2a92   :  { %v15410_v34 = vpop.f32.mrb[70].mxu0 }
0x2a93   :  { %v7157_v4 = vadd.f32 %v15410_v34, %v14239_v22  ;;  %v7151_v24 = vpop.f32.mrb[71].mxu0 }
0x2a94   :  { %v7152_v38 = vadd.f32 %v14239_v22, %v7151_v24 }
0x2a95   :  { %v7161_v41 = vadd.f32 %v7157_v4, %v6969_v12  ;;  %v7197_v12 = vrot.slane %v18287_v46, %v18547_v10 }
0x2a96   :  { %v7160_v58 = vadd.f32 %v7152_v38, %v6968_v26 }
0x2a97   :  { %v7165_v56 = vsel %vm384_vm3, %v7161_v41, 0.0 }
0x2a98   :  { %7166 = vadd.xlane.f32.xlu0 %v7165_v56  ;;  %v7162_v43 = vsel %vm384_vm3, %v7160_v58, 0.0 }
0x2a99   :  { %7163 = vadd.xlane.f32.xlu1 %v7162_v43 }
0x2b25   :  { %v7167_v45 = vpop.xlane.xlu0 %7166 }
0x2b26   :  { %v7169_v48 = vmul.f32 0.03125, %v7167_v45  ;;  %v7164_v53 = vpop.xlane.xlu1 %7163 }
0x2b27   :  { %v7168_v55 = vmul.f32 0.03125, %v7164_v53 }
0x2b28   :  { %v7171_v57 = vsub.f32 %v7161_v41, %v7169_v48 }
0x2b29   :  { %v7170_v62 = vsub.f32 %v7160_v58, %v7168_v55 }
0x2b2a   :  { %v7173_v44 = vmul.f32 %v7171_v57, %v7171_v57 }
0x2b2b   :  { %v7172_v0 = vmul.f32 %v7170_v62, %v7170_v62 }
0x2b2c   :  { %v7177_v1 = vsel %vm384_vm3, %v7173_v44, 0.0 }
0x2b2d   :  { %7178 = vadd.xlane.f32.xlu0 %v7177_v1  ;;  %v7174_v2 = vsel %vm384_vm3, %v7172_v0, 0.0 }
0x2b2e   :  { %7175 = vadd.xlane.f32.xlu1 %v7174_v2 }
0x2bba   :  { %v7179_v51 = vpop.xlane.xlu0 %7178 }
0x2bbb   :  { %v7181_v7 = vmul.f32 0.03125, %v7179_v51  ;;  %v7176_v9 = vpop.xlane.xlu1 %7175 }
0x2bbc   :  { %v7180_v50 = vmul.f32 0.03125, %v7176_v9 }
0x2bbd   :  { %v7183_v14 = vadd.f32 1e-05, %v7181_v7 }
0x2bbe   :  { %v7182_v15 = vadd.f32 1e-05, %v7180_v50 }
0x2bbf   :  { %16612 = vrsqrt.f32 %v7183_v14 }
0x2bc0   :  { %16614 = vrsqrt.f32 %v7182_v15 }
0x2bc9   :  { %v16613_v16 = vpop.eup %16612 }
0x2bca   :  { %v16615_v59 = vpop.eup %16614  ;;  %v7187_v26 = vmul.f32 %v16613_v16, %v7171_v57 }
0x2bcb   :  { %v7186_v17 = vmul.f32 %v16615_v59, %v7170_v62 }
0x2bcc   :  { %v7193_v19 = vmul.f32 %v7191_v8, %v7187_v26 }
0x2bcd   :  { %v7192_v47 = vmul.f32 %v7191_v8, %v7186_v17 }
0x2bce   :  { %v18555_v21 = vadd.f32 %v7197_v12, %v7193_v19 }
0x2bcf   :  { %v18553_v23 = vadd.f32 %v7197_v12, %v7192_v47 }
0x2bd1   :  { %15419 = vmatprep.mubr.msk.f32.mxu1 %vm384_vm3, %v18553_v23 }
0x2bd2   :  { %15420 = vmatmul.mubr.msk.f32.vlgmr.msra.gmra.mrb[84].mxu1 %vm384_vm3, %v18555_v21 }
0x2bd3   :  { %15424 = vmatprep.mubr.msk.f32.mxu1 %vm17107_vm4, %v17106_v18 }
0x2ca5   :  { %v18563_v36 = vpop.f32.mrb[84].mxu1 }
0x2ca6   :  { %v18565_v42 = vpop.f32.mrb[85].mxu1 }
0x2ca7   :  { %7463 = vrot.lane.b32.xlu0 %v18565_v42, %s17109_s30  ;;  %7296 = vrot.lane.b32.xlu1 %v18565_v42, %s17108_s14 }
0x2cab   :  { %7628 = vrot.lane.b32.xlu0 %v18565_v42, %s17111_s4  ;;  %7461 = vrot.lane.b32.xlu1 %v18565_v42, %s17110_s3 }
0x2caf   :  { %7795 = vrot.lane.b32.xlu0 %v18565_v42, %s17112_s17  ;;  %7630 = vrot.lane.b32.xlu1 %v18565_v42, %s17113_s18 }
0x2cb3   :  { %8145 = vrot.lane.b32.xlu0 %v18563_v36, %s17109_s30  ;;  %7797 = vrot.lane.b32.xlu1 %v18565_v42, %s17114_s29 }
0x2cb7   :  { %8312 = vrot.lane.b32.xlu0 %v18563_v36, %s17113_s18  ;;  %7978 = vrot.lane.b32.xlu1 %v18563_v36, %s17108_s14 }
0x2cbb   :  { %8479 = vrot.lane.b32.xlu0 %v18563_v36, %s17114_s29  ;;  %8143 = vrot.lane.b32.xlu1 %v18563_v36, %s17110_s3 }
0x2cbf   :  { %7385 = vrot.lane.b32.xlu0 %v18565_v42, %s17102_s20  ;;  %8310 = vrot.lane.b32.xlu1 %v18563_v36, %s17111_s4 }
0x2cc3   :  { %8477 = vrot.lane.b32.xlu1 %v18563_v36, %s17112_s17 }
0x2cc7   :  { %7552 = vrot.lane.b32.xlu1 %v18565_v42, %s17116_s5 }
0x2d19   :  { %v7464_v46 = vpop.permute.xlu0 %7463  ;;  %v7297_v60 = vpop.permute.xlu1 %7296 }
0x2d1a   :  { %15423 = vmatpush3.xpose.msk.msra.mxu1 %vm469_vm5, %v7297_v60  ;;  %15433 = vmatpush3.xpose.msk.msra.mxu0 %vm469_vm5, %v7464_v46 }
0x2d1b   :  { %15442 = vmatprep.subr.mxu0 %v17106_v18  ;;  %15427 = vmatprep.subr.mxu1 %v17106_v18 }
0x2d1d   :  { %v7629_v31 = vpop.permute.xlu0 %7628  ;;  %15425 = vmatmul.mubr.msk.f32.vlgmr.msra.gmra.mrb[86].mxu1 %vm469_vm5, %v18565_v42  ;;  %v7462_v27 = vpop.permute.xlu1 %7461 }
0x2d1e   :  { %15435 = vmatmul.mubr.msk.f32.vlgmr.msra.gmra.mrb[72].mxu0 %vm469_vm5, %v7462_v27  ;;  %15429 = vmatprep.mubr.msk.f32.mxu1 %vm17107_vm4, %v17106_v18 }
0x2d1f   :  { %15444 = vmatprep.mubr.msk.f32.mxu0 %vm17107_vm4, %v17106_v18 }
0x2d21   :  { %v7796_v29 = vpop.permute.xlu0 %7795  ;;  %v7631_v32 = vpop.permute.xlu1 %7630 }
0x2d22   :  { %15443 = vmatpush3.xpose.msk.msra.mxu0 %vm469_vm5, %v7631_v32 }
0x2d23   :  { %15452 = vmatprep.subr.mxu0 %v17106_v18 }
0x2d25   :  { %v8146_v30 = vpop.permute.xlu0 %8145  ;;  %15445 = vmatmul.mubr.msk.f32.vlgmr.msra.gmra.mrb[74].mxu0 %vm469_vm5, %v7629_v31  ;;  %v7798_v22 = vpop.permute.xlu1 %7797 }
0x2d26   :  { %15453 = vmatpush3.xpose.msk.msra.mxu0 %vm469_vm5, %v7798_v22  ;;  %15454 = vmatprep.mubr.msk.f32.mxu0 %vm17107_vm4, %v17106_v18 }
0x2d27   :  { %15462 = vmatprep.subr.mxu0 %v17106_v18 }
0x2d29   :  { %v8313_v34 = vpop.permute.xlu0 %8312  ;;  %15455 = vmatmul.mubr.msk.f32.vlgmr.msra.gmra.mrb[76].mxu0 %vm469_vm5, %v7796_v29  ;;  %v7979_v4 = vpop.permute.xlu1 %7978 }
0x2d2a   :  { %15463 = vmatpush3.xpose.msk.msra.mxu0 %vm469_vm5, %v7979_v4  ;;  %15464 = vmatprep.mubr.msk.f32.mxu0 %vm17107_vm4, %v17106_v18 }
0x2d2b   :  { %15472 = vmatprep.subr.mxu0 %v17106_v18 }
0x2d2d   :  { %v8480_v24 = vpop.permute.xlu0 %8479  ;;  %15465 = vmatmul.mubr.msk.f32.vlgmr.msra.gmra.mrb[78].mxu0 %vm469_vm5, %v18563_v36  ;;  %v8144_v38 = vpop.permute.xlu1 %8143 }
0x2d2e   :  { %15473 = vmatpush3.xpose.msk.msra.mxu0 %vm469_vm5, %v8146_v30  ;;  %15474 = vmatprep.mubr.msk.f32.mxu0 %vm17107_vm4, %v17106_v18 }
0x2d2f   :  { %15482 = vmatprep.subr.mxu0 %v17106_v18 }
0x2d31   :  { %v7386_v41 = vpop.permute.xlu0 %7385  ;;  %15475 = vmatmul.mubr.msk.f32.vlgmr.msra.gmra.mrb[80].mxu0 %vm469_vm5, %v8144_v38  ;;  %v8311_v58 = vpop.permute.xlu1 %8310 }
0x2d32   :  { %15428 = vmatpush3.msra.mxu1 %v7386_v41  ;;  %15483 = vmatpush3.xpose.msk.msra.mxu0 %vm469_vm5, %v8313_v34 }
0x2d33   :  { %15484 = vmatprep.mubr.msk.f32.mxu0 %vm17107_vm4, %v17106_v18  ;;  %15492 = vmatprep.subr.mxu0 %v17106_v18 }
0x2d34   :  { %15437 = vmatprep.subr.mxu1 %v17106_v18 }
0x2d35   :  { %15485 = vmatmul.mubr.msk.f32.vlgmr.msra.gmra.mrb[82].mxu0 %vm469_vm5, %v8311_v58  ;;  %v8478_v56 = vpop.permute.xlu1 %8477 }
0x2d36   :  { %15493 = vmatpush3.xpose.msk.msra.mxu0 %vm469_vm5, %v8480_v24  ;;  %15494 = vmatprep.mubr.msk.f32.mxu0 %vm17107_vm4, %v17106_v18 }
0x2d39   :  { %15495 = vmatmul.mubr.msk.f32.vlgmr.msra.gmra.mrb[84].mxu0 %vm469_vm5, %v8478_v56  ;;  %v18667_v4 = vpop.permute.xlu1 %7552 }
0x2df0   :  { %v7368_v43 = vpop.f32.mrb[86].mxu1 }
0x2df1   :  { %v7372_v45 = vmul.f32 0.35355338, %v7368_v43  ;;  %v15426_v48 = vpop.f32.mrb[87].mxu1  ;;  %v7535_v53 = vpop.f32.mrb[72].mxu0 }
0x2df2   :  { %v7539_v55 = vmul.f32 0.35355338, %v7535_v53  ;;  %v15436_v57 = vpop.f32.mrb[73].mxu0 }
0x2df3   :  { %v7373_v62 = vsel %vm17571_vm6, %v7372_v45, -1000000.0 }
0x2df4   :  { %v7540_v44 = vsel %vm17571_vm6, %v7539_v55, -1000000.0  ;;  %v7374_v0 = vsel %vm469_vm5, %v7373_v62, -inf }
0x2df5   :  { %7375 = vmax.xlane.f32.xlu0 %v7374_v0  ;;  %v7541_v1 = vsel %vm469_vm5, %v7540_v44, -inf }
0x2df6   :  { %7542 = vmax.xlane.f32.xlu1 %v7541_v1 }
0x2df8   :  { %v7702_v2 = vpop.f32.mrb[74].mxu0 }
0x2df9   :  { %v7706_v52 = vmul.f32 0.35355338, %v7702_v2  ;;  %v15446_v3 = vpop.f32.mrb[75].mxu0 }
0x2dfb   :  { %v7707_v20 = vsel %vm17571_vm6, %v7706_v52, -1000000.0 }
0x2dfc   :  { %v7869_v63 = vpop.f32.mrb[76].mxu0  ;;  %v7708_v6 = vsel %vm469_vm5, %v7707_v20, -inf }
0x2dfd   :  { %v7873_v49 = vmul.f32 0.35355338, %v7869_v63  ;;  %7709 = vmax.xlane.f32.xlu0 %v7708_v6  ;;  %v15456_v51 = vpop.f32.mrb[77].mxu0 }
0x2dff   :  { %v7874_v7 = vsel %vm17571_vm6, %v7873_v49, -1000000.0 }
0x2e00   :  { %v8050_v9 = vpop.f32.mrb[78].mxu0  ;;  %v7875_v50 = vsel %vm469_vm5, %v7874_v7, -inf }
0x2e01   :  { %v8054_v14 = vmul.f32 0.35355338, %v8050_v9  ;;  %7876 = vmax.xlane.f32.xlu0 %v7875_v50  ;;  %v15466_v15 = vpop.f32.mrb[79].mxu0 }
0x2e03   :  { %v8055_v8 = vsel %vm17571_vm6, %v8054_v14, -1000000.0 }
0x2e04   :  { %v8217_v16 = vpop.f32.mrb[80].mxu0  ;;  %v8056_v59 = vsel %vm469_vm5, %v8055_v8, -inf }
0x2e05   :  { %v8221_v26 = vmul.f32 0.35355338, %v8217_v16  ;;  %8057 = vmax.xlane.f32.xlu1 %v8056_v59  ;;  %v15476_v17 = vpop.f32.mrb[81].mxu0 }
0x2e07   :  { %v8222_v12 = vsel %vm17571_vm6, %v8221_v26, -1000000.0 }
0x2e08   :  { %v8384_v19 = vpop.f32.mrb[82].mxu0  ;;  %v8223_v47 = vsel %vm469_vm5, %v8222_v12, -inf }
0x2e09   :  { %v8388_v46 = vmul.f32 0.35355338, %v8384_v19  ;;  %8224 = vmax.xlane.f32.xlu0 %v8223_v47  ;;  %v15486_v60 = vpop.f32.mrb[83].mxu0 }
0x2e0b   :  { %v8389_v31 = vsel %vm17571_vm6, %v8388_v46, -1000000.0 }
0x2e0c   :  { %v8551_v27 = vpop.f32.mrb[84].mxu0  ;;  %v8390_v29 = vsel %vm469_vm5, %v8389_v31, -inf }
0x2e0d   :  { %v8555_v32 = vmul.f32 0.35355338, %v8551_v27  ;;  %8391 = vmax.xlane.f32.xlu1 %v8390_v29  ;;  %v15496_v30 = vpop.f32.mrb[85].mxu0 }
0x2e0f   :  { %v8556_v22 = vsel %vm17571_vm6, %v8555_v32, -1000000.0 }
0x2e10   :  { %v8557_v34 = vsel %vm469_vm5, %v8556_v22, -inf }
0x2e11   :  { %8558 = vmax.xlane.f32.xlu0 %v8557_v34 }
0x2e1e   :  { %7886 = vrot.lane.b32.xlu1 %v18565_v42, %s19578_s15 }
0x2e27   :  { %7719 = vrot.lane.b32.xlu0 %v18565_v42, %s19579_s8 }
0x2e82   :  { %v7376_v24 = vpop.xlane.xlu0 %7375 }
0x2e83   :  { %v7377_v38 = vsub.f32 %v7373_v62, %v7376_v24  ;;  %v7543_v41 = vpop.xlane.xlu1 %7542 }
0x2e84   :  { %v7544_v58 = vsub.f32 %v7540_v44, %v7543_v41 }
0x2e85   :  { %v7378_v56 = vmul.f32 1.442695, %v7377_v38 }
0x2e86   :  { %v7545_v43 = vmul.f32 1.442695, %v7544_v58 }
0x2e87   :  { %16616 = vpow2.f32 %v7378_v56 }
0x2e88   :  { %16618 = vpow2.f32 %v7545_v43 }
0x2e8a   :  { %v7710_v37 = vpop.xlane.xlu0 %7709 }
0x2e8b   :  { %v7711_v45 = vsub.f32 %v7707_v20, %v7710_v37 }
0x2e8d   :  { %v7712_v48 = vmul.f32 1.442695, %v7711_v45 }
0x2e8e   :  { %v7877_v53 = vpop.xlane.xlu0 %7876 }
0x2e8f   :  { %16620 = vpow2.f32 %v7712_v48  ;;  %v7878_v55 = vsub.f32 %v7874_v7, %v7877_v53 }
0x2e91   :  { %v16617_v57 = vpop.eup %16616  ;;  %v7879_v0 = vmul.f32 1.442695, %v7878_v55 }
0x2e92   :  { %v16619_v1 = vpop.eup %16618  ;;  %v7380_v42 = vsel %vm469_vm5, %v16617_v57, 0.0  ;;  %v8058_v20 = vpop.xlane.xlu1 %8057 }
0x2e93   :  { %16622 = vpow2.f32 %v7879_v0  ;;  %7381 = vadd.xlane.f32.xlu1 %v7380_v42  ;;  %v7547_v62 = vsel %vm469_vm5, %v16619_v1, 0.0  ;;  %v8059_v63 = vsub.f32 %v8055_v8, %v8058_v20 }
0x2e94   :  { %7548 = vadd.xlane.f32.xlu0 %v7547_v62 }
0x2e95   :  { %v8060_v7 = vmul.f32 1.442695, %v8059_v63 }
0x2e96   :  { %v8225_v6 = vpop.xlane.xlu0 %8224 }
0x2e97   :  { %v8226_v51 = vsub.f32 %v8222_v12, %v8225_v6  ;;  %16624 = vpow2.f32 %v8060_v7 }
0x2e99   :  { %v16621_v44 = vpop.eup %16620  ;;  %v8227_v14 = vmul.f32 1.442695, %v8226_v51 }
0x2e9a   :  { %v7714_v2 = vsel %vm469_vm5, %v16621_v44, 0.0  ;;  %v8392_v49 = vpop.xlane.xlu1 %8391 }
0x2e9b   :  { %7715 = vadd.xlane.f32.xlu1 %v7714_v2  ;;  %v8393_v9 = vsub.f32 %v8389_v31, %v8392_v49  ;;  %16626 = vpow2.f32 %v8227_v14 }
0x2e9d   :  { %v18672_v52 = vpop.eup %16622  ;;  %v8394_v15 = vmul.f32 1.442695, %v8393_v9 }
0x2e9e   :  { %v7881_v3 = vsel %vm469_vm5, %v18672_v52, 0.0  ;;  %v8559_v50 = vpop.xlane.xlu0 %8558  ;;  %v7887_v31 = vpop.permute.xlu1 %7886 }
0x2e9f   :  { %7882 = vadd.xlane.f32.xlu0 %v7881_v3  ;;  %v8560_v16 = vsub.f32 %v8556_v22, %v8559_v50  ;;  %16628 = vpow2.f32 %v8394_v15  ;;  %v14247_v15 = vld [vmem:[%s19560_s2 + $0x20] sm:$0xff] }
0x2ea1   :  { %v8561_v59 = vmul.f32 1.442695, %v8560_v16  ;;  %v16625_v26 = vpop.eup %16624  ;;  %v14248_v16 = vld [vmem:[%s19560_s2 + $0x28] sm:$0xff] }
0x2ea2   :  { %v8062_v19 = vsel %vm469_vm5, %v16625_v26, 0.0  ;;  %v7720_v27 = vpop.permute.xlu0 %7719 }
0x2ea3   :  { %16630 = vpow2.f32 %v8561_v59  ;;  %v16120_v59 = vpack.c.bf16 %v14248_v16, %v14247_v15  ;;  %v16765_v15 = vld [vmem:[#allocation6 + $0x18] sm:$0xff]  ;;  %v14279_v16 = vld [vmem:[%s19562_s11 + $0x20] sm:$0xff] }
0x2ea5   :  { %v18680_v17 = vpop.eup %16626  ;;  %16121 = vmatprep.subr.bf16.mxu0 %v16120_v59 }
0x2ea6   :  { %v8229_v12 = vsel %vm469_vm5, %v18680_v17, 0.0  ;;  %16123 = vmatpush3.bf16.msra.mxu0 %v16120_v59  ;;  %v14280_v59 = vld [vmem:[%s19562_s11 + $0x28] sm:$0xff] }
0x2ea9   :  { %v18683_v8 = vpop.eup %16628 }
0x2eaa   :  { %v8396_v47 = vsel %vm469_vm5, %v18683_v8, 0.0 }
0x2eac   :  { %8234 = vrot.lane.b32.xlu1 %v18563_v36, %s17116_s5  ;;  %s19581_s5 = smov 24  }
0x2ead   :  { %v18689_v46 = vpop.eup %16630 }
0x2eae   :  { %v8563_v60 = vsel %vm469_vm5, %v18689_v46, 0.0 }
0x2eb5   :  { %8067 = vrot.lane.b32.xlu0 %v18563_v36, %s17102_s20  ;;  %s19580_s20 = smov 16  }
0x2ed0   :  { %8063 = vadd.xlane.f32.xlu1 %v8062_v19 }
0x2ed4   :  { %8230 = vadd.xlane.f32.xlu0 %v8229_v12  ;;  %8397 = vadd.xlane.f32.xlu1 %v8396_v47 }
0x2ed8   :  { %8564 = vadd.xlane.f32.xlu1 %v8563_v60 }
0x2ee9   :  { %8568 = vrot.lane.b32.xlu1 %v18563_v36, %s19578_s15 }
0x2eea   :  { %8401 = vrot.lane.b32.xlu0 %v18563_v36, %s19579_s8 }
0x2f20   :  { %v7382_v29 = vpop.xlane.xlu1 %7381 }
0x2f21   :  { %16632 = vrcp.f32 %v7382_v29  ;;  %v7549_v32 = vpop.xlane.xlu0 %7548 }
0x2f22   :  { %16634 = vrcp.f32 %v7549_v32 }
0x2f28   :  { %v7716_v30 = vpop.xlane.xlu1 %7715 }
0x2f29   :  { %16636 = vrcp.f32 %v7716_v30 }
0x2f2b   :  { %v16633_v22 = vpop.eup %16632 }
0x2f2c   :  { %v7883_v34 = vpop.xlane.xlu0 %7882  ;;  %v7384_v24 = vmul.f32 %v16633_v22, %v16617_v57  ;;  %v16635_v38 = vpop.eup %16634 }
0x2f2d   :  { %16638 = vrcp.f32 %v7883_v34  ;;  %v7551_v36 = vmul.f32 %v16635_v38, %v16619_v1  ;;  %v8235_v37 = vpop.permute.xlu1 %8234 }
0x2f2e   :  { %15430 = vmatmul.mubr.msk.f32.vlgmr.msra.gmra.mrb[88].mxu1 %vm469_vm5, %v7384_v24 }
0x2f2f   :  { %15438 = vmatpush3.msra.mxu1 %v18667_v4  ;;  %15439 = vmatprep.mubr.msk.f32.mxu1 %vm17107_vm4, %v17106_v18 }
0x2f30   :  { %15447 = vmatprep.subr.mxu1 %v17106_v18  ;;  %v8068_v43 = vpop.permute.xlu0 %8067 }
0x2f32   :  { %15440 = vmatmul.mubr.msk.f32.vlgmr.msra.gmra.mrb[90].mxu1 %vm469_vm5, %v7551_v36 }
0x2f33   :  { %v16637_v41 = vpop.eup %16636  ;;  %15448 = vmatpush3.msra.mxu1 %v7720_v27  ;;  %15449 = vmatprep.mubr.msk.f32.mxu1 %vm17107_vm4, %v17106_v18 }
0x2f34   :  { %15457 = vmatprep.subr.mxu1 %v17106_v18  ;;  %v7718_v58 = vmul.f32 %v16637_v41, %v16621_v44 }
0x2f36   :  { %15450 = vmatmul.mubr.msk.f32.vlgmr.msra.gmra.mrb[92].mxu1 %vm469_vm5, %v7718_v58 }
0x2f37   :  { %v16639_v56 = vpop.eup %16638  ;;  %15458 = vmatpush3.msra.mxu1 %v7887_v31  ;;  %15459 = vmatprep.mubr.msk.f32.mxu1 %vm17107_vm4, %v17106_v18 }
0x2f38   :  { %15467 = vmatprep.subr.mxu1 %v17106_v18  ;;  %v7885_v4 = vmul.f32 %v16639_v56, %v18672_v52 }
0x2f3a   :  { %15460 = vmatmul.mubr.msk.f32.vlgmr.msra.gmra.mrb[94].mxu1 %vm469_vm5, %v7885_v4 }
0x2f3b   :  { %15468 = vmatpush3.msra.mxu1 %v8068_v43  ;;  %15469 = vmatprep.mubr.msk.f32.mxu1 %vm17107_vm4, %v17106_v18 }
0x2f3c   :  { %15477 = vmatprep.subr.mxu1 %v17106_v18 }
0x2f5d   :  { %v8064_v45 = vpop.xlane.xlu1 %8063 }
0x2f5e   :  { %16640 = vrcp.f32 %v8064_v45 }
0x2f61   :  { %v8231_v48 = vpop.xlane.xlu0 %8230  ;;  %v8398_v53 = vpop.xlane.xlu1 %8397 }
0x2f62   :  { %16642 = vrcp.f32 %v8231_v48 }
0x2f63   :  { %16644 = vrcp.f32 %v8398_v53 }
0x2f65   :  { %v8565_v55 = vpop.xlane.xlu1 %8564  ;;  %v8402_v44 = vpop.permute.xlu0 %8401 }
0x2f66   :  { %16646 = vrcp.f32 %v8565_v55 }
0x2f68   :  { %v16641_v57 = vpop.eup %16640 }
0x2f69   :  { %v8066_v0 = vmul.f32 %v16641_v57, %v16625_v26  ;;  %v8569_v3 = vpop.permute.xlu1 %8568  ;;  %v14249_v26 = vld [vmem:[%s19560_s2 + $0x30] sm:$0xff] }
0x2f6b   :  { %15470 = vmatmul.mubr.msk.f32.vlgmr.msra.gmra.mrb[96].mxu1 %vm469_vm5, %v8066_v0 }
0x2f6c   :  { %v16643_v1 = vpop.eup %16642  ;;  %15478 = vmatpush3.msra.mxu1 %v8235_v37  ;;  %15479 = vmatprep.mubr.msk.f32.mxu1 %vm17107_vm4, %v17106_v18  ;;  %v16762_v37 = vld [vmem:[#allocation6] sm:$0xff] }
0x2f6d   :  { %15487 = vmatprep.subr.mxu1 %v17106_v18  ;;  %v8233_v42 = vmul.f32 %v16643_v1, %v18680_v17  ;;  %v16645_v62 = vpop.eup %16644  ;;  %v14250_v17 = vld [vmem:[%s19560_s2 + $0x38] sm:$0xff]  ;;  %v14283_v1 = vld [vmem:[%s19561_s9 + $0x20] sm:$0xff] }
0x2f6e   :  { %v8400_v2 = vmul.f32 %v16645_v62, %v18683_v8  ;;  %v16124_v19 = vpack.c.bf16 %v14250_v17, %v14249_v26  ;;  %v16128_v26 = vpack.c.bf16 %v14280_v59, %v14279_v16  ;;  %v14281_v17 = vld [vmem:[%s19562_s11 + $0x30] sm:$0xff] }
0x2f6f   :  { %15480 = vmatmul.mubr.msk.f32.vlgmr.msra.gmra.mrb[98].mxu1 %vm469_vm5, %v8233_v42  ;;  %v14284_v42 = vld [vmem:[%s19561_s9 + $0x28] sm:$0xff] }
0x2f70   :  { %15488 = vmatpush3.msra.mxu1 %v8402_v44  ;;  %15489 = vmatprep.mubr.msk.f32.mxu1 %vm17107_vm4, %v17106_v18  ;;  %v16647_v52 = vpop.eup %16646  ;;  %v16136_v62 = vpack.c.bf16 %v14284_v42, %v14283_v1 }
0x2f71   :  { %15497 = vmatprep.subr.mxu1 %v17106_v18  ;;  %v8567_v20 = vmul.f32 %v16647_v52, %v18689_v46  ;;  %16125 = vmatprep.subr.bf16.mxu0 %v16124_v19 }
0x2f72   :  { %16127 = vmatpush3.bf16.msra.mxu0 %v16124_v19  ;;  %v14282_v19 = vld [vmem:[%s19562_s11 + $0x38] sm:$0xff] }
0x2f73   :  { %15490 = vmatmul.mubr.msk.f32.vlgmr.msra.gmra.mrb[100].mxu1 %vm469_vm5, %v8400_v2  ;;  %16137 = vmatprep.subr.bf16.mxu0 %v16136_v62 }
0x2f74   :  { %15498 = vmatpush3.msra.mxu1 %v8569_v3  ;;  %15499 = vmatprep.mubr.msk.f32.mxu1 %vm17107_vm4, %v17106_v18 }
0x2f75   :  { %16129 = vmatprep.subr.bf16.mxu1 %v16128_v26 }
0x2f77   :  { %15500 = vmatmul.mubr.msk.f32.vlgmr.msra.gmra.mrb[102].mxu1 %vm469_vm5, %v8567_v20 }
0x2f78   :  { %16131 = vmatpush3.bf16.msra.mxu1 %v16128_v26 }
0x3001   :  { %v7457_v63 = vpop.f32.mrb[88].mxu1 }
0x3002   :  { %v15431_v6 = vpop.f32.mrb[89].mxu1 }
0x3005   :  { %v7624_v49 = vpop.f32.mrb[90].mxu1 }
0x3006   :  { %7963 = vrot.lane.b32.xlu0 %v7624_v49, %s17092_s10  ;;  %v15441_v51 = vpop.f32.mrb[91].mxu1 }
0x3007   :  { %v14285_v51 = vld [vmem:[%s19561_s9 + $0x30] sm:$0xff] }
0x3009   :  { %v7791_v7 = vpop.f32.mrb[92].mxu1 }
0x300a   :  { %7967 = vrot.lane.b32.xlu1 %v7791_v7, %s19580_s20  ;;  %v15451_v9 = vpop.f32.mrb[93].mxu1  ;;  %v14286_v7 = vld [vmem:[%s19561_s9 + $0x38] sm:$0xff] }
0x300b   :  { %v16140_v9 = vpack.c.bf16 %v14286_v7, %v14285_v51 }
0x300d   :  { %v7958_v50 = vpop.f32.mrb[94].mxu1 }
0x300e   :  { %7971 = vrot.lane.b32.xlu1 %v7958_v50, %s19581_s5  ;;  %v15461_v14 = vpop.f32.mrb[95].mxu1  ;;  %v16763_v50 = vld [vmem:[#allocation6 + $0x8] sm:$0xff] }
0x300f   :  { %v16764_v14 = vld [vmem:[#allocation6 + $0x10] sm:$0xff] }
0x303e   :  { %v8139_v8 = vpop.f32.mrb[96].mxu1 }
0x303f   :  { %v15471_v12 = vpop.f32.mrb[97].mxu1 }
0x3042   :  { %v8306_v47 = vpop.f32.mrb[98].mxu1 }
0x3043   :  { %8645 = vrot.lane.b32.xlu0 %v8306_v47, %s17092_s10  ;;  %v15481_v46 = vpop.f32.mrb[99].mxu1 }
0x3046   :  { %v8473_v60 = vpop.f32.mrb[100].mxu1 }
0x3047   :  { %8649 = vrot.lane.b32.xlu0 %v8473_v60, %s19580_s20  ;;  %v15491_v31 = vpop.f32.mrb[101].mxu1 }
0x304a   :  { %v8640_v27 = vpop.f32.mrb[102].mxu1 }
0x304b   :  { %8653 = vrot.lane.b32.xlu1 %v8640_v27, %s19581_s5  ;;  %v15501_v29 = vpop.f32.mrb[103].mxu1 }
0x304c   :  { %v14242_v29 = vld [vmem:[%s19505_s22 + $0x4] sm:$0xf] }
0x3078   :  { %v7964_v32 = vpop.permute.xlu0 %7963 }
0x3079   :  { %v7974_v22 = vsel %vm469_vm5, %v7457_v63, %v7964_v32  ;;  %v7203_v32 = vld [vmem:[#allocation22 + $0x4] sm:$0xf] }
0x307c   :  { %v7968_v30 = vpop.permute.xlu1 %7967 }
0x307d   :  { %v7975_v34 = vsel %vm1147_vm7, %v7974_v22, %v7968_v30  ;;  %v8771_v30 = vrot.slane %v14242_v29, %v17803_v61 }
0x3080   :  { %v7972_v24 = vpop.permute.xlu1 %7971 }
0x3081   :  { %v7976_v38 = vsel %vm1149_vm8, %v7975_v34, %v7972_v24  ;;  %v8777_v24 = vrot.slane %v7203_v32, %v17803_v61 }
0x3082   :  { %15510 = vmatprep.mubr.msk.f32.mxu0 %vm384_vm3, %v7976_v38 }
0x30b5   :  { %v8646_v36 = vpop.permute.xlu0 %8645 }
0x30b6   :  { %v8656_v58 = vsel %vm469_vm5, %v8139_v8, %v8646_v36  ;;  %v16132_v8 = vpack.c.bf16 %v14282_v19, %v14281_v17 }
0x30b8   :  { %16133 = vmatprep.subr.bf16.mxu1 %v16132_v8 }
0x30b9   :  { %v8650_v41 = vpop.permute.xlu0 %8649  ;;  %16135 = vmatpush3.bf16.msra.mxu1 %v16132_v8 }
0x30ba   :  { %v8657_v56 = vsel %vm1147_vm7, %v8656_v58, %v8650_v41  ;;  %16144 = vmatprep.subr.bf16.mxu1 %v17120_v54 }
0x30bd   :  { %v8654_v4 = vpop.permute.xlu1 %8653 }
0x30be   :  { %v8658_v43 = vsel %vm1149_vm8, %v8657_v56, %v8654_v4 }
0x30bf   :  { %15511 = vmatmul.mubr.msk.f32.vlgmr.msra.gmra.mrb[86].mxu0 %vm384_vm3, %v8658_v43 }
0x30c0   :  { %15532 = vmatprep.mubr.msk.f32.mxu0 %vm384_vm3, %v16762_v37  ;;  %16139 = vmatpush3.bf16.msra.mxu0 %v16136_v62 }
0x30c1   :  { %16141 = vmatprep.subr.bf16.mxu0 %v16140_v9 }
0x30c4   :  { %16143 = vmatpush3.bf16.msra.mxu0 %v16140_v9 }
0x30c5   :  { %16151 = vmatprep.subr.bf16.mxu0 %v17120_v54 }
0x30c7   :  { %15533 = vmatmul.mubr.msk.f32.vlgmr.msra.gmra.mrb[88].mxu0 %vm384_vm3, %v16763_v50 }
0x30c8   :  { %15535 = vmatprep.mubr.msk.f32.mxu0 %vm384_vm3, %v16764_v14 }
0x30cb   :  { %15536 = vmatmul.mubr.msk.f32.gmra.mrb[90].mxu0 %vm384_vm3, %v16765_v15 }
0x30cc   :  { %15556 = vmatprep.mubr.msk.f32.mxu0 %vm17107_vm4, %v17106_v18 }
0x3192   :  { %v15512_v45 = vpop.f32.mrb[86].mxu0 }
0x3193   :  { %v8741_v48 = vadd.f32 %v15512_v45, %v18555_v21  ;;  %v8731_v53 = vpop.f32.mrb[87].mxu0 }
0x3194   :  { %v8740_v55 = vadd.f32 %v8731_v53, %v18553_v23 }
0x3195   :  { %v8745_v57 = vsel %vm384_vm3, %v8741_v48, 0.0 }
0x3196   :  { %8746 = vadd.xlane.f32.xlu1 %v8745_v57  ;;  %v8742_v0 = vsel %vm384_vm3, %v8740_v55, 0.0 }
0x3197   :  { %8743 = vadd.xlane.f32.xlu0 %v8742_v0 }
0x319a   :  { %v15534_v43 = vpop.f32.mrb[88].mxu0 }
0x319b   :  { %v8942_v37 = vpop.f32.mrb[89].mxu0 }
0x319c   :  { %v18809_v61 = vpack.i.bf16 %v15534_v43, %v8942_v37  ;;  %v16145_v45 = vpack.c.bf16 %v15534_v43, %v8942_v37 }
0x319e   :  { %v18833_v42 = vpop.f32.mrb[90].mxu0 }
0x319f   :  { %v18835_v62 = vpop.f32.mrb[91].mxu0 }
0x31a7   :  { %16403 = vrot.lane.b32.xlu1 %v18809_v61, %s17110_s3 }
0x31ab   :  { %16408 = vrot.lane.b32.xlu1 %v18809_v61, %s17111_s4 }
0x3223   :  { %v8747_v21 = vpop.xlane.xlu1 %8746 }
0x3224   :  { %v8749_v44 = vmul.f32 0.03125, %v8747_v21  ;;  %v8744_v23 = vpop.xlane.xlu0 %8743 }
0x3225   :  { %v8748_v2 = vmul.f32 0.03125, %v8744_v23 }
0x3226   :  { %v8751_v52 = vsub.f32 %v8741_v48, %v8749_v44 }
0x3227   :  { %v8750_v3 = vsub.f32 %v8740_v55, %v8748_v2  ;;  %v16404_v48 = vpop.permute.xlu1 %16403 }
0x3228   :  { %v8753_v6 = vmul.f32 %v8751_v52, %v8751_v52  ;;  %v16406_v53 = vunpack.i.h.bf16 %v16404_v48  ;;  %v16405_v55 = vunpack.i.l.bf16 %v16404_v48 }
0x3229   :  { %v8752_v20 = vmul.f32 %v8750_v3, %v8750_v3 }
0x322a   :  { %v8757_v49 = vsel %vm384_vm3, %v8753_v6, 0.0  ;;  %v16152_v57 = vpack.c.bf16 %v16406_v53, %v16405_v55 }
0x322b   :  { %v8754_v63 = vsel %vm384_vm3, %v8752_v20, 0.0  ;;  %v16409_v21 = vpop.permute.xlu1 %16408  ;;  %v18848_v20 = vpack.i.bf16 %v18833_v42, %v18835_v62 }
0x322c   :  { %8755 = vadd.xlane.f32.xlu0 %v8754_v63  ;;  %16154 = vmatpush3.bf16.xpose.msk.msra.mxu0 %vm17822_vm9, %v16152_v57  ;;  %v16411_v44 = vunpack.i.h.bf16 %v16409_v21  ;;  %v16410_v23 = vunpack.i.l.bf16 %v16409_v21  ;;  %v16173_v63 = vpack.c.bf16 %v18833_v42, %v18835_v62 }
0x322d   :  { %16158 = vmatprep.subr.bf16.mxu0 %v17120_v54 }
0x322e   :  { %v16159_v2 = vpack.c.bf16 %v16411_v44, %v16410_v23 }
0x3230   :  { %8758 = vadd.xlane.f32.xlu0 %v8757_v49 }
0x32b9   :  { %v8756_v12 = vpop.xlane.xlu0 %8755 }
0x32ba   :  { %v8760_v47 = vmul.f32 0.03125, %v8756_v12 }
0x32bc   :  { %v8762_v46 = vadd.f32 1e-05, %v8760_v47 }
0x32bd   :  { %v8759_v60 = vpop.xlane.xlu0 %8758 }
0x32be   :  { %16648 = vrsqrt.f32 %v8762_v46  ;;  %v8761_v31 = vmul.f32 0.03125, %v8759_v60 }
0x32c0   :  { %v8763_v27 = vadd.f32 1e-05, %v8761_v31 }
0x32c2   :  { %16650 = vrsqrt.f32 %v8763_v27 }
0x32c8   :  { %v16649_v22 = vpop.eup %16648 }
0x32c9   :  { %v8766_v34 = vmul.f32 %v16649_v22, %v8750_v3 }
0x32cb   :  { %v8772_v38 = vmul.f32 %v8771_v30, %v8766_v34 }
0x32cc   :  { %v16651_v36 = vpop.eup %16650 }
0x32cd   :  { %v8767_v41 = vmul.f32 %v16651_v36, %v8751_v52  ;;  %v18799_v58 = vadd.f32 %v8777_v24, %v8772_v38 }
0x32cf   :  { %v8773_v56 = vmul.f32 %v8771_v30, %v8767_v41  ;;  %15521 = vmatprep.mubr.msk.f32.mxu1 %vm384_vm3, %v18799_v58 }
0x32d1   :  { %v18803_v4 = vadd.f32 %v8777_v24, %v8773_v56 }
0x32d3   :  { %15522 = vmatmul.mubr.msk.f32.vlgmr.msra.gmra.mrb[104].mxu1 %vm384_vm3, %v18803_v4 }
0x32d4   :  { %15542 = vmatprep.mubr.msk.f32.mxu1 %vm17107_vm4, %v17106_v18  ;;  %16147 = vmatpush3.bf16.xpose.msk.msra.mxu1 %vm17822_vm9, %v16145_v45 }
0x32d5   :  { %16148 = vmatprep.subr.bf16.mxu1 %v17120_v54 }
0x33a6   :  { %v18821_v0 = vpop.f32.mrb[104].mxu1 }
0x33a7   :  { %v18823_v1 = vpop.f32.mrb[105].mxu1 }
0x33a8   :  { %9306 = vrot.lane.b32.xlu1 %v18823_v1, %s17111_s4  ;;  %9132 = vrot.lane.b32.xlu0 %v18823_v1, %s17110_s3 }
0x33a9   :  { %15543 = vmatmul.mubr.msk.f32.vlgmr.msra.gmra.mrb[106].mxu1 %vm469_vm5, %v18823_v1 }
0x33aa   :  { %15549 = vmatprep.mubr.msk.f32.mxu1 %vm17107_vm4, %v17106_v18 }
0x341a   :  { %v9133_v52 = vpop.permute.xlu0 %9132  ;;  %v9307_v3 = vpop.permute.xlu1 %9306 }
0x341b   :  { %15557 = vmatmul.mubr.msk.f32.vlgmr.msra.gmra.mrb[92].mxu0 %vm469_vm5, %v9133_v52 }
0x341c   :  { %16161 = vmatpush3.bf16.xpose.msk.msra.mxu0 %vm17822_vm9, %v16159_v2  ;;  %15570 = vmatprep.mubr.msk.f32.mxu0 %vm17107_vm4, %v17106_v18 }
0x341d   :  { %16169 = vmatprep.subr.bf16.mxu0 %v17120_v54 }
0x3423   :  { %15571 = vmatmul.mubr.msk.f32.vlgmr.msra.gmra.mrb[94].mxu0 %vm469_vm5, %v9307_v3 }
0x3424   :  { %15591 = vmatprep.mubr.msk.f32.mxu0 %vm17107_vm4, %v17106_v18 }
0x347c   :  { %v9036_v6 = vpop.f32.mrb[106].mxu1 }
0x347d   :  { %v9040_v49 = vmul.f32 0.35355338, %v9036_v6  ;;  %v15544_v51 = vpop.f32.mrb[107].mxu1 }
0x347f   :  { %v9041_v7 = vsel %vm17874_vm10, %v9040_v49, -1000000.0 }
0x3480   :  { %v9042_v9 = vsel %vm1147_vm7, %v9041_v7, -inf }
0x3481   :  { %9043 = vmax.xlane.f32.xlu0 %v9042_v9 }
0x34ee   :  { %v9210_v50 = vpop.f32.mrb[92].mxu0 }
0x34ef   :  { %v9214_v14 = vmul.f32 0.35355338, %v9210_v50  ;;  %v15558_v15 = vpop.f32.mrb[93].mxu0 }
0x34f1   :  { %v9215_v16 = vsel %vm17874_vm10, %v9214_v14, -1000000.0 }
0x34f2   :  { %v9216_v59 = vsel %vm1147_vm7, %v9215_v16, -inf }
0x34f3   :  { %9217 = vmax.xlane.f32.xlu1 %v9216_v59 }
0x34f6   :  { %v9384_v26 = vpop.f32.mrb[94].mxu0 }
0x34f7   :  { %v9388_v17 = vmul.f32 0.35355338, %v9384_v26  ;;  %v15572_v19 = vpop.f32.mrb[95].mxu0 }
0x34f9   :  { %v9389_v8 = vsel %vm17874_vm10, %v9388_v17, -1000000.0 }
0x34fa   :  { %v9390_v12 = vsel %vm1147_vm7, %v9389_v8, -inf }
0x34fb   :  { %9391 = vmax.xlane.f32.xlu0 %v9390_v12 }
0x3504   :  { %16413 = vrot.lane.b32.xlu1 %v18809_v61, %s17108_s14 }
0x350e   :  { %v9044_v47 = vpop.xlane.xlu0 %9043 }
0x350f   :  { %v9045_v46 = vsub.f32 %v9041_v7, %v9044_v47 }
0x3511   :  { %v9046_v60 = vmul.f32 1.442695, %v9045_v46 }
0x3513   :  { %16652 = vpow2.f32 %v9046_v60 }
0x351d   :  { %v16653_v31 = vpop.eup %16652 }
0x351e   :  { %v9048_v27 = vsel %vm1147_vm7, %v16653_v31, 0.0 }
0x351f   :  { %9049 = vadd.xlane.f32.xlu0 %v9048_v27 }
0x3580   :  { %v9218_v29 = vpop.xlane.xlu1 %9217 }
0x3581   :  { %v9219_v32 = vsub.f32 %v9215_v16, %v9218_v29 }
0x3583   :  { %v9220_v30 = vmul.f32 1.442695, %v9219_v32 }
0x3584   :  { %v16414_v22 = vpop.permute.xlu1 %16413 }
0x3585   :  { %16654 = vpow2.f32 %v9220_v30  ;;  %v16416_v34 = vunpack.i.h.bf16 %v16414_v22  ;;  %v16415_v24 = vunpack.i.l.bf16 %v16414_v22 }
0x3587   :  { %v16149_v38 = vpack.c.bf16 %v16416_v34, %v16415_v24 }
0x3588   :  { %v9392_v36 = vpop.xlane.xlu0 %9391 }
0x3589   :  { %v9393_v41 = vsub.f32 %v9389_v8, %v9392_v36  ;;  %16150 = vmatpush3.bf16.msra.mxu1 %v16149_v38 }
0x358a   :  { %16155 = vmatprep.subr.bf16.mxu1 %v17120_v54 }
0x358b   :  { %v9394_v56 = vmul.f32 1.442695, %v9393_v41 }
0x358d   :  { %16656 = vpow2.f32 %v9394_v56 }
0x358f   :  { %v16655_v43 = vpop.eup %16654 }
0x3590   :  { %v9222_v37 = vsel %vm1147_vm7, %v16655_v43, 0.0 }
0x3591   :  { %9223 = vadd.xlane.f32.xlu1 %v9222_v37 }
0x3597   :  { %v16657_v45 = vpop.eup %16656 }
0x3598   :  { %v9396_v48 = vsel %vm1147_vm7, %v16657_v45, 0.0 }
0x3599   :  { %9397 = vadd.xlane.f32.xlu0 %v9396_v48 }
0x35a2   :  { %16423 = vrot.lane.b32.xlu1 %v18809_v61, %s17113_s18 }
0x35a6   :  { %16428 = vrot.lane.b32.xlu1 %v18809_v61, %s17112_s17 }
0x35ac   :  { %v9050_v53 = vpop.xlane.xlu0 %9049 }
0x35ad   :  { %16658 = vrcp.f32 %v9050_v53 }
0x35af   :  { %16418 = vrot.lane.b32.xlu0 %v18809_v61, %s17109_s30 }
0x35b3   :  { %9480 = vrot.lane.b32.xlu0 %v18823_v1, %s17112_s17 }
0x35b7   :  { %v16659_v55 = vpop.eup %16658 }
0x35b8   :  { %v9052_v57 = vmul.f32 %v16659_v55, %v16653_v31 }
0x35ba   :  { %15550 = vmatmul.mubr.msk.f32.vlgmr.msra.gmra.mrb[108].mxu1 %vm1147_vm7, %v9052_v57 }
0x35bb   :  { %15563 = vmatprep.mubr.msk.f32.mxu1 %vm17107_vm4, %v17106_v18 }
0x361e   :  { %v9224_v21 = vpop.xlane.xlu1 %9223 }
0x361f   :  { %16660 = vrcp.f32 %v9224_v21 }
0x3622   :  { %v16424_v23 = vpop.permute.xlu1 %16423 }
0x3623   :  { %v16426_v49 = vunpack.i.h.bf16 %v16424_v23  ;;  %v16425_v51 = vunpack.i.l.bf16 %v16424_v23 }
0x3625   :  { %v16163_v50 = vpack.c.bf16 %v16426_v49, %v16425_v51 }
0x3626   :  { %v9398_v44 = vpop.xlane.xlu0 %9397  ;;  %v16429_v14 = vpop.permute.xlu1 %16428 }
0x3627   :  { %16662 = vrcp.f32 %v9398_v44  ;;  %v16431_v16 = vunpack.i.h.bf16 %v16429_v14  ;;  %v16430_v59 = vunpack.i.l.bf16 %v16429_v14 }
0x3629   :  { %v16661_v6 = vpop.eup %16660  ;;  %v16166_v26 = vpack.c.bf16 %v16431_v16, %v16430_v59 }
0x362a   :  { %v16419_v2 = vpop.permute.xlu0 %16418  ;;  %v9226_v1 = vmul.f32 %v16661_v6, %v16655_v43 }
0x362b   :  { %v16421_v52 = vunpack.i.h.bf16 %v16419_v2  ;;  %v16420_v3 = vunpack.i.l.bf16 %v16419_v2 }
0x362d   :  { %v16156_v7 = vpack.c.bf16 %v16421_v52, %v16420_v3 }
0x362e   :  { %v9481_v17 = vpop.permute.xlu0 %9480 }
0x362f   :  { %16157 = vmatpush3.bf16.msra.mxu1 %v16156_v7 }
0x3630   :  { %16162 = vmatprep.subr.bf16.mxu1 %v17120_v54 }
0x3631   :  { %v16663_v9 = vpop.eup %16662 }
0x3632   :  { %15564 = vmatmul.mubr.msk.f32.vlgmr.msra.gmra.mrb[110].mxu1 %vm1147_vm7, %v9226_v1  ;;  %v9400_v15 = vmul.f32 %v16663_v9, %v16657_v45 }
0x3633   :  { %16164 = vmatpush3.bf16.msra.mxu1 %v16163_v50  ;;  %15577 = vmatprep.mubr.msk.f32.mxu1 %vm17107_vm4, %v17106_v18 }
0x3634   :  { %16165 = vmatprep.subr.bf16.mxu1 %v17120_v54 }
0x3636   :  { %15578 = vmatmul.mubr.msk.f32.vlgmr.msra.gmra.mrb[112].mxu1 %vm1147_vm7, %v9400_v15 }
0x3637   :  { %15584 = vmatprep.mubr.msk.f32.mxu1 %vm17107_vm4, %v17106_v18 }
0x363c   :  { %16168 = vmatpush3.bf16.xpose.msk.msra.mxu1 %vm17822_vm9, %v16166_v26 }
0x363d   :  { %16176 = vmatprep.subr.bf16.mxu1 %v17120_v54 }
0x3643   :  { %15585 = vmatmul.mubr.msk.f32.vlgmr.msra.gmra.mrb[114].mxu1 %vm469_vm5, %v9481_v17 }
0x3644   :  { %15605 = vmatprep.mubr.msk.f32.mxu1 %vm17107_vm4, %v17106_v18 }
0x368d   :  { %v18892_v19 = vpop.f32.mrb[108].mxu1 }
0x368e   :  { %v15551_v8 = vpop.f32.mrb[109].mxu1 }
0x3705   :  { %v18894_v12 = vpop.f32.mrb[110].mxu1 }
0x3706   :  { %v15565_v47 = vpop.f32.mrb[111].mxu1 }
0x3709   :  { %v18896_v46 = vpop.f32.mrb[112].mxu1 }
0x370a   :  { %v15579_v60 = vpop.f32.mrb[113].mxu1 }
0x3716   :  { %v9558_v31 = vpop.f32.mrb[114].mxu1 }
0x3717   :  { %v9562_v27 = vmul.f32 0.35355338, %v9558_v31  ;;  %v15586_v29 = vpop.f32.mrb[115].mxu1 }
0x3719   :  { %v9563_v32 = vsel %vm17874_vm10, %v9562_v27, -1000000.0 }
0x371a   :  { %v9564_v30 = vsel %vm1147_vm7, %v9563_v32, -inf }
0x371b   :  { %9565 = vmax.xlane.f32.xlu1 %v9564_v30 }
0x37a8   :  { %v9566_v22 = vpop.xlane.xlu1 %9565 }
0x37a9   :  { %v9567_v34 = vsub.f32 %v9563_v32, %v9566_v22 }
0x37ab   :  { %v9568_v24 = vmul.f32 1.442695, %v9567_v34 }
0x37ad   :  { %16664 = vpow2.f32 %v9568_v24 }
0x37b7   :  { %v16665_v38 = vpop.eup %16664 }
0x37b8   :  { %v9570_v36 = vsel %vm1147_vm7, %v16665_v38, 0.0 }
0x37b9   :  { %9571 = vadd.xlane.f32.xlu0 %v9570_v36 }
0x37cf   :  { %16433 = vrot.lane.b32.xlu0 %v18809_v61, %s17114_s29 }
0x37d3   :  { %16443 = vrot.lane.b32.xlu0 %v18848_v20, %s17110_s3 }
0x37d7   :  { %9840 = vrot.lane.b32.xlu0 %v18821_v0, %s17110_s3 }
0x3846   :  { %v9572_v39 = vpop.xlane.xlu0 %9571 }
0x3847   :  { %16666 = vrcp.f32 %v9572_v39 }
0x384a   :  { %v16434_v41 = vpop.permute.xlu0 %16433 }
0x384b   :  { %v16436_v56 = vunpack.i.h.bf16 %v16434_v41  ;;  %v16435_v43 = vunpack.i.l.bf16 %v16434_v41 }
0x384d   :  { %v16170_v37 = vpack.c.bf16 %v16436_v56, %v16435_v43 }
0x384e   :  { %v16444_v1 = vpop.permute.xlu0 %16443 }
0x384f   :  { %16171 = vmatpush3.bf16.msra.mxu0 %v16170_v37  ;;  %v16446_v50 = vunpack.i.h.bf16 %v16444_v1  ;;  %v16445_v14 = vunpack.i.l.bf16 %v16444_v1 }
0x3850   :  { %16172 = vmatprep.subr.bf16.mxu0 %v17120_v54 }
0x3851   :  { %v16667_v45 = vpop.eup %16666  ;;  %v16180_v16 = vpack.c.bf16 %v16446_v50, %v16445_v14 }
0x3852   :  { %v9574_v48 = vmul.f32 %v16667_v45, %v16665_v38  ;;  %v9841_v59 = vpop.permute.xlu0 %9840 }
0x3854   :  { %15592 = vmatmul.mubr.msk.f32.vlgmr.msra.gmra.mrb[96].mxu0 %vm1147_vm7, %v9574_v48 }
0x3855   :  { %15598 = vmatprep.mubr.msk.f32.mxu0 %vm17107_vm4, %v17106_v18 }
0x3858   :  { %16175 = vmatpush3.bf16.xpose.msk.msra.mxu0 %vm17822_vm9, %v16173_v63 }
0x3859   :  { %16183 = vmatprep.subr.bf16.mxu0 %v17120_v54 }
0x385f   :  { %15599 = vmatmul.mubr.msk.f32.vlgmr.msra.gmra.mrb[98].mxu0 %vm469_vm5, %v18821_v0 }
0x3860   :  { %15619 = vmatprep.mubr.msk.f32.mxu0 %vm17107_vm4, %v17106_v18 }
0x3927   :  { %v18922_v61 = vpop.f32.mrb[96].mxu0 }
0x3928   :  { %v15593_v53 = vpop.f32.mrb[97].mxu0 }
0x3932   :  { %v9744_v55 = vpop.f32.mrb[98].mxu0 }
0x3933   :  { %v9748_v57 = vmul.f32 0.35355338, %v9744_v55  ;;  %v15600_v21 = vpop.f32.mrb[99].mxu0 }
0x3935   :  { %v9749_v42 = vsel %vm17951_vm11, %v9748_v57, -1000000.0 }
0x3936   :  { %v9750_v62 = vsel %vm1147_vm7, %v9749_v42, -inf }
0x3937   :  { %9751 = vmax.xlane.f32.xlu1 %v9750_v62 }
0x39c4   :  { %v9752_v63 = vpop.xlane.xlu1 %9751 }
0x39c5   :  { %v9753_v44 = vsub.f32 %v9749_v42, %v9752_v63 }
0x39c7   :  { %v9754_v23 = vmul.f32 1.442695, %v9753_v44 }
0x39c9   :  { %16668 = vpow2.f32 %v9754_v23 }
0x39d3   :  { %v16669_v2 = vpop.eup %16668 }
0x39d4   :  { %v9756_v52 = vsel %vm1147_vm7, %v16669_v2, 0.0 }
0x39d5   :  { %9757 = vadd.xlane.f32.xlu1 %v9756_v52 }
0x39e6   :  { %16438 = vrot.lane.b32.xlu1 %v18848_v20, %s17108_s14 }
0x3a62   :  { %v9758_v3 = vpop.xlane.xlu1 %9757 }
0x3a63   :  { %16670 = vrcp.f32 %v9758_v3 }
0x3a66   :  { %v16439_v6 = vpop.permute.xlu1 %16438 }
0x3a67   :  { %v16441_v49 = vunpack.i.h.bf16 %v16439_v6  ;;  %v16440_v51 = vunpack.i.l.bf16 %v16439_v6 }
0x3a69   :  { %v16177_v7 = vpack.c.bf16 %v16441_v49, %v16440_v51 }
0x3a6b   :  { %16178 = vmatpush3.bf16.msra.mxu1 %v16177_v7 }
0x3a6c   :  { %16179 = vmatprep.subr.bf16.mxu1 %v17120_v54 }
0x3a6d   :  { %v16671_v9 = vpop.eup %16670 }
0x3a6e   :  { %v9760_v15 = vmul.f32 %v16671_v9, %v16669_v2 }
0x3a70   :  { %15606 = vmatmul.mubr.msk.f32.vlgmr.msra.gmra.mrb[116].mxu1 %vm1147_vm7, %v9760_v15 }
0x3a71   :  { %15612 = vmatprep.mubr.msk.f32.mxu1 %vm17107_vm4, %v17106_v18 }
0x3a74   :  { %16182 = vmatpush3.bf16.xpose.msk.msra.mxu1 %vm17822_vm9, %v16180_v16  ;;  %v14331_v16 = vld [vmem:[%s19499_s16 + $0x20] sm:$0xff] }
0x3a75   :  { %16190 = vmatprep.subr.bf16.mxu1 %v17120_v54 }
0x3a7b   :  { %15613 = vmatmul.mubr.msk.f32.vlgmr.msra.gmra.mrb[118].mxu1 %vm469_vm5, %v9841_v59 }
0x3a7c   :  { %15633 = vmatprep.mubr.msk.f32.mxu1 %vm17107_vm4, %v17106_v18 }
0x3b43   :  { %v18940_v26 = vpop.f32.mrb[116].mxu1 }
0x3b44   :  { %v15607_v17 = vpop.f32.mrb[117].mxu1 }
0x3b4e   :  { %v9918_v8 = vpop.f32.mrb[118].mxu1 }
0x3b4f   :  { %v9922_v47 = vmul.f32 0.35355338, %v9918_v8  ;;  %v15614_v60 = vpop.f32.mrb[119].mxu1 }
0x3b50   :  { %v14333_v60 = vld [vmem:[%s19499_s16 + $0x30] sm:$0xff] }
0x3b51   :  { %v9923_v31 = vsel %vm17951_vm11, %v9922_v47, -1000000.0 }
0x3b52   :  { %v9924_v27 = vsel %vm1147_vm7, %v9923_v31, -inf }
0x3b53   :  { %9925 = vmax.xlane.f32.xlu1 %v9924_v27 }
0x3b64   :  { %16453 = vrot.lane.b32.xlu1 %v18848_v20, %s17111_s4 }
0x3b68   :  { %10014 = vrot.lane.b32.xlu1 %v18821_v0, %s17111_s4 }
0x3be0   :  { %v9926_v29 = vpop.xlane.xlu1 %9925 }
0x3be1   :  { %v9927_v32 = vsub.f32 %v9923_v31, %v9926_v29  ;;  %v14334_v31 = vld [vmem:[%s19499_s16 + $0x38] sm:$0xff] }
0x3be2   :  { %v16212_v27 = vpack.c.bf16 %v14334_v31, %v14333_v60 }
0x3be3   :  { %v9928_v30 = vmul.f32 1.442695, %v9927_v32 }
0x3be4   :  { %v16454_v56 = vpop.permute.xlu1 %16453 }
0x3be5   :  { %16672 = vpow2.f32 %v9928_v30  ;;  %v16456_v37 = vunpack.i.h.bf16 %v16454_v56  ;;  %v16455_v45 = vunpack.i.l.bf16 %v16454_v56 }
0x3be7   :  { %v16187_v53 = vpack.c.bf16 %v16456_v37, %v16455_v45 }
0x3be8   :  { %v10015_v55 = vpop.permute.xlu1 %10014 }
0x3bef   :  { %v16673_v22 = vpop.eup %16672 }
0x3bf0   :  { %v9930_v34 = vsel %vm1147_vm7, %v16673_v22, 0.0 }
0x3bf1   :  { %9931 = vadd.xlane.f32.xlu0 %v9930_v34 }
0x3c07   :  { %16448 = vrot.lane.b32.xlu0 %v18848_v20, %s17109_s30 }
0x3c7e   :  { %v9932_v24 = vpop.xlane.xlu0 %9931 }
0x3c7f   :  { %16674 = vrcp.f32 %v9932_v24 }
0x3c82   :  { %v16449_v38 = vpop.permute.xlu0 %16448 }
0x3c83   :  { %v16451_v36 = vunpack.i.h.bf16 %v16449_v38  ;;  %v16450_v39 = vunpack.i.l.bf16 %v16449_v38 }
0x3c85   :  { %v16184_v41 = vpack.c.bf16 %v16451_v36, %v16450_v39 }
0x3c87   :  { %16185 = vmatpush3.bf16.msra.mxu0 %v16184_v41 }
0x3c88   :  { %16186 = vmatprep.subr.bf16.mxu0 %v17120_v54 }
0x3c89   :  { %v16675_v43 = vpop.eup %16674 }
0x3c8a   :  { %v9934_v48 = vmul.f32 %v16675_v43, %v16673_v22 }
0x3c8c   :  { %15620 = vmatmul.mubr.msk.f32.vlgmr.msra.gmra.mrb[100].mxu0 %vm1147_vm7, %v9934_v48 }
0x3c8d   :  { %15626 = vmatprep.mubr.msk.f32.mxu0 %vm17107_vm4, %v17106_v18 }
0x3c90   :  { %16189 = vmatpush3.bf16.xpose.msk.msra.mxu0 %vm17822_vm9, %v16187_v53 }
0x3c91   :  { %16197 = vmatprep.subr.bf16.mxu0 %v17120_v54 }
0x3c97   :  { %15627 = vmatmul.mubr.msk.f32.vlgmr.msra.gmra.mrb[102].mxu0 %vm469_vm5, %v10015_v55 }
0x3c98   :  { %15647 = vmatprep.mubr.msk.f32.mxu0 %vm17107_vm4, %v17106_v18 }
0x3d5f   :  { %v18962_v57 = vpop.f32.mrb[100].mxu0 }
0x3d60   :  { %v15621_v21 = vpop.f32.mrb[101].mxu0 }
0x3d6a   :  { %v10092_v42 = vpop.f32.mrb[102].mxu0 }
0x3d6b   :  { %v10096_v62 = vmul.f32 0.35355338, %v10092_v42  ;;  %v15628_v63 = vpop.f32.mrb[103].mxu0 }
0x3d6d   :  { %v10097_v44 = vsel %vm17951_vm11, %v10096_v62, -1000000.0 }
0x3d6e   :  { %v10098_v23 = vsel %vm1147_vm7, %v10097_v44, -inf }
0x3d6f   :  { %10099 = vmax.xlane.f32.xlu0 %v10098_v23  ;;  %v14288_v23 = vld [vmem:[%s19569_s7 + $0x28] sm:$0xff] }
0x3d85   :  { %16458 = vrot.lane.b32.xlu0 %v18848_v20, %s17113_s18 }
0x3d89   :  { %10188 = vrot.lane.b32.xlu0 %v18821_v0, %s17112_s17 }
0x3dfc   :  { %v10100_v2 = vpop.xlane.xlu0 %10099 }
0x3dfd   :  { %v10101_v52 = vsub.f32 %v10097_v44, %v10100_v2  ;;  %v14287_v44 = vld [vmem:[%s19569_s7 + $0x20] sm:$0xff] }
0x3dfe   :  { %v16200_v2 = vpack.c.bf16 %v14288_v23, %v14287_v44 }
0x3dff   :  { %v10102_v3 = vmul.f32 1.442695, %v10101_v52  ;;  %v14290_v52 = vld [vmem:[%s19569_s7 + $0x38] sm:$0xff] }
0x3e00   :  { %v16459_v6 = vpop.permute.xlu0 %16458 }
0x3e01   :  { %16676 = vpow2.f32 %v10102_v3  ;;  %v16461_v49 = vunpack.i.h.bf16 %v16459_v6  ;;  %v16460_v51 = vunpack.i.l.bf16 %v16459_v6  ;;  %v10464_v6 = vld [vmem:[#allocation14 + $0x20] sm:$0xff] }
0x3e03   :  { %v16191_v7 = vpack.c.bf16 %v16461_v49, %v16460_v51  ;;  %v10465_v49 = vld [vmem:[#allocation14 + $0x28] sm:$0xff] }
0x3e04   :  { %v10189_v29 = vpop.permute.xlu0 %10188  ;;  %v16216_v51 = vpack.c.bf16 %v10465_v49, %v10464_v6 }
0x3e05   :  { %16192 = vmatpush3.bf16.msra.mxu1 %v16191_v7 }
0x3e06   :  { %16193 = vmatprep.subr.bf16.mxu1 %v17120_v54  ;;  %v14332_v54 = vld [vmem:[%s19499_s16 + $0x28] sm:$0xff] }
0x3e07   :  { %v16208_v8 = vpack.c.bf16 %v14332_v54, %v14331_v16 }
0x3e0b   :  { %v16677_v1 = vpop.eup %16676 }
0x3e0c   :  { %v10104_v9 = vsel %vm1147_vm7, %v16677_v1, 0.0 }
0x3e0d   :  { %10105 = vadd.xlane.f32.xlu1 %v10104_v9 }
0x3e1e   :  { %16463 = vrot.lane.b32.xlu1 %v18848_v20, %s17112_s17 }
0x3e9a   :  { %v10106_v50 = vpop.xlane.xlu1 %10105 }
0x3e9b   :  { %16678 = vrcp.f32 %v10106_v50 }
0x3e9e   :  { %v16464_v0 = vpop.permute.xlu1 %16463 }
0x3e9f   :  { %v16466_v14 = vunpack.i.h.bf16 %v16464_v0  ;;  %v16465_v15 = vunpack.i.l.bf16 %v16464_v0  ;;  %v10466_v0 = vld [vmem:[#allocation14 + $0x30] sm:$0xff] }
0x3ea1   :  { %v16194_v47 = vpack.c.bf16 %v16466_v14, %v16465_v15  ;;  %v10467_v14 = vld [vmem:[#allocation14 + $0x38] sm:$0xff] }
0x3ea5   :  { %v16679_v59 = vpop.eup %16678 }
0x3ea6   :  { %v10108_v17 = vmul.f32 %v16679_v59, %v16677_v1  ;;  %v16220_v59 = vpack.c.bf16 %v10467_v14, %v10466_v0 }
0x3ea8   :  { %15634 = vmatmul.mubr.msk.f32.vlgmr.msra.gmra.mrb[120].mxu1 %vm1147_vm7, %v10108_v17 }
0x3ea9   :  { %16196 = vmatpush3.bf16.xpose.msk.msra.mxu1 %vm17822_vm9, %v16194_v47  ;;  %15640 = vmatprep.mubr.msk.f32.mxu1 %vm17107_vm4, %v17106_v18  ;;  %v16767_v47 = vld [vmem:[#allocation10 + $0x8] sm:$0xff] }
0x3eaa   :  { %16209 = vmatprep.subr.bf16.mxu1 %v16208_v8 }
0x3eb0   :  { %15641 = vmatmul.mubr.msk.f32.vlgmr.msra.gmra.mrb[122].mxu1 %vm469_vm5, %v10189_v29 }
0x3eb1   :  { %16211 = vmatpush3.bf16.msra.mxu1 %v16208_v8  ;;  %15669 = vmatprep.mubr.msk.f32.mxu1 %vm384_vm3, %v18799_v58  ;;  %v16766_v8 = vld [vmem:[#allocation10] sm:$0xff] }
0x3eb2   :  { %16213 = vmatprep.subr.bf16.mxu1 %v16212_v27 }
0x3eb5   :  { %16215 = vmatpush3.bf16.msra.mxu1 %v16212_v27 }
0x3eb6   :  { %15683 = vmatprep.subr.mxu1 %v17106_v18 }
0x3eb8   :  { %15670 = vmatmul.mubr.msk.f32.vlgmr.msra.gmra.mrb[124].mxu1 %vm384_vm3, %v18803_v4 }
0x3eb9   :  { %15685 = vmatprep.mubr.msk.f32.mxu1 %vm17107_vm4, %v17106_v18 }
0x3f7b   :  { %v10184_v13 = vpop.f32.mrb[120].mxu1 }
0x3f7c   :  { %v15635_v32 = vpop.f32.mrb[121].mxu1 }
0x3f83   :  { %v10266_v30 = vpop.f32.mrb[122].mxu1 }
0x3f84   :  { %v10270_v22 = vmul.f32 0.35355338, %v10266_v30  ;;  %v15642_v34 = vpop.f32.mrb[123].mxu1 }
0x3f86   :  { %v10271_v24 = vsel %vm17951_vm11, %v10270_v22, -1000000.0 }
0x3f87   :  { %v10272_v38 = vsel %vm1147_vm7, %v10271_v24, -inf }
0x3f88   :  { %10273 = vmax.xlane.f32.xlu1 %v10272_v38 }
0x3f8b   :  { %v19003_v36 = vpop.f32.mrb[124].mxu1 }
0x3f8c   :  { %v19005_v39 = vpop.f32.mrb[125].mxu1 }
0x3f99   :  { %9655 = vrot.lane.b32.xlu1 %v18894_v12, %s17092_s10 }
0x3f9d   :  { %9659 = vrot.lane.b32.xlu1 %v18896_v46, %s19580_s20 }
0x3fa1   :  { %9663 = vrot.lane.b32.xlu1 %v18922_v61, %s19581_s5 }
0x4015   :  { %v10274_v41 = vpop.xlane.xlu1 %10273 }
0x4016   :  { %v10275_v56 = vsub.f32 %v10271_v24, %v10274_v41 }
0x4018   :  { %v10276_v25 = vmul.f32 1.442695, %v10275_v56 }
0x4019   :  { %v9656_v12 = vpop.permute.xlu1 %9655 }
0x401a   :  { %16680 = vpow2.f32 %v10276_v25  ;;  %v9666_v62 = vsel %vm469_vm5, %v18892_v19, %v9656_v12  ;;  %v14289_v19 = vld [vmem:[%s19569_s7 + $0x30] sm:$0xff] }
0x401b   :  { %v16204_v3 = vpack.c.bf16 %v14290_v52, %v14289_v19 }
0x401d   :  { %v9660_v45 = vpop.permute.xlu1 %9659 }
0x401e   :  { %v9667_v63 = vsel %vm1147_vm7, %v9666_v62, %v9660_v45 }
0x4021   :  { %v9664_v42 = vpop.permute.xlu1 %9663 }
0x4024   :  { %v16681_v43 = vpop.eup %16680 }
0x4025   :  { %v10278_v37 = vsel %vm1147_vm7, %v16681_v43, 0.0 }
0x4026   :  { %10279 = vadd.xlane.f32.xlu0 %v10278_v37 }
0x403c   :  { %16468 = vrot.lane.b32.xlu0 %v18848_v20, %s17114_s29 }
0x4040   :  { %10363 = vrot.lane.b32.xlu0 %v18962_v57, %s17092_s10  ;;  %v9668_v57 = vsel %vm1149_vm8, %v9667_v63, %v9664_v42 }
0x4044   :  { %10367 = vrot.lane.b32.xlu0 %v10184_v13, %s19580_s20 }
0x40b3   :  { %v10280_v46 = vpop.xlane.xlu0 %10279 }
0x40b4   :  { %16682 = vrcp.f32 %v10280_v46 }
0x40b7   :  { %v16469_v61 = vpop.permute.xlu0 %16468 }
0x40b8   :  { %v16471_v48 = vunpack.i.h.bf16 %v16469_v61  ;;  %v16470_v53 = vunpack.i.l.bf16 %v16469_v61 }
0x40ba   :  { %v16198_v55 = vpack.c.bf16 %v16471_v48, %v16470_v53 }
0x40bb   :  { %v10364_v9 = vpop.permute.xlu0 %10363 }
0x40bc   :  { %16199 = vmatpush3.bf16.msra.mxu0 %v16198_v55  ;;  %v10374_v15 = vsel %vm469_vm5, %v18940_v26, %v10364_v9 }
0x40bd   :  { %16201 = vmatprep.subr.bf16.mxu0 %v16200_v2 }
0x40be   :  { %v16683_v21 = vpop.eup %16682 }
0x40bf   :  { %v10282_v20 = vmul.f32 %v16683_v21, %v16681_v43  ;;  %v10368_v50 = vpop.permute.xlu0 %10367 }
0x40c0   :  { %v10375_v16 = vsel %vm1147_vm7, %v10374_v15, %v10368_v50 }
0x40c1   :  { %15648 = vmatmul.mubr.msk.f32.vlgmr.msra.gmra.mrb[104].mxu0 %vm1147_vm7, %v10282_v20 }
0x40c2   :  { %15658 = vmatprep.mubr.msk.f32.mxu0 %vm384_vm3, %v9668_v57  ;;  %16203 = vmatpush3.bf16.msra.mxu0 %v16200_v2 }
0x40c3   :  { %16205 = vmatprep.subr.bf16.mxu0 %v16204_v3 }
0x40c6   :  { %16207 = vmatpush3.bf16.msra.mxu0 %v16204_v3 }
0x40c7   :  { %16217 = vmatprep.subr.bf16.mxu0 %v16216_v51 }
0x4194   :  { %v10358_v7 = vpop.f32.mrb[104].mxu0 }
0x4195   :  { %10371 = vrot.lane.b32.xlu1 %v10358_v7, %s19581_s5  ;;  %v15649_v1 = vpop.f32.mrb[105].mxu0 }
0x4199   :  { %10788 = vrot.lane.b32.xlu1 %v19005_v39, %s17110_s3 }
0x419d   :  { %10955 = vrot.lane.b32.xlu1 %v19005_v39, %s17111_s4 }
0x41a1   :  { %11122 = vrot.lane.b32.xlu1 %v19005_v39, %s17112_s17 }
0x41a5   :  { %11469 = vrot.lane.b32.xlu1 %v19003_v36, %s17110_s3 }
0x41a9   :  { %11636 = vrot.lane.b32.xlu1 %v19003_v36, %s17111_s4 }
0x41ad   :  { %11803 = vrot.lane.b32.xlu1 %v19003_v36, %s17112_s17 }
0x4207   :  { %v10372_v54 = vpop.permute.xlu1 %10371 }
0x4208   :  { %v10376_v17 = vsel %vm1149_vm8, %v10375_v16, %v10372_v54 }
0x4209   :  { %15659 = vmatmul.mubr.msk.f32.vlgmr.msra.gmra.mrb[106].mxu0 %vm384_vm3, %v10376_v17 }
0x420a   :  { %16219 = vmatpush3.bf16.msra.mxu0 %v16216_v51  ;;  %15680 = vmatprep.mubr.msk.f32.mxu0 %vm384_vm3, %v16766_v8 }
0x420b   :  { %16221 = vmatprep.subr.bf16.mxu0 %v16220_v59  ;;  %v10789_v31 = vpop.permute.xlu1 %10788 }
0x420e   :  { %16223 = vmatpush3.bf16.msra.mxu0 %v16220_v59 }
0x420f   :  { %15693 = vmatprep.subr.mxu0 %v17106_v18  ;;  %v10956_v29 = vpop.permute.xlu1 %10955 }
0x4211   :  { %15681 = vmatmul.mubr.msk.f32.vlgmr.msra.gmra.mrb[108].mxu0 %vm384_vm3, %v16767_v47 }
0x4212   :  { %15695 = vmatprep.mubr.msk.f32.mxu0 %vm17107_vm4, %v17106_v18 }
0x4213   :  { %v11123_v30 = vpop.permute.xlu1 %11122 }
0x4217   :  { %v11470_v34 = vpop.permute.xlu1 %11469 }
0x42e4   :  { %v19060_v26 = vpop.f32.mrb[108].mxu0 }
0x42e5   :  { %v19062_v60 = vpop.f32.mrb[109].mxu0 }
0x42e6   :  { %10790 = vrot.lane.b32.xlu0 %v19062_v60, %s17110_s3  ;;  %15684 = vmatpush3.xpose.msk.msra.mxu1 %vm469_vm5, %v19062_v60 }
0x42e7   :  { %10879 = vrot.lane.b32.xlu1 %v19062_v60, %s17109_s30  ;;  %15688 = vmatprep.subr.mxu1 %v17106_v18 }
0x42e9   :  { %15686 = vmatmul.mubr.msk.f32.vlgmr.msra.gmra.mrb[126].mxu1 %vm469_vm5, %v19005_v39  ;;  %v11637_v39 = vpop.permute.xlu1 %11636 }
0x42ea   :  { %10957 = vrot.lane.b32.xlu0 %v19062_v60, %s17111_s4  ;;  %15690 = vmatprep.mubr.msk.f32.mxu1 %vm17107_vm4, %v17106_v18 }
0x42ee   :  { %11124 = vrot.lane.b32.xlu0 %v19062_v60, %s17112_s17 }
0x42f2   :  { %11471 = vrot.lane.b32.xlu0 %v19060_v26, %s17110_s3 }
0x42f6   :  { %11638 = vrot.lane.b32.xlu0 %v19060_v26, %s17111_s4 }
0x42fa   :  { %11805 = vrot.lane.b32.xlu0 %v19060_v26, %s17112_s17 }
0x42fe   :  { %10712 = vrot.lane.b32.xlu0 %v19062_v60, %s17108_s14 }
0x4358   :  { %v10791_v27 = vpop.permute.xlu0 %10790 }
0x4359   :  { %15694 = vmatpush3.xpose.msk.msra.mxu0 %vm469_vm5, %v10791_v27 }
0x435a   :  { %15703 = vmatprep.subr.mxu0 %v17106_v18 }
0x435c   :  { %v10958_v13 = vpop.permute.xlu0 %10957  ;;  %15696 = vmatmul.mubr.msk.f32.vlgmr.msra.gmra.mrb[110].mxu0 %vm469_vm5, %v10789_v31 }
0x435d   :  { %15704 = vmatpush3.xpose.msk.msra.mxu0 %vm469_vm5, %v10958_v13  ;;  %15705 = vmatprep.mubr.msk.f32.mxu0 %vm17107_vm4, %v17106_v18 }
0x435e   :  { %15713 = vmatprep.subr.mxu0 %v17106_v18 }
0x4360   :  { %v11125_v32 = vpop.permute.xlu0 %11124  ;;  %15706 = vmatmul.mubr.msk.f32.vlgmr.msra.gmra.mrb[112].mxu0 %vm469_vm5, %v10956_v29 }
0x4361   :  { %15714 = vmatpush3.xpose.msk.msra.mxu0 %vm469_vm5, %v11125_v32  ;;  %15715 = vmatprep.mubr.msk.f32.mxu0 %vm17107_vm4, %v17106_v18 }
0x4362   :  { %15723 = vmatprep.subr.mxu0 %v17106_v18 }
0x4364   :  { %v11472_v22 = vpop.permute.xlu0 %11471  ;;  %15716 = vmatmul.mubr.msk.f32.vlgmr.msra.gmra.mrb[114].mxu0 %vm469_vm5, %v11123_v30 }
0x4365   :  { %15724 = vmatpush3.xpose.msk.msra.mxu0 %vm469_vm5, %v19060_v26  ;;  %15725 = vmatprep.mubr.msk.f32.mxu0 %vm17107_vm4, %v17106_v18 }
0x4366   :  { %15733 = vmatprep.subr.mxu0 %v17106_v18 }
0x4368   :  { %v11639_v24 = vpop.permute.xlu0 %11638  ;;  %15726 = vmatmul.mubr.msk.f32.vlgmr.msra.gmra.mrb[116].mxu0 %vm469_vm5, %v19003_v36  ;;  %v11804_v36 = vpop.permute.xlu1 %11803 }
0x4369   :  { %15734 = vmatpush3.xpose.msk.msra.mxu0 %vm469_vm5, %v11472_v22  ;;  %15735 = vmatprep.mubr.msk.f32.mxu0 %vm17107_vm4, %v17106_v18 }
0x436a   :  { %15743 = vmatprep.subr.mxu0 %v17106_v18 }
0x436c   :  { %v11806_v38 = vpop.permute.xlu0 %11805  ;;  %15736 = vmatmul.mubr.msk.f32.vlgmr.msra.gmra.mrb[118].mxu0 %vm469_vm5, %v11470_v34  ;;  %v10880_v30 = vpop.permute.xlu1 %10879 }
0x436d   :  { %15744 = vmatpush3.xpose.msk.msra.mxu0 %vm469_vm5, %v11639_v24  ;;  %15745 = vmatprep.mubr.msk.f32.mxu0 %vm17107_vm4, %v17106_v18 }
0x436e   :  { %15753 = vmatprep.subr.mxu0 %v17106_v18 }
0x4370   :  { %v10713_v41 = vpop.permute.xlu0 %10712  ;;  %15746 = vmatmul.mubr.msk.f32.vlgmr.msra.gmra.mrb[120].mxu0 %vm469_vm5, %v11637_v39 }
0x4371   :  { %15689 = vmatpush3.msra.mxu1 %v10713_v41  ;;  %15754 = vmatpush3.xpose.msk.msra.mxu0 %vm469_vm5, %v11806_v38 }
0x4372   :  { %15755 = vmatprep.mubr.msk.f32.mxu0 %vm17107_vm4, %v17106_v18  ;;  %15698 = vmatprep.subr.mxu1 %v17106_v18 }
0x4374   :  { %15756 = vmatmul.mubr.msk.f32.vlgmr.msra.gmra.mrb[122].mxu0 %vm469_vm5, %v11804_v36 }
0x43bc   :  { %v10695_v56 = vpop.f32.mrb[126].mxu1 }
0x43bd   :  { %v10699_v25 = vmul.f32 0.35355338, %v10695_v56  ;;  %v15687_v43 = vpop.f32.mrb[127].mxu1 }
0x43bf   :  { %v10700_v37 = vsel %vm18154_vm12, %v10699_v25, -1000000.0 }
0x43c0   :  { %v10701_v12 = vsel %vm469_vm5, %v10700_v37, -inf }
0x43c1   :  { %10702 = vmax.xlane.f32.xlu0 %v10701_v12 }
0x442f   :  { %v10862_v46 = vpop.f32.mrb[110].mxu0 }
0x4430   :  { %v10866_v61 = vmul.f32 0.35355338, %v10862_v46  ;;  %v15697_v45 = vpop.f32.mrb[111].mxu0 }
0x4432   :  { %v10867_v48 = vsel %vm18154_vm12, %v10866_v61, -1000000.0 }
0x4433   :  { %v11029_v53 = vpop.f32.mrb[112].mxu0  ;;  %v10868_v55 = vsel %vm469_vm5, %v10867_v48, -inf }
0x4434   :  { %v11033_v21 = vmul.f32 0.35355338, %v11029_v53  ;;  %10869 = vmax.xlane.f32.xlu1 %v10868_v55  ;;  %v15707_v42 = vpop.f32.mrb[113].mxu0 }
0x4436   :  { %v11034_v62 = vsel %vm18154_vm12, %v11033_v21, -1000000.0 }
0x4437   :  { %v11196_v20 = vpop.f32.mrb[114].mxu0  ;;  %v11035_v63 = vsel %vm469_vm5, %v11034_v62, -inf }
0x4438   :  { %v11200_v57 = vmul.f32 0.35355338, %v11196_v20  ;;  %v15717_v44 = vpop.f32.mrb[115].mxu0  ;;  %11036 = vmax.xlane.f32.xlu0 %v11035_v63 }
0x443a   :  { %v11201_v23 = vsel %vm18154_vm12, %v11200_v57, -1000000.0 }
0x443b   :  { %v11376_v19 = vpop.f32.mrb[116].mxu0  ;;  %v11202_v2 = vsel %vm469_vm5, %v11201_v23, -inf }
0x443c   :  { %v11380_v52 = vmul.f32 0.35355338, %v11376_v19  ;;  %v15727_v3 = vpop.f32.mrb[117].mxu0  ;;  %11203 = vmax.xlane.f32.xlu0 %v11202_v2 }
0x443e   :  { %v11381_v6 = vsel %vm18170_vm13, %v11380_v52, -1000000.0 }
0x443f   :  { %v11543_v49 = vpop.f32.mrb[118].mxu0  ;;  %v11382_v51 = vsel %vm469_vm5, %v11381_v6, -inf }
0x4440   :  { %v11547_v7 = vmul.f32 0.35355338, %v11543_v49  ;;  %11383 = vmax.xlane.f32.xlu1 %v11382_v51  ;;  %v15737_v1 = vpop.f32.mrb[119].mxu0 }
0x4442   :  { %v11548_v9 = vsel %vm18170_vm13, %v11547_v7, -1000000.0 }
0x4443   :  { %v11710_v5 = vpop.f32.mrb[120].mxu0  ;;  %v11549_v50 = vsel %vm469_vm5, %v11548_v9, -inf }
0x4444   :  { %v11714_v0 = vmul.f32 0.35355338, %v11710_v5  ;;  %v15747_v14 = vpop.f32.mrb[121].mxu0  ;;  %11550 = vmax.xlane.f32.xlu0 %v11549_v50 }
0x4446   :  { %v11715_v15 = vsel %vm18170_vm13, %v11714_v0, -1000000.0 }
0x4447   :  { %v11877_v16 = vpop.f32.mrb[122].mxu0  ;;  %v11716_v54 = vsel %vm469_vm5, %v11715_v15, -inf }
0x4448   :  { %v11881_v59 = vmul.f32 0.35355338, %v11877_v16  ;;  %11717 = vmax.xlane.f32.xlu1 %v11716_v54  ;;  %v15757_v17 = vpop.f32.mrb[123].mxu0 }
0x444a   :  { %v11882_v8 = vsel %vm18170_vm13, %v11881_v59, -1000000.0 }
0x444b   :  { %v11883_v47 = vsel %vm469_vm5, %v11882_v8, -inf }
0x444c   :  { %11884 = vmax.xlane.f32.xlu0 %v11883_v47 }
0x444e   :  { %v10703_v31 = vpop.xlane.xlu0 %10702 }
0x444f   :  { %v10704_v27 = vsub.f32 %v10700_v37, %v10703_v31 }
0x4451   :  { %v10705_v29 = vmul.f32 1.442695, %v10704_v27 }
0x4453   :  { %16684 = vpow2.f32 %v10705_v29 }
0x4459   :  { %11213 = vrot.lane.b32.xlu1 %v19062_v60, %s17114_s29 }
0x445d   :  { %v16685_v13 = vpop.eup %16684 }
0x445e   :  { %v10707_v32 = vsel %vm469_vm5, %v16685_v13, 0.0 }
0x4462   :  { %11046 = vrot.lane.b32.xlu0 %v19062_v60, %s17113_s18 }
0x447d   :  { %10708 = vadd.xlane.f32.xlu1 %v10707_v32 }
0x44c1   :  { %v10870_v28 = vpop.xlane.xlu1 %10869 }
0x44c2   :  { %v10871_v22 = vsub.f32 %v10867_v48, %v10870_v28 }
0x44c4   :  { %v10872_v34 = vmul.f32 1.442695, %v10871_v22 }
0x44c5   :  { %v11037_v24 = vpop.xlane.xlu0 %11036 }
0x44c6   :  { %16686 = vpow2.f32 %v10872_v34  ;;  %v11038_v38 = vsub.f32 %v11034_v62, %v11037_v24 }
0x44c8   :  { %v11039_v39 = vmul.f32 1.442695, %v11038_v38 }
0x44c9   :  { %v11204_v41 = vpop.xlane.xlu0 %11203 }
0x44ca   :  { %16688 = vpow2.f32 %v11039_v39  ;;  %v11205_v36 = vsub.f32 %v11201_v23, %v11204_v41 }
0x44cc   :  { %v11206_v60 = vmul.f32 1.442695, %v11205_v36 }
0x44cd   :  { %v11384_v61 = vpop.xlane.xlu1 %11383 }
0x44ce   :  { %16690 = vpow2.f32 %v11206_v60  ;;  %v11385_v45 = vsub.f32 %v11381_v6, %v11384_v61 }
0x44d0   :  { %v16687_v56 = vpop.eup %16686  ;;  %v11386_v21 = vmul.f32 1.442695, %v11385_v45 }
0x44d1   :  { %v10874_v25 = vsel %vm469_vm5, %v16687_v56, 0.0  ;;  %v11551_v48 = vpop.xlane.xlu0 %11550 }
0x44d2   :  { %10875 = vadd.xlane.f32.xlu0 %v10874_v25  ;;  %v11552_v55 = vsub.f32 %v11548_v9, %v11551_v48  ;;  %16692 = vpow2.f32 %v11386_v21  ;;  %v10469_v48 = vld [vmem:[#allocation16 + $0x20] sm:$0xff]  ;;  %v10471_v21 = vld [vmem:[#allocation16 + $0x30] sm:$0xff] }
0x44d4   :  { %v16689_v43 = vpop.eup %16688  ;;  %v11553_v20 = vmul.f32 1.442695, %v11552_v55 }
0x44d5   :  { %v11041_v37 = vsel %vm469_vm5, %v16689_v43, 0.0  ;;  %v11718_v53 = vpop.xlane.xlu1 %11717 }
0x44d6   :  { %11042 = vadd.xlane.f32.xlu1 %v11041_v37  ;;  %v11719_v42 = vsub.f32 %v11715_v15, %v11718_v53  ;;  %16694 = vpow2.f32 %v11553_v20  ;;  %v10470_v53 = vld [vmem:[#allocation16 + $0x28] sm:$0xff] }
0x44d7   :  { %v16224_v55 = vpack.c.bf16 %v10470_v53, %v10469_v48 }
0x44d8   :  { %v19153_v12 = vpop.eup %16690  ;;  %v11720_v63 = vmul.f32 1.442695, %v11719_v42  ;;  %v10472_v42 = vld [vmem:[#allocation16 + $0x38] sm:$0xff] }
0x44d9   :  { %v11208_v46 = vsel %vm469_vm5, %v19153_v12, 0.0  ;;  %v11885_v62 = vpop.xlane.xlu0 %11884  ;;  %v11214_v23 = vpop.permute.xlu1 %11213  ;;  %16225 = vmatprep.subr.bf16.mxu0 %v16224_v55 }
0x44da   :  { %11209 = vadd.xlane.f32.xlu0 %v11208_v46  ;;  %v11886_v57 = vsub.f32 %v11882_v8, %v11885_v62  ;;  %16696 = vpow2.f32 %v11720_v63  ;;  %16227 = vmatpush3.bf16.msra.mxu0 %v16224_v55  ;;  %v16228_v62 = vpack.c.bf16 %v10472_v42, %v10471_v21  ;;  %v19239_v42 = vld [vmem:[%s19505_s22 + $0x4] sm:$0xf] }
0x44dc   :  { %v11887_v44 = vmul.f32 1.442695, %v11886_v57  ;;  %v16693_v19 = vpop.eup %16692  ;;  %16229 = vmatprep.subr.bf16.mxu0 %v16228_v62 }
0x44dd   :  { %v11388_v3 = vsel %vm469_vm5, %v16693_v19, 0.0  ;;  %v11047_v50 = vpop.permute.xlu0 %11046 }
0x44de   :  { %16698 = vpow2.f32 %v11887_v44  ;;  %16231 = vmatpush3.bf16.msra.mxu0 %v16228_v62  ;;  %v12099_v62 = vrot.slane %v19239_v42, %v18278_v35 }
0x44e0   :  { %v19161_v2 = vpop.eup %16694 }
0x44e1   :  { %v11555_v51 = vsel %vm469_vm5, %v19161_v2, 0.0 }
0x44e4   :  { %v19164_v6 = vpop.eup %16696 }
0x44e5   :  { %v11722_v49 = vsel %vm469_vm5, %v19164_v6, 0.0 }
0x44e7   :  { %11560 = vrot.lane.b32.xlu1 %v19060_v26, %s17109_s30 }
0x44e8   :  { %v19170_v7 = vpop.eup %16698 }
0x44e9   :  { %v11889_v1 = vsel %vm469_vm5, %v19170_v7, 0.0 }
0x44f0   :  { %11393 = vrot.lane.b32.xlu0 %v19060_v26, %s17108_s14 }
0x450a   :  { %v10709_v52 = vpop.xlane.xlu1 %10708 }
0x450b   :  { %16700 = vrcp.f32 %v10709_v52  ;;  %11389 = vadd.xlane.f32.xlu1 %v11388_v3 }
0x450f   :  { %11723 = vadd.xlane.f32.xlu1 %v11722_v49  ;;  %11556 = vadd.xlane.f32.xlu0 %v11555_v51 }
0x4513   :  { %11890 = vadd.xlane.f32.xlu1 %v11889_v1 }
0x4515   :  { %v16701_v9 = vpop.eup %16700 }
0x4516   :  { %v10711_v5 = vmul.f32 %v16701_v9, %v16685_v13 }
0x4518   :  { %15691 = vmatmul.mubr.msk.f32.vlgmr.msra.gmra.mrb[128].mxu1 %vm469_vm5, %v10711_v5 }
0x4519   :  { %15699 = vmatpush3.msra.mxu1 %v10880_v30  ;;  %15700 = vmatprep.mubr.msk.f32.mxu1 %vm17107_vm4, %v17106_v18 }
0x451a   :  { %15708 = vmatprep.subr.mxu1 %v17106_v18 }
0x4524   :  { %11894 = vrot.lane.b32.xlu1 %v19060_v26, %s17114_s29 }
0x4525   :  { %11727 = vrot.lane.b32.xlu0 %v19060_v26, %s17113_s18 }
0x455f   :  { %v10876_v0 = vpop.xlane.xlu0 %10875 }
0x4560   :  { %16702 = vrcp.f32 %v10876_v0 }
0x4563   :  { %v11043_v14 = vpop.xlane.xlu1 %11042 }
0x4564   :  { %16704 = vrcp.f32 %v11043_v14 }
0x4567   :  { %v11210_v15 = vpop.xlane.xlu0 %11209  ;;  %v11561_v31 = vpop.permute.xlu1 %11560 }
0x4568   :  { %16706 = vrcp.f32 %v11210_v15 }
0x456a   :  { %v16703_v16 = vpop.eup %16702 }
0x456b   :  { %v10878_v54 = vmul.f32 %v16703_v16, %v16687_v56  ;;  %v11394_v47 = vpop.permute.xlu0 %11393  ;;  %v16768_v16 = vld [vmem:[#allocation8] sm:$0xff] }
0x456d   :  { %15701 = vmatmul.mubr.msk.f32.vlgmr.msra.gmra.mrb[130].mxu1 %vm469_vm5, %v10878_v54 }
0x456e   :  { %v16705_v59 = vpop.eup %16704  ;;  %15709 = vmatpush3.msra.mxu1 %v11047_v50  ;;  %15710 = vmatprep.mubr.msk.f32.mxu1 %vm17107_vm4, %v17106_v18 }
0x456f   :  { %v11045_v17 = vmul.f32 %v16705_v59, %v16689_v43  ;;  %15718 = vmatprep.subr.mxu1 %v17106_v18 }
0x4571   :  { %15711 = vmatmul.mubr.msk.f32.vlgmr.msra.gmra.mrb[132].mxu1 %vm469_vm5, %v11045_v17 }
0x4572   :  { %v16707_v26 = vpop.eup %16706  ;;  %15719 = vmatpush3.msra.mxu1 %v11214_v23  ;;  %15720 = vmatprep.mubr.msk.f32.mxu1 %vm17107_vm4, %v17106_v18 }
0x4573   :  { %v11212_v8 = vmul.f32 %v16707_v26, %v19153_v12  ;;  %15728 = vmatprep.subr.mxu1 %v17106_v18 }
0x4575   :  { %15721 = vmatmul.mubr.msk.f32.vlgmr.msra.gmra.mrb[134].mxu1 %vm469_vm5, %v11212_v8 }
0x4576   :  { %15729 = vmatpush3.msra.mxu1 %v11394_v47  ;;  %15730 = vmatprep.mubr.msk.f32.mxu1 %vm17107_vm4, %v17106_v18 }
0x4577   :  { %15738 = vmatprep.subr.mxu1 %v17106_v18 }
0x4598   :  { %v11390_v27 = vpop.xlane.xlu1 %11389 }
0x4599   :  { %16708 = vrcp.f32 %v11390_v27 }
0x459c   :  { %v11724_v29 = vpop.xlane.xlu1 %11723  ;;  %v11557_v13 = vpop.xlane.xlu0 %11556 }
0x459d   :  { %16710 = vrcp.f32 %v11557_v13 }
0x459e   :  { %16712 = vrcp.f32 %v11724_v29 }
0x45a0   :  { %v11891_v32 = vpop.xlane.xlu1 %11890  ;;  %v11728_v38 = vpop.permute.xlu0 %11727 }
0x45a1   :  { %16714 = vrcp.f32 %v11891_v32 }
0x45a3   :  { %v16709_v30 = vpop.eup %16708 }
0x45a4   :  { %v11392_v28 = vmul.f32 %v16709_v30, %v16693_v19  ;;  %v11895_v36 = vpop.permute.xlu1 %11894 }
0x45a6   :  { %15731 = vmatmul.mubr.msk.f32.vlgmr.msra.gmra.mrb[136].mxu1 %vm469_vm5, %v11392_v28 }
0x45a7   :  { %15739 = vmatpush3.msra.mxu1 %v11561_v31  ;;  %15740 = vmatprep.mubr.msk.f32.mxu1 %vm17107_vm4, %v17106_v18  ;;  %v16711_v22 = vpop.eup %16710 }
0x45a8   :  { %15748 = vmatprep.subr.mxu1 %v17106_v18  ;;  %v11559_v34 = vmul.f32 %v16711_v22, %v19161_v2  ;;  %v16713_v24 = vpop.eup %16712 }
0x45a9   :  { %v11726_v39 = vmul.f32 %v16713_v24, %v19164_v6  ;;  %v12115_v24 = vld [vmem:[#allocation19 + $0x28] sm:$0xff] }
0x45aa   :  { %15741 = vmatmul.mubr.msk.f32.vlgmr.msra.gmra.mrb[138].mxu1 %vm469_vm5, %v11559_v34 }
0x45ab   :  { %15749 = vmatpush3.msra.mxu1 %v11728_v38  ;;  %15750 = vmatprep.mubr.msk.f32.mxu1 %vm17107_vm4, %v17106_v18  ;;  %v16715_v41 = vpop.eup %16714 }
0x45ac   :  { %15758 = vmatprep.subr.mxu1 %v17106_v18  ;;  %v11893_v60 = vmul.f32 %v16715_v41, %v19170_v7  ;;  %v12117_v41 = vld [vmem:[#allocation19 + $0x38] sm:$0xff] }
0x45ae   :  { %15751 = vmatmul.mubr.msk.f32.vlgmr.msra.gmra.mrb[140].mxu1 %vm469_vm5, %v11726_v39  ;;  %v12116_v39 = vld [vmem:[#allocation19 + $0x30] sm:$0xff] }
0x45af   :  { %15759 = vmatpush3.msra.mxu1 %v11895_v36  ;;  %15760 = vmatprep.mubr.msk.f32.mxu1 %vm17107_vm4, %v17106_v18  ;;  %v16244_v36 = vpack.c.bf16 %v12117_v41, %v12116_v39 }
0x45b2   :  { %15761 = vmatmul.mubr.msk.f32.vlgmr.msra.gmra.mrb[142].mxu1 %vm469_vm5, %v11893_v60  ;;  %v12109_v60 = vld [vmem:[#allocation17 + $0x20] sm:$0xff] }
0x45eb   :  { %v10784_v56 = vpop.f32.mrb[128].mxu1 }
0x45ec   :  { %v15692_v25 = vpop.f32.mrb[129].mxu1 }
0x4640   :  { %v10951_v43 = vpop.f32.mrb[130].mxu1 }
0x4641   :  { %11290 = vrot.lane.b32.xlu0 %v10951_v43, %s17092_s10  ;;  %v15702_v37 = vpop.f32.mrb[131].mxu1  ;;  %v16769_v43 = vld [vmem:[#allocation8 + $0x8] sm:$0xff] }
0x4642   :  { %v12111_v37 = vld [vmem:[#allocation17 + $0x30] sm:$0xff] }
0x4644   :  { %v11118_v12 = vpop.f32.mrb[132].mxu1 }
0x4645   :  { %11294 = vrot.lane.b32.xlu1 %v11118_v12, %s19580_s20  ;;  %v15712_v46 = vpop.f32.mrb[133].mxu1  ;;  %v12112_v12 = vld [vmem:[#allocation17 + $0x38] sm:$0xff] }
0x4646   :  { %v16236_v46 = vpack.c.bf16 %v12112_v12, %v12111_v37 }
0x4648   :  { %v11285_v61 = vpop.f32.mrb[134].mxu1 }
0x4649   :  { %11298 = vrot.lane.b32.xlu1 %v11285_v61, %s19581_s5  ;;  %v15722_v45 = vpop.f32.mrb[135].mxu1 }
0x4679   :  { %v11465_v20 = vpop.f32.mrb[136].mxu1 }
0x467a   :  { %v15732_v63 = vpop.f32.mrb[137].mxu1 }
0x467d   :  { %v11632_v57 = vpop.f32.mrb[138].mxu1 }
0x467e   :  { %11971 = vrot.lane.b32.xlu0 %v11632_v57, %s17092_s10  ;;  %v15742_v44 = vpop.f32.mrb[139].mxu1  ;;  %v19243_v57 = vld [vmem:[#allocation22 + $0x4] sm:$0xf] }
0x467f   :  { %v12105_v44 = vrot.slane %v19243_v57, %v18278_v35 }
0x4681   :  { %v11799_v23 = vpop.f32.mrb[140].mxu1 }
0x4682   :  { %11975 = vrot.lane.b32.xlu0 %v11799_v23, %s19580_s20  ;;  %v15752_v19 = vpop.f32.mrb[141].mxu1 }
0x4685   :  { %v11966_v2 = vpop.f32.mrb[142].mxu1 }
0x4686   :  { %11979 = vrot.lane.b32.xlu1 %v11966_v2, %s19581_s5  ;;  %v15762_v52 = vpop.f32.mrb[143].mxu1 }
0x46b3   :  { %v11291_v3 = vpop.permute.xlu0 %11290 }
0x46b4   :  { %v11301_v49 = vsel %vm469_vm5, %v10784_v56, %v11291_v3  ;;  %v12110_v56 = vld [vmem:[#allocation17 + $0x28] sm:$0xff] }
0x46b5   :  { %v16232_v25 = vpack.c.bf16 %v12110_v56, %v12109_v60 }
0x46b7   :  { %v11295_v6 = vpop.permute.xlu1 %11294  ;;  %16233 = vmatprep.subr.bf16.mxu1 %v16232_v25 }
0x46b8   :  { %v11302_v51 = vsel %vm1147_vm7, %v11301_v49, %v11295_v6  ;;  %16235 = vmatpush3.bf16.msra.mxu1 %v16232_v25 }
0x46b9   :  { %16237 = vmatprep.subr.bf16.mxu1 %v16236_v46 }
0x46bb   :  { %v11299_v7 = vpop.permute.xlu1 %11298 }
0x46bc   :  { %v11303_v1 = vsel %vm1149_vm8, %v11302_v51, %v11299_v7  ;;  %16239 = vmatpush3.bf16.msra.mxu1 %v16236_v46 }
0x46bd   :  { %15771 = vmatprep.mubr.msk.f32.mxu0 %vm384_vm3, %v11303_v1  ;;  %15796 = vmatprep.subr.mxu1 %v17106_v18 }
0x46f0   :  { %v11972_v9 = vpop.permute.xlu0 %11971 }
0x46f1   :  { %v11982_v50 = vsel %vm469_vm5, %v11465_v20, %v11972_v9 }
0x46f4   :  { %v11976_v5 = vpop.permute.xlu0 %11975 }
0x46f5   :  { %v11983_v0 = vsel %vm1147_vm7, %v11982_v50, %v11976_v5 }
0x46f8   :  { %v11980_v14 = vpop.permute.xlu1 %11979 }
0x46f9   :  { %v11984_v15 = vsel %vm1149_vm8, %v11983_v0, %v11980_v14 }
0x46fa   :  { %15772 = vmatmul.mubr.msk.f32.vlgmr.msra.gmra.mrb[106].mxu0 %vm384_vm3, %v11984_v15 }
0x46fb   :  { %15793 = vmatprep.mubr.msk.f32.mxu0 %vm384_vm3, %v16768_v16 }
0x47cd   :  { %v15773_v54 = vpop.f32.mrb[106].mxu0 }
0x47ce   :  { %v16290_v59 = vadd.f32 %v15773_v54, %v18803_v4  ;;  %v12057_v17 = vpop.f32.mrb[107].mxu0 }
0x47cf   :  { %v16291_v26 = vadd.f32 %v12057_v17, %v18799_v58  ;;  %v12114_v58 = vld [vmem:[#allocation19 + $0x20] sm:$0xff] }
0x47d0   :  { %v12073_v8 = vsel %vm384_vm3, %v16290_v59, 0.0  ;;  %v16240_v38 = vpack.c.bf16 %v12115_v24, %v12114_v58 }
0x47d1   :  { %12074 = vadd.xlane.f32.xlu1 %v12073_v8  ;;  %v12070_v47 = vsel %vm384_vm3, %v16291_v26, 0.0 }
0x47d2   :  { %12071 = vadd.xlane.f32.xlu0 %v12070_v47  ;;  %16241 = vmatprep.subr.bf16.mxu0 %v16240_v38 }
0x47d3   :  { %16243 = vmatpush3.bf16.msra.mxu0 %v16240_v38 }
0x47d4   :  { %16245 = vmatprep.subr.bf16.mxu0 %v16244_v36 }
0x47d7   :  { %16247 = vmatpush3.bf16.msra.mxu0 %v16244_v36 }
0x47d8   :  { %15806 = vmatprep.subr.mxu0 %v17106_v18 }
0x47da   :  { %15794 = vmatmul.mubr.msk.f32.vlgmr.msra.gmra.mrb[124].mxu0 %vm384_vm3, %v16769_v43 }
0x47db   :  { %15808 = vmatprep.mubr.msk.f32.mxu0 %vm17107_vm4, %v17106_v18 }
0x485e   :  { %v12075_v31 = vpop.xlane.xlu1 %12074 }
0x485f   :  { %v12077_v27 = vmul.f32 0.03125, %v12075_v31  ;;  %v12072_v29 = vpop.xlane.xlu0 %12071 }
0x4860   :  { %v12076_v13 = vmul.f32 0.03125, %v12072_v29 }
0x4861   :  { %v12079_v32 = vsub.f32 %v16290_v59, %v12077_v27 }
0x4862   :  { %v12078_v30 = vsub.f32 %v16291_v26, %v12076_v13 }
0x4863   :  { %v12081_v34 = vmul.f32 %v12079_v32, %v12079_v32 }
0x4864   :  { %v12080_v28 = vmul.f32 %v12078_v30, %v12078_v30 }
0x4865   :  { %v12085_v4 = vsel %vm384_vm3, %v12081_v34, 0.0 }
0x4866   :  { %v12082_v22 = vsel %vm384_vm3, %v12080_v28, 0.0 }
0x4867   :  { %12083 = vadd.xlane.f32.xlu0 %v12082_v22 }
0x486b   :  { %12086 = vadd.xlane.f32.xlu0 %v12085_v4 }
0x48ad   :  { %v19257_v49 = vpop.f32.mrb[124].mxu0 }
0x48ae   :  { %v19259_v35 = vpop.f32.mrb[125].mxu0 }
0x48af   :  { %12446 = vrot.lane.b32.xlu1 %v19259_v35, %s17110_s3 }
0x48b3   :  { %12613 = vrot.lane.b32.xlu1 %v19259_v35, %s17111_s4 }
0x48f4   :  { %v12084_v61 = vpop.xlane.xlu0 %12083 }
0x48f5   :  { %v12088_v45 = vmul.f32 0.03125, %v12084_v61 }
0x48f7   :  { %v12090_v48 = vadd.f32 1e-05, %v12088_v45 }
0x48f8   :  { %v12087_v53 = vpop.xlane.xlu0 %12086 }
0x48f9   :  { %16716 = vrsqrt.f32 %v12090_v48  ;;  %v12089_v55 = vmul.f32 0.03125, %v12087_v53 }
0x48fb   :  { %v12091_v21 = vadd.f32 1e-05, %v12089_v55 }
0x48fd   :  { %16718 = vrsqrt.f32 %v12091_v21 }
0x4903   :  { %v16717_v20 = vpop.eup %16716 }
0x4904   :  { %v12094_v63 = vmul.f32 %v16717_v20, %v12078_v30 }
0x4906   :  { %v12100_v23 = vmul.f32 %v12099_v62, %v12094_v63 }
0x4907   :  { %v16719_v19 = vpop.eup %16718 }
0x4908   :  { %v12095_v2 = vmul.f32 %v16719_v19, %v12079_v32  ;;  %v19247_v52 = vadd.f32 %v12105_v44, %v12100_v23 }
0x490a   :  { %v12101_v3 = vmul.f32 %v12099_v62, %v12095_v2  ;;  %15782 = vmatprep.mubr.msk.f32.mxu1 %vm384_vm3, %v19247_v52 }
0x490c   :  { %v19251_v6 = vadd.f32 %v12105_v44, %v12101_v3 }
0x490e   :  { %15783 = vmatmul.mubr.msk.f32.vlgmr.msra.gmra.mrb[144].mxu1 %vm384_vm3, %v19251_v6 }
0x490f   :  { %15798 = vmatprep.mubr.msk.f32.mxu1 %vm17107_vm4, %v17106_v18  ;;  %15797 = vmatpush3.xpose.msk.msra.mxu1 %vm469_vm5, %v19259_v35 }
0x4910   :  { %15801 = vmatprep.subr.mxu1 %v17106_v18 }
0x4921   :  { %v12447_v51 = vpop.permute.xlu1 %12446 }
0x4922   :  { %15807 = vmatpush3.xpose.msk.msra.mxu0 %vm469_vm5, %v12447_v51 }
0x4923   :  { %15816 = vmatprep.subr.mxu0 %v17106_v18 }
0x4925   :  { %v12614_v9 = vpop.permute.xlu1 %12613 }
0x49e1   :  { %v15784_v7 = vpop.f32.mrb[144].mxu1 }
0x49e2   :  { %v12195_v1 = vpop.f32.mrb[145].mxu1 }
0x49e3   :  { %12611 = vrot.lane.b32.xlu1 %v12195_v1, %s17111_s4  ;;  %12444 = vrot.lane.b32.xlu0 %v12195_v1, %s17110_s3 }
0x49e4   :  { %15799 = vmatmul.mubr.msk.f32.vlgmr.msra.gmra.mrb[146].mxu1 %vm469_vm5, %v12195_v1 }
0x49e5   :  { %15803 = vmatprep.mubr.msk.f32.mxu1 %vm17107_vm4, %v17106_v18 }
0x49e7   :  { %12778 = vrot.lane.b32.xlu1 %v12195_v1, %s17112_s17  ;;  %12780 = vrot.lane.b32.xlu0 %v19259_v35, %s17112_s17 }
0x49eb   :  { %13125 = vrot.lane.b32.xlu1 %v15784_v7, %s17110_s3  ;;  %13127 = vrot.lane.b32.xlu0 %v19257_v49, %s17110_s3 }
0x49ef   :  { %13292 = vrot.lane.b32.xlu1 %v15784_v7, %s17111_s4  ;;  %13294 = vrot.lane.b32.xlu0 %v19257_v49, %s17111_s4 }
0x49f3   :  { %13459 = vrot.lane.b32.xlu1 %v15784_v7, %s17112_s17  ;;  %13461 = vrot.lane.b32.xlu0 %v19257_v49, %s17112_s17 }
0x49f7   :  { %12535 = vrot.lane.b32.xlu1 %v19259_v35, %s17109_s30  ;;  %12368 = vrot.lane.b32.xlu0 %v19259_v35, %s17108_s14 }
0x4a55   :  { %v12612_v5 = vpop.permute.xlu1 %12611  ;;  %v12445_v50 = vpop.permute.xlu0 %12444 }
0x4a56   :  { %15809 = vmatmul.mubr.msk.f32.vlgmr.msra.gmra.mrb[126].mxu0 %vm469_vm5, %v12445_v50 }
0x4a57   :  { %15817 = vmatpush3.xpose.msk.msra.mxu0 %vm469_vm5, %v12614_v9  ;;  %15818 = vmatprep.mubr.msk.f32.mxu0 %vm17107_vm4, %v17106_v18 }
0x4a58   :  { %15826 = vmatprep.subr.mxu0 %v17106_v18 }
0x4a59   :  { %v12781_v0 = vpop.permute.xlu0 %12780  ;;  %v12779_v14 = vpop.permute.xlu1 %12778 }
0x4a5a   :  { %15819 = vmatmul.mubr.msk.f32.vlgmr.msra.gmra.mrb[128].mxu0 %vm469_vm5, %v12612_v5 }
0x4a5b   :  { %15827 = vmatpush3.xpose.msk.msra.mxu0 %vm469_vm5, %v12781_v0  ;;  %15828 = vmatprep.mubr.msk.f32.mxu0 %vm17107_vm4, %v17106_v18 }
0x4a5c   :  { %15836 = vmatprep.subr.mxu0 %v17106_v18 }
0x4a5d   :  { %v13128_v15 = vpop.permute.xlu0 %13127  ;;  %v13126_v16 = vpop.permute.xlu1 %13125 }
0x4a5e   :  { %15829 = vmatmul.mubr.msk.f32.vlgmr.msra.gmra.mrb[130].mxu0 %vm469_vm5, %v12779_v14 }
0x4a5f   :  { %15837 = vmatpush3.xpose.msk.msra.mxu0 %vm469_vm5, %v19257_v49  ;;  %15838 = vmatprep.mubr.msk.f32.mxu0 %vm17107_vm4, %v17106_v18 }
0x4a60   :  { %15846 = vmatprep.subr.mxu0 %v17106_v18 }
0x4a61   :  { %v13295_v54 = vpop.permute.xlu0 %13294  ;;  %v13293_v17 = vpop.permute.xlu1 %13292 }
0x4a62   :  { %15839 = vmatmul.mubr.msk.f32.vlgmr.msra.gmra.mrb[132].mxu0 %vm469_vm5, %v15784_v7 }
0x4a63   :  { %15847 = vmatpush3.xpose.msk.msra.mxu0 %vm469_vm5, %v13128_v15  ;;  %15848 = vmatprep.mubr.msk.f32.mxu0 %vm17107_vm4, %v17106_v18 }
0x4a64   :  { %15856 = vmatprep.subr.mxu0 %v17106_v18 }
0x4a65   :  { %v13462_v59 = vpop.permute.xlu0 %13461  ;;  %v13460_v8 = vpop.permute.xlu1 %13459 }
0x4a66   :  { %15849 = vmatmul.mubr.msk.f32.vlgmr.msra.gmra.mrb[134].mxu0 %vm469_vm5, %v13126_v16 }
0x4a67   :  { %15857 = vmatpush3.xpose.msk.msra.mxu0 %vm469_vm5, %v13295_v54  ;;  %15858 = vmatprep.mubr.msk.f32.mxu0 %vm17107_vm4, %v17106_v18 }
0x4a68   :  { %15866 = vmatprep.subr.mxu0 %v17106_v18 }
0x4a69   :  { %v12369_v26 = vpop.permute.xlu0 %12368  ;;  %v12536_v0 = vpop.permute.xlu1 %12535 }
0x4a6a   :  { %15802 = vmatpush3.msra.mxu1 %v12369_v26  ;;  %15859 = vmatmul.mubr.msk.f32.vlgmr.msra.gmra.mrb[136].mxu0 %vm469_vm5, %v13293_v17 }
0x4a6b   :  { %15867 = vmatpush3.xpose.msk.msra.mxu0 %vm469_vm5, %v13462_v59  ;;  %15868 = vmatprep.mubr.msk.f32.mxu0 %vm17107_vm4, %v17106_v18 }
0x4a6c   :  { %15811 = vmatprep.subr.mxu1 %v17106_v18 }
0x4a6e   :  { %15869 = vmatmul.mubr.msk.f32.vlgmr.msra.gmra.mrb[138].mxu0 %vm469_vm5, %v13460_v8 }
0x4ab7   :  { %v12351_v47 = vpop.f32.mrb[146].mxu1 }
0x4ab8   :  { %v12355_v31 = vmul.f32 0.35355338, %v12351_v47  ;;  %v15800_v27 = vpop.f32.mrb[147].mxu1 }
0x4aba   :  { %v12356_v29 = vsel %vm18368_vm14, %v12355_v31, -1000000.0 }
0x4abb   :  { %v12357_v13 = vsel %vm469_vm5, %v12356_v29, -inf }
0x4abc   :  { %12358 = vmax.xlane.f32.xlu0 %v12357_v13 }
0x4b29   :  { %v12518_v32 = vpop.f32.mrb[126].mxu0 }
0x4b2a   :  { %v12522_v30 = vmul.f32 0.35355338, %v12518_v32  ;;  %v15810_v28 = vpop.f32.mrb[127].mxu0 }
0x4b2c   :  { %v12523_v22 = vsel %vm18368_vm14, %v12522_v30, -1000000.0 }
0x4b2d   :  { %v12685_v34 = vpop.f32.mrb[128].mxu0  ;;  %v12524_v4 = vsel %vm469_vm5, %v12523_v22, -inf }
0x4b2e   :  { %v12689_v58 = vmul.f32 0.35355338, %v12685_v34  ;;  %12525 = vmax.xlane.f32.xlu1 %v12524_v4  ;;  %v15820_v24 = vpop.f32.mrb[129].mxu0 }
0x4b30   :  { %v12690_v38 = vsel %vm18368_vm14, %v12689_v58, -1000000.0 }
0x4b31   :  { %v12852_v39 = vpop.f32.mrb[130].mxu0  ;;  %v12691_v41 = vsel %vm469_vm5, %v12690_v38, -inf }
0x4b32   :  { %v12856_v36 = vmul.f32 0.35355338, %v12852_v39  ;;  %v15830_v60 = vpop.f32.mrb[131].mxu0  ;;  %12692 = vmax.xlane.f32.xlu0 %v12691_v41 }
0x4b34   :  { %v12857_v56 = vsel %vm18368_vm14, %v12856_v36, -1000000.0 }
0x4b35   :  { %v13032_v25 = vpop.f32.mrb[132].mxu0  ;;  %v12858_v43 = vsel %vm469_vm5, %v12857_v56, -inf }
0x4b36   :  { %v13036_v37 = vmul.f32 0.35355338, %v13032_v25  ;;  %v15840_v12 = vpop.f32.mrb[133].mxu0  ;;  %12859 = vmax.xlane.f32.xlu0 %v12858_v43 }
0x4b38   :  { %v13037_v46 = vsel %vm18384_vm15, %v13036_v37, -1000000.0 }
0x4b39   :  { %v13199_v61 = vpop.f32.mrb[134].mxu0  ;;  %v13038_v45 = vsel %vm469_vm5, %v13037_v46, -inf }
0x4b3a   :  { %v13203_v48 = vmul.f32 0.35355338, %v13199_v61  ;;  %13039 = vmax.xlane.f32.xlu1 %v13038_v45  ;;  %v15850_v53 = vpop.f32.mrb[135].mxu0 }
0x4b3c   :  { %v13204_v55 = vsel %vm18384_vm15, %v13203_v48, -1000000.0 }
0x4b3d   :  { %v13366_v33 = vpop.f32.mrb[136].mxu0  ;;  %v13205_v21 = vsel %vm469_vm5, %v13204_v55, -inf }
0x4b3e   :  { %v13370_v62 = vmul.f32 0.35355338, %v13366_v33  ;;  %v15860_v20 = vpop.f32.mrb[137].mxu0  ;;  %13206 = vmax.xlane.f32.xlu0 %v13205_v21 }
0x4b40   :  { %v13371_v63 = vsel %vm18384_vm15, %v13370_v62, -1000000.0 }
0x4b41   :  { %v13533_v44 = vpop.f32.mrb[138].mxu0  ;;  %v13372_v23 = vsel %vm469_vm5, %v13371_v63, -inf }
0x4b42   :  { %v13537_v19 = vmul.f32 0.35355338, %v13533_v44  ;;  %13373 = vmax.xlane.f32.xlu1 %v13372_v23  ;;  %v15870_v2 = vpop.f32.mrb[139].mxu0 }
0x4b44   :  { %v13538_v3 = vsel %vm18384_vm15, %v13537_v19, -1000000.0 }
0x4b45   :  { %v13539_v51 = vsel %vm469_vm5, %v13538_v3, -inf }
0x4b46   :  { %13540 = vmax.xlane.f32.xlu0 %v13539_v51 }
0x4b49   :  { %v12359_v7 = vpop.xlane.xlu0 %12358 }
0x4b4a   :  { %v12360_v1 = vsub.f32 %v12356_v29, %v12359_v7 }
0x4b4c   :  { %v12361_v9 = vmul.f32 1.442695, %v12360_v1 }
0x4b4e   :  { %16720 = vpow2.f32 %v12361_v9 }
0x4b53   :  { %12869 = vrot.lane.b32.xlu1 %v19259_v35, %s17114_s29 }
0x4b58   :  { %v16721_v5 = vpop.eup %16720 }
0x4b59   :  { %v12363_v50 = vsel %vm469_vm5, %v16721_v5, 0.0 }
0x4b5c   :  { %12702 = vrot.lane.b32.xlu0 %v19259_v35, %s17113_s18 }
0x4b77   :  { %12364 = vadd.xlane.f32.xlu1 %v12363_v50 }
0x4bbb   :  { %v12526_v40 = vpop.xlane.xlu1 %12525 }
0x4bbc   :  { %v12527_v14 = vsub.f32 %v12523_v22, %v12526_v40 }
0x4bbe   :  { %v12528_v15 = vmul.f32 1.442695, %v12527_v14 }
0x4bbf   :  { %v12693_v16 = vpop.xlane.xlu0 %12692 }
0x4bc0   :  { %16722 = vpow2.f32 %v12528_v15  ;;  %v12694_v54 = vsub.f32 %v12690_v38, %v12693_v16 }
0x4bc2   :  { %v12695_v59 = vmul.f32 1.442695, %v12694_v54 }
0x4bc3   :  { %v12860_v17 = vpop.xlane.xlu0 %12859 }
0x4bc4   :  { %16724 = vpow2.f32 %v12695_v59  ;;  %v12861_v26 = vsub.f32 %v12857_v56, %v12860_v17 }
0x4bc6   :  { %v12862_v35 = vmul.f32 1.442695, %v12861_v26 }
0x4bc7   :  { %v13040_v32 = vpop.xlane.xlu1 %13039 }
0x4bc8   :  { %16726 = vpow2.f32 %v12862_v35  ;;  %v13041_v30 = vsub.f32 %v13037_v46, %v13040_v32 }
0x4bca   :  { %v16723_v8 = vpop.eup %16722  ;;  %v13042_v4 = vmul.f32 1.442695, %v13041_v30  ;;  %v12119_v30 = vld [vmem:[#allocation20 + $0x20] sm:$0xff] }
0x4bcb   :  { %v12530_v47 = vsel %vm469_vm5, %v16723_v8, 0.0  ;;  %v13207_v28 = vpop.xlane.xlu0 %13206 }
0x4bcc   :  { %12531 = vadd.xlane.f32.xlu0 %v12530_v47  ;;  %v13208_v34 = vsub.f32 %v13204_v55, %v13207_v28  ;;  %16728 = vpow2.f32 %v13042_v4 }
0x4bce   :  { %v16725_v31 = vpop.eup %16724  ;;  %v13209_v38 = vmul.f32 1.442695, %v13208_v34  ;;  %v12122_v34 = vld [vmem:[#allocation20 + $0x38] sm:$0xff] }
0x4bcf   :  { %v12697_v27 = vsel %vm469_vm5, %v16725_v31, 0.0  ;;  %v13374_v22 = vpop.xlane.xlu1 %13373 }
0x4bd0   :  { %12698 = vadd.xlane.f32.xlu1 %v12697_v27  ;;  %v13375_v58 = vsub.f32 %v13371_v63, %v13374_v22  ;;  %16730 = vpow2.f32 %v13209_v38  ;;  %v12121_v22 = vld [vmem:[#allocation20 + $0x30] sm:$0xff] }
0x4bd1   :  { %v16252_v4 = vpack.c.bf16 %v12122_v34, %v12121_v22  ;;  %v13753_v22 = vrot.slane %v19239_v42, %v18504_v11 }
0x4bd2   :  { %v19354_v29 = vpop.eup %16726  ;;  %v13376_v39 = vmul.f32 1.442695, %v13375_v58 }
0x4bd3   :  { %v12864_v13 = vsel %vm469_vm5, %v19354_v29, 0.0  ;;  %v13541_v24 = vpop.xlane.xlu0 %13540  ;;  %v12870_v60 = vpop.permute.xlu1 %12869 }
0x4bd4   :  { %12865 = vadd.xlane.f32.xlu0 %v12864_v13  ;;  %v13542_v41 = vsub.f32 %v13538_v3, %v13541_v24  ;;  %16732 = vpow2.f32 %v13376_v39 }
0x4bd6   :  { %v13543_v36 = vmul.f32 1.442695, %v13542_v41  ;;  %v16729_v56 = vpop.eup %16728 }
0x4bd7   :  { %v13044_v37 = vsel %vm469_vm5, %v16729_v56, 0.0  ;;  %v12703_v33 = vpop.permute.xlu0 %12702 }
0x4bd8   :  { %16734 = vpow2.f32 %v13543_v36 }
0x4bda   :  { %v19362_v25 = vpop.eup %16730 }
0x4bdb   :  { %v13211_v61 = vsel %vm469_vm5, %v19362_v25, 0.0 }
0x4bde   :  { %v19365_v12 = vpop.eup %16732 }
0x4bdf   :  { %v13378_v46 = vsel %vm469_vm5, %v19365_v12, 0.0 }
0x4be1   :  { %13216 = vrot.lane.b32.xlu1 %v19257_v49, %s17109_s30 }
0x4be2   :  { %v19371_v45 = vpop.eup %16734 }
0x4be3   :  { %v13545_v48 = vsel %vm469_vm5, %v19371_v45, 0.0 }
0x4bea   :  { %13049 = vrot.lane.b32.xlu0 %v19257_v49, %s17108_s14 }
0x4c04   :  { %v12365_v43 = vpop.xlane.xlu1 %12364 }
0x4c05   :  { %16736 = vrcp.f32 %v12365_v43  ;;  %13045 = vadd.xlane.f32.xlu1 %v13044_v37 }
0x4c09   :  { %13379 = vadd.xlane.f32.xlu1 %v13378_v46  ;;  %13212 = vadd.xlane.f32.xlu0 %v13211_v61 }
0x4c0d   :  { %13546 = vadd.xlane.f32.xlu1 %v13545_v48 }
0x4c0f   :  { %v16737_v53 = vpop.eup %16736 }
0x4c10   :  { %v12367_v55 = vmul.f32 %v16737_v53, %v16721_v5 }
0x4c12   :  { %15804 = vmatmul.mubr.msk.f32.vlgmr.msra.gmra.mrb[148].mxu1 %vm469_vm5, %v12367_v55 }
0x4c13   :  { %15812 = vmatpush3.msra.mxu1 %v12536_v0  ;;  %15813 = vmatprep.mubr.msk.f32.mxu1 %vm17107_vm4, %v17106_v18 }
0x4c14   :  { %15821 = vmatprep.subr.mxu1 %v17106_v18 }
0x4c1e   :  { %13550 = vrot.lane.b32.xlu1 %v19257_v49, %s17114_s29 }
0x4c1f   :  { %13383 = vrot.lane.b32.xlu0 %v19257_v49, %s17113_s18 }
0x4c59   :  { %v12532_v21 = vpop.xlane.xlu0 %12531 }
0x4c5a   :  { %16738 = vrcp.f32 %v12532_v21 }
0x4c5d   :  { %v12699_v62 = vpop.xlane.xlu1 %12698 }
0x4c5e   :  { %16740 = vrcp.f32 %v12699_v62 }
0x4c61   :  { %v12866_v20 = vpop.xlane.xlu0 %12865  ;;  %v13217_v51 = vpop.permute.xlu1 %13216 }
0x4c62   :  { %16742 = vrcp.f32 %v12866_v20 }
0x4c64   :  { %v16739_v63 = vpop.eup %16738 }
0x4c65   :  { %v12534_v44 = vmul.f32 %v16739_v63, %v16723_v8  ;;  %v13050_v3 = vpop.permute.xlu0 %13049 }
0x4c67   :  { %15814 = vmatmul.mubr.msk.f32.vlgmr.msra.gmra.mrb[150].mxu1 %vm469_vm5, %v12534_v44 }
0x4c68   :  { %v16741_v23 = vpop.eup %16740  ;;  %15822 = vmatpush3.msra.mxu1 %v12703_v33  ;;  %15823 = vmatprep.mubr.msk.f32.mxu1 %vm17107_vm4, %v17106_v18 }
0x4c69   :  { %v12701_v19 = vmul.f32 %v16741_v23, %v16725_v31  ;;  %15831 = vmatprep.subr.mxu1 %v17106_v18 }
0x4c6b   :  { %15824 = vmatmul.mubr.msk.f32.vlgmr.msra.gmra.mrb[152].mxu1 %vm469_vm5, %v12701_v19 }
0x4c6c   :  { %v16743_v49 = vpop.eup %16742  ;;  %15832 = vmatpush3.msra.mxu1 %v12870_v60  ;;  %15833 = vmatprep.mubr.msk.f32.mxu1 %vm17107_vm4, %v17106_v18 }
0x4c6d   :  { %v12868_v2 = vmul.f32 %v16743_v49, %v19354_v29  ;;  %15841 = vmatprep.subr.mxu1 %v17106_v18 }
0x4c6f   :  { %15834 = vmatmul.mubr.msk.f32.vlgmr.msra.gmra.mrb[154].mxu1 %vm469_vm5, %v12868_v2 }
0x4c70   :  { %15842 = vmatpush3.msra.mxu1 %v13050_v3  ;;  %15843 = vmatprep.mubr.msk.f32.mxu1 %vm17107_vm4, %v17106_v18 }
0x4c71   :  { %15851 = vmatprep.subr.mxu1 %v17106_v18 }
0x4c92   :  { %v13046_v7 = vpop.xlane.xlu1 %13045 }
0x4c93   :  { %16744 = vrcp.f32 %v13046_v7 }
0x4c96   :  { %v13380_v1 = vpop.xlane.xlu1 %13379  ;;  %v13213_v9 = vpop.xlane.xlu0 %13212 }
0x4c97   :  { %16746 = vrcp.f32 %v13213_v9 }
0x4c98   :  { %16748 = vrcp.f32 %v13380_v1 }
0x4c9a   :  { %v13547_v5 = vpop.xlane.xlu1 %13546  ;;  %v13384_v16 = vpop.permute.xlu0 %13383 }
0x4c9b   :  { %16750 = vrcp.f32 %v13547_v5 }
0x4c9d   :  { %v16745_v50 = vpop.eup %16744 }
0x4c9e   :  { %v13048_v0 = vmul.f32 %v16745_v50, %v16729_v56  ;;  %v13551_v17 = vpop.permute.xlu1 %13550 }
0x4ca0   :  { %15844 = vmatmul.mubr.msk.f32.vlgmr.msra.gmra.mrb[156].mxu1 %vm469_vm5, %v13048_v0  ;;  %v13764_v0 = vld [vmem:[#allocation23 + $0x28] sm:$0xff] }
0x4ca1   :  { %15852 = vmatpush3.msra.mxu1 %v13217_v51  ;;  %15853 = vmatprep.mubr.msk.f32.mxu1 %vm17107_vm4, %v17106_v18  ;;  %v16747_v40 = vpop.eup %16746 }
0x4ca2   :  { %15861 = vmatprep.subr.mxu1 %v17106_v18  ;;  %v13215_v14 = vmul.f32 %v16747_v40, %v19362_v25  ;;  %v16749_v15 = vpop.eup %16748 }
0x4ca3   :  { %v13382_v54 = vmul.f32 %v16749_v15, %v19365_v12  ;;  %v13766_v15 = vld [vmem:[#allocation23 + $0x38] sm:$0xff] }
0x4ca4   :  { %15854 = vmatmul.mubr.msk.f32.vlgmr.msra.gmra.mrb[158].mxu1 %vm469_vm5, %v13215_v14  ;;  %v13765_v14 = vld [vmem:[#allocation23 + $0x30] sm:$0xff] }
0x4ca5   :  { %15862 = vmatpush3.msra.mxu1 %v13384_v16  ;;  %15863 = vmatprep.mubr.msk.f32.mxu1 %vm17107_vm4, %v17106_v18  ;;  %v16751_v59 = vpop.eup %16750  ;;  %v16260_v16 = vpack.c.bf16 %v13766_v15, %v13765_v14  ;;  %v13999_v14 = vld [vmem:[#allocation11 + $0x18] sm:$0xff] }
0x4ca6   :  { %15871 = vmatprep.subr.mxu1 %v17106_v18  ;;  %v13549_v26 = vmul.f32 %v16751_v59, %v19371_v45  ;;  %v14400_v59 = vld [vmem:[%s19509_s26 + $0x48] sm:$0xff] }
0x4ca8   :  { %15864 = vmatmul.mubr.msk.f32.vlgmr.msra.gmra.mrb[160].mxu1 %vm469_vm5, %v13382_v54  ;;  %v14399_v54 = vld [vmem:[%s19509_s26 + $0x40] sm:$0xff] }
0x4ca9   :  { %15872 = vmatpush3.msra.mxu1 %v13551_v17  ;;  %15873 = vmatprep.mubr.msk.f32.mxu1 %vm17107_vm4, %v17106_v18  ;;  %v12120_v18 = vld [vmem:[#allocation20 + $0x28] sm:$0xff] }
0x4caa   :  { %v16248_v28 = vpack.c.bf16 %v12120_v18, %v12119_v30  ;;  %v14401_v17 = vld [vmem:[%s19509_s26 + $0x50] sm:$0xff] }
0x4cac   :  { %15874 = vmatmul.mubr.msk.f32.vlgmr.msra.gmra.mrb[162].mxu1 %vm469_vm5, %v13549_v26  ;;  %16249 = vmatprep.subr.bf16.mxu0 %v16248_v28  ;;  %v16264_v26 = vpack.c.bf16 %v14400_v59, %v14399_v54 }
0x4cad   :  { %16251 = vmatpush3.bf16.msra.mxu0 %v16248_v28 }
0x4cae   :  { %16253 = vmatprep.subr.bf16.mxu0 %v16252_v4 }
0x4cb1   :  { %16255 = vmatpush3.bf16.msra.mxu0 %v16252_v4 }
0x4cb2   :  { %16265 = vmatprep.subr.bf16.mxu0 %v16264_v26 }
0x4ce5   :  { %v12440_v35 = vpop.f32.mrb[148].mxu1 }
0x4ce6   :  { %v15805_v8 = vpop.f32.mrb[149].mxu1 }
0x4d3a   :  { %v12607_v47 = vpop.f32.mrb[150].mxu1 }
0x4d3b   :  { %12946 = vrot.lane.b32.xlu0 %v12607_v47, %s17092_s10  ;;  %v15815_v31 = vpop.f32.mrb[151].mxu1  ;;  %v14403_v47 = vld [vmem:[%s19509_s26 + $0x60] sm:$0xff] }
0x4d3c   :  { %v14404_v31 = vld [vmem:[%s19509_s26 + $0x68] sm:$0xff] }
0x4d3e   :  { %v12774_v27 = vpop.f32.mrb[152].mxu1 }
0x4d3f   :  { %12950 = vrot.lane.b32.xlu1 %v12774_v27, %s19580_s20  ;;  %v15825_v29 = vpop.f32.mrb[153].mxu1  ;;  %v16272_v27 = vpack.c.bf16 %v14404_v31, %v14403_v47 }
0x4d42   :  { %v12941_v13 = vpop.f32.mrb[154].mxu1 }
0x4d43   :  { %12954 = vrot.lane.b32.xlu1 %v12941_v13, %s19581_s5  ;;  %v15835_v32 = vpop.f32.mrb[155].mxu1 }
0x4d73   :  { %v13121_v58 = vpop.f32.mrb[156].mxu1 }
0x4d74   :  { %v15845_v24 = vpop.f32.mrb[157].mxu1 }
0x4d77   :  { %v13288_v38 = vpop.f32.mrb[158].mxu1 }
0x4d78   :  { %13627 = vrot.lane.b32.xlu0 %v13288_v38, %s17092_s10  ;;  %v15855_v39 = vpop.f32.mrb[159].mxu1 }
0x4d7b   :  { %v13455_v41 = vpop.f32.mrb[160].mxu1 }
0x4d7c   :  { %13631 = vrot.lane.b32.xlu0 %v13455_v41, %s19580_s20  ;;  %v15865_v36 = vpop.f32.mrb[161].mxu1 }
0x4d7f   :  { %v13622_v60 = vpop.f32.mrb[162].mxu1 }
0x4d80   :  { %13635 = vrot.lane.b32.xlu1 %v13622_v60, %s19581_s5  ;;  %v15875_v56 = vpop.f32.mrb[163].mxu1 }
0x4d81   :  { %v14405_v56 = vld [vmem:[%s19509_s26 + $0x70] sm:$0xff] }
0x4dad   :  { %v12947_v25 = vpop.permute.xlu0 %12946 }
0x4dae   :  { %v12957_v37 = vsel %vm469_vm5, %v12440_v35, %v12947_v25  ;;  %v14402_v35 = vld [vmem:[%s19509_s26 + $0x58] sm:$0xff] }
0x4daf   :  { %v16268_v8 = vpack.c.bf16 %v14402_v35, %v14401_v17  ;;  %v14406_v25 = vld [vmem:[%s19509_s26 + $0x78] sm:$0xff] }
0x4db1   :  { %v12951_v43 = vpop.permute.xlu1 %12950 }
0x4db2   :  { %v12958_v12 = vsel %vm1147_vm7, %v12957_v37, %v12951_v43  ;;  %v16276_v43 = vpack.c.bf16 %v14406_v25, %v14405_v56 }
0x4db5   :  { %v12955_v46 = vpop.permute.xlu1 %12954 }
0x4db6   :  { %v12959_v61 = vsel %vm1149_vm8, %v12958_v12, %v12955_v46 }
0x4db7   :  { %15884 = vmatprep.mubr.msk.f32.mxu0 %vm384_vm3, %v12959_v61 }
0x4dea   :  { %v13628_v45 = vpop.permute.xlu0 %13627 }
0x4deb   :  { %v13638_v53 = vsel %vm469_vm5, %v13121_v58, %v13628_v45  ;;  %v13759_v58 = vrot.slane %v19243_v57, %v18504_v11  ;;  %v14396_v11 = vld [vmem:[%s19508_s25 + $0x1] ss:$0 sm:$0xff] }
0x4dee   :  { %v13632_v48 = vpop.permute.xlu0 %13631 }
0x4def   :  { %v13639_v55 = vsel %vm1147_vm7, %v13638_v53, %v13632_v48  ;;  %v14408_v53 = vld [vmem:[%s19510_s27 + $0x1] ss:$0 sm:$0xff] }
0x4df2   :  { %v13636_v33 = vpop.permute.xlu1 %13635 }
0x4df3   :  { %v13640_v21 = vsel %vm1149_vm8, %v13639_v55, %v13636_v33 }
0x4df4   :  { %15885 = vmatmul.mubr.msk.f32.vlgmr.msra.gmra.mrb[140].mxu0 %vm384_vm3, %v13640_v21 }
0x4df5   :  { %16267 = vmatpush3.bf16.msra.mxu0 %v16264_v26 }
0x4df6   :  { %16269 = vmatprep.subr.bf16.mxu0 %v16268_v8 }
0x4df9   :  { %16271 = vmatpush3.bf16.msra.mxu0 %v16268_v8  ;;  %v13987_v8 = vrot.slane %v19239_v42, %v18547_v10 }
0x4dfa   :  { %16273 = vmatprep.subr.bf16.mxu0 %v16272_v27 }
0x4dfd   :  { %16275 = vmatpush3.bf16.msra.mxu0 %v16272_v27 }
0x4dfe   :  { %16277 = vmatprep.subr.bf16.mxu0 %v16276_v43 }
0x4e01   :  { %16279 = vmatpush3.bf16.msra.mxu0 %v16276_v43 }
0x4ec7   :  { %v15886_v62 = vpop.f32.mrb[140].mxu0 }
0x4ec8   :  { %v13723_v20 = vadd.f32 %v15886_v62, %v19251_v6  ;;  %v13713_v63 = vpop.f32.mrb[141].mxu0 }
0x4ec9   :  { %v13722_v44 = vadd.f32 %v13713_v63, %v19247_v52  ;;  %v13763_v52 = vld [vmem:[#allocation23 + $0x20] sm:$0xff] }
0x4eca   :  { %v13727_v23 = vsel %vm384_vm3, %v13723_v20, 0.0  ;;  %v16256_v40 = vpack.c.bf16 %v13764_v0, %v13763_v52  ;;  %v13997_v52 = vld [vmem:[#allocation11 + $0x8] sm:$0xff] }
0x4ecb   :  { %13728 = vadd.xlane.f32.xlu1 %v13727_v23  ;;  %v13724_v19 = vsel %vm384_vm3, %v13722_v44, 0.0 }
0x4ecc   :  { %13725 = vadd.xlane.f32.xlu0 %v13724_v19  ;;  %16257 = vmatprep.subr.bf16.mxu1 %v16256_v40 }
0x4ecd   :  { %16259 = vmatpush3.bf16.msra.mxu1 %v16256_v40  ;;  %v13998_v40 = vld [vmem:[#allocation11 + $0x10] sm:$0xff] }
0x4ece   :  { %16261 = vmatprep.subr.bf16.mxu1 %v16260_v16  ;;  %v16284_v15 = vpack.c.bf16 %v13999_v14, %v13998_v40 }
0x4ed1   :  { %16263 = vmatpush3.bf16.msra.mxu1 %v16260_v16 }
0x4f58   :  { %v13729_v49 = vpop.xlane.xlu1 %13728 }
0x4f59   :  { %v13731_v2 = vmul.f32 0.03125, %v13729_v49  ;;  %v13726_v3 = vpop.xlane.xlu0 %13725 }
0x4f5a   :  { %v13730_v51 = vmul.f32 0.03125, %v13726_v3 }
0x4f5b   :  { %v13733_v7 = vsub.f32 %v13723_v20, %v13731_v2 }
0x4f5c   :  { %v13732_v1 = vsub.f32 %v13722_v44, %v13730_v51 }
0x4f5d   :  { %v13735_v50 = vmul.f32 %v13733_v7, %v13733_v7 }
0x4f5e   :  { %v13734_v9 = vmul.f32 %v13732_v1, %v13732_v1 }
0x4f5f   :  { %v13739_v6 = vsel %vm384_vm3, %v13735_v50, 0.0 }
0x4f60   :  { %v13736_v5 = vsel %vm384_vm3, %v13734_v9, 0.0 }
0x4f61   :  { %13737 = vadd.xlane.f32.xlu0 %v13736_v5 }
0x4f65   :  { %13740 = vadd.xlane.f32.xlu0 %v13739_v6  ;;  %v13996_v6 = vld [vmem:[#allocation11] sm:$0xff] }
0x4f66   :  { %v16280_v0 = vpack.c.bf16 %v13997_v52, %v13996_v6 }
0x4f68   :  { %16281 = vmatprep.subr.bf16.mxu1 %v16280_v0 }
0x4fee   :  { %v13738_v29 = vpop.xlane.xlu0 %13737 }
0x4fef   :  { %v13742_v13 = vmul.f32 0.03125, %v13738_v29 }
0x4ff1   :  { %v13744_v32 = vadd.f32 1e-05, %v13742_v13  ;;  %v13993_v13 = vrot.slane %v19243_v57, %v18547_v10 }
0x4ff2   :  { %v13741_v30 = vpop.xlane.xlu0 %13740 }
0x4ff3   :  { %16752 = vrsqrt.f32 %v13744_v32  ;;  %v13743_v18 = vmul.f32 0.03125, %v13741_v30 }
0x4ff5   :  { %v13745_v28 = vadd.f32 1e-05, %v13743_v18 }
0x4ff7   :  { %16754 = vrsqrt.f32 %v13745_v28 }
0x4ffd   :  { %v16753_v34 = vpop.eup %16752 }
0x4ffe   :  { %v13748_v4 = vmul.f32 %v16753_v34, %v13732_v1 }
0x5000   :  { %v13754_v24 = vmul.f32 %v13753_v22, %v13748_v4 }
0x5001   :  { %v16755_v38 = vpop.eup %16754 }
0x5002   :  { %v13749_v39 = vmul.f32 %v16755_v38, %v13733_v7  ;;  %v13760_v41 = vadd.f32 %v13759_v58, %v13754_v24 }
0x5004   :  { %v13755_v36 = vmul.f32 %v13753_v22, %v13749_v39  ;;  %15895 = vmatprep.mubr.msk.f32.mxu1 %vm384_vm3, %v13760_v41  ;;  %v14411_v22 = vld [vmem:[#allocation13] ss:$0 sm:$0xff] }
0x5006   :  { %v13761_v60 = vadd.f32 %v13759_v58, %v13755_v36 }
0x5008   :  { %15896 = vmatmul.mubr.msk.f32.vlgmr.msra.gmra.mrb[164].mxu1 %vm384_vm3, %v13761_v60 }
0x5009   :  { %16283 = vmatpush3.bf16.msra.mxu1 %v16280_v0 }
0x500a   :  { %16285 = vmatprep.subr.bf16.mxu1 %v16284_v15 }
0x500d   :  { %16287 = vmatpush3.bf16.msra.mxu1 %v16284_v15 }
0x50db   :  { %v15897_v37 = vpop.f32.mrb[164].mxu1 }
0x50dc   :  { %v13853_v12 = vadd.f32 %v15897_v37, %v14396_v11  ;;  %v13847_v46 = vpop.f32.mrb[165].mxu1 }
0x50dd   :  { %v13848_v61 = vadd.f32 %v14396_v11, %v13847_v46 }
0x50de   :  { %v13857_v48 = vmax.f32 %v13853_v12, 0.0 }
0x50df   :  { %v13856_v45 = vmax.f32 %v13848_v61, 0.0 }
0x50e1   :  { %15914 = vmatprep.mubr.msk.f32.mxu0 %vm281_vm0, %v13856_v45 }
0x50e2   :  { %15915 = vmatmul.mubr.msk.f32.vlgmr.msra.gmra.mrb[142].mxu0 %vm281_vm0, %v13857_v48 }
0x51b5   :  { %v15916_v55 = vpop.f32.mrb[142].mxu0 }
0x51b6   :  { %v13953_v33 = vadd.f32 %v15916_v55, %v14408_v53  ;;  %v13947_v21 = vpop.f32.mrb[143].mxu0 }
0x51b7   :  { %v13948_v62 = vadd.f32 %v14408_v53, %v13947_v21 }
0x51b8   :  { %v13957_v20 = vadd.f32 %v13953_v33, %v13761_v60 }
0x51b9   :  { %v13956_v63 = vadd.f32 %v13948_v62, %v13760_v41 }
0x51ba   :  { %v13961_v44 = vsel %vm384_vm3, %v13957_v20, 0.0 }
0x51bb   :  { %13962 = vadd.xlane.f32.xlu0 %v13961_v44  ;;  %v13958_v23 = vsel %vm384_vm3, %v13956_v63, 0.0 }
0x51bc   :  { %13959 = vadd.xlane.f32.xlu1 %v13958_v23 }
0x5248   :  { %v13963_v19 = vpop.xlane.xlu0 %13962 }
0x5249   :  { %v13965_v49 = vmul.f32 0.03125, %v13963_v19  ;;  %v13960_v2 = vpop.xlane.xlu1 %13959 }
0x524a   :  { %v13964_v3 = vmul.f32 0.03125, %v13960_v2 }
0x524b   :  { %v13967_v51 = vsub.f32 %v13957_v20, %v13965_v49 }
0x524c   :  { %v13966_v7 = vsub.f32 %v13956_v63, %v13964_v3 }
0x524d   :  { %v13969_v1 = vmul.f32 %v13967_v51, %v13967_v51 }
0x524e   :  { %v13968_v9 = vmul.f32 %v13966_v7, %v13966_v7 }
0x524f   :  { %v13973_v5 = vsel %vm384_vm3, %v13969_v1, 0.0 }
0x5250   :  { %13974 = vadd.xlane.f32.xlu0 %v13973_v5  ;;  %v13970_v50 = vsel %vm384_vm3, %v13968_v9, 0.0 }
0x5251   :  { %13971 = vadd.xlane.f32.xlu1 %v13970_v50 }
0x52dd   :  { %v13975_v16 = vpop.xlane.xlu0 %13974 }
0x52de   :  { %v13977_v54 = vmul.f32 0.03125, %v13975_v16  ;;  %v13972_v59 = vpop.xlane.xlu1 %13971 }
0x52df   :  { %v13976_v17 = vmul.f32 0.03125, %v13972_v59 }
0x52e0   :  { %v13979_v26 = vadd.f32 1e-05, %v13977_v54 }
0x52e1   :  { %v13978_v35 = vadd.f32 1e-05, %v13976_v17 }
0x52e2   :  { %16756 = vrsqrt.f32 %v13979_v26 }
0x52e3   :  { %16758 = vrsqrt.f32 %v13978_v35 }
0x52ec   :  { %v16757_v47 = vpop.eup %16756 }
0x52ed   :  { %v16759_v31 = vpop.eup %16758  ;;  %v13983_v27 = vmul.f32 %v16757_v47, %v13967_v51 }
0x52ee   :  { %v13982_v29 = vmul.f32 %v16759_v31, %v13966_v7 }
0x52ef   :  { %v13989_v32 = vmul.f32 %v13987_v8, %v13983_v27 }
0x52f0   :  { %v13988_v30 = vmul.f32 %v13987_v8, %v13982_v29 }
0x52f1   :  { %v13995_v28 = vadd.f32 %v13993_v13, %v13989_v32 }
0x52f2   :  { %v13994_v18 = vadd.f32 %v13993_v13, %v13988_v30 }
0x52f4   :  { %15925 = vmatprep.mubr.msk.f32.mxu1 %vm384_vm3, %v13994_v18 }
0x52f5   :  { %15926 = vmatmul.mubr.msk.f32.vlgmr.msra.gmra.mrb[166].mxu1 %vm384_vm3, %v13995_v28 }
0x53c8   :  { %v15927_v34 = vpop.f32.mrb[166].mxu1 }
0x53c9   :  { %v14085_v4 = vadd.f32 %v15927_v34, %v14411_v22  ;;  %v14079_v58 = vpop.f32.mrb[167].mxu1 }
0x53ca   :  { %v14080_v42 = vadd.f32 %v14411_v22, %v14079_v58 }
0x53cb   :  { %14089 = vst [vmem:[%s19511_s28 + $0x8] sm:$0xff] %v14085_v4 }
0x53cc   :  { %14088 = vst [vmem:[%s19511_s28] sm:$0xff] %v14080_v42 }
0x53cd   :  { %14094 = vsyncpa [#allocation7], 1 }
0x53ce   :  { %14095 = vsyncpa [#allocation9], 1 }
0x53cf   :  { %14096 = vsyncpa [#allocation12], 1 }
0x53d0   :  { %14097 = vsyncpa [#allocation15], 1 }
0x53d1   :  { %14098 = vsyncpa [#allocation18], 1 }
0x53d2   :  { %14099 = vsyncpa [#allocation21], 1 }
0x53d3   :  { %14100 = vsyncpa [#allocation24], 1 }

</bundles_post_ra>
